<compile_context>
chip_gen: v7x
topology: tpu7x:2x2x1
jax: 0.10.0
libtpu: 0.0.40
codegen_flags: <defaults>
</compile_context>

<pallas_src>
import functools
import math

import numpy as np
import jax
import jax.numpy as jnp
from jax import lax
from jax.experimental import pallas as pl
from jax.experimental.pallas import tpu as pltpu  # noqa: F401  (TPU backend)

# ----------------------------- model hyper-params -----------------------------
B = 2            # batch
L_ENC = 8        # encoder sequence length
L_DEC = 8        # decoder sequence length
D_MODEL = 32
D_K = 8
D_V = 8
N_HEADS = 4
D_FF = 64
N_LAYERS_ENC = 2
N_LAYERS_DEC = 2
MAX_SEQ_LEN = 16
TGT_VOCAB = 50
VOCAB_PAD = 128  # lane-dense padded width for the final projection
LN_EPS = 1e-5    # nn.LayerNorm default


# ============================ in-kernel math helpers ===========================

def _layer_norm(y, g, b, eps):
    mean = jnp.mean(y, axis=-1, keepdims=True)
    cen = y - mean
    var = jnp.mean(cen * cen, axis=-1, keepdims=True)
    return cen * lax.rsqrt(var + eps) * g + b


def _mha_sublayer(x_q, x_kv, p, mask_bias, *, n_heads, d_k, d_v, self_attn, eps):
    """Multi-head attention + residual + LayerNorm on the whole batch at once.

    x_q: (B, Lq, D)   x_kv: (B, Lk, D)   mask_bias: (B, Lq, Lk) f32 or None.
    """
    Bb, Lq, D = x_q.shape
    Lk = x_kv.shape[1]
    hk = n_heads * d_k
    hv = n_heads * d_v

    xq_flat = x_q.reshape(Bb * Lq, D)
    wqkv, bqkv = p["wqkv"], p["bqkv"]
    if self_attn:
        # One MXU matmul produces Q, K and V for all heads of the whole batch.
        qkv = jnp.dot(xq_flat, wqkv, preferred_element_type=jnp.float32) + bqkv
        q = qkv[:, :hk].reshape(Bb, Lq, hk)
        k = qkv[:, hk:2 * hk].reshape(Bb, Lq, hk)
        v = qkv[:, 2 * hk:2 * hk + hv].reshape(Bb, Lq, hv)
    else:
        xkv_flat = x_kv.reshape(Bb * Lk, D)
        q = (jnp.dot(xq_flat, wqkv[:, :hk],
                     preferred_element_type=jnp.float32) + bqkv[:, :hk]
             ).reshape(Bb, Lq, hk)
        k = (jnp.dot(xkv_flat, wqkv[:, hk:2 * hk],
                     preferred_element_type=jnp.float32) + bqkv[:, hk:2 * hk]
             ).reshape(Bb, Lk, hk)
        v = (jnp.dot(xkv_flat, wqkv[:, 2 * hk:2 * hk + hv],
                     preferred_element_type=jnp.float32) + bqkv[:, 2 * hk:2 * hk + hv]
             ).reshape(Bb, Lk, hv)

    scale = 1.0 / math.sqrt(d_k)

    # Per-head scores (batched over B), stacked along the sublane axis so the
    # softmax (max / exp / sum / reciprocal) runs ONCE for all heads.
    s_list = []
    for h in range(n_heads):
        q_h = q[:, :, h * d_k:(h + 1) * d_k]
        k_h = k[:, :, h * d_k:(h + 1) * d_k]
        s_h = jnp.einsum("bqd,bkd->bqk", q_h, k_h,
                         preferred_element_type=jnp.float32) * scale
        if mask_bias is not None:
            s_h = s_h + mask_bias          # additive -1e9 bias (masked_fill equiv.)
        s_list.append(s_h)
    s_all = jnp.concatenate(s_list, axis=1)                 # (B, H*Lq, Lk)
    s_max = jnp.max(s_all, axis=-1, keepdims=True)
    e = jnp.exp(s_all - s_max)
    inv_denom = pl.reciprocal(jnp.sum(e, axis=-1, keepdims=True), approx=True)
    p_all = e * inv_denom

    ctx_list = []
    for h in range(n_heads):
        p_h = p_all[:, h * Lq:(h + 1) * Lq, :]
        v_h = v[:, :, h * d_v:(h + 1) * d_v]
        ctx_list.append(jnp.einsum("bqk,bkd->bqd", p_h, v_h,
                                   preferred_element_type=jnp.float32))
    ctx = jnp.concatenate(ctx_list, axis=-1).reshape(Bb * Lq, hv)  # (B*Lq, H*dv)

    # Single concatenated output projection + residual + LayerNorm epilogue.
    out = (jnp.dot(ctx, p["wo"], preferred_element_type=jnp.float32)
           + p["bo"] + xq_flat)
    out = _layer_norm(out, p["ln_g"], p["ln_b"], eps)
    return out.reshape(Bb, Lq, D)


def _ffn_sublayer(x, p, *, eps):
    """relu(x@w1+b1)@w2+b2 + residual, then LayerNorm, on the flattened batch."""
    Bb, L, D = x.shape
    flat = x.reshape(Bb * L, D)
    h = jnp.dot(flat, p["w1"], preferred_element_type=jnp.float32) + p["b1"]
    h = jnp.maximum(h, 0.0)
    y = jnp.dot(h, p["w2"], preferred_element_type=jnp.float32) + p["b2"] + flat
    y = _layer_norm(y, p["ln_g"], p["ln_b"], eps)
    return y.reshape(Bb, L, D)


# ============================ the single fused kernel ==========================

def _transformer_kernel(treedef, n_leaves, *refs, n_heads, d_k, d_v, eps):
    enc_in_ref, dec_emb_ref, mask_ref = refs[0], refs[1], refs[2]
    w_refs = refs[3:3 + n_leaves]
    logits_ref = refs[3 + n_leaves]

    # Load every (tiny) weight once — VMEM-resident for the whole forward pass.
    w = jax.tree_util.tree_unflatten(treedef, [r[...] for r in w_refs])
    mask_bias = mask_ref[...]                     # (B, Ld, Ld) additive f32 bias

    # ---------------------------------- encoder --------------------------------
    enc_out = enc_in_ref[...]                     # (B, Le, D); inputs already d_model
    for lp in w["enc_layers"]:
        enc_out = _mha_sublayer(enc_out, enc_out, lp["self_attn"], None,
                                n_heads=n_heads, d_k=d_k, d_v=d_v,
                                self_attn=True, eps=eps)
        enc_out = _ffn_sublayer(enc_out, lp["ffn"], eps=eps)

    # ---------------------------------- decoder --------------------------------
    dec_out = dec_emb_ref[...]                    # (B, Ld, D) embedding + pos enc
    for lp in w["dec_layers"]:
        dec_out = _mha_sublayer(dec_out, dec_out, lp["self_attn"], mask_bias,
                                n_heads=n_heads, d_k=d_k, d_v=d_v,
                                self_attn=True, eps=eps)
        dec_out = _mha_sublayer(dec_out, enc_out, lp["enc_attn"], None,
                                n_heads=n_heads, d_k=d_k, d_v=d_v,
                                self_attn=False, eps=eps)   # enc_attn_mask=None
        dec_out = _ffn_sublayer(dec_out, lp["ffn"], eps=eps)

    # --------- final vocab projection (bias-free, lane-dense 128 wide) ---------
    Bb, Ld, D = dec_out.shape
    flat = dec_out.reshape(Bb * Ld, D)
    logits_ref[...] = jnp.dot(flat, w["proj_w_pad"],
                              preferred_element_type=jnp.float32)


# ============================== positional encoding ============================

def pos_encoding_table(n_position, d_model):
    pos = np.arange(n_position)[:, None].astype(np.float64)
    j = np.arange(d_model)[None, :]
    angle = pos / np.power(10000.0, 2.0 * (j // 2) / d_model)
    table = np.zeros((n_position, d_model), dtype=np.float64)
    table[:, 0::2] = np.sin(angle[:, 0::2])
    table[:, 1::2] = np.cos(angle[:, 1::2])
    table = np.concatenate([np.zeros((1, d_model)), table], axis=0)  # pad row 0
    return jnp.asarray(table.astype(np.float32))


def pos_encode(table, lengths, max_len):
    # input_pos[b, t] = t+1 if t < len[b] else 0  (0 is the zero pad row)
    t = jnp.arange(max_len)[None, :]
    pos = jnp.where(t < lengths[:, None], t + 1, 0)
    return jnp.take(table, pos, axis=0)  # (B, max_len, D)


# ============================== transformer forward ============================

def _kernel_weights(params):
    """Reshape params into the 2-D-only pytree the kernel consumes."""
    def v2(x):
        return x.reshape(1, -1)

    def attn(p):
        return dict(wqkv=p["wqkv"], bqkv=v2(p["bqkv"]), wo=p["wo"], bo=v2(p["bo"]),
                    ln_g=v2(p["ln_g"]), ln_b=v2(p["ln_b"]))

    def ffn(p):
        return dict(w1=p["w1"], b1=v2(p["b1"]), w2=p["w2"], b2=v2(p["b2"]),
                    ln_g=v2(p["ln_g"]), ln_b=v2(p["ln_b"]))

    return dict(
        enc_layers=[dict(self_attn=attn(l["self_attn"]), ffn=ffn(l["ffn"]))
                    for l in params["enc_layers"]],
        dec_layers=[dict(self_attn=attn(l["self_attn"]),
                         enc_attn=attn(l["enc_attn"]), ffn=ffn(l["ffn"]))
                    for l in params["dec_layers"]],
        proj_w_pad=params["proj_w_pad"],
    )


@jax.jit
def transformer_forward(params, enc_inputs, dec_inputs, dec_inputs_len):
    Bb, Le, D = enc_inputs.shape
    Ld = dec_inputs.shape[1]

    # ----- cheap XLA glue: embedding, positional encoding, additive mask -------
    dec_emb = jnp.take(params["tgt_emb"], dec_inputs, axis=0)
    dec_emb = dec_emb + pos_encode(params["pos_table"], dec_inputs_len, Ld)
    # TODO(synk): nn.Dropout layers are treated as identity (inference semantics).

    pad = (dec_inputs == 0).astype(jnp.int32)[:, None, :]            # (B,1,Ld)
    pad = jnp.broadcast_to(pad, (Bb, Ld, Ld))
    sub = jnp.triu(jnp.ones((Ld, Ld), jnp.int32), k=1)[None, :, :]
    masked = (pad + sub) > 0                                         # (B,Ld,Ld)
    mask_bias = jnp.where(masked, jnp.float32(-1e9), jnp.float32(0.0))

    # ----- one fused pallas_call for the entire encoder+decoder+projection -----
    weights = _kernel_weights(params)
    leaves, treedef = jax.tree_util.tree_flatten(weights)

    kernel = functools.partial(_transformer_kernel, treedef, len(leaves),
                               n_heads=N_HEADS, d_k=D_K, d_v=D_V, eps=LN_EPS)

    logits_pad = pl.pallas_call(
        kernel,
        out_shape=jax.ShapeDtypeStruct((Bb * Ld, VOCAB_PAD), jnp.float32),
    )(enc_inputs, dec_emb, mask_bias, *leaves)

    logits_flat = logits_pad[:, :TGT_VOCAB]
    dec_logits = logits_flat.reshape(Bb, Ld, TGT_VOCAB)
    return logits_flat, dec_logits


# ================================ parameter init ===============================

def init_params(key):
    keys = list(jax.random.split(key, 64))
    it = iter(keys)

    def w(shape, scale=0.02):
        return scale * jax.random.normal(next(it), shape, dtype=jnp.float32)

    def zeros(shape):
        return jnp.zeros(shape, jnp.float32)

    def attn_params():
        wq = w((D_MODEL, N_HEADS * D_K))
        wk = w((D_MODEL, N_HEADS * D_K))
        wv = w((D_MODEL, N_HEADS * D_V))
        return dict(
            wqkv=jnp.concatenate([wq, wk, wv], axis=1),       # (D, H*(2dk+dv))
            bqkv=zeros((N_HEADS * (2 * D_K + D_V),)),
            wo=w((N_HEADS * D_V, D_MODEL)), bo=zeros((D_MODEL,)),
            ln_g=jnp.ones((D_MODEL,), jnp.float32), ln_b=zeros((D_MODEL,)),
        )

    def ffn_params():
        return dict(
            w1=w((D_MODEL, D_FF)), b1=zeros((D_FF,)),
            w2=w((D_FF, D_MODEL)), b2=zeros((D_MODEL,)),
            ln_g=jnp.ones((D_MODEL,), jnp.float32), ln_b=zeros((D_MODEL,)),
        )

    enc_layers = [dict(self_attn=attn_params(), ffn=ffn_params())
                  for _ in range(N_LAYERS_ENC)]
    dec_layers = [dict(self_attn=attn_params(), enc_attn=attn_params(),
                       ffn=ffn_params()) for _ in range(N_LAYERS_DEC)]

    tgt_emb = w((TGT_VOCAB, D_MODEL))
    tgt_emb = tgt_emb.at[0].set(0.0)          # padding_idx=0

    proj_w = w((D_MODEL, TGT_VOCAB))
    proj_w_pad = jnp.pad(proj_w, ((0, 0), (0, VOCAB_PAD - TGT_VOCAB)))

    return dict(
        enc_layers=enc_layers,
        dec_layers=dec_layers,
        tgt_emb=tgt_emb,
        proj_w_pad=proj_w_pad,
        pos_table=pos_encoding_table(MAX_SEQ_LEN * 10, D_MODEL),
    )


# ===================================== main ====================================

if __name__ == "__main__":
    key = jax.random.PRNGKey(0)
    k_param, k_enc, k_tok = jax.random.split(key, 3)

    params = init_params(k_param)

    # encoder input: continuous features already in d_model space
    enc_inputs = jax.random.normal(k_enc, (B, L_ENC, D_MODEL), jnp.float32)

    # decoder input: token ids with trailing padding (id 0) on the second sequence
    dec_lens = jnp.array([L_DEC, L_DEC - 2], jnp.int32)
    toks = jax.random.randint(k_tok, (B, L_DEC), 1, TGT_VOCAB, jnp.int32)
    t_idx = jnp.arange(L_DEC)[None, :]
    dec_inputs = jnp.where(t_idx < dec_lens[:, None], toks, 0)

    logits_flat, dec_logits = transformer_forward(params, enc_inputs,
                                                  dec_inputs, dec_lens)
    jax.block_until_ready((logits_flat, dec_logits))

    assert logits_flat.shape == (B * L_DEC, TGT_VOCAB)
    assert dec_logits.shape == (B, L_DEC, TGT_VOCAB)
    assert bool(jnp.all(jnp.isfinite(dec_logits)))
    print("KERNEL_OK")
</pallas_src>

<mosaic_0001>
module attributes {stable_mosaic.version = 11 : i64} {
  func.func @_transformer_kernel(%arg0: memref<2x8x32xf32, #tpu.memory_space<vmem>>, %arg1: memref<2x8x32xf32, #tpu.memory_space<vmem>>, %arg2: memref<2x8x8xf32, #tpu.memory_space<vmem>>, %arg3: memref<1x32xf32, #tpu.memory_space<vmem>>, %arg4: memref<1x96xf32, #tpu.memory_space<vmem>>, %arg5: memref<1x32xf32, #tpu.memory_space<vmem>>, %arg6: memref<1x32xf32, #tpu.memory_space<vmem>>, %arg7: memref<32x32xf32, #tpu.memory_space<vmem>>, %arg8: memref<32x96xf32, #tpu.memory_space<vmem>>, %arg9: memref<1x64xf32, #tpu.memory_space<vmem>>, %arg10: memref<1x32xf32, #tpu.memory_space<vmem>>, %arg11: memref<1x32xf32, #tpu.memory_space<vmem>>, %arg12: memref<1x32xf32, #tpu.memory_space<vmem>>, %arg13: memref<32x64xf32, #tpu.memory_space<vmem>>, %arg14: memref<64x32xf32, #tpu.memory_space<vmem>>, %arg15: memref<1x32xf32, #tpu.memory_space<vmem>>, %arg16: memref<1x96xf32, #tpu.memory_space<vmem>>, %arg17: memref<1x32xf32, #tpu.memory_space<vmem>>, %arg18: memref<1x32xf32, #tpu.memory_space<vmem>>, %arg19: memref<32x32xf32, #tpu.memory_space<vmem>>, %arg20: memref<32x96xf32, #tpu.memory_space<vmem>>, %arg21: memref<1x32xf32, #tpu.memory_space<vmem>>, %arg22: memref<1x96xf32, #tpu.memory_space<vmem>>, %arg23: memref<1x32xf32, #tpu.memory_space<vmem>>, %arg24: memref<1x32xf32, #tpu.memory_space<vmem>>, %arg25: memref<32x32xf32, #tpu.memory_space<vmem>>, %arg26: memref<32x96xf32, #tpu.memory_space<vmem>>, %arg27: memref<1x64xf32, #tpu.memory_space<vmem>>, %arg28: memref<1x32xf32, #tpu.memory_space<vmem>>, %arg29: memref<1x32xf32, #tpu.memory_space<vmem>>, %arg30: memref<1x32xf32, #tpu.memory_space<vmem>>, %arg31: memref<32x64xf32, #tpu.memory_space<vmem>>, %arg32: memref<64x32xf32, #tpu.memory_space<vmem>>, %arg33: memref<1x32xf32, #tpu.memory_space<vmem>>, %arg34: memref<1x96xf32, #tpu.memory_space<vmem>>, %arg35: memref<1x32xf32, #tpu.memory_space<vmem>>, %arg36: memref<1x32xf32, #tpu.memory_space<vmem>>, %arg37: memref<32x32xf32, #tpu.memory_space<vmem>>, %arg38: memref<32x96xf32, #tpu.memory_space<vmem>>, %arg39: memref<1x64xf32, #tpu.memory_space<vmem>>, %arg40: memref<1x32xf32, #tpu.memory_space<vmem>>, %arg41: memref<1x32xf32, #tpu.memory_space<vmem>>, %arg42: memref<1x32xf32, #tpu.memory_space<vmem>>, %arg43: memref<32x64xf32, #tpu.memory_space<vmem>>, %arg44: memref<64x32xf32, #tpu.memory_space<vmem>>, %arg45: memref<1x32xf32, #tpu.memory_space<vmem>>, %arg46: memref<1x96xf32, #tpu.memory_space<vmem>>, %arg47: memref<1x32xf32, #tpu.memory_space<vmem>>, %arg48: memref<1x32xf32, #tpu.memory_space<vmem>>, %arg49: memref<32x32xf32, #tpu.memory_space<vmem>>, %arg50: memref<32x96xf32, #tpu.memory_space<vmem>>, %arg51: memref<1x64xf32, #tpu.memory_space<vmem>>, %arg52: memref<1x32xf32, #tpu.memory_space<vmem>>, %arg53: memref<1x32xf32, #tpu.memory_space<vmem>>, %arg54: memref<1x32xf32, #tpu.memory_space<vmem>>, %arg55: memref<32x64xf32, #tpu.memory_space<vmem>>, %arg56: memref<64x32xf32, #tpu.memory_space<vmem>>, %arg57: memref<1x32xf32, #tpu.memory_space<vmem>>, %arg58: memref<1x96xf32, #tpu.memory_space<vmem>>, %arg59: memref<1x32xf32, #tpu.memory_space<vmem>>, %arg60: memref<1x32xf32, #tpu.memory_space<vmem>>, %arg61: memref<32x32xf32, #tpu.memory_space<vmem>>, %arg62: memref<32x96xf32, #tpu.memory_space<vmem>>, %arg63: memref<32x128xf32, #tpu.memory_space<vmem>>, %arg64: memref<16x128xf32, #tpu.memory_space<vmem>>) attributes {dimension_semantics = [], scalar_prefetch = 0 : i64, scratch_operands = 0 : i64, tpu.core_type = #tpu.core_type<tc>} {
    %c0 = arith.constant 0 : index
    %c0_0 = arith.constant 0 : index
    %0 = vector.load %arg3[%c0, %c0_0] : memref<1x32xf32, #tpu.memory_space<vmem>>, vector<1x32xf32>
    %c0_1 = arith.constant 0 : index
    %c0_2 = arith.constant 0 : index
    %1 = vector.load %arg4[%c0_1, %c0_2] : memref<1x96xf32, #tpu.memory_space<vmem>>, vector<1x96xf32>
    %c0_3 = arith.constant 0 : index
    %c0_4 = arith.constant 0 : index
    %2 = vector.load %arg5[%c0_3, %c0_4] : memref<1x32xf32, #tpu.memory_space<vmem>>, vector<1x32xf32>
    %c0_5 = arith.constant 0 : index
    %c0_6 = arith.constant 0 : index
    %3 = vector.load %arg6[%c0_5, %c0_6] : memref<1x32xf32, #tpu.memory_space<vmem>>, vector<1x32xf32>
    %c0_7 = arith.constant 0 : index
    %c0_8 = arith.constant 0 : index
    %4 = vector.load %arg7[%c0_7, %c0_8] : memref<32x32xf32, #tpu.memory_space<vmem>>, vector<32x32xf32>
    %c0_9 = arith.constant 0 : index
    %c0_10 = arith.constant 0 : index
    %5 = vector.load %arg8[%c0_9, %c0_10] : memref<32x96xf32, #tpu.memory_space<vmem>>, vector<32x96xf32>
    %c0_11 = arith.constant 0 : index
    %c0_12 = arith.constant 0 : index
    %6 = vector.load %arg9[%c0_11, %c0_12] : memref<1x64xf32, #tpu.memory_space<vmem>>, vector<1x64xf32>
    %c0_13 = arith.constant 0 : index
    %c0_14 = arith.constant 0 : index
    %7 = vector.load %arg10[%c0_13, %c0_14] : memref<1x32xf32, #tpu.memory_space<vmem>>, vector<1x32xf32>
    %c0_15 = arith.constant 0 : index
    %c0_16 = arith.constant 0 : index
    %8 = vector.load %arg11[%c0_15, %c0_16] : memref<1x32xf32, #tpu.memory_space<vmem>>, vector<1x32xf32>
    %c0_17 = arith.constant 0 : index
    %c0_18 = arith.constant 0 : index
    %9 = vector.load %arg12[%c0_17, %c0_18] : memref<1x32xf32, #tpu.memory_space<vmem>>, vector<1x32xf32>
    %c0_19 = arith.constant 0 : index
    %c0_20 = arith.constant 0 : index
    %10 = vector.load %arg13[%c0_19, %c0_20] : memref<32x64xf32, #tpu.memory_space<vmem>>, vector<32x64xf32>
    %c0_21 = arith.constant 0 : index
    %c0_22 = arith.constant 0 : index
    %11 = vector.load %arg14[%c0_21, %c0_22] : memref<64x32xf32, #tpu.memory_space<vmem>>, vector<64x32xf32>
    %c0_23 = arith.constant 0 : index
    %c0_24 = arith.constant 0 : index
    %12 = vector.load %arg15[%c0_23, %c0_24] : memref<1x32xf32, #tpu.memory_space<vmem>>, vector<1x32xf32>
    %c0_25 = arith.constant 0 : index
    %c0_26 = arith.constant 0 : index
    %13 = vector.load %arg16[%c0_25, %c0_26] : memref<1x96xf32, #tpu.memory_space<vmem>>, vector<1x96xf32>
    %c0_27 = arith.constant 0 : index
    %c0_28 = arith.constant 0 : index
    %14 = vector.load %arg17[%c0_27, %c0_28] : memref<1x32xf32, #tpu.memory_space<vmem>>, vector<1x32xf32>
    %c0_29 = arith.constant 0 : index
    %c0_30 = arith.constant 0 : index
    %15 = vector.load %arg18[%c0_29, %c0_30] : memref<1x32xf32, #tpu.memory_space<vmem>>, vector<1x32xf32>
    %c0_31 = arith.constant 0 : index
    %c0_32 = arith.constant 0 : index
    %16 = vector.load %arg19[%c0_31, %c0_32] : memref<32x32xf32, #tpu.memory_space<vmem>>, vector<32x32xf32>
    %c0_33 = arith.constant 0 : index
    %c0_34 = arith.constant 0 : index
    %17 = vector.load %arg20[%c0_33, %c0_34] : memref<32x96xf32, #tpu.memory_space<vmem>>, vector<32x96xf32>
    %c0_35 = arith.constant 0 : index
    %c0_36 = arith.constant 0 : index
    %18 = vector.load %arg21[%c0_35, %c0_36] : memref<1x32xf32, #tpu.memory_space<vmem>>, vector<1x32xf32>
    %c0_37 = arith.constant 0 : index
    %c0_38 = arith.constant 0 : index
    %19 = vector.load %arg22[%c0_37, %c0_38] : memref<1x96xf32, #tpu.memory_space<vmem>>, vector<1x96xf32>
    %c0_39 = arith.constant 0 : index
    %c0_40 = arith.constant 0 : index
    %20 = vector.load %arg23[%c0_39, %c0_40] : memref<1x32xf32, #tpu.memory_space<vmem>>, vector<1x32xf32>
    %c0_41 = arith.constant 0 : index
    %c0_42 = arith.constant 0 : index
    %21 = vector.load %arg24[%c0_41, %c0_42] : memref<1x32xf32, #tpu.memory_space<vmem>>, vector<1x32xf32>
    %c0_43 = arith.constant 0 : index
    %c0_44 = arith.constant 0 : index
    %22 = vector.load %arg25[%c0_43, %c0_44] : memref<32x32xf32, #tpu.memory_space<vmem>>, vector<32x32xf32>
    %c0_45 = arith.constant 0 : index
    %c0_46 = arith.constant 0 : index
    %23 = vector.load %arg26[%c0_45, %c0_46] : memref<32x96xf32, #tpu.memory_space<vmem>>, vector<32x96xf32>
    %c0_47 = arith.constant 0 : index
    %c0_48 = arith.constant 0 : index
    %24 = vector.load %arg27[%c0_47, %c0_48] : memref<1x64xf32, #tpu.memory_space<vmem>>, vector<1x64xf32>
    %c0_49 = arith.constant 0 : index
    %c0_50 = arith.constant 0 : index
    %25 = vector.load %arg28[%c0_49, %c0_50] : memref<1x32xf32, #tpu.memory_space<vmem>>, vector<1x32xf32>
    %c0_51 = arith.constant 0 : index
    %c0_52 = arith.constant 0 : index
    %26 = vector.load %arg29[%c0_51, %c0_52] : memref<1x32xf32, #tpu.memory_space<vmem>>, vector<1x32xf32>
    %c0_53 = arith.constant 0 : index
    %c0_54 = arith.constant 0 : index
    %27 = vector.load %arg30[%c0_53, %c0_54] : memref<1x32xf32, #tpu.memory_space<vmem>>, vector<1x32xf32>
    %c0_55 = arith.constant 0 : index
    %c0_56 = arith.constant 0 : index
    %28 = vector.load %arg31[%c0_55, %c0_56] : memref<32x64xf32, #tpu.memory_space<vmem>>, vector<32x64xf32>
    %c0_57 = arith.constant 0 : index
    %c0_58 = arith.constant 0 : index
    %29 = vector.load %arg32[%c0_57, %c0_58] : memref<64x32xf32, #tpu.memory_space<vmem>>, vector<64x32xf32>
    %c0_59 = arith.constant 0 : index
    %c0_60 = arith.constant 0 : index
    %30 = vector.load %arg33[%c0_59, %c0_60] : memref<1x32xf32, #tpu.memory_space<vmem>>, vector<1x32xf32>
    %c0_61 = arith.constant 0 : index
    %c0_62 = arith.constant 0 : index
    %31 = vector.load %arg34[%c0_61, %c0_62] : memref<1x96xf32, #tpu.memory_space<vmem>>, vector<1x96xf32>
    %c0_63 = arith.constant 0 : index
    %c0_64 = arith.constant 0 : index
    %32 = vector.load %arg35[%c0_63, %c0_64] : memref<1x32xf32, #tpu.memory_space<vmem>>, vector<1x32xf32>
    %c0_65 = arith.constant 0 : index
    %c0_66 = arith.constant 0 : index
    %33 = vector.load %arg36[%c0_65, %c0_66] : memref<1x32xf32, #tpu.memory_space<vmem>>, vector<1x32xf32>
    %c0_67 = arith.constant 0 : index
    %c0_68 = arith.constant 0 : index
    %34 = vector.load %arg37[%c0_67, %c0_68] : memref<32x32xf32, #tpu.memory_space<vmem>>, vector<32x32xf32>
    %c0_69 = arith.constant 0 : index
    %c0_70 = arith.constant 0 : index
    %35 = vector.load %arg38[%c0_69, %c0_70] : memref<32x96xf32, #tpu.memory_space<vmem>>, vector<32x96xf32>
    %c0_71 = arith.constant 0 : index
    %c0_72 = arith.constant 0 : index
    %36 = vector.load %arg39[%c0_71, %c0_72] : memref<1x64xf32, #tpu.memory_space<vmem>>, vector<1x64xf32>
    %c0_73 = arith.constant 0 : index
    %c0_74 = arith.constant 0 : index
    %37 = vector.load %arg40[%c0_73, %c0_74] : memref<1x32xf32, #tpu.memory_space<vmem>>, vector<1x32xf32>
    %c0_75 = arith.constant 0 : index
    %c0_76 = arith.constant 0 : index
    %38 = vector.load %arg41[%c0_75, %c0_76] : memref<1x32xf32, #tpu.memory_space<vmem>>, vector<1x32xf32>
    %c0_77 = arith.constant 0 : index
    %c0_78 = arith.constant 0 : index
    %39 = vector.load %arg42[%c0_77, %c0_78] : memref<1x32xf32, #tpu.memory_space<vmem>>, vector<1x32xf32>
    %c0_79 = arith.constant 0 : index
    %c0_80 = arith.constant 0 : index
    %40 = vector.load %arg43[%c0_79, %c0_80] : memref<32x64xf32, #tpu.memory_space<vmem>>, vector<32x64xf32>
    %c0_81 = arith.constant 0 : index
    %c0_82 = arith.constant 0 : index
    %41 = vector.load %arg44[%c0_81, %c0_82] : memref<64x32xf32, #tpu.memory_space<vmem>>, vector<64x32xf32>
    %c0_83 = arith.constant 0 : index
    %c0_84 = arith.constant 0 : index
    %42 = vector.load %arg45[%c0_83, %c0_84] : memref<1x32xf32, #tpu.memory_space<vmem>>, vector<1x32xf32>
    %c0_85 = arith.constant 0 : index
    %c0_86 = arith.constant 0 : index
    %43 = vector.load %arg46[%c0_85, %c0_86] : memref<1x96xf32, #tpu.memory_space<vmem>>, vector<1x96xf32>
    %c0_87 = arith.constant 0 : index
    %c0_88 = arith.constant 0 : index
    %44 = vector.load %arg47[%c0_87, %c0_88] : memref<1x32xf32, #tpu.memory_space<vmem>>, vector<1x32xf32>
    %c0_89 = arith.constant 0 : index
    %c0_90 = arith.constant 0 : index
    %45 = vector.load %arg48[%c0_89, %c0_90] : memref<1x32xf32, #tpu.memory_space<vmem>>, vector<1x32xf32>
    %c0_91 = arith.constant 0 : index
    %c0_92 = arith.constant 0 : index
    %46 = vector.load %arg49[%c0_91, %c0_92] : memref<32x32xf32, #tpu.memory_space<vmem>>, vector<32x32xf32>
    %c0_93 = arith.constant 0 : index
    %c0_94 = arith.constant 0 : index
    %47 = vector.load %arg50[%c0_93, %c0_94] : memref<32x96xf32, #tpu.memory_space<vmem>>, vector<32x96xf32>
    %c0_95 = arith.constant 0 : index
    %c0_96 = arith.constant 0 : index
    %48 = vector.load %arg51[%c0_95, %c0_96] : memref<1x64xf32, #tpu.memory_space<vmem>>, vector<1x64xf32>
    %c0_97 = arith.constant 0 : index
    %c0_98 = arith.constant 0 : index
    %49 = vector.load %arg52[%c0_97, %c0_98] : memref<1x32xf32, #tpu.memory_space<vmem>>, vector<1x32xf32>
    %c0_99 = arith.constant 0 : index
    %c0_100 = arith.constant 0 : index
    %50 = vector.load %arg53[%c0_99, %c0_100] : memref<1x32xf32, #tpu.memory_space<vmem>>, vector<1x32xf32>
    %c0_101 = arith.constant 0 : index
    %c0_102 = arith.constant 0 : index
    %51 = vector.load %arg54[%c0_101, %c0_102] : memref<1x32xf32, #tpu.memory_space<vmem>>, vector<1x32xf32>
    %c0_103 = arith.constant 0 : index
    %c0_104 = arith.constant 0 : index
    %52 = vector.load %arg55[%c0_103, %c0_104] : memref<32x64xf32, #tpu.memory_space<vmem>>, vector<32x64xf32>
    %c0_105 = arith.constant 0 : index
    %c0_106 = arith.constant 0 : index
    %53 = vector.load %arg56[%c0_105, %c0_106] : memref<64x32xf32, #tpu.memory_space<vmem>>, vector<64x32xf32>
    %c0_107 = arith.constant 0 : index
    %c0_108 = arith.constant 0 : index
    %54 = vector.load %arg57[%c0_107, %c0_108] : memref<1x32xf32, #tpu.memory_space<vmem>>, vector<1x32xf32>
    %c0_109 = arith.constant 0 : index
    %c0_110 = arith.constant 0 : index
    %55 = vector.load %arg58[%c0_109, %c0_110] : memref<1x96xf32, #tpu.memory_space<vmem>>, vector<1x96xf32>
    %c0_111 = arith.constant 0 : index
    %c0_112 = arith.constant 0 : index
    %56 = vector.load %arg59[%c0_111, %c0_112] : memref<1x32xf32, #tpu.memory_space<vmem>>, vector<1x32xf32>
    %c0_113 = arith.constant 0 : index
    %c0_114 = arith.constant 0 : index
    %57 = vector.load %arg60[%c0_113, %c0_114] : memref<1x32xf32, #tpu.memory_space<vmem>>, vector<1x32xf32>
    %c0_115 = arith.constant 0 : index
    %c0_116 = arith.constant 0 : index
    %58 = vector.load %arg61[%c0_115, %c0_116] : memref<32x32xf32, #tpu.memory_space<vmem>>, vector<32x32xf32>
    %c0_117 = arith.constant 0 : index
    %c0_118 = arith.constant 0 : index
    %59 = vector.load %arg62[%c0_117, %c0_118] : memref<32x96xf32, #tpu.memory_space<vmem>>, vector<32x96xf32>
    %c0_119 = arith.constant 0 : index
    %c0_120 = arith.constant 0 : index
    %60 = vector.load %arg63[%c0_119, %c0_120] : memref<32x128xf32, #tpu.memory_space<vmem>>, vector<32x128xf32>
    %c0_121 = arith.constant 0 : index
    %c0_122 = arith.constant 0 : index
    %c0_123 = arith.constant 0 : index
    %61 = vector.load %arg2[%c0_121, %c0_122, %c0_123] : memref<2x8x8xf32, #tpu.memory_space<vmem>>, vector<2x8x8xf32>
    %c0_124 = arith.constant 0 : index
    %c0_125 = arith.constant 0 : index
    %c0_126 = arith.constant 0 : index
    %62 = vector.load %arg0[%c0_124, %c0_125, %c0_126] : memref<2x8x32xf32, #tpu.memory_space<vmem>>, vector<2x8x32xf32>
    %63 = vector.shape_cast %62 : vector<2x8x32xf32> to vector<16x32xf32>
    %cst = arith.constant dense<0.000000e+00> : vector<16x96xf32>
    %64 = tpu.matmul %63, %47, %cst {dimension_numbers = #tpu.dot_dimension_numbers<[1], [0], [0], [1], [0, 0, 1, 1], [], []>} : vector<16x32xf32>, vector<32x96xf32>, vector<16x96xf32> -> vector<16x96xf32>
    %65 = vector.broadcast %43 : vector<1x96xf32> to vector<16x96xf32>
    %66 = arith.addf %64, %65 : vector<16x96xf32>
    %67 = vector.extract_strided_slice %66 {offsets = [0, 0], sizes = [16, 32], strides = [1, 1]} : vector<16x96xf32> to vector<16x32xf32>
    %68 = vector.shape_cast %67 : vector<16x32xf32> to vector<2x8x32xf32>
    %69 = vector.extract_strided_slice %66 {offsets = [0, 32], sizes = [16, 32], strides = [1, 1]} : vector<16x96xf32> to vector<16x32xf32>
    %70 = vector.shape_cast %69 : vector<16x32xf32> to vector<2x8x32xf32>
    %71 = vector.extract_strided_slice %66 {offsets = [0, 64], sizes = [16, 32], strides = [1, 1]} : vector<16x96xf32> to vector<16x32xf32>
    %72 = vector.shape_cast %71 : vector<16x32xf32> to vector<2x8x32xf32>
    %73 = vector.extract_strided_slice %68 {offsets = [0, 0, 0], sizes = [2, 8, 8], strides = [1, 1, 1]} : vector<2x8x32xf32> to vector<2x8x8xf32>
    %74 = vector.extract_strided_slice %70 {offsets = [0, 0, 0], sizes = [2, 8, 8], strides = [1, 1, 1]} : vector<2x8x32xf32> to vector<2x8x8xf32>
    "tpu.trace_start"() <{level = 10 : i32, message = "bqd,bkd->bqk"}> : () -> ()
    %cst_127 = arith.constant dense<0.000000e+00> : vector<2x8x8xf32>
    %75 = tpu.matmul %73, %74, %cst_127 {dimension_numbers = #tpu.dot_dimension_numbers<[2], [2], [1], [1], [0, 0, 0, 1, 1, 1], [0], [0]>} : vector<2x8x8xf32>, vector<2x8x8xf32>, vector<2x8x8xf32> -> vector<2x8x8xf32>
    "tpu.trace_stop"() : () -> ()
    %cst_128 = arith.constant 0.353553385 : f32
    %76 = vector.broadcast %cst_128 : f32 to vector<2x8x8xf32>
    %77 = arith.mulf %75, %76 : vector<2x8x8xf32>
    %78 = vector.extract_strided_slice %68 {offsets = [0, 0, 8], sizes = [2, 8, 8], strides = [1, 1, 1]} : vector<2x8x32xf32> to vector<2x8x8xf32>
    %79 = vector.extract_strided_slice %70 {offsets = [0, 0, 8], sizes = [2, 8, 8], strides = [1, 1, 1]} : vector<2x8x32xf32> to vector<2x8x8xf32>
    "tpu.trace_start"() <{level = 10 : i32, message = "bqd,bkd->bqk"}> : () -> ()
    %cst_129 = arith.constant dense<0.000000e+00> : vector<2x8x8xf32>
    %80 = tpu.matmul %78, %79, %cst_129 {dimension_numbers = #tpu.dot_dimension_numbers<[2], [2], [1], [1], [0, 0, 0, 1, 1, 1], [0], [0]>} : vector<2x8x8xf32>, vector<2x8x8xf32>, vector<2x8x8xf32> -> vector<2x8x8xf32>
    "tpu.trace_stop"() : () -> ()
    %cst_130 = arith.constant 0.353553385 : f32
    %81 = vector.broadcast %cst_130 : f32 to vector<2x8x8xf32>
    %82 = arith.mulf %80, %81 : vector<2x8x8xf32>
    %83 = vector.extract_strided_slice %68 {offsets = [0, 0, 16], sizes = [2, 8, 8], strides = [1, 1, 1]} : vector<2x8x32xf32> to vector<2x8x8xf32>
    %84 = vector.extract_strided_slice %70 {offsets = [0, 0, 16], sizes = [2, 8, 8], strides = [1, 1, 1]} : vector<2x8x32xf32> to vector<2x8x8xf32>
    "tpu.trace_start"() <{level = 10 : i32, message = "bqd,bkd->bqk"}> : () -> ()
    %cst_131 = arith.constant dense<0.000000e+00> : vector<2x8x8xf32>
    %85 = tpu.matmul %83, %84, %cst_131 {dimension_numbers = #tpu.dot_dimension_numbers<[2], [2], [1], [1], [0, 0, 0, 1, 1, 1], [0], [0]>} : vector<2x8x8xf32>, vector<2x8x8xf32>, vector<2x8x8xf32> -> vector<2x8x8xf32>
    "tpu.trace_stop"() : () -> ()
    %cst_132 = arith.constant 0.353553385 : f32
    %86 = vector.broadcast %cst_132 : f32 to vector<2x8x8xf32>
    %87 = arith.mulf %85, %86 : vector<2x8x8xf32>
    %88 = vector.extract_strided_slice %68 {offsets = [0, 0, 24], sizes = [2, 8, 8], strides = [1, 1, 1]} : vector<2x8x32xf32> to vector<2x8x8xf32>
    %89 = vector.extract_strided_slice %70 {offsets = [0, 0, 24], sizes = [2, 8, 8], strides = [1, 1, 1]} : vector<2x8x32xf32> to vector<2x8x8xf32>
    "tpu.trace_start"() <{level = 10 : i32, message = "bqd,bkd->bqk"}> : () -> ()
    %cst_133 = arith.constant dense<0.000000e+00> : vector<2x8x8xf32>
    %90 = tpu.matmul %88, %89, %cst_133 {dimension_numbers = #tpu.dot_dimension_numbers<[2], [2], [1], [1], [0, 0, 0, 1, 1, 1], [0], [0]>} : vector<2x8x8xf32>, vector<2x8x8xf32>, vector<2x8x8xf32> -> vector<2x8x8xf32>
    "tpu.trace_stop"() : () -> ()
    %cst_134 = arith.constant 0.353553385 : f32
    %91 = vector.broadcast %cst_134 : f32 to vector<2x8x8xf32>
    %92 = arith.mulf %90, %91 : vector<2x8x8xf32>
    %93 = tpu.concatenate %77, %82, %87, %92 in 1 : vector<2x8x8xf32>, vector<2x8x8xf32>, vector<2x8x8xf32>, vector<2x8x8xf32> -> vector<2x32x8xf32>
    %cst_135 = arith.constant dense<0xFF800000> : vector<2x32xf32>
    %94 = vector.multi_reduction <maximumf>, %93, %cst_135 [2] : vector<2x32x8xf32> to vector<2x32xf32>
    %95 = vector.shape_cast %94 : vector<2x32xf32> to vector<2x32x1xf32>
    %96 = vector.broadcast %95 : vector<2x32x1xf32> to vector<2x32x8xf32>
    %97 = arith.subf %93, %96 : vector<2x32x8xf32>
    %98 = math.exp %97 : vector<2x32x8xf32>
    %cst_136 = arith.constant dense<0.000000e+00> : vector<2x32xf32>
    %99 = vector.multi_reduction <add>, %98, %cst_136 [2] : vector<2x32x8xf32> to vector<2x32xf32>
    %100 = vector.shape_cast %99 : vector<2x32xf32> to vector<2x32x1xf32>
    %101 = tpu.reciprocal %100 {approx = true} : vector<2x32x1xf32> -> vector<2x32x1xf32>
    %102 = vector.broadcast %101 : vector<2x32x1xf32> to vector<2x32x8xf32>
    %103 = arith.mulf %98, %102 : vector<2x32x8xf32>
    %104 = vector.extract_strided_slice %103 {offsets = [0, 0, 0], sizes = [2, 8, 8], strides = [1, 1, 1]} : vector<2x32x8xf32> to vector<2x8x8xf32>
    %105 = vector.extract_strided_slice %72 {offsets = [0, 0, 0], sizes = [2, 8, 8], strides = [1, 1, 1]} : vector<2x8x32xf32> to vector<2x8x8xf32>
    "tpu.trace_start"() <{level = 10 : i32, message = "bqk,bkd->bqd"}> : () -> ()
    %cst_137 = arith.constant dense<0.000000e+00> : vector<2x8x8xf32>
    %106 = tpu.matmul %104, %105, %cst_137 {dimension_numbers = #tpu.dot_dimension_numbers<[2], [1], [1], [2], [0, 0, 0, 1, 1, 2], [0], [0]>} : vector<2x8x8xf32>, vector<2x8x8xf32>, vector<2x8x8xf32> -> vector<2x8x8xf32>
    "tpu.trace_stop"() : () -> ()
    %107 = vector.extract_strided_slice %103 {offsets = [0, 8, 0], sizes = [2, 8, 8], strides = [1, 1, 1]} : vector<2x32x8xf32> to vector<2x8x8xf32>
    %108 = vector.extract_strided_slice %72 {offsets = [0, 0, 8], sizes = [2, 8, 8], strides = [1, 1, 1]} : vector<2x8x32xf32> to vector<2x8x8xf32>
    "tpu.trace_start"() <{level = 10 : i32, message = "bqk,bkd->bqd"}> : () -> ()
    %cst_138 = arith.constant dense<0.000000e+00> : vector<2x8x8xf32>
    %109 = tpu.matmul %107, %108, %cst_138 {dimension_numbers = #tpu.dot_dimension_numbers<[2], [1], [1], [2], [0, 0, 0, 1, 1, 2], [0], [0]>} : vector<2x8x8xf32>, vector<2x8x8xf32>, vector<2x8x8xf32> -> vector<2x8x8xf32>
    "tpu.trace_stop"() : () -> ()
    %110 = vector.extract_strided_slice %103 {offsets = [0, 16, 0], sizes = [2, 8, 8], strides = [1, 1, 1]} : vector<2x32x8xf32> to vector<2x8x8xf32>
    %111 = vector.extract_strided_slice %72 {offsets = [0, 0, 16], sizes = [2, 8, 8], strides = [1, 1, 1]} : vector<2x8x32xf32> to vector<2x8x8xf32>
    "tpu.trace_start"() <{level = 10 : i32, message = "bqk,bkd->bqd"}> : () -> ()
    %cst_139 = arith.constant dense<0.000000e+00> : vector<2x8x8xf32>
    %112 = tpu.matmul %110, %111, %cst_139 {dimension_numbers = #tpu.dot_dimension_numbers<[2], [1], [1], [2], [0, 0, 0, 1, 1, 2], [0], [0]>} : vector<2x8x8xf32>, vector<2x8x8xf32>, vector<2x8x8xf32> -> vector<2x8x8xf32>
    "tpu.trace_stop"() : () -> ()
    %113 = vector.extract_strided_slice %103 {offsets = [0, 24, 0], sizes = [2, 8, 8], strides = [1, 1, 1]} : vector<2x32x8xf32> to vector<2x8x8xf32>
    %114 = vector.extract_strided_slice %72 {offsets = [0, 0, 24], sizes = [2, 8, 8], strides = [1, 1, 1]} : vector<2x8x32xf32> to vector<2x8x8xf32>
    "tpu.trace_start"() <{level = 10 : i32, message = "bqk,bkd->bqd"}> : () -> ()
    %cst_140 = arith.constant dense<0.000000e+00> : vector<2x8x8xf32>
    %115 = tpu.matmul %113, %114, %cst_140 {dimension_numbers = #tpu.dot_dimension_numbers<[2], [1], [1], [2], [0, 0, 0, 1, 1, 2], [0], [0]>} : vector<2x8x8xf32>, vector<2x8x8xf32>, vector<2x8x8xf32> -> vector<2x8x8xf32>
    "tpu.trace_stop"() : () -> ()
    %116 = tpu.concatenate %106, %109, %112, %115 in 2 : vector<2x8x8xf32>, vector<2x8x8xf32>, vector<2x8x8xf32>, vector<2x8x8xf32> -> vector<2x8x32xf32>
    %117 = vector.shape_cast %116 : vector<2x8x32xf32> to vector<16x32xf32>
    %cst_141 = arith.constant dense<0.000000e+00> : vector<16x32xf32>
    %118 = tpu.matmul %117, %46, %cst_141 {dimension_numbers = #tpu.dot_dimension_numbers<[1], [0], [0], [1], [0, 0, 1, 1], [], []>} : vector<16x32xf32>, vector<32x32xf32>, vector<16x32xf32> -> vector<16x32xf32>
    %119 = vector.broadcast %42 : vector<1x32xf32> to vector<16x32xf32>
    %120 = arith.addf %118, %119 : vector<16x32xf32>
    %121 = arith.addf %120, %63 : vector<16x32xf32>
    %cst_142 = arith.constant dense<0.000000e+00> : vector<16xf32>
    %122 = vector.multi_reduction <add>, %121, %cst_142 [1] : vector<16x32xf32> to vector<16xf32>
    %123 = vector.shape_cast %122 : vector<16xf32> to vector<16x1xf32>
    %cst_143 = arith.constant 3.200000e+01 : f32
    %124 = vector.broadcast %cst_143 : f32 to vector<16x1xf32>
    %125 = arith.divf %123, %124 : vector<16x1xf32>
    %126 = vector.broadcast %125 : vector<16x1xf32> to vector<16x32xf32>
    %127 = arith.subf %121, %126 : vector<16x32xf32>
    %128 = arith.mulf %127, %127 : vector<16x32xf32>
    %cst_144 = arith.constant dense<0.000000e+00> : vector<16xf32>
    %129 = vector.multi_reduction <add>, %128, %cst_144 [1] : vector<16x32xf32> to vector<16xf32>
    %130 = vector.shape_cast %129 : vector<16xf32> to vector<16x1xf32>
    %cst_145 = arith.constant 3.200000e+01 : f32
    %131 = vector.broadcast %cst_145 : f32 to vector<16x1xf32>
    %132 = arith.divf %130, %131 : vector<16x1xf32>
    %cst_146 = arith.constant 9.99999974E-6 : f32
    %133 = vector.broadcast %cst_146 : f32 to vector<16x1xf32>
    %134 = arith.addf %132, %133 : vector<16x1xf32>
    %135 = math.rsqrt %134 : vector<16x1xf32>
    %136 = vector.broadcast %135 : vector<16x1xf32> to vector<16x32xf32>
    %137 = arith.mulf %127, %136 : vector<16x32xf32>
    %138 = vector.broadcast %45 : vector<1x32xf32> to vector<16x32xf32>
    %139 = arith.mulf %137, %138 : vector<16x32xf32>
    %140 = vector.broadcast %44 : vector<1x32xf32> to vector<16x32xf32>
    %141 = arith.addf %139, %140 : vector<16x32xf32>
    %142 = vector.shape_cast %141 : vector<16x32xf32> to vector<2x8x32xf32>
    %143 = vector.shape_cast %142 : vector<2x8x32xf32> to vector<16x32xf32>
    %cst_147 = arith.constant dense<0.000000e+00> : vector<16x64xf32>
    %144 = tpu.matmul %143, %40, %cst_147 {dimension_numbers = #tpu.dot_dimension_numbers<[1], [0], [0], [1], [0, 0, 1, 1], [], []>} : vector<16x32xf32>, vector<32x64xf32>, vector<16x64xf32> -> vector<16x64xf32>
    %145 = vector.broadcast %36 : vector<1x64xf32> to vector<16x64xf32>
    %146 = arith.addf %144, %145 : vector<16x64xf32>
    %cst_148 = arith.constant 0.000000e+00 : f32
    %147 = vector.broadcast %cst_148 : f32 to vector<16x64xf32>
    %148 = arith.maximumf %146, %147 : vector<16x64xf32>
    %cst_149 = arith.constant dense<0.000000e+00> : vector<16x32xf32>
    %149 = tpu.matmul %148, %41, %cst_149 {dimension_numbers = #tpu.dot_dimension_numbers<[1], [0], [0], [1], [0, 0, 1, 1], [], []>} : vector<16x64xf32>, vector<64x32xf32>, vector<16x32xf32> -> vector<16x32xf32>
    %150 = vector.broadcast %37 : vector<1x32xf32> to vector<16x32xf32>
    %151 = arith.addf %149, %150 : vector<16x32xf32>
    %152 = arith.addf %151, %143 : vector<16x32xf32>
    %cst_150 = arith.constant dense<0.000000e+00> : vector<16xf32>
    %153 = vector.multi_reduction <add>, %152, %cst_150 [1] : vector<16x32xf32> to vector<16xf32>
    %154 = vector.shape_cast %153 : vector<16xf32> to vector<16x1xf32>
    %cst_151 = arith.constant 3.200000e+01 : f32
    %155 = vector.broadcast %cst_151 : f32 to vector<16x1xf32>
    %156 = arith.divf %154, %155 : vector<16x1xf32>
    %157 = vector.broadcast %156 : vector<16x1xf32> to vector<16x32xf32>
    %158 = arith.subf %152, %157 : vector<16x32xf32>
    %159 = arith.mulf %158, %158 : vector<16x32xf32>
    %cst_152 = arith.constant dense<0.000000e+00> : vector<16xf32>
    %160 = vector.multi_reduction <add>, %159, %cst_152 [1] : vector<16x32xf32> to vector<16xf32>
    %161 = vector.shape_cast %160 : vector<16xf32> to vector<16x1xf32>
    %cst_153 = arith.constant 3.200000e+01 : f32
    %162 = vector.broadcast %cst_153 : f32 to vector<16x1xf32>
    %163 = arith.divf %161, %162 : vector<16x1xf32>
    %cst_154 = arith.constant 9.99999974E-6 : f32
    %164 = vector.broadcast %cst_154 : f32 to vector<16x1xf32>
    %165 = arith.addf %163, %164 : vector<16x1xf32>
    %166 = math.rsqrt %165 : vector<16x1xf32>
    %167 = vector.broadcast %166 : vector<16x1xf32> to vector<16x32xf32>
    %168 = arith.mulf %158, %167 : vector<16x32xf32>
    %169 = vector.broadcast %39 : vector<1x32xf32> to vector<16x32xf32>
    %170 = arith.mulf %168, %169 : vector<16x32xf32>
    %171 = vector.broadcast %38 : vector<1x32xf32> to vector<16x32xf32>
    %172 = arith.addf %170, %171 : vector<16x32xf32>
    %173 = vector.shape_cast %172 : vector<16x32xf32> to vector<2x8x32xf32>
    %174 = vector.shape_cast %173 : vector<2x8x32xf32> to vector<16x32xf32>
    %cst_155 = arith.constant dense<0.000000e+00> : vector<16x96xf32>
    %175 = tpu.matmul %174, %59, %cst_155 {dimension_numbers = #tpu.dot_dimension_numbers<[1], [0], [0], [1], [0, 0, 1, 1], [], []>} : vector<16x32xf32>, vector<32x96xf32>, vector<16x96xf32> -> vector<16x96xf32>
    %176 = vector.broadcast %55 : vector<1x96xf32> to vector<16x96xf32>
    %177 = arith.addf %175, %176 : vector<16x96xf32>
    %178 = vector.extract_strided_slice %177 {offsets = [0, 0], sizes = [16, 32], strides = [1, 1]} : vector<16x96xf32> to vector<16x32xf32>
    %179 = vector.shape_cast %178 : vector<16x32xf32> to vector<2x8x32xf32>
    %180 = vector.extract_strided_slice %177 {offsets = [0, 32], sizes = [16, 32], strides = [1, 1]} : vector<16x96xf32> to vector<16x32xf32>
    %181 = vector.shape_cast %180 : vector<16x32xf32> to vector<2x8x32xf32>
    %182 = vector.extract_strided_slice %177 {offsets = [0, 64], sizes = [16, 32], strides = [1, 1]} : vector<16x96xf32> to vector<16x32xf32>
    %183 = vector.shape_cast %182 : vector<16x32xf32> to vector<2x8x32xf32>
    %184 = vector.extract_strided_slice %179 {offsets = [0, 0, 0], sizes = [2, 8, 8], strides = [1, 1, 1]} : vector<2x8x32xf32> to vector<2x8x8xf32>
    %185 = vector.extract_strided_slice %181 {offsets = [0, 0, 0], sizes = [2, 8, 8], strides = [1, 1, 1]} : vector<2x8x32xf32> to vector<2x8x8xf32>
    "tpu.trace_start"() <{level = 10 : i32, message = "bqd,bkd->bqk"}> : () -> ()
    %cst_156 = arith.constant dense<0.000000e+00> : vector<2x8x8xf32>
    %186 = tpu.matmul %184, %185, %cst_156 {dimension_numbers = #tpu.dot_dimension_numbers<[2], [2], [1], [1], [0, 0, 0, 1, 1, 1], [0], [0]>} : vector<2x8x8xf32>, vector<2x8x8xf32>, vector<2x8x8xf32> -> vector<2x8x8xf32>
    "tpu.trace_stop"() : () -> ()
    %cst_157 = arith.constant 0.353553385 : f32
    %187 = vector.broadcast %cst_157 : f32 to vector<2x8x8xf32>
    %188 = arith.mulf %186, %187 : vector<2x8x8xf32>
    %189 = vector.extract_strided_slice %179 {offsets = [0, 0, 8], sizes = [2, 8, 8], strides = [1, 1, 1]} : vector<2x8x32xf32> to vector<2x8x8xf32>
    %190 = vector.extract_strided_slice %181 {offsets = [0, 0, 8], sizes = [2, 8, 8], strides = [1, 1, 1]} : vector<2x8x32xf32> to vector<2x8x8xf32>
    "tpu.trace_start"() <{level = 10 : i32, message = "bqd,bkd->bqk"}> : () -> ()
    %cst_158 = arith.constant dense<0.000000e+00> : vector<2x8x8xf32>
    %191 = tpu.matmul %189, %190, %cst_158 {dimension_numbers = #tpu.dot_dimension_numbers<[2], [2], [1], [1], [0, 0, 0, 1, 1, 1], [0], [0]>} : vector<2x8x8xf32>, vector<2x8x8xf32>, vector<2x8x8xf32> -> vector<2x8x8xf32>
    "tpu.trace_stop"() : () -> ()
    %cst_159 = arith.constant 0.353553385 : f32
    %192 = vector.broadcast %cst_159 : f32 to vector<2x8x8xf32>
    %193 = arith.mulf %191, %192 : vector<2x8x8xf32>
    %194 = vector.extract_strided_slice %179 {offsets = [0, 0, 16], sizes = [2, 8, 8], strides = [1, 1, 1]} : vector<2x8x32xf32> to vector<2x8x8xf32>
    %195 = vector.extract_strided_slice %181 {offsets = [0, 0, 16], sizes = [2, 8, 8], strides = [1, 1, 1]} : vector<2x8x32xf32> to vector<2x8x8xf32>
    "tpu.trace_start"() <{level = 10 : i32, message = "bqd,bkd->bqk"}> : () -> ()
    %cst_160 = arith.constant dense<0.000000e+00> : vector<2x8x8xf32>
    %196 = tpu.matmul %194, %195, %cst_160 {dimension_numbers = #tpu.dot_dimension_numbers<[2], [2], [1], [1], [0, 0, 0, 1, 1, 1], [0], [0]>} : vector<2x8x8xf32>, vector<2x8x8xf32>, vector<2x8x8xf32> -> vector<2x8x8xf32>
    "tpu.trace_stop"() : () -> ()
    %cst_161 = arith.constant 0.353553385 : f32
    %197 = vector.broadcast %cst_161 : f32 to vector<2x8x8xf32>
    %198 = arith.mulf %196, %197 : vector<2x8x8xf32>
    %199 = vector.extract_strided_slice %179 {offsets = [0, 0, 24], sizes = [2, 8, 8], strides = [1, 1, 1]} : vector<2x8x32xf32> to vector<2x8x8xf32>
    %200 = vector.extract_strided_slice %181 {offsets = [0, 0, 24], sizes = [2, 8, 8], strides = [1, 1, 1]} : vector<2x8x32xf32> to vector<2x8x8xf32>
    "tpu.trace_start"() <{level = 10 : i32, message = "bqd,bkd->bqk"}> : () -> ()
    %cst_162 = arith.constant dense<0.000000e+00> : vector<2x8x8xf32>
    %201 = tpu.matmul %199, %200, %cst_162 {dimension_numbers = #tpu.dot_dimension_numbers<[2], [2], [1], [1], [0, 0, 0, 1, 1, 1], [0], [0]>} : vector<2x8x8xf32>, vector<2x8x8xf32>, vector<2x8x8xf32> -> vector<2x8x8xf32>
    "tpu.trace_stop"() : () -> ()
    %cst_163 = arith.constant 0.353553385 : f32
    %202 = vector.broadcast %cst_163 : f32 to vector<2x8x8xf32>
    %203 = arith.mulf %201, %202 : vector<2x8x8xf32>
    %204 = tpu.concatenate %188, %193, %198, %203 in 1 : vector<2x8x8xf32>, vector<2x8x8xf32>, vector<2x8x8xf32>, vector<2x8x8xf32> -> vector<2x32x8xf32>
    %cst_164 = arith.constant dense<0xFF800000> : vector<2x32xf32>
    %205 = vector.multi_reduction <maximumf>, %204, %cst_164 [2] : vector<2x32x8xf32> to vector<2x32xf32>
    %206 = vector.shape_cast %205 : vector<2x32xf32> to vector<2x32x1xf32>
    %207 = vector.broadcast %206 : vector<2x32x1xf32> to vector<2x32x8xf32>
    %208 = arith.subf %204, %207 : vector<2x32x8xf32>
    %209 = math.exp %208 : vector<2x32x8xf32>
    %cst_165 = arith.constant dense<0.000000e+00> : vector<2x32xf32>
    %210 = vector.multi_reduction <add>, %209, %cst_165 [2] : vector<2x32x8xf32> to vector<2x32xf32>
    %211 = vector.shape_cast %210 : vector<2x32xf32> to vector<2x32x1xf32>
    %212 = tpu.reciprocal %211 {approx = true} : vector<2x32x1xf32> -> vector<2x32x1xf32>
    %213 = vector.broadcast %212 : vector<2x32x1xf32> to vector<2x32x8xf32>
    %214 = arith.mulf %209, %213 : vector<2x32x8xf32>
    %215 = vector.extract_strided_slice %214 {offsets = [0, 0, 0], sizes = [2, 8, 8], strides = [1, 1, 1]} : vector<2x32x8xf32> to vector<2x8x8xf32>
    %216 = vector.extract_strided_slice %183 {offsets = [0, 0, 0], sizes = [2, 8, 8], strides = [1, 1, 1]} : vector<2x8x32xf32> to vector<2x8x8xf32>
    "tpu.trace_start"() <{level = 10 : i32, message = "bqk,bkd->bqd"}> : () -> ()
    %cst_166 = arith.constant dense<0.000000e+00> : vector<2x8x8xf32>
    %217 = tpu.matmul %215, %216, %cst_166 {dimension_numbers = #tpu.dot_dimension_numbers<[2], [1], [1], [2], [0, 0, 0, 1, 1, 2], [0], [0]>} : vector<2x8x8xf32>, vector<2x8x8xf32>, vector<2x8x8xf32> -> vector<2x8x8xf32>
    "tpu.trace_stop"() : () -> ()
    %218 = vector.extract_strided_slice %214 {offsets = [0, 8, 0], sizes = [2, 8, 8], strides = [1, 1, 1]} : vector<2x32x8xf32> to vector<2x8x8xf32>
    %219 = vector.extract_strided_slice %183 {offsets = [0, 0, 8], sizes = [2, 8, 8], strides = [1, 1, 1]} : vector<2x8x32xf32> to vector<2x8x8xf32>
    "tpu.trace_start"() <{level = 10 : i32, message = "bqk,bkd->bqd"}> : () -> ()
    %cst_167 = arith.constant dense<0.000000e+00> : vector<2x8x8xf32>
    %220 = tpu.matmul %218, %219, %cst_167 {dimension_numbers = #tpu.dot_dimension_numbers<[2], [1], [1], [2], [0, 0, 0, 1, 1, 2], [0], [0]>} : vector<2x8x8xf32>, vector<2x8x8xf32>, vector<2x8x8xf32> -> vector<2x8x8xf32>
    "tpu.trace_stop"() : () -> ()
    %221 = vector.extract_strided_slice %214 {offsets = [0, 16, 0], sizes = [2, 8, 8], strides = [1, 1, 1]} : vector<2x32x8xf32> to vector<2x8x8xf32>
    %222 = vector.extract_strided_slice %183 {offsets = [0, 0, 16], sizes = [2, 8, 8], strides = [1, 1, 1]} : vector<2x8x32xf32> to vector<2x8x8xf32>
    "tpu.trace_start"() <{level = 10 : i32, message = "bqk,bkd->bqd"}> : () -> ()
    %cst_168 = arith.constant dense<0.000000e+00> : vector<2x8x8xf32>
    %223 = tpu.matmul %221, %222, %cst_168 {dimension_numbers = #tpu.dot_dimension_numbers<[2], [1], [1], [2], [0, 0, 0, 1, 1, 2], [0], [0]>} : vector<2x8x8xf32>, vector<2x8x8xf32>, vector<2x8x8xf32> -> vector<2x8x8xf32>
    "tpu.trace_stop"() : () -> ()
    %224 = vector.extract_strided_slice %214 {offsets = [0, 24, 0], sizes = [2, 8, 8], strides = [1, 1, 1]} : vector<2x32x8xf32> to vector<2x8x8xf32>
    %225 = vector.extract_strided_slice %183 {offsets = [0, 0, 24], sizes = [2, 8, 8], strides = [1, 1, 1]} : vector<2x8x32xf32> to vector<2x8x8xf32>
    "tpu.trace_start"() <{level = 10 : i32, message = "bqk,bkd->bqd"}> : () -> ()
    %cst_169 = arith.constant dense<0.000000e+00> : vector<2x8x8xf32>
    %226 = tpu.matmul %224, %225, %cst_169 {dimension_numbers = #tpu.dot_dimension_numbers<[2], [1], [1], [2], [0, 0, 0, 1, 1, 2], [0], [0]>} : vector<2x8x8xf32>, vector<2x8x8xf32>, vector<2x8x8xf32> -> vector<2x8x8xf32>
    "tpu.trace_stop"() : () -> ()
    %227 = tpu.concatenate %217, %220, %223, %226 in 2 : vector<2x8x8xf32>, vector<2x8x8xf32>, vector<2x8x8xf32>, vector<2x8x8xf32> -> vector<2x8x32xf32>
    %228 = vector.shape_cast %227 : vector<2x8x32xf32> to vector<16x32xf32>
    %cst_170 = arith.constant dense<0.000000e+00> : vector<16x32xf32>
    %229 = tpu.matmul %228, %58, %cst_170 {dimension_numbers = #tpu.dot_dimension_numbers<[1], [0], [0], [1], [0, 0, 1, 1], [], []>} : vector<16x32xf32>, vector<32x32xf32>, vector<16x32xf32> -> vector<16x32xf32>
    %230 = vector.broadcast %54 : vector<1x32xf32> to vector<16x32xf32>
    %231 = arith.addf %229, %230 : vector<16x32xf32>
    %232 = arith.addf %231, %174 : vector<16x32xf32>
    %cst_171 = arith.constant dense<0.000000e+00> : vector<16xf32>
    %233 = vector.multi_reduction <add>, %232, %cst_171 [1] : vector<16x32xf32> to vector<16xf32>
    %234 = vector.shape_cast %233 : vector<16xf32> to vector<16x1xf32>
    %cst_172 = arith.constant 3.200000e+01 : f32
    %235 = vector.broadcast %cst_172 : f32 to vector<16x1xf32>
    %236 = arith.divf %234, %235 : vector<16x1xf32>
    %237 = vector.broadcast %236 : vector<16x1xf32> to vector<16x32xf32>
    %238 = arith.subf %232, %237 : vector<16x32xf32>
    %239 = arith.mulf %238, %238 : vector<16x32xf32>
    %cst_173 = arith.constant dense<0.000000e+00> : vector<16xf32>
    %240 = vector.multi_reduction <add>, %239, %cst_173 [1] : vector<16x32xf32> to vector<16xf32>
    %241 = vector.shape_cast %240 : vector<16xf32> to vector<16x1xf32>
    %cst_174 = arith.constant 3.200000e+01 : f32
    %242 = vector.broadcast %cst_174 : f32 to vector<16x1xf32>
    %243 = arith.divf %241, %242 : vector<16x1xf32>
    %cst_175 = arith.constant 9.99999974E-6 : f32
    %244 = vector.broadcast %cst_175 : f32 to vector<16x1xf32>
    %245 = arith.addf %243, %244 : vector<16x1xf32>
    %246 = math.rsqrt %245 : vector<16x1xf32>
    %247 = vector.broadcast %246 : vector<16x1xf32> to vector<16x32xf32>
    %248 = arith.mulf %238, %247 : vector<16x32xf32>
    %249 = vector.broadcast %57 : vector<1x32xf32> to vector<16x32xf32>
    %250 = arith.mulf %248, %249 : vector<16x32xf32>
    %251 = vector.broadcast %56 : vector<1x32xf32> to vector<16x32xf32>
    %252 = arith.addf %250, %251 : vector<16x32xf32>
    %253 = vector.shape_cast %252 : vector<16x32xf32> to vector<2x8x32xf32>
    %254 = vector.shape_cast %253 : vector<2x8x32xf32> to vector<16x32xf32>
    %cst_176 = arith.constant dense<0.000000e+00> : vector<16x64xf32>
    %255 = tpu.matmul %254, %52, %cst_176 {dimension_numbers = #tpu.dot_dimension_numbers<[1], [0], [0], [1], [0, 0, 1, 1], [], []>} : vector<16x32xf32>, vector<32x64xf32>, vector<16x64xf32> -> vector<16x64xf32>
    %256 = vector.broadcast %48 : vector<1x64xf32> to vector<16x64xf32>
    %257 = arith.addf %255, %256 : vector<16x64xf32>
    %cst_177 = arith.constant 0.000000e+00 : f32
    %258 = vector.broadcast %cst_177 : f32 to vector<16x64xf32>
    %259 = arith.maximumf %257, %258 : vector<16x64xf32>
    %cst_178 = arith.constant dense<0.000000e+00> : vector<16x32xf32>
    %260 = tpu.matmul %259, %53, %cst_178 {dimension_numbers = #tpu.dot_dimension_numbers<[1], [0], [0], [1], [0, 0, 1, 1], [], []>} : vector<16x64xf32>, vector<64x32xf32>, vector<16x32xf32> -> vector<16x32xf32>
    %261 = vector.broadcast %49 : vector<1x32xf32> to vector<16x32xf32>
    %262 = arith.addf %260, %261 : vector<16x32xf32>
    %263 = arith.addf %262, %254 : vector<16x32xf32>
    %cst_179 = arith.constant dense<0.000000e+00> : vector<16xf32>
    %264 = vector.multi_reduction <add>, %263, %cst_179 [1] : vector<16x32xf32> to vector<16xf32>
    %265 = vector.shape_cast %264 : vector<16xf32> to vector<16x1xf32>
    %cst_180 = arith.constant 3.200000e+01 : f32
    %266 = vector.broadcast %cst_180 : f32 to vector<16x1xf32>
    %267 = arith.divf %265, %266 : vector<16x1xf32>
    %268 = vector.broadcast %267 : vector<16x1xf32> to vector<16x32xf32>
    %269 = arith.subf %263, %268 : vector<16x32xf32>
    %270 = arith.mulf %269, %269 : vector<16x32xf32>
    %cst_181 = arith.constant dense<0.000000e+00> : vector<16xf32>
    %271 = vector.multi_reduction <add>, %270, %cst_181 [1] : vector<16x32xf32> to vector<16xf32>
    %272 = vector.shape_cast %271 : vector<16xf32> to vector<16x1xf32>
    %cst_182 = arith.constant 3.200000e+01 : f32
    %273 = vector.broadcast %cst_182 : f32 to vector<16x1xf32>
    %274 = arith.divf %272, %273 : vector<16x1xf32>
    %cst_183 = arith.constant 9.99999974E-6 : f32
    %275 = vector.broadcast %cst_183 : f32 to vector<16x1xf32>
    %276 = arith.addf %274, %275 : vector<16x1xf32>
    %277 = math.rsqrt %276 : vector<16x1xf32>
    %278 = vector.broadcast %277 : vector<16x1xf32> to vector<16x32xf32>
    %279 = arith.mulf %269, %278 : vector<16x32xf32>
    %280 = vector.broadcast %51 : vector<1x32xf32> to vector<16x32xf32>
    %281 = arith.mulf %279, %280 : vector<16x32xf32>
    %282 = vector.broadcast %50 : vector<1x32xf32> to vector<16x32xf32>
    %283 = arith.addf %281, %282 : vector<16x32xf32>
    %284 = vector.shape_cast %283 : vector<16x32xf32> to vector<2x8x32xf32>
    %c0_184 = arith.constant 0 : index
    %c0_185 = arith.constant 0 : index
    %c0_186 = arith.constant 0 : index
    %285 = vector.load %arg1[%c0_184, %c0_185, %c0_186] : memref<2x8x32xf32, #tpu.memory_space<vmem>>, vector<2x8x32xf32>
    %286 = vector.shape_cast %285 : vector<2x8x32xf32> to vector<16x32xf32>
    %cst_187 = arith.constant dense<0.000000e+00> : vector<16x96xf32>
    %287 = tpu.matmul %286, %17, %cst_187 {dimension_numbers = #tpu.dot_dimension_numbers<[1], [0], [0], [1], [0, 0, 1, 1], [], []>} : vector<16x32xf32>, vector<32x96xf32>, vector<16x96xf32> -> vector<16x96xf32>
    %288 = vector.broadcast %13 : vector<1x96xf32> to vector<16x96xf32>
    %289 = arith.addf %287, %288 : vector<16x96xf32>
    %290 = vector.extract_strided_slice %289 {offsets = [0, 0], sizes = [16, 32], strides = [1, 1]} : vector<16x96xf32> to vector<16x32xf32>
    %291 = vector.shape_cast %290 : vector<16x32xf32> to vector<2x8x32xf32>
    %292 = vector.extract_strided_slice %289 {offsets = [0, 32], sizes = [16, 32], strides = [1, 1]} : vector<16x96xf32> to vector<16x32xf32>
    %293 = vector.shape_cast %292 : vector<16x32xf32> to vector<2x8x32xf32>
    %294 = vector.extract_strided_slice %289 {offsets = [0, 64], sizes = [16, 32], strides = [1, 1]} : vector<16x96xf32> to vector<16x32xf32>
    %295 = vector.shape_cast %294 : vector<16x32xf32> to vector<2x8x32xf32>
    %296 = vector.extract_strided_slice %291 {offsets = [0, 0, 0], sizes = [2, 8, 8], strides = [1, 1, 1]} : vector<2x8x32xf32> to vector<2x8x8xf32>
    %297 = vector.extract_strided_slice %293 {offsets = [0, 0, 0], sizes = [2, 8, 8], strides = [1, 1, 1]} : vector<2x8x32xf32> to vector<2x8x8xf32>
    "tpu.trace_start"() <{level = 10 : i32, message = "bqd,bkd->bqk"}> : () -> ()
    %cst_188 = arith.constant dense<0.000000e+00> : vector<2x8x8xf32>
    %298 = tpu.matmul %296, %297, %cst_188 {dimension_numbers = #tpu.dot_dimension_numbers<[2], [2], [1], [1], [0, 0, 0, 1, 1, 1], [0], [0]>} : vector<2x8x8xf32>, vector<2x8x8xf32>, vector<2x8x8xf32> -> vector<2x8x8xf32>
    "tpu.trace_stop"() : () -> ()
    %cst_189 = arith.constant 0.353553385 : f32
    %299 = vector.broadcast %cst_189 : f32 to vector<2x8x8xf32>
    %300 = arith.mulf %298, %299 : vector<2x8x8xf32>
    %301 = arith.addf %300, %61 : vector<2x8x8xf32>
    %302 = vector.extract_strided_slice %291 {offsets = [0, 0, 8], sizes = [2, 8, 8], strides = [1, 1, 1]} : vector<2x8x32xf32> to vector<2x8x8xf32>
    %303 = vector.extract_strided_slice %293 {offsets = [0, 0, 8], sizes = [2, 8, 8], strides = [1, 1, 1]} : vector<2x8x32xf32> to vector<2x8x8xf32>
    "tpu.trace_start"() <{level = 10 : i32, message = "bqd,bkd->bqk"}> : () -> ()
    %cst_190 = arith.constant dense<0.000000e+00> : vector<2x8x8xf32>
    %304 = tpu.matmul %302, %303, %cst_190 {dimension_numbers = #tpu.dot_dimension_numbers<[2], [2], [1], [1], [0, 0, 0, 1, 1, 1], [0], [0]>} : vector<2x8x8xf32>, vector<2x8x8xf32>, vector<2x8x8xf32> -> vector<2x8x8xf32>
    "tpu.trace_stop"() : () -> ()
    %cst_191 = arith.constant 0.353553385 : f32
    %305 = vector.broadcast %cst_191 : f32 to vector<2x8x8xf32>
    %306 = arith.mulf %304, %305 : vector<2x8x8xf32>
    %307 = arith.addf %306, %61 : vector<2x8x8xf32>
    %308 = vector.extract_strided_slice %291 {offsets = [0, 0, 16], sizes = [2, 8, 8], strides = [1, 1, 1]} : vector<2x8x32xf32> to vector<2x8x8xf32>
    %309 = vector.extract_strided_slice %293 {offsets = [0, 0, 16], sizes = [2, 8, 8], strides = [1, 1, 1]} : vector<2x8x32xf32> to vector<2x8x8xf32>
    "tpu.trace_start"() <{level = 10 : i32, message = "bqd,bkd->bqk"}> : () -> ()
    %cst_192 = arith.constant dense<0.000000e+00> : vector<2x8x8xf32>
    %310 = tpu.matmul %308, %309, %cst_192 {dimension_numbers = #tpu.dot_dimension_numbers<[2], [2], [1], [1], [0, 0, 0, 1, 1, 1], [0], [0]>} : vector<2x8x8xf32>, vector<2x8x8xf32>, vector<2x8x8xf32> -> vector<2x8x8xf32>
    "tpu.trace_stop"() : () -> ()
    %cst_193 = arith.constant 0.353553385 : f32
    %311 = vector.broadcast %cst_193 : f32 to vector<2x8x8xf32>
    %312 = arith.mulf %310, %311 : vector<2x8x8xf32>
    %313 = arith.addf %312, %61 : vector<2x8x8xf32>
    %314 = vector.extract_strided_slice %291 {offsets = [0, 0, 24], sizes = [2, 8, 8], strides = [1, 1, 1]} : vector<2x8x32xf32> to vector<2x8x8xf32>
    %315 = vector.extract_strided_slice %293 {offsets = [0, 0, 24], sizes = [2, 8, 8], strides = [1, 1, 1]} : vector<2x8x32xf32> to vector<2x8x8xf32>
    "tpu.trace_start"() <{level = 10 : i32, message = "bqd,bkd->bqk"}> : () -> ()
    %cst_194 = arith.constant dense<0.000000e+00> : vector<2x8x8xf32>
    %316 = tpu.matmul %314, %315, %cst_194 {dimension_numbers = #tpu.dot_dimension_numbers<[2], [2], [1], [1], [0, 0, 0, 1, 1, 1], [0], [0]>} : vector<2x8x8xf32>, vector<2x8x8xf32>, vector<2x8x8xf32> -> vector<2x8x8xf32>
    "tpu.trace_stop"() : () -> ()
    %cst_195 = arith.constant 0.353553385 : f32
    %317 = vector.broadcast %cst_195 : f32 to vector<2x8x8xf32>
    %318 = arith.mulf %316, %317 : vector<2x8x8xf32>
    %319 = arith.addf %318, %61 : vector<2x8x8xf32>
    %320 = tpu.concatenate %301, %307, %313, %319 in 1 : vector<2x8x8xf32>, vector<2x8x8xf32>, vector<2x8x8xf32>, vector<2x8x8xf32> -> vector<2x32x8xf32>
    %cst_196 = arith.constant dense<0xFF800000> : vector<2x32xf32>
    %321 = vector.multi_reduction <maximumf>, %320, %cst_196 [2] : vector<2x32x8xf32> to vector<2x32xf32>
    %322 = vector.shape_cast %321 : vector<2x32xf32> to vector<2x32x1xf32>
    %323 = vector.broadcast %322 : vector<2x32x1xf32> to vector<2x32x8xf32>
    %324 = arith.subf %320, %323 : vector<2x32x8xf32>
    %325 = math.exp %324 : vector<2x32x8xf32>
    %cst_197 = arith.constant dense<0.000000e+00> : vector<2x32xf32>
    %326 = vector.multi_reduction <add>, %325, %cst_197 [2] : vector<2x32x8xf32> to vector<2x32xf32>
    %327 = vector.shape_cast %326 : vector<2x32xf32> to vector<2x32x1xf32>
    %328 = tpu.reciprocal %327 {approx = true} : vector<2x32x1xf32> -> vector<2x32x1xf32>
    %329 = vector.broadcast %328 : vector<2x32x1xf32> to vector<2x32x8xf32>
    %330 = arith.mulf %325, %329 : vector<2x32x8xf32>
    %331 = vector.extract_strided_slice %330 {offsets = [0, 0, 0], sizes = [2, 8, 8], strides = [1, 1, 1]} : vector<2x32x8xf32> to vector<2x8x8xf32>
    %332 = vector.extract_strided_slice %295 {offsets = [0, 0, 0], sizes = [2, 8, 8], strides = [1, 1, 1]} : vector<2x8x32xf32> to vector<2x8x8xf32>
    "tpu.trace_start"() <{level = 10 : i32, message = "bqk,bkd->bqd"}> : () -> ()
    %cst_198 = arith.constant dense<0.000000e+00> : vector<2x8x8xf32>
    %333 = tpu.matmul %331, %332, %cst_198 {dimension_numbers = #tpu.dot_dimension_numbers<[2], [1], [1], [2], [0, 0, 0, 1, 1, 2], [0], [0]>} : vector<2x8x8xf32>, vector<2x8x8xf32>, vector<2x8x8xf32> -> vector<2x8x8xf32>
    "tpu.trace_stop"() : () -> ()
    %334 = vector.extract_strided_slice %330 {offsets = [0, 8, 0], sizes = [2, 8, 8], strides = [1, 1, 1]} : vector<2x32x8xf32> to vector<2x8x8xf32>
    %335 = vector.extract_strided_slice %295 {offsets = [0, 0, 8], sizes = [2, 8, 8], strides = [1, 1, 1]} : vector<2x8x32xf32> to vector<2x8x8xf32>
    "tpu.trace_start"() <{level = 10 : i32, message = "bqk,bkd->bqd"}> : () -> ()
    %cst_199 = arith.constant dense<0.000000e+00> : vector<2x8x8xf32>
    %336 = tpu.matmul %334, %335, %cst_199 {dimension_numbers = #tpu.dot_dimension_numbers<[2], [1], [1], [2], [0, 0, 0, 1, 1, 2], [0], [0]>} : vector<2x8x8xf32>, vector<2x8x8xf32>, vector<2x8x8xf32> -> vector<2x8x8xf32>
    "tpu.trace_stop"() : () -> ()
    %337 = vector.extract_strided_slice %330 {offsets = [0, 16, 0], sizes = [2, 8, 8], strides = [1, 1, 1]} : vector<2x32x8xf32> to vector<2x8x8xf32>
    %338 = vector.extract_strided_slice %295 {offsets = [0, 0, 16], sizes = [2, 8, 8], strides = [1, 1, 1]} : vector<2x8x32xf32> to vector<2x8x8xf32>
    "tpu.trace_start"() <{level = 10 : i32, message = "bqk,bkd->bqd"}> : () -> ()
    %cst_200 = arith.constant dense<0.000000e+00> : vector<2x8x8xf32>
    %339 = tpu.matmul %337, %338, %cst_200 {dimension_numbers = #tpu.dot_dimension_numbers<[2], [1], [1], [2], [0, 0, 0, 1, 1, 2], [0], [0]>} : vector<2x8x8xf32>, vector<2x8x8xf32>, vector<2x8x8xf32> -> vector<2x8x8xf32>
    "tpu.trace_stop"() : () -> ()
    %340 = vector.extract_strided_slice %330 {offsets = [0, 24, 0], sizes = [2, 8, 8], strides = [1, 1, 1]} : vector<2x32x8xf32> to vector<2x8x8xf32>
    %341 = vector.extract_strided_slice %295 {offsets = [0, 0, 24], sizes = [2, 8, 8], strides = [1, 1, 1]} : vector<2x8x32xf32> to vector<2x8x8xf32>
    "tpu.trace_start"() <{level = 10 : i32, message = "bqk,bkd->bqd"}> : () -> ()
    %cst_201 = arith.constant dense<0.000000e+00> : vector<2x8x8xf32>
    %342 = tpu.matmul %340, %341, %cst_201 {dimension_numbers = #tpu.dot_dimension_numbers<[2], [1], [1], [2], [0, 0, 0, 1, 1, 2], [0], [0]>} : vector<2x8x8xf32>, vector<2x8x8xf32>, vector<2x8x8xf32> -> vector<2x8x8xf32>
    "tpu.trace_stop"() : () -> ()
    %343 = tpu.concatenate %333, %336, %339, %342 in 2 : vector<2x8x8xf32>, vector<2x8x8xf32>, vector<2x8x8xf32>, vector<2x8x8xf32> -> vector<2x8x32xf32>
    %344 = vector.shape_cast %343 : vector<2x8x32xf32> to vector<16x32xf32>
    %cst_202 = arith.constant dense<0.000000e+00> : vector<16x32xf32>
    %345 = tpu.matmul %344, %16, %cst_202 {dimension_numbers = #tpu.dot_dimension_numbers<[1], [0], [0], [1], [0, 0, 1, 1], [], []>} : vector<16x32xf32>, vector<32x32xf32>, vector<16x32xf32> -> vector<16x32xf32>
    %346 = vector.broadcast %12 : vector<1x32xf32> to vector<16x32xf32>
    %347 = arith.addf %345, %346 : vector<16x32xf32>
    %348 = arith.addf %347, %286 : vector<16x32xf32>
    %cst_203 = arith.constant dense<0.000000e+00> : vector<16xf32>
    %349 = vector.multi_reduction <add>, %348, %cst_203 [1] : vector<16x32xf32> to vector<16xf32>
    %350 = vector.shape_cast %349 : vector<16xf32> to vector<16x1xf32>
    %cst_204 = arith.constant 3.200000e+01 : f32
    %351 = vector.broadcast %cst_204 : f32 to vector<16x1xf32>
    %352 = arith.divf %350, %351 : vector<16x1xf32>
    %353 = vector.broadcast %352 : vector<16x1xf32> to vector<16x32xf32>
    %354 = arith.subf %348, %353 : vector<16x32xf32>
    %355 = arith.mulf %354, %354 : vector<16x32xf32>
    %cst_205 = arith.constant dense<0.000000e+00> : vector<16xf32>
    %356 = vector.multi_reduction <add>, %355, %cst_205 [1] : vector<16x32xf32> to vector<16xf32>
    %357 = vector.shape_cast %356 : vector<16xf32> to vector<16x1xf32>
    %cst_206 = arith.constant 3.200000e+01 : f32
    %358 = vector.broadcast %cst_206 : f32 to vector<16x1xf32>
    %359 = arith.divf %357, %358 : vector<16x1xf32>
    %cst_207 = arith.constant 9.99999974E-6 : f32
    %360 = vector.broadcast %cst_207 : f32 to vector<16x1xf32>
    %361 = arith.addf %359, %360 : vector<16x1xf32>
    %362 = math.rsqrt %361 : vector<16x1xf32>
    %363 = vector.broadcast %362 : vector<16x1xf32> to vector<16x32xf32>
    %364 = arith.mulf %354, %363 : vector<16x32xf32>
    %365 = vector.broadcast %15 : vector<1x32xf32> to vector<16x32xf32>
    %366 = arith.mulf %364, %365 : vector<16x32xf32>
    %367 = vector.broadcast %14 : vector<1x32xf32> to vector<16x32xf32>
    %368 = arith.addf %366, %367 : vector<16x32xf32>
    %369 = vector.shape_cast %368 : vector<16x32xf32> to vector<2x8x32xf32>
    %370 = vector.shape_cast %369 : vector<2x8x32xf32> to vector<16x32xf32>
    %371 = vector.shape_cast %284 : vector<2x8x32xf32> to vector<16x32xf32>
    %372 = vector.extract_strided_slice %5 {offsets = [0, 0], sizes = [32, 32], strides = [1, 1]} : vector<32x96xf32> to vector<32x32xf32>
    %cst_208 = arith.constant dense<0.000000e+00> : vector<16x32xf32>
    %373 = tpu.matmul %370, %372, %cst_208 {dimension_numbers = #tpu.dot_dimension_numbers<[1], [0], [0], [1], [0, 0, 1, 1], [], []>} : vector<16x32xf32>, vector<32x32xf32>, vector<16x32xf32> -> vector<16x32xf32>
    %374 = vector.extract_strided_slice %1 {offsets = [0, 0], sizes = [1, 32], strides = [1, 1]} : vector<1x96xf32> to vector<1x32xf32>
    %375 = vector.broadcast %374 : vector<1x32xf32> to vector<16x32xf32>
    %376 = arith.addf %373, %375 : vector<16x32xf32>
    %377 = vector.shape_cast %376 : vector<16x32xf32> to vector<2x8x32xf32>
    %378 = vector.extract_strided_slice %5 {offsets = [0, 32], sizes = [32, 32], strides = [1, 1]} : vector<32x96xf32> to vector<32x32xf32>
    %cst_209 = arith.constant dense<0.000000e+00> : vector<16x32xf32>
    %379 = tpu.matmul %371, %378, %cst_209 {dimension_numbers = #tpu.dot_dimension_numbers<[1], [0], [0], [1], [0, 0, 1, 1], [], []>} : vector<16x32xf32>, vector<32x32xf32>, vector<16x32xf32> -> vector<16x32xf32>
    %380 = vector.extract_strided_slice %1 {offsets = [0, 32], sizes = [1, 32], strides = [1, 1]} : vector<1x96xf32> to vector<1x32xf32>
    %381 = vector.broadcast %380 : vector<1x32xf32> to vector<16x32xf32>
    %382 = arith.addf %379, %381 : vector<16x32xf32>
    %383 = vector.shape_cast %382 : vector<16x32xf32> to vector<2x8x32xf32>
    %384 = vector.extract_strided_slice %5 {offsets = [0, 64], sizes = [32, 32], strides = [1, 1]} : vector<32x96xf32> to vector<32x32xf32>
    %cst_210 = arith.constant dense<0.000000e+00> : vector<16x32xf32>
    %385 = tpu.matmul %371, %384, %cst_210 {dimension_numbers = #tpu.dot_dimension_numbers<[1], [0], [0], [1], [0, 0, 1, 1], [], []>} : vector<16x32xf32>, vector<32x32xf32>, vector<16x32xf32> -> vector<16x32xf32>
    %386 = vector.extract_strided_slice %1 {offsets = [0, 64], sizes = [1, 32], strides = [1, 1]} : vector<1x96xf32> to vector<1x32xf32>
    %387 = vector.broadcast %386 : vector<1x32xf32> to vector<16x32xf32>
    %388 = arith.addf %385, %387 : vector<16x32xf32>
    %389 = vector.shape_cast %388 : vector<16x32xf32> to vector<2x8x32xf32>
    %390 = vector.extract_strided_slice %377 {offsets = [0, 0, 0], sizes = [2, 8, 8], strides = [1, 1, 1]} : vector<2x8x32xf32> to vector<2x8x8xf32>
    %391 = vector.extract_strided_slice %383 {offsets = [0, 0, 0], sizes = [2, 8, 8], strides = [1, 1, 1]} : vector<2x8x32xf32> to vector<2x8x8xf32>
    "tpu.trace_start"() <{level = 10 : i32, message = "bqd,bkd->bqk"}> : () -> ()
    %cst_211 = arith.constant dense<0.000000e+00> : vector<2x8x8xf32>
    %392 = tpu.matmul %390, %391, %cst_211 {dimension_numbers = #tpu.dot_dimension_numbers<[2], [2], [1], [1], [0, 0, 0, 1, 1, 1], [0], [0]>} : vector<2x8x8xf32>, vector<2x8x8xf32>, vector<2x8x8xf32> -> vector<2x8x8xf32>
    "tpu.trace_stop"() : () -> ()
    %cst_212 = arith.constant 0.353553385 : f32
    %393 = vector.broadcast %cst_212 : f32 to vector<2x8x8xf32>
    %394 = arith.mulf %392, %393 : vector<2x8x8xf32>
    %395 = vector.extract_strided_slice %377 {offsets = [0, 0, 8], sizes = [2, 8, 8], strides = [1, 1, 1]} : vector<2x8x32xf32> to vector<2x8x8xf32>
    %396 = vector.extract_strided_slice %383 {offsets = [0, 0, 8], sizes = [2, 8, 8], strides = [1, 1, 1]} : vector<2x8x32xf32> to vector<2x8x8xf32>
    "tpu.trace_start"() <{level = 10 : i32, message = "bqd,bkd->bqk"}> : () -> ()
    %cst_213 = arith.constant dense<0.000000e+00> : vector<2x8x8xf32>
    %397 = tpu.matmul %395, %396, %cst_213 {dimension_numbers = #tpu.dot_dimension_numbers<[2], [2], [1], [1], [0, 0, 0, 1, 1, 1], [0], [0]>} : vector<2x8x8xf32>, vector<2x8x8xf32>, vector<2x8x8xf32> -> vector<2x8x8xf32>
    "tpu.trace_stop"() : () -> ()
    %cst_214 = arith.constant 0.353553385 : f32
    %398 = vector.broadcast %cst_214 : f32 to vector<2x8x8xf32>
    %399 = arith.mulf %397, %398 : vector<2x8x8xf32>
    %400 = vector.extract_strided_slice %377 {offsets = [0, 0, 16], sizes = [2, 8, 8], strides = [1, 1, 1]} : vector<2x8x32xf32> to vector<2x8x8xf32>
    %401 = vector.extract_strided_slice %383 {offsets = [0, 0, 16], sizes = [2, 8, 8], strides = [1, 1, 1]} : vector<2x8x32xf32> to vector<2x8x8xf32>
    "tpu.trace_start"() <{level = 10 : i32, message = "bqd,bkd->bqk"}> : () -> ()
    %cst_215 = arith.constant dense<0.000000e+00> : vector<2x8x8xf32>
    %402 = tpu.matmul %400, %401, %cst_215 {dimension_numbers = #tpu.dot_dimension_numbers<[2], [2], [1], [1], [0, 0, 0, 1, 1, 1], [0], [0]>} : vector<2x8x8xf32>, vector<2x8x8xf32>, vector<2x8x8xf32> -> vector<2x8x8xf32>
    "tpu.trace_stop"() : () -> ()
    %cst_216 = arith.constant 0.353553385 : f32
    %403 = vector.broadcast %cst_216 : f32 to vector<2x8x8xf32>
    %404 = arith.mulf %402, %403 : vector<2x8x8xf32>
    %405 = vector.extract_strided_slice %377 {offsets = [0, 0, 24], sizes = [2, 8, 8], strides = [1, 1, 1]} : vector<2x8x32xf32> to vector<2x8x8xf32>
    %406 = vector.extract_strided_slice %383 {offsets = [0, 0, 24], sizes = [2, 8, 8], strides = [1, 1, 1]} : vector<2x8x32xf32> to vector<2x8x8xf32>
    "tpu.trace_start"() <{level = 10 : i32, message = "bqd,bkd->bqk"}> : () -> ()
    %cst_217 = arith.constant dense<0.000000e+00> : vector<2x8x8xf32>
    %407 = tpu.matmul %405, %406, %cst_217 {dimension_numbers = #tpu.dot_dimension_numbers<[2], [2], [1], [1], [0, 0, 0, 1, 1, 1], [0], [0]>} : vector<2x8x8xf32>, vector<2x8x8xf32>, vector<2x8x8xf32> -> vector<2x8x8xf32>
    "tpu.trace_stop"() : () -> ()
    %cst_218 = arith.constant 0.353553385 : f32
    %408 = vector.broadcast %cst_218 : f32 to vector<2x8x8xf32>
    %409 = arith.mulf %407, %408 : vector<2x8x8xf32>
    %410 = tpu.concatenate %394, %399, %404, %409 in 1 : vector<2x8x8xf32>, vector<2x8x8xf32>, vector<2x8x8xf32>, vector<2x8x8xf32> -> vector<2x32x8xf32>
    %cst_219 = arith.constant dense<0xFF800000> : vector<2x32xf32>
    %411 = vector.multi_reduction <maximumf>, %410, %cst_219 [2] : vector<2x32x8xf32> to vector<2x32xf32>
    %412 = vector.shape_cast %411 : vector<2x32xf32> to vector<2x32x1xf32>
    %413 = vector.broadcast %412 : vector<2x32x1xf32> to vector<2x32x8xf32>
    %414 = arith.subf %410, %413 : vector<2x32x8xf32>
    %415 = math.exp %414 : vector<2x32x8xf32>
    %cst_220 = arith.constant dense<0.000000e+00> : vector<2x32xf32>
    %416 = vector.multi_reduction <add>, %415, %cst_220 [2] : vector<2x32x8xf32> to vector<2x32xf32>
    %417 = vector.shape_cast %416 : vector<2x32xf32> to vector<2x32x1xf32>
    %418 = tpu.reciprocal %417 {approx = true} : vector<2x32x1xf32> -> vector<2x32x1xf32>
    %419 = vector.broadcast %418 : vector<2x32x1xf32> to vector<2x32x8xf32>
    %420 = arith.mulf %415, %419 : vector<2x32x8xf32>
    %421 = vector.extract_strided_slice %420 {offsets = [0, 0, 0], sizes = [2, 8, 8], strides = [1, 1, 1]} : vector<2x32x8xf32> to vector<2x8x8xf32>
    %422 = vector.extract_strided_slice %389 {offsets = [0, 0, 0], sizes = [2, 8, 8], strides = [1, 1, 1]} : vector<2x8x32xf32> to vector<2x8x8xf32>
    "tpu.trace_start"() <{level = 10 : i32, message = "bqk,bkd->bqd"}> : () -> ()
    %cst_221 = arith.constant dense<0.000000e+00> : vector<2x8x8xf32>
    %423 = tpu.matmul %421, %422, %cst_221 {dimension_numbers = #tpu.dot_dimension_numbers<[2], [1], [1], [2], [0, 0, 0, 1, 1, 2], [0], [0]>} : vector<2x8x8xf32>, vector<2x8x8xf32>, vector<2x8x8xf32> -> vector<2x8x8xf32>
    "tpu.trace_stop"() : () -> ()
    %424 = vector.extract_strided_slice %420 {offsets = [0, 8, 0], sizes = [2, 8, 8], strides = [1, 1, 1]} : vector<2x32x8xf32> to vector<2x8x8xf32>
    %425 = vector.extract_strided_slice %389 {offsets = [0, 0, 8], sizes = [2, 8, 8], strides = [1, 1, 1]} : vector<2x8x32xf32> to vector<2x8x8xf32>
    "tpu.trace_start"() <{level = 10 : i32, message = "bqk,bkd->bqd"}> : () -> ()
    %cst_222 = arith.constant dense<0.000000e+00> : vector<2x8x8xf32>
    %426 = tpu.matmul %424, %425, %cst_222 {dimension_numbers = #tpu.dot_dimension_numbers<[2], [1], [1], [2], [0, 0, 0, 1, 1, 2], [0], [0]>} : vector<2x8x8xf32>, vector<2x8x8xf32>, vector<2x8x8xf32> -> vector<2x8x8xf32>
    "tpu.trace_stop"() : () -> ()
    %427 = vector.extract_strided_slice %420 {offsets = [0, 16, 0], sizes = [2, 8, 8], strides = [1, 1, 1]} : vector<2x32x8xf32> to vector<2x8x8xf32>
    %428 = vector.extract_strided_slice %389 {offsets = [0, 0, 16], sizes = [2, 8, 8], strides = [1, 1, 1]} : vector<2x8x32xf32> to vector<2x8x8xf32>
    "tpu.trace_start"() <{level = 10 : i32, message = "bqk,bkd->bqd"}> : () -> ()
    %cst_223 = arith.constant dense<0.000000e+00> : vector<2x8x8xf32>
    %429 = tpu.matmul %427, %428, %cst_223 {dimension_numbers = #tpu.dot_dimension_numbers<[2], [1], [1], [2], [0, 0, 0, 1, 1, 2], [0], [0]>} : vector<2x8x8xf32>, vector<2x8x8xf32>, vector<2x8x8xf32> -> vector<2x8x8xf32>
    "tpu.trace_stop"() : () -> ()
    %430 = vector.extract_strided_slice %420 {offsets = [0, 24, 0], sizes = [2, 8, 8], strides = [1, 1, 1]} : vector<2x32x8xf32> to vector<2x8x8xf32>
    %431 = vector.extract_strided_slice %389 {offsets = [0, 0, 24], sizes = [2, 8, 8], strides = [1, 1, 1]} : vector<2x8x32xf32> to vector<2x8x8xf32>
    "tpu.trace_start"() <{level = 10 : i32, message = "bqk,bkd->bqd"}> : () -> ()
    %cst_224 = arith.constant dense<0.000000e+00> : vector<2x8x8xf32>
    %432 = tpu.matmul %430, %431, %cst_224 {dimension_numbers = #tpu.dot_dimension_numbers<[2], [1], [1], [2], [0, 0, 0, 1, 1, 2], [0], [0]>} : vector<2x8x8xf32>, vector<2x8x8xf32>, vector<2x8x8xf32> -> vector<2x8x8xf32>
    "tpu.trace_stop"() : () -> ()
    %433 = tpu.concatenate %423, %426, %429, %432 in 2 : vector<2x8x8xf32>, vector<2x8x8xf32>, vector<2x8x8xf32>, vector<2x8x8xf32> -> vector<2x8x32xf32>
    %434 = vector.shape_cast %433 : vector<2x8x32xf32> to vector<16x32xf32>
    %cst_225 = arith.constant dense<0.000000e+00> : vector<16x32xf32>
    %435 = tpu.matmul %434, %4, %cst_225 {dimension_numbers = #tpu.dot_dimension_numbers<[1], [0], [0], [1], [0, 0, 1, 1], [], []>} : vector<16x32xf32>, vector<32x32xf32>, vector<16x32xf32> -> vector<16x32xf32>
    %436 = vector.broadcast %0 : vector<1x32xf32> to vector<16x32xf32>
    %437 = arith.addf %435, %436 : vector<16x32xf32>
    %438 = arith.addf %437, %370 : vector<16x32xf32>
    %cst_226 = arith.constant dense<0.000000e+00> : vector<16xf32>
    %439 = vector.multi_reduction <add>, %438, %cst_226 [1] : vector<16x32xf32> to vector<16xf32>
    %440 = vector.shape_cast %439 : vector<16xf32> to vector<16x1xf32>
    %cst_227 = arith.constant 3.200000e+01 : f32
    %441 = vector.broadcast %cst_227 : f32 to vector<16x1xf32>
    %442 = arith.divf %440, %441 : vector<16x1xf32>
    %443 = vector.broadcast %442 : vector<16x1xf32> to vector<16x32xf32>
    %444 = arith.subf %438, %443 : vector<16x32xf32>
    %445 = arith.mulf %444, %444 : vector<16x32xf32>
    %cst_228 = arith.constant dense<0.000000e+00> : vector<16xf32>
    %446 = vector.multi_reduction <add>, %445, %cst_228 [1] : vector<16x32xf32> to vector<16xf32>
    %447 = vector.shape_cast %446 : vector<16xf32> to vector<16x1xf32>
    %cst_229 = arith.constant 3.200000e+01 : f32
    %448 = vector.broadcast %cst_229 : f32 to vector<16x1xf32>
    %449 = arith.divf %447, %448 : vector<16x1xf32>
    %cst_230 = arith.constant 9.99999974E-6 : f32
    %450 = vector.broadcast %cst_230 : f32 to vector<16x1xf32>
    %451 = arith.addf %449, %450 : vector<16x1xf32>
    %452 = math.rsqrt %451 : vector<16x1xf32>
    %453 = vector.broadcast %452 : vector<16x1xf32> to vector<16x32xf32>
    %454 = arith.mulf %444, %453 : vector<16x32xf32>
    %455 = vector.broadcast %3 : vector<1x32xf32> to vector<16x32xf32>
    %456 = arith.mulf %454, %455 : vector<16x32xf32>
    %457 = vector.broadcast %2 : vector<1x32xf32> to vector<16x32xf32>
    %458 = arith.addf %456, %457 : vector<16x32xf32>
    %459 = vector.shape_cast %458 : vector<16x32xf32> to vector<2x8x32xf32>
    %460 = vector.shape_cast %459 : vector<2x8x32xf32> to vector<16x32xf32>
    %cst_231 = arith.constant dense<0.000000e+00> : vector<16x64xf32>
    %461 = tpu.matmul %460, %10, %cst_231 {dimension_numbers = #tpu.dot_dimension_numbers<[1], [0], [0], [1], [0, 0, 1, 1], [], []>} : vector<16x32xf32>, vector<32x64xf32>, vector<16x64xf32> -> vector<16x64xf32>
    %462 = vector.broadcast %6 : vector<1x64xf32> to vector<16x64xf32>
    %463 = arith.addf %461, %462 : vector<16x64xf32>
    %cst_232 = arith.constant 0.000000e+00 : f32
    %464 = vector.broadcast %cst_232 : f32 to vector<16x64xf32>
    %465 = arith.maximumf %463, %464 : vector<16x64xf32>
    %cst_233 = arith.constant dense<0.000000e+00> : vector<16x32xf32>
    %466 = tpu.matmul %465, %11, %cst_233 {dimension_numbers = #tpu.dot_dimension_numbers<[1], [0], [0], [1], [0, 0, 1, 1], [], []>} : vector<16x64xf32>, vector<64x32xf32>, vector<16x32xf32> -> vector<16x32xf32>
    %467 = vector.broadcast %7 : vector<1x32xf32> to vector<16x32xf32>
    %468 = arith.addf %466, %467 : vector<16x32xf32>
    %469 = arith.addf %468, %460 : vector<16x32xf32>
    %cst_234 = arith.constant dense<0.000000e+00> : vector<16xf32>
    %470 = vector.multi_reduction <add>, %469, %cst_234 [1] : vector<16x32xf32> to vector<16xf32>
    %471 = vector.shape_cast %470 : vector<16xf32> to vector<16x1xf32>
    %cst_235 = arith.constant 3.200000e+01 : f32
    %472 = vector.broadcast %cst_235 : f32 to vector<16x1xf32>
    %473 = arith.divf %471, %472 : vector<16x1xf32>
    %474 = vector.broadcast %473 : vector<16x1xf32> to vector<16x32xf32>
    %475 = arith.subf %469, %474 : vector<16x32xf32>
    %476 = arith.mulf %475, %475 : vector<16x32xf32>
    %cst_236 = arith.constant dense<0.000000e+00> : vector<16xf32>
    %477 = vector.multi_reduction <add>, %476, %cst_236 [1] : vector<16x32xf32> to vector<16xf32>
    %478 = vector.shape_cast %477 : vector<16xf32> to vector<16x1xf32>
    %cst_237 = arith.constant 3.200000e+01 : f32
    %479 = vector.broadcast %cst_237 : f32 to vector<16x1xf32>
    %480 = arith.divf %478, %479 : vector<16x1xf32>
    %cst_238 = arith.constant 9.99999974E-6 : f32
    %481 = vector.broadcast %cst_238 : f32 to vector<16x1xf32>
    %482 = arith.addf %480, %481 : vector<16x1xf32>
    %483 = math.rsqrt %482 : vector<16x1xf32>
    %484 = vector.broadcast %483 : vector<16x1xf32> to vector<16x32xf32>
    %485 = arith.mulf %475, %484 : vector<16x32xf32>
    %486 = vector.broadcast %9 : vector<1x32xf32> to vector<16x32xf32>
    %487 = arith.mulf %485, %486 : vector<16x32xf32>
    %488 = vector.broadcast %8 : vector<1x32xf32> to vector<16x32xf32>
    %489 = arith.addf %487, %488 : vector<16x32xf32>
    %490 = vector.shape_cast %489 : vector<16x32xf32> to vector<2x8x32xf32>
    %491 = vector.shape_cast %490 : vector<2x8x32xf32> to vector<16x32xf32>
    %cst_239 = arith.constant dense<0.000000e+00> : vector<16x96xf32>
    %492 = tpu.matmul %491, %35, %cst_239 {dimension_numbers = #tpu.dot_dimension_numbers<[1], [0], [0], [1], [0, 0, 1, 1], [], []>} : vector<16x32xf32>, vector<32x96xf32>, vector<16x96xf32> -> vector<16x96xf32>
    %493 = vector.broadcast %31 : vector<1x96xf32> to vector<16x96xf32>
    %494 = arith.addf %492, %493 : vector<16x96xf32>
    %495 = vector.extract_strided_slice %494 {offsets = [0, 0], sizes = [16, 32], strides = [1, 1]} : vector<16x96xf32> to vector<16x32xf32>
    %496 = vector.shape_cast %495 : vector<16x32xf32> to vector<2x8x32xf32>
    %497 = vector.extract_strided_slice %494 {offsets = [0, 32], sizes = [16, 32], strides = [1, 1]} : vector<16x96xf32> to vector<16x32xf32>
    %498 = vector.shape_cast %497 : vector<16x32xf32> to vector<2x8x32xf32>
    %499 = vector.extract_strided_slice %494 {offsets = [0, 64], sizes = [16, 32], strides = [1, 1]} : vector<16x96xf32> to vector<16x32xf32>
    %500 = vector.shape_cast %499 : vector<16x32xf32> to vector<2x8x32xf32>
    %501 = vector.extract_strided_slice %496 {offsets = [0, 0, 0], sizes = [2, 8, 8], strides = [1, 1, 1]} : vector<2x8x32xf32> to vector<2x8x8xf32>
    %502 = vector.extract_strided_slice %498 {offsets = [0, 0, 0], sizes = [2, 8, 8], strides = [1, 1, 1]} : vector<2x8x32xf32> to vector<2x8x8xf32>
    "tpu.trace_start"() <{level = 10 : i32, message = "bqd,bkd->bqk"}> : () -> ()
    %cst_240 = arith.constant dense<0.000000e+00> : vector<2x8x8xf32>
    %503 = tpu.matmul %501, %502, %cst_240 {dimension_numbers = #tpu.dot_dimension_numbers<[2], [2], [1], [1], [0, 0, 0, 1, 1, 1], [0], [0]>} : vector<2x8x8xf32>, vector<2x8x8xf32>, vector<2x8x8xf32> -> vector<2x8x8xf32>
    "tpu.trace_stop"() : () -> ()
    %cst_241 = arith.constant 0.353553385 : f32
    %504 = vector.broadcast %cst_241 : f32 to vector<2x8x8xf32>
    %505 = arith.mulf %503, %504 : vector<2x8x8xf32>
    %506 = arith.addf %505, %61 : vector<2x8x8xf32>
    %507 = vector.extract_strided_slice %496 {offsets = [0, 0, 8], sizes = [2, 8, 8], strides = [1, 1, 1]} : vector<2x8x32xf32> to vector<2x8x8xf32>
    %508 = vector.extract_strided_slice %498 {offsets = [0, 0, 8], sizes = [2, 8, 8], strides = [1, 1, 1]} : vector<2x8x32xf32> to vector<2x8x8xf32>
    "tpu.trace_start"() <{level = 10 : i32, message = "bqd,bkd->bqk"}> : () -> ()
    %cst_242 = arith.constant dense<0.000000e+00> : vector<2x8x8xf32>
    %509 = tpu.matmul %507, %508, %cst_242 {dimension_numbers = #tpu.dot_dimension_numbers<[2], [2], [1], [1], [0, 0, 0, 1, 1, 1], [0], [0]>} : vector<2x8x8xf32>, vector<2x8x8xf32>, vector<2x8x8xf32> -> vector<2x8x8xf32>
    "tpu.trace_stop"() : () -> ()
    %cst_243 = arith.constant 0.353553385 : f32
    %510 = vector.broadcast %cst_243 : f32 to vector<2x8x8xf32>
    %511 = arith.mulf %509, %510 : vector<2x8x8xf32>
    %512 = arith.addf %511, %61 : vector<2x8x8xf32>
    %513 = vector.extract_strided_slice %496 {offsets = [0, 0, 16], sizes = [2, 8, 8], strides = [1, 1, 1]} : vector<2x8x32xf32> to vector<2x8x8xf32>
    %514 = vector.extract_strided_slice %498 {offsets = [0, 0, 16], sizes = [2, 8, 8], strides = [1, 1, 1]} : vector<2x8x32xf32> to vector<2x8x8xf32>
    "tpu.trace_start"() <{level = 10 : i32, message = "bqd,bkd->bqk"}> : () -> ()
    %cst_244 = arith.constant dense<0.000000e+00> : vector<2x8x8xf32>
    %515 = tpu.matmul %513, %514, %cst_244 {dimension_numbers = #tpu.dot_dimension_numbers<[2], [2], [1], [1], [0, 0, 0, 1, 1, 1], [0], [0]>} : vector<2x8x8xf32>, vector<2x8x8xf32>, vector<2x8x8xf32> -> vector<2x8x8xf32>
    "tpu.trace_stop"() : () -> ()
    %cst_245 = arith.constant 0.353553385 : f32
    %516 = vector.broadcast %cst_245 : f32 to vector<2x8x8xf32>
    %517 = arith.mulf %515, %516 : vector<2x8x8xf32>
    %518 = arith.addf %517, %61 : vector<2x8x8xf32>
    %519 = vector.extract_strided_slice %496 {offsets = [0, 0, 24], sizes = [2, 8, 8], strides = [1, 1, 1]} : vector<2x8x32xf32> to vector<2x8x8xf32>
    %520 = vector.extract_strided_slice %498 {offsets = [0, 0, 24], sizes = [2, 8, 8], strides = [1, 1, 1]} : vector<2x8x32xf32> to vector<2x8x8xf32>
    "tpu.trace_start"() <{level = 10 : i32, message = "bqd,bkd->bqk"}> : () -> ()
    %cst_246 = arith.constant dense<0.000000e+00> : vector<2x8x8xf32>
    %521 = tpu.matmul %519, %520, %cst_246 {dimension_numbers = #tpu.dot_dimension_numbers<[2], [2], [1], [1], [0, 0, 0, 1, 1, 1], [0], [0]>} : vector<2x8x8xf32>, vector<2x8x8xf32>, vector<2x8x8xf32> -> vector<2x8x8xf32>
    "tpu.trace_stop"() : () -> ()
    %cst_247 = arith.constant 0.353553385 : f32
    %522 = vector.broadcast %cst_247 : f32 to vector<2x8x8xf32>
    %523 = arith.mulf %521, %522 : vector<2x8x8xf32>
    %524 = arith.addf %523, %61 : vector<2x8x8xf32>
    %525 = tpu.concatenate %506, %512, %518, %524 in 1 : vector<2x8x8xf32>, vector<2x8x8xf32>, vector<2x8x8xf32>, vector<2x8x8xf32> -> vector<2x32x8xf32>
    %cst_248 = arith.constant dense<0xFF800000> : vector<2x32xf32>
    %526 = vector.multi_reduction <maximumf>, %525, %cst_248 [2] : vector<2x32x8xf32> to vector<2x32xf32>
    %527 = vector.shape_cast %526 : vector<2x32xf32> to vector<2x32x1xf32>
    %528 = vector.broadcast %527 : vector<2x32x1xf32> to vector<2x32x8xf32>
    %529 = arith.subf %525, %528 : vector<2x32x8xf32>
    %530 = math.exp %529 : vector<2x32x8xf32>
    %cst_249 = arith.constant dense<0.000000e+00> : vector<2x32xf32>
    %531 = vector.multi_reduction <add>, %530, %cst_249 [2] : vector<2x32x8xf32> to vector<2x32xf32>
    %532 = vector.shape_cast %531 : vector<2x32xf32> to vector<2x32x1xf32>
    %533 = tpu.reciprocal %532 {approx = true} : vector<2x32x1xf32> -> vector<2x32x1xf32>
    %534 = vector.broadcast %533 : vector<2x32x1xf32> to vector<2x32x8xf32>
    %535 = arith.mulf %530, %534 : vector<2x32x8xf32>
    %536 = vector.extract_strided_slice %535 {offsets = [0, 0, 0], sizes = [2, 8, 8], strides = [1, 1, 1]} : vector<2x32x8xf32> to vector<2x8x8xf32>
    %537 = vector.extract_strided_slice %500 {offsets = [0, 0, 0], sizes = [2, 8, 8], strides = [1, 1, 1]} : vector<2x8x32xf32> to vector<2x8x8xf32>
    "tpu.trace_start"() <{level = 10 : i32, message = "bqk,bkd->bqd"}> : () -> ()
    %cst_250 = arith.constant dense<0.000000e+00> : vector<2x8x8xf32>
    %538 = tpu.matmul %536, %537, %cst_250 {dimension_numbers = #tpu.dot_dimension_numbers<[2], [1], [1], [2], [0, 0, 0, 1, 1, 2], [0], [0]>} : vector<2x8x8xf32>, vector<2x8x8xf32>, vector<2x8x8xf32> -> vector<2x8x8xf32>
    "tpu.trace_stop"() : () -> ()
    %539 = vector.extract_strided_slice %535 {offsets = [0, 8, 0], sizes = [2, 8, 8], strides = [1, 1, 1]} : vector<2x32x8xf32> to vector<2x8x8xf32>
    %540 = vector.extract_strided_slice %500 {offsets = [0, 0, 8], sizes = [2, 8, 8], strides = [1, 1, 1]} : vector<2x8x32xf32> to vector<2x8x8xf32>
    "tpu.trace_start"() <{level = 10 : i32, message = "bqk,bkd->bqd"}> : () -> ()
    %cst_251 = arith.constant dense<0.000000e+00> : vector<2x8x8xf32>
    %541 = tpu.matmul %539, %540, %cst_251 {dimension_numbers = #tpu.dot_dimension_numbers<[2], [1], [1], [2], [0, 0, 0, 1, 1, 2], [0], [0]>} : vector<2x8x8xf32>, vector<2x8x8xf32>, vector<2x8x8xf32> -> vector<2x8x8xf32>
    "tpu.trace_stop"() : () -> ()
    %542 = vector.extract_strided_slice %535 {offsets = [0, 16, 0], sizes = [2, 8, 8], strides = [1, 1, 1]} : vector<2x32x8xf32> to vector<2x8x8xf32>
    %543 = vector.extract_strided_slice %500 {offsets = [0, 0, 16], sizes = [2, 8, 8], strides = [1, 1, 1]} : vector<2x8x32xf32> to vector<2x8x8xf32>
    "tpu.trace_start"() <{level = 10 : i32, message = "bqk,bkd->bqd"}> : () -> ()
    %cst_252 = arith.constant dense<0.000000e+00> : vector<2x8x8xf32>
    %544 = tpu.matmul %542, %543, %cst_252 {dimension_numbers = #tpu.dot_dimension_numbers<[2], [1], [1], [2], [0, 0, 0, 1, 1, 2], [0], [0]>} : vector<2x8x8xf32>, vector<2x8x8xf32>, vector<2x8x8xf32> -> vector<2x8x8xf32>
    "tpu.trace_stop"() : () -> ()
    %545 = vector.extract_strided_slice %535 {offsets = [0, 24, 0], sizes = [2, 8, 8], strides = [1, 1, 1]} : vector<2x32x8xf32> to vector<2x8x8xf32>
    %546 = vector.extract_strided_slice %500 {offsets = [0, 0, 24], sizes = [2, 8, 8], strides = [1, 1, 1]} : vector<2x8x32xf32> to vector<2x8x8xf32>
    "tpu.trace_start"() <{level = 10 : i32, message = "bqk,bkd->bqd"}> : () -> ()
    %cst_253 = arith.constant dense<0.000000e+00> : vector<2x8x8xf32>
    %547 = tpu.matmul %545, %546, %cst_253 {dimension_numbers = #tpu.dot_dimension_numbers<[2], [1], [1], [2], [0, 0, 0, 1, 1, 2], [0], [0]>} : vector<2x8x8xf32>, vector<2x8x8xf32>, vector<2x8x8xf32> -> vector<2x8x8xf32>
    "tpu.trace_stop"() : () -> ()
    %548 = tpu.concatenate %538, %541, %544, %547 in 2 : vector<2x8x8xf32>, vector<2x8x8xf32>, vector<2x8x8xf32>, vector<2x8x8xf32> -> vector<2x8x32xf32>
    %549 = vector.shape_cast %548 : vector<2x8x32xf32> to vector<16x32xf32>
    %cst_254 = arith.constant dense<0.000000e+00> : vector<16x32xf32>
    %550 = tpu.matmul %549, %34, %cst_254 {dimension_numbers = #tpu.dot_dimension_numbers<[1], [0], [0], [1], [0, 0, 1, 1], [], []>} : vector<16x32xf32>, vector<32x32xf32>, vector<16x32xf32> -> vector<16x32xf32>
    %551 = vector.broadcast %30 : vector<1x32xf32> to vector<16x32xf32>
    %552 = arith.addf %550, %551 : vector<16x32xf32>
    %553 = arith.addf %552, %491 : vector<16x32xf32>
    %cst_255 = arith.constant dense<0.000000e+00> : vector<16xf32>
    %554 = vector.multi_reduction <add>, %553, %cst_255 [1] : vector<16x32xf32> to vector<16xf32>
    %555 = vector.shape_cast %554 : vector<16xf32> to vector<16x1xf32>
    %cst_256 = arith.constant 3.200000e+01 : f32
    %556 = vector.broadcast %cst_256 : f32 to vector<16x1xf32>
    %557 = arith.divf %555, %556 : vector<16x1xf32>
    %558 = vector.broadcast %557 : vector<16x1xf32> to vector<16x32xf32>
    %559 = arith.subf %553, %558 : vector<16x32xf32>
    %560 = arith.mulf %559, %559 : vector<16x32xf32>
    %cst_257 = arith.constant dense<0.000000e+00> : vector<16xf32>
    %561 = vector.multi_reduction <add>, %560, %cst_257 [1] : vector<16x32xf32> to vector<16xf32>
    %562 = vector.shape_cast %561 : vector<16xf32> to vector<16x1xf32>
    %cst_258 = arith.constant 3.200000e+01 : f32
    %563 = vector.broadcast %cst_258 : f32 to vector<16x1xf32>
    %564 = arith.divf %562, %563 : vector<16x1xf32>
    %cst_259 = arith.constant 9.99999974E-6 : f32
    %565 = vector.broadcast %cst_259 : f32 to vector<16x1xf32>
    %566 = arith.addf %564, %565 : vector<16x1xf32>
    %567 = math.rsqrt %566 : vector<16x1xf32>
    %568 = vector.broadcast %567 : vector<16x1xf32> to vector<16x32xf32>
    %569 = arith.mulf %559, %568 : vector<16x32xf32>
    %570 = vector.broadcast %33 : vector<1x32xf32> to vector<16x32xf32>
    %571 = arith.mulf %569, %570 : vector<16x32xf32>
    %572 = vector.broadcast %32 : vector<1x32xf32> to vector<16x32xf32>
    %573 = arith.addf %571, %572 : vector<16x32xf32>
    %574 = vector.shape_cast %573 : vector<16x32xf32> to vector<2x8x32xf32>
    %575 = vector.shape_cast %574 : vector<2x8x32xf32> to vector<16x32xf32>
    %576 = vector.shape_cast %284 : vector<2x8x32xf32> to vector<16x32xf32>
    %577 = vector.extract_strided_slice %23 {offsets = [0, 0], sizes = [32, 32], strides = [1, 1]} : vector<32x96xf32> to vector<32x32xf32>
    %cst_260 = arith.constant dense<0.000000e+00> : vector<16x32xf32>
    %578 = tpu.matmul %575, %577, %cst_260 {dimension_numbers = #tpu.dot_dimension_numbers<[1], [0], [0], [1], [0, 0, 1, 1], [], []>} : vector<16x32xf32>, vector<32x32xf32>, vector<16x32xf32> -> vector<16x32xf32>
    %579 = vector.extract_strided_slice %19 {offsets = [0, 0], sizes = [1, 32], strides = [1, 1]} : vector<1x96xf32> to vector<1x32xf32>
    %580 = vector.broadcast %579 : vector<1x32xf32> to vector<16x32xf32>
    %581 = arith.addf %578, %580 : vector<16x32xf32>
    %582 = vector.shape_cast %581 : vector<16x32xf32> to vector<2x8x32xf32>
    %583 = vector.extract_strided_slice %23 {offsets = [0, 32], sizes = [32, 32], strides = [1, 1]} : vector<32x96xf32> to vector<32x32xf32>
    %cst_261 = arith.constant dense<0.000000e+00> : vector<16x32xf32>
    %584 = tpu.matmul %576, %583, %cst_261 {dimension_numbers = #tpu.dot_dimension_numbers<[1], [0], [0], [1], [0, 0, 1, 1], [], []>} : vector<16x32xf32>, vector<32x32xf32>, vector<16x32xf32> -> vector<16x32xf32>
    %585 = vector.extract_strided_slice %19 {offsets = [0, 32], sizes = [1, 32], strides = [1, 1]} : vector<1x96xf32> to vector<1x32xf32>
    %586 = vector.broadcast %585 : vector<1x32xf32> to vector<16x32xf32>
    %587 = arith.addf %584, %586 : vector<16x32xf32>
    %588 = vector.shape_cast %587 : vector<16x32xf32> to vector<2x8x32xf32>
    %589 = vector.extract_strided_slice %23 {offsets = [0, 64], sizes = [32, 32], strides = [1, 1]} : vector<32x96xf32> to vector<32x32xf32>
    %cst_262 = arith.constant dense<0.000000e+00> : vector<16x32xf32>
    %590 = tpu.matmul %576, %589, %cst_262 {dimension_numbers = #tpu.dot_dimension_numbers<[1], [0], [0], [1], [0, 0, 1, 1], [], []>} : vector<16x32xf32>, vector<32x32xf32>, vector<16x32xf32> -> vector<16x32xf32>
    %591 = vector.extract_strided_slice %19 {offsets = [0, 64], sizes = [1, 32], strides = [1, 1]} : vector<1x96xf32> to vector<1x32xf32>
    %592 = vector.broadcast %591 : vector<1x32xf32> to vector<16x32xf32>
    %593 = arith.addf %590, %592 : vector<16x32xf32>
    %594 = vector.shape_cast %593 : vector<16x32xf32> to vector<2x8x32xf32>
    %595 = vector.extract_strided_slice %582 {offsets = [0, 0, 0], sizes = [2, 8, 8], strides = [1, 1, 1]} : vector<2x8x32xf32> to vector<2x8x8xf32>
    %596 = vector.extract_strided_slice %588 {offsets = [0, 0, 0], sizes = [2, 8, 8], strides = [1, 1, 1]} : vector<2x8x32xf32> to vector<2x8x8xf32>
    "tpu.trace_start"() <{level = 10 : i32, message = "bqd,bkd->bqk"}> : () -> ()
    %cst_263 = arith.constant dense<0.000000e+00> : vector<2x8x8xf32>
    %597 = tpu.matmul %595, %596, %cst_263 {dimension_numbers = #tpu.dot_dimension_numbers<[2], [2], [1], [1], [0, 0, 0, 1, 1, 1], [0], [0]>} : vector<2x8x8xf32>, vector<2x8x8xf32>, vector<2x8x8xf32> -> vector<2x8x8xf32>
    "tpu.trace_stop"() : () -> ()
    %cst_264 = arith.constant 0.353553385 : f32
    %598 = vector.broadcast %cst_264 : f32 to vector<2x8x8xf32>
    %599 = arith.mulf %597, %598 : vector<2x8x8xf32>
    %600 = vector.extract_strided_slice %582 {offsets = [0, 0, 8], sizes = [2, 8, 8], strides = [1, 1, 1]} : vector<2x8x32xf32> to vector<2x8x8xf32>
    %601 = vector.extract_strided_slice %588 {offsets = [0, 0, 8], sizes = [2, 8, 8], strides = [1, 1, 1]} : vector<2x8x32xf32> to vector<2x8x8xf32>
    "tpu.trace_start"() <{level = 10 : i32, message = "bqd,bkd->bqk"}> : () -> ()
    %cst_265 = arith.constant dense<0.000000e+00> : vector<2x8x8xf32>
    %602 = tpu.matmul %600, %601, %cst_265 {dimension_numbers = #tpu.dot_dimension_numbers<[2], [2], [1], [1], [0, 0, 0, 1, 1, 1], [0], [0]>} : vector<2x8x8xf32>, vector<2x8x8xf32>, vector<2x8x8xf32> -> vector<2x8x8xf32>
    "tpu.trace_stop"() : () -> ()
    %cst_266 = arith.constant 0.353553385 : f32
    %603 = vector.broadcast %cst_266 : f32 to vector<2x8x8xf32>
    %604 = arith.mulf %602, %603 : vector<2x8x8xf32>
    %605 = vector.extract_strided_slice %582 {offsets = [0, 0, 16], sizes = [2, 8, 8], strides = [1, 1, 1]} : vector<2x8x32xf32> to vector<2x8x8xf32>
    %606 = vector.extract_strided_slice %588 {offsets = [0, 0, 16], sizes = [2, 8, 8], strides = [1, 1, 1]} : vector<2x8x32xf32> to vector<2x8x8xf32>
    "tpu.trace_start"() <{level = 10 : i32, message = "bqd,bkd->bqk"}> : () -> ()
    %cst_267 = arith.constant dense<0.000000e+00> : vector<2x8x8xf32>
    %607 = tpu.matmul %605, %606, %cst_267 {dimension_numbers = #tpu.dot_dimension_numbers<[2], [2], [1], [1], [0, 0, 0, 1, 1, 1], [0], [0]>} : vector<2x8x8xf32>, vector<2x8x8xf32>, vector<2x8x8xf32> -> vector<2x8x8xf32>
    "tpu.trace_stop"() : () -> ()
    %cst_268 = arith.constant 0.353553385 : f32
    %608 = vector.broadcast %cst_268 : f32 to vector<2x8x8xf32>
    %609 = arith.mulf %607, %608 : vector<2x8x8xf32>
    %610 = vector.extract_strided_slice %582 {offsets = [0, 0, 24], sizes = [2, 8, 8], strides = [1, 1, 1]} : vector<2x8x32xf32> to vector<2x8x8xf32>
    %611 = vector.extract_strided_slice %588 {offsets = [0, 0, 24], sizes = [2, 8, 8], strides = [1, 1, 1]} : vector<2x8x32xf32> to vector<2x8x8xf32>
    "tpu.trace_start"() <{level = 10 : i32, message = "bqd,bkd->bqk"}> : () -> ()
    %cst_269 = arith.constant dense<0.000000e+00> : vector<2x8x8xf32>
    %612 = tpu.matmul %610, %611, %cst_269 {dimension_numbers = #tpu.dot_dimension_numbers<[2], [2], [1], [1], [0, 0, 0, 1, 1, 1], [0], [0]>} : vector<2x8x8xf32>, vector<2x8x8xf32>, vector<2x8x8xf32> -> vector<2x8x8xf32>
    "tpu.trace_stop"() : () -> ()
    %cst_270 = arith.constant 0.353553385 : f32
    %613 = vector.broadcast %cst_270 : f32 to vector<2x8x8xf32>
    %614 = arith.mulf %612, %613 : vector<2x8x8xf32>
    %615 = tpu.concatenate %599, %604, %609, %614 in 1 : vector<2x8x8xf32>, vector<2x8x8xf32>, vector<2x8x8xf32>, vector<2x8x8xf32> -> vector<2x32x8xf32>
    %cst_271 = arith.constant dense<0xFF800000> : vector<2x32xf32>
    %616 = vector.multi_reduction <maximumf>, %615, %cst_271 [2] : vector<2x32x8xf32> to vector<2x32xf32>
    %617 = vector.shape_cast %616 : vector<2x32xf32> to vector<2x32x1xf32>
    %618 = vector.broadcast %617 : vector<2x32x1xf32> to vector<2x32x8xf32>
    %619 = arith.subf %615, %618 : vector<2x32x8xf32>
    %620 = math.exp %619 : vector<2x32x8xf32>
    %cst_272 = arith.constant dense<0.000000e+00> : vector<2x32xf32>
    %621 = vector.multi_reduction <add>, %620, %cst_272 [2] : vector<2x32x8xf32> to vector<2x32xf32>
    %622 = vector.shape_cast %621 : vector<2x32xf32> to vector<2x32x1xf32>
    %623 = tpu.reciprocal %622 {approx = true} : vector<2x32x1xf32> -> vector<2x32x1xf32>
    %624 = vector.broadcast %623 : vector<2x32x1xf32> to vector<2x32x8xf32>
    %625 = arith.mulf %620, %624 : vector<2x32x8xf32>
    %626 = vector.extract_strided_slice %625 {offsets = [0, 0, 0], sizes = [2, 8, 8], strides = [1, 1, 1]} : vector<2x32x8xf32> to vector<2x8x8xf32>
    %627 = vector.extract_strided_slice %594 {offsets = [0, 0, 0], sizes = [2, 8, 8], strides = [1, 1, 1]} : vector<2x8x32xf32> to vector<2x8x8xf32>
    "tpu.trace_start"() <{level = 10 : i32, message = "bqk,bkd->bqd"}> : () -> ()
    %cst_273 = arith.constant dense<0.000000e+00> : vector<2x8x8xf32>
    %628 = tpu.matmul %626, %627, %cst_273 {dimension_numbers = #tpu.dot_dimension_numbers<[2], [1], [1], [2], [0, 0, 0, 1, 1, 2], [0], [0]>} : vector<2x8x8xf32>, vector<2x8x8xf32>, vector<2x8x8xf32> -> vector<2x8x8xf32>
    "tpu.trace_stop"() : () -> ()
    %629 = vector.extract_strided_slice %625 {offsets = [0, 8, 0], sizes = [2, 8, 8], strides = [1, 1, 1]} : vector<2x32x8xf32> to vector<2x8x8xf32>
    %630 = vector.extract_strided_slice %594 {offsets = [0, 0, 8], sizes = [2, 8, 8], strides = [1, 1, 1]} : vector<2x8x32xf32> to vector<2x8x8xf32>
    "tpu.trace_start"() <{level = 10 : i32, message = "bqk,bkd->bqd"}> : () -> ()
    %cst_274 = arith.constant dense<0.000000e+00> : vector<2x8x8xf32>
    %631 = tpu.matmul %629, %630, %cst_274 {dimension_numbers = #tpu.dot_dimension_numbers<[2], [1], [1], [2], [0, 0, 0, 1, 1, 2], [0], [0]>} : vector<2x8x8xf32>, vector<2x8x8xf32>, vector<2x8x8xf32> -> vector<2x8x8xf32>
    "tpu.trace_stop"() : () -> ()
    %632 = vector.extract_strided_slice %625 {offsets = [0, 16, 0], sizes = [2, 8, 8], strides = [1, 1, 1]} : vector<2x32x8xf32> to vector<2x8x8xf32>
    %633 = vector.extract_strided_slice %594 {offsets = [0, 0, 16], sizes = [2, 8, 8], strides = [1, 1, 1]} : vector<2x8x32xf32> to vector<2x8x8xf32>
    "tpu.trace_start"() <{level = 10 : i32, message = "bqk,bkd->bqd"}> : () -> ()
    %cst_275 = arith.constant dense<0.000000e+00> : vector<2x8x8xf32>
    %634 = tpu.matmul %632, %633, %cst_275 {dimension_numbers = #tpu.dot_dimension_numbers<[2], [1], [1], [2], [0, 0, 0, 1, 1, 2], [0], [0]>} : vector<2x8x8xf32>, vector<2x8x8xf32>, vector<2x8x8xf32> -> vector<2x8x8xf32>
    "tpu.trace_stop"() : () -> ()
    %635 = vector.extract_strided_slice %625 {offsets = [0, 24, 0], sizes = [2, 8, 8], strides = [1, 1, 1]} : vector<2x32x8xf32> to vector<2x8x8xf32>
    %636 = vector.extract_strided_slice %594 {offsets = [0, 0, 24], sizes = [2, 8, 8], strides = [1, 1, 1]} : vector<2x8x32xf32> to vector<2x8x8xf32>
    "tpu.trace_start"() <{level = 10 : i32, message = "bqk,bkd->bqd"}> : () -> ()
    %cst_276 = arith.constant dense<0.000000e+00> : vector<2x8x8xf32>
    %637 = tpu.matmul %635, %636, %cst_276 {dimension_numbers = #tpu.dot_dimension_numbers<[2], [1], [1], [2], [0, 0, 0, 1, 1, 2], [0], [0]>} : vector<2x8x8xf32>, vector<2x8x8xf32>, vector<2x8x8xf32> -> vector<2x8x8xf32>
    "tpu.trace_stop"() : () -> ()
    %638 = tpu.concatenate %628, %631, %634, %637 in 2 : vector<2x8x8xf32>, vector<2x8x8xf32>, vector<2x8x8xf32>, vector<2x8x8xf32> -> vector<2x8x32xf32>
    %639 = vector.shape_cast %638 : vector<2x8x32xf32> to vector<16x32xf32>
    %cst_277 = arith.constant dense<0.000000e+00> : vector<16x32xf32>
    %640 = tpu.matmul %639, %22, %cst_277 {dimension_numbers = #tpu.dot_dimension_numbers<[1], [0], [0], [1], [0, 0, 1, 1], [], []>} : vector<16x32xf32>, vector<32x32xf32>, vector<16x32xf32> -> vector<16x32xf32>
    %641 = vector.broadcast %18 : vector<1x32xf32> to vector<16x32xf32>
    %642 = arith.addf %640, %641 : vector<16x32xf32>
    %643 = arith.addf %642, %575 : vector<16x32xf32>
    %cst_278 = arith.constant dense<0.000000e+00> : vector<16xf32>
    %644 = vector.multi_reduction <add>, %643, %cst_278 [1] : vector<16x32xf32> to vector<16xf32>
    %645 = vector.shape_cast %644 : vector<16xf32> to vector<16x1xf32>
    %cst_279 = arith.constant 3.200000e+01 : f32
    %646 = vector.broadcast %cst_279 : f32 to vector<16x1xf32>
    %647 = arith.divf %645, %646 : vector<16x1xf32>
    %648 = vector.broadcast %647 : vector<16x1xf32> to vector<16x32xf32>
    %649 = arith.subf %643, %648 : vector<16x32xf32>
    %650 = arith.mulf %649, %649 : vector<16x32xf32>
    %cst_280 = arith.constant dense<0.000000e+00> : vector<16xf32>
    %651 = vector.multi_reduction <add>, %650, %cst_280 [1] : vector<16x32xf32> to vector<16xf32>
    %652 = vector.shape_cast %651 : vector<16xf32> to vector<16x1xf32>
    %cst_281 = arith.constant 3.200000e+01 : f32
    %653 = vector.broadcast %cst_281 : f32 to vector<16x1xf32>
    %654 = arith.divf %652, %653 : vector<16x1xf32>
    %cst_282 = arith.constant 9.99999974E-6 : f32
    %655 = vector.broadcast %cst_282 : f32 to vector<16x1xf32>
    %656 = arith.addf %654, %655 : vector<16x1xf32>
    %657 = math.rsqrt %656 : vector<16x1xf32>
    %658 = vector.broadcast %657 : vector<16x1xf32> to vector<16x32xf32>
    %659 = arith.mulf %649, %658 : vector<16x32xf32>
    %660 = vector.broadcast %21 : vector<1x32xf32> to vector<16x32xf32>
    %661 = arith.mulf %659, %660 : vector<16x32xf32>
    %662 = vector.broadcast %20 : vector<1x32xf32> to vector<16x32xf32>
    %663 = arith.addf %661, %662 : vector<16x32xf32>
    %664 = vector.shape_cast %663 : vector<16x32xf32> to vector<2x8x32xf32>
    %665 = vector.shape_cast %664 : vector<2x8x32xf32> to vector<16x32xf32>
    %cst_283 = arith.constant dense<0.000000e+00> : vector<16x64xf32>
    %666 = tpu.matmul %665, %28, %cst_283 {dimension_numbers = #tpu.dot_dimension_numbers<[1], [0], [0], [1], [0, 0, 1, 1], [], []>} : vector<16x32xf32>, vector<32x64xf32>, vector<16x64xf32> -> vector<16x64xf32>
    %667 = vector.broadcast %24 : vector<1x64xf32> to vector<16x64xf32>
    %668 = arith.addf %666, %667 : vector<16x64xf32>
    %cst_284 = arith.constant 0.000000e+00 : f32
    %669 = vector.broadcast %cst_284 : f32 to vector<16x64xf32>
    %670 = arith.maximumf %668, %669 : vector<16x64xf32>
    %cst_285 = arith.constant dense<0.000000e+00> : vector<16x32xf32>
    %671 = tpu.matmul %670, %29, %cst_285 {dimension_numbers = #tpu.dot_dimension_numbers<[1], [0], [0], [1], [0, 0, 1, 1], [], []>} : vector<16x64xf32>, vector<64x32xf32>, vector<16x32xf32> -> vector<16x32xf32>
    %672 = vector.broadcast %25 : vector<1x32xf32> to vector<16x32xf32>
    %673 = arith.addf %671, %672 : vector<16x32xf32>
    %674 = arith.addf %673, %665 : vector<16x32xf32>
    %cst_286 = arith.constant dense<0.000000e+00> : vector<16xf32>
    %675 = vector.multi_reduction <add>, %674, %cst_286 [1] : vector<16x32xf32> to vector<16xf32>
    %676 = vector.shape_cast %675 : vector<16xf32> to vector<16x1xf32>
    %cst_287 = arith.constant 3.200000e+01 : f32
    %677 = vector.broadcast %cst_287 : f32 to vector<16x1xf32>
    %678 = arith.divf %676, %677 : vector<16x1xf32>
    %679 = vector.broadcast %678 : vector<16x1xf32> to vector<16x32xf32>
    %680 = arith.subf %674, %679 : vector<16x32xf32>
    %681 = arith.mulf %680, %680 : vector<16x32xf32>
    %cst_288 = arith.constant dense<0.000000e+00> : vector<16xf32>
    %682 = vector.multi_reduction <add>, %681, %cst_288 [1] : vector<16x32xf32> to vector<16xf32>
    %683 = vector.shape_cast %682 : vector<16xf32> to vector<16x1xf32>
    %cst_289 = arith.constant 3.200000e+01 : f32
    %684 = vector.broadcast %cst_289 : f32 to vector<16x1xf32>
    %685 = arith.divf %683, %684 : vector<16x1xf32>
    %cst_290 = arith.constant 9.99999974E-6 : f32
    %686 = vector.broadcast %cst_290 : f32 to vector<16x1xf32>
    %687 = arith.addf %685, %686 : vector<16x1xf32>
    %688 = math.rsqrt %687 : vector<16x1xf32>
    %689 = vector.broadcast %688 : vector<16x1xf32> to vector<16x32xf32>
    %690 = arith.mulf %680, %689 : vector<16x32xf32>
    %691 = vector.broadcast %27 : vector<1x32xf32> to vector<16x32xf32>
    %692 = arith.mulf %690, %691 : vector<16x32xf32>
    %693 = vector.broadcast %26 : vector<1x32xf32> to vector<16x32xf32>
    %694 = arith.addf %692, %693 : vector<16x32xf32>
    %695 = vector.shape_cast %694 : vector<16x32xf32> to vector<2x8x32xf32>
    %696 = vector.shape_cast %695 : vector<2x8x32xf32> to vector<16x32xf32>
    %cst_291 = arith.constant dense<0.000000e+00> : vector<16x128xf32>
    %697 = tpu.matmul %696, %60, %cst_291 {dimension_numbers = #tpu.dot_dimension_numbers<[1], [0], [0], [1], [0, 0, 1, 1], [], []>} : vector<16x32xf32>, vector<32x128xf32>, vector<16x128xf32> -> vector<16x128xf32>
    %c0_292 = arith.constant 0 : index
    %c0_293 = arith.constant 0 : index
    %698 = vector.load %arg64[%c0_292, %c0_293] : memref<16x128xf32, #tpu.memory_space<vmem>>, vector<16x128xf32>
    tpu.vector_store %arg64[%c0_292, %c0_293], %697 {strides = array<i32>} : memref<16x128xf32, #tpu.memory_space<vmem>>, vector<16x128xf32>,
    return
  }
}

</mosaic_0001>

<bundles_post_ra>
// kernel: transformer_forward.1
= control target key start
LH: loop header
LB: loop body
LE: loop exit
PB: predicated region body
PF: predicated region fallthrough
CT: control target
= control target key end

     0   :  { %s14028_s6 = smov 1   ;;  %s14029_s10 = smov 2   ;;  %s15810_s0 = inlined_call_operand.smem [shape: u32[65], index: -1, kind: input, shape index: {}] }
   0x1   :  { %s14138_s5 = sld [smem:[%s15810_s0]]   ;;  %s14030_s14 = smov 3  }
   0x2   :  { %s14143_s9 = sld [smem:[%s15810_s0 + %s14028_s6]]   ;;  %s14031_s18 = smov 4  }
   0x3   :  { %s14148_s13 = sld [smem:[%s15810_s0 + %s14029_s10]]   ;;  %s14032_s22 = smov 5  }
   0x4   :  { %s14153_s17 = sld [smem:[%s15810_s0 + %s14030_s14]]   ;;  %s14033_s26 = smov 6  }
   0x5   :  { %s14158_s21 = sld [smem:[%s15810_s0 + %s14031_s18]]   ;;  %s14034_s30 = smov 7  }
   0x6   :  { %s14163_s25 = sld [smem:[%s15810_s0 + %s14032_s22]]   ;;  %s14035_s4 = smov 8  }
   0x7   :  { %15840 = sst [smem:[#allocation48_spill]] %s14138_s5  ;;  %s14036_s10 = smov 9  }
   0x8   :  { %15841 = sst [smem:[#allocation49_spill]] %s14143_s9  ;;  %s14037_s15 = smov 10  }
   0x9   :  { %15842 = sst [smem:[#allocation50_spill]] %s14148_s13  ;;  %s14038_s20 = smov 11  }
   0xa   :  { %15843 = sst [smem:[#allocation51_spill]] %s14153_s17  ;;  %s14040_s1 = smov 13  }
   0xb   :  { %15844 = sst [smem:[#allocation52_spill]] %s14158_s21  ;;  %s14041_s7 = smov 14  }
   0xc   :  { %15845 = sst [smem:[#allocation53_spill]] %s14163_s25  ;;  %s14043_s22 = smov 16  }
   0xd   :  { %s14168_s29 = sld [smem:[%s15810_s0 + %s14033_s26]]   ;;  %s14039_s26 = smov 12  }
   0xe   :  { %s14173_s3 = sld [smem:[%s15810_s0 + %s14034_s30]]   ;;  %s14044_s28 = smov 17  }
   0xf   :  { %s14178_s8 = sld [smem:[%s15810_s0 + %s14035_s4]]  }
  0x10   :  { %s14183_s14 = sld [smem:[%s15810_s0 + %s14036_s10]]  }
  0x11   :  { %s14188_s19 = sld [smem:[%s15810_s0 + %s14037_s15]]   ;;  %s14042_s15 = smov 15  }
  0x12   :  { %s14193_s24 = sld [smem:[%s15810_s0 + %s14038_s20]]  }
  0x13   :  { %15846 = sst [smem:[#allocation54_spill]] %s14168_s29 }
  0x14   :  { %15847 = sst [smem:[#allocation55_spill]] %s14173_s3 }
  0x15   :  { %15848 = sst [smem:[#allocation56_spill]] %s14178_s8 }
  0x16   :  { %15849 = sst [smem:[#allocation57_spill]] %s14183_s14 }
  0x17   :  { %15850 = sst [smem:[#allocation58_spill]] %s14188_s19 }
  0x18   :  { %15851 = sst [smem:[#allocation59_spill]] %s14193_s24 }
  0x19   :  { %s14198_s30 = sld [smem:[%s15810_s0 + %s14039_s26]]  }
  0x1a   :  { %s14203_s6 = sld [smem:[%s15810_s0 + %s14040_s1]]  }
  0x1b   :  { %s14208_s12 = sld [smem:[%s15810_s0 + %s14041_s7]]   ;;  %s14045_s7 = smov 18  }
  0x1c   :  { %s14213_s20 = sld [smem:[%s15810_s0 + %s14042_s15]]   ;;  %s14046_s15 = smov 19  }
  0x1d   :  { %s14218_s27 = sld [smem:[%s15810_s0 + %s14043_s22]]   ;;  %s14047_s22 = smov 20  }
  0x1e   :  { %s14223_s4 = sld [smem:[%s15810_s0 + %s14044_s28]]   ;;  %s14048_s28 = smov 21  }
  0x1f   :  { %15852 = sst [smem:[#allocation60_spill]] %s14198_s30 }
  0x20   :  { %15853 = sst [smem:[#allocation61_spill]] %s14203_s6 }
  0x21   :  { %15854 = sst [smem:[#allocation62_spill]] %s14208_s12 }
  0x22   :  { %15855 = sst [smem:[#allocation63_spill]] %s14213_s20 }
  0x23   :  { %15856 = sst [smem:[#allocation64_spill]] %s14218_s27 }
  0x24   :  { %15857 = sst [smem:[#allocation65_spill]] %s14223_s4 }
  0x25   :  { %s14228_s24 = sld [smem:[%s15810_s0 + %s14045_s7]]   ;;  %s14049_s7 = smov 22  }
  0x26   :  { %s14233_s30 = sld [smem:[%s15810_s0 + %s14046_s15]]   ;;  %s14050_s15 = smov 23  }
  0x27   :  { %s14238_s19 = sld [smem:[%s15810_s0 + %s14047_s22]]   ;;  %s14051_s22 = smov 24  }
  0x28   :  { %s14243_s14 = sld [smem:[%s15810_s0 + %s14048_s28]]   ;;  %s14052_s28 = smov 25  }
  0x29   :  { %s14248_s25 = sld [smem:[%s15810_s0 + %s14049_s7]]   ;;  %s14053_s7 = smov 26  }
  0x2a   :  { %s14253_s29 = sld [smem:[%s15810_s0 + %s14050_s15]]   ;;  %s14054_s15 = smov 27  }
  0x2b   :  { %15858 = sst [smem:[#allocation66_spill]] %s14228_s24 }
  0x2c   :  { %15859 = sst [smem:[#allocation67_spill]] %s14233_s30 }
  0x2d   :  { %15860 = sst [smem:[#allocation68_spill]] %s14238_s19 }
  0x2e   :  { %15861 = sst [smem:[#allocation69_spill]] %s14243_s14 }
  0x2f   :  { %15862 = sst [smem:[#allocation70_spill]] %s14248_s25 }
  0x30   :  { %15863 = sst [smem:[#allocation71_spill]] %s14253_s29 }
  0x31   :  { %s14258_s12 = sld [smem:[%s15810_s0 + %s14051_s22]]   ;;  %s14055_s22 = smov 28  }
  0x32   :  { %s14263_s14 = sld [smem:[%s15810_s0 + %s14052_s28]]   ;;  %s14056_s28 = smov 29  }
  0x33   :  { %s14268_s25 = sld [smem:[%s15810_s0 + %s14053_s7]]   ;;  %s14057_s7 = smov 30  }
  0x34   :  { %s14273_s29 = sld [smem:[%s15810_s0 + %s14054_s15]]   ;;  %s14058_s15 = smov 31  }
  0x37   :  { %15864 = sst [smem:[#allocation72_spill]] %s14258_s12 }
  0x38   :  { %15865 = sst [smem:[#allocation73_spill]] %s14263_s14 }
  0x39   :  { %15866 = sst [smem:[#allocation74_spill]] %s14268_s25 }
  0x3a   :  { %15867 = sst [smem:[#allocation75_spill]] %s14273_s29 }
  0x3b   :  { %s14278_s12 = sld [smem:[%s15810_s0 + %s14055_s22]]   ;;  %s14059_s22 = smov 32  }
  0x3c   :  { %s14283_s14 = sld [smem:[%s15810_s0 + %s14056_s28]]   ;;  %s14060_s28 = smov 33  }
  0x3d   :  { %s14288_s25 = sld [smem:[%s15810_s0 + %s14057_s7]]   ;;  %s14061_s7 = smov 34  }
  0x3e   :  { %s14293_s29 = sld [smem:[%s15810_s0 + %s14058_s15]]   ;;  %s14062_s15 = smov 35  }
  0x3f   :  { %s14303_s6 = sld [smem:[%s15810_s0 + %s14060_s28]]   ;;  %s14064_s28 = smov 37  }
  0x40   :  { %s14308_s17 = sld [smem:[%s15810_s0 + %s14061_s7]]   ;;  %s14065_s7 = smov 38  }
  0x41   :  { %15868 = sst [smem:[#allocation76_spill]] %s14278_s12 }
  0x42   :  { %s14298_s12 = sld [smem:[%s15810_s0 + %s14059_s22]]   ;;  %s14063_s22 = smov 36  }
  0x43   :  { %s14323_s3 = sld [smem:[%s15810_s0 + %s14064_s28]]   ;;  %s14068_s28 = smov 41  }
  0x44   :  { %15869 = sst [smem:[#allocation77_spill]] %s14293_s29 }
  0x45   :  { %s14313_s29 = sld [smem:[%s15810_s0 + %s14062_s15]]   ;;  %s14066_s15 = smov 39  }
  0x46   :  { %s14328_s4 = sld [smem:[%s15810_s0 + %s14065_s7]]   ;;  %s14069_s7 = smov 42  }
  0x47   :  { %s14333_s24 = sld [smem:[%s15810_s0 + %s14066_s15]]   ;;  %s14070_s15 = smov 43  }
  0x48   :  { %15870 = sst [smem:[#allocation78_spill]] %s14298_s12 }
  0x49   :  { %s14318_s12 = sld [smem:[%s15810_s0 + %s14063_s22]]   ;;  %s14067_s22 = smov 40  }
  0x4a   :  { %15871 = sst [smem:[#allocation79_spill]] %s14323_s3 }
  0x4b   :  { %s14338_s21 = sld [smem:[%s15810_s0 + %s14067_s22]]   ;;  %s14071_s22 = smov 44  }
  0x4c   :  { %15872 = sst [smem:[#allocation80_spill]] %s14328_s4 }
  0x4d   :  { %s14343_s3 = sld [smem:[%s15810_s0 + %s14068_s28]]   ;;  %s14072_s28 = smov 45  }
  0x4e   :  { %s14348_s4 = sld [smem:[%s15810_s0 + %s14069_s7]]   ;;  %s14073_s7 = smov 46  }
  0x4f   :  { %s14353_s8 = sld [smem:[%s15810_s0 + %s14070_s15]]   ;;  %s14074_s15 = smov 47  }
  0x50   :  { %s14358_s20 = sld [smem:[%s15810_s0 + %s14071_s22]]   ;;  %s14075_s22 = smov 48  }
  0x51   :  { %s14363_s30 = sld [smem:[%s15810_s0 + %s14072_s28]]   ;;  %s14076_s28 = smov 49  }
  0x52   :  { %s14368_s13 = sld [smem:[%s15810_s0 + %s14073_s7]]   ;;  %s14077_s7 = smov 50  }
  0x53   :  { %15873 = sst [smem:[#allocation81_spill]] %s14343_s3 }
  0x54   :  { %s14373_s27 = sld [smem:[%s15810_s0 + %s14074_s15]]   ;;  %s14078_s15 = smov 51  }
  0x55   :  { %15874 = sst [smem:[#allocation82_spill]] %s14353_s8 }
  0x56   :  { %15875 = sst [smem:[#allocation83_spill]] %s14358_s20 }
  0x57   :  { %15876 = sst [smem:[#allocation84_spill]] %s14363_s30 }
  0x58   :  { %s14378_s9 = sld [smem:[%s15810_s0 + %s14075_s22]]   ;;  %s14079_s22 = smov 52  }
  0x59   :  { %s14383_s19 = sld [smem:[%s15810_s0 + %s14076_s28]]   ;;  %s14080_s28 = smov 53  }
  0x5a   :  { %15877 = sst [smem:[#allocation85_spill]] %s14373_s27 }
  0x5b   :  { %s14388_s20 = sld [smem:[%s15810_s0 + %s14077_s7]]   ;;  %s14081_s7 = smov 54  }
  0x5c   :  { %s14393_s8 = sld [smem:[%s15810_s0 + %s14078_s15]]   ;;  %s14082_s15 = smov 55  }
  0x5d   :  { %s14398_s5 = sld [smem:[%s15810_s0 + %s14079_s22]]   ;;  %s14083_s22 = smov 56  }
  0x5e   :  { %s14418_s27 = sld [smem:[%s15810_s0 + %s14083_s22]]   ;;  %s14087_s22 = smov 60  }
  0x5f   :  { %15878 = sst [smem:[#allocation86_spill]] %s14383_s19 }
  0x60   :  { %s14403_s19 = sld [smem:[%s15810_s0 + %s14080_s28]]   ;;  %s14084_s28 = smov 57  }
  0x61   :  { %15879 = sst [smem:[#allocation87_spill]] %s14388_s20 }
  0x62   :  { %15880 = sst [smem:[#allocation88_spill]] %s14393_s8 }
  0x63   :  { %s14408_s20 = sld [smem:[%s15810_s0 + %s14081_s7]]   ;;  %s14085_s7 = smov 58  }
  0x64   :  { %s14413_s8 = sld [smem:[%s15810_s0 + %s14082_s15]]   ;;  %s14086_s15 = smov 59  }
  0x65   :  { %15883 = sst [smem:[#allocation91_spill]] %s14418_s27 }
  0x66   :  { %15881 = sst [smem:[#allocation89_spill]] %s14403_s19 }
  0x67   :  { %s14423_s19 = sld [smem:[%s15810_s0 + %s14084_s28]]   ;;  %s14088_s28 = smov 61  }
  0x68   :  { %s14428_s30 = sld [smem:[%s15810_s0 + %s14085_s7]]   ;;  %s14089_s7 = smov 62  }
  0x69   :  { %s14438_s27 = sld [smem:[%s15810_s0 + %s14087_s22]]   ;;  %s14091_s22 = smov 64  }
  0x6a   :  { %15882 = sst [smem:[#allocation90_spill]] %s14413_s8 }
  0x6b   :  { %s14433_s8 = sld [smem:[%s15810_s0 + %s14086_s15]]   ;;  %s14090_s15 = smov 63  }
  0x6c   :  { %s14448_s3 = sld [smem:[%s15810_s0 + %s14089_s7]]  }
  0x6d   :  { %15884 = sst [smem:[#allocation92_spill]] %s14423_s19 }
  0x6e   :  { %s14443_s19 = sld [smem:[%s15810_s0 + %s14088_s28]]  }
  0x6f   :  { %15886 = sst [smem:[#allocation94_spill]] %s14438_s27 }
  0x70   :  { %s14458_s27 = sld [smem:[%s15810_s0 + %s14091_s22]]  }
  0x71   :  { %15885 = sst [smem:[#allocation93_spill]] %s14433_s8 }
  0x72   :  { %s14453_s8 = sld [smem:[%s15810_s0 + %s14090_s15]]  }
  0x73   :  { %134 = vsyncpa [#allocation3], 0 }
  0x74   :  { %135 = vsyncpa [#allocation5], 0 }
  0x75   :  { %136 = vsyncpa [#allocation8], 0 }
  0x76   :  { %137 = vsyncpa [#allocation11], 0 }
  0x77   :  { %138 = vsyncpa [#allocation14], 0 }
  0x78   :  { %139 = vsyncpa [#allocation17], 0 }
  0x79   :  { %140 = vsyncpa [#allocation20], 0 }
  0x7a   :  { %141 = vsyncpa [#allocation23], 0 }
  0x7b   :  { %142 = vsyncpa [#allocation26], 0 }
  0x7c   :  { %143 = vsyncpa [#allocation29], 0 }
  0x7d   :  { %144 = vsyncpa [#allocation32], 0 }
  0x7e   :  { %145 = vsyncpa [#allocation35], 0  ;;  %s14092_s28 = smov [#allocation4]   ;;  %s14093_s2 = smov [#allocation7]  }
  0x7f   :  { %s220_s1 = sshll.u32 %s14092_s28, 4  ;;  %s244_s0 = sshll.u32 %s14093_s2, 4  ;;  %s221_s1 = int_to_ptr.vmem [resolvable:$true] %s220_s1  ;;  %s245_s0 = int_to_ptr.vmem [resolvable:$true] %s244_s0 }
  0x80   :  { %s13520_s7 = scalar_lea.hbm %s14288_s25, 16 }
  0x81   :  { %p13521_p0 = scmp.ne.s32.totalorder %s14288_s25, %s13520_s7  ;;  %p13524_p1 = scmp.lt.u32.totalorder %s13520_s7, %s14288_s25 }
  0x83   :  { %p13526_p2 = pnand %p13524_p1, %p13521_p0 }
  0x85   :  { %13529 = shalt.err (!%p13526_p2)
}
  0x86   :  { %s13530_s10 = scalar_lea.vmem %s221_s1, 16  ;;  %s13534_s11 = scalar_lea.vmem %s221_s1, 32 }
  0x87   :  { %p13531_p3 = scmp.ne.s32.totalorder %s221_s1, %s13530_s10  ;;  %p13535_p4 = scmp.lt.s32.totalorder %s221_s1, %s221_s1 }
  0x88   :  { %p13536_p5 = scmp.lt.s32.totalorder %s13534_s11, %s13530_s10 }
  0x8a   :  { %p13537_p6 = por %p13536_p5, %p13535_p4 }
  0x8c   :  { %p13538_p7 = pnand %p13537_p6, %p13531_p3 }
  0x8e   :  { %13541 = shalt.err (!%p13538_p7)
}
  0x8f   :  { %223 = dma.hbm_to_vmem [thread:$0]  %s14288_s25, 16, %s221_s1, [#allocation5]  }
  0x90   :  { %s13542_s15 = scalar_lea.hbm %s14308_s17, 16 }
  0x91   :  { %p13543_p8 = scmp.ne.s32.totalorder %s14308_s17, %s13542_s15  ;;  %p13546_p9 = scmp.lt.u32.totalorder %s13542_s15, %s14308_s17 }
  0x93   :  { %p13548_p10 = pnand %p13546_p9, %p13543_p8 }
  0x95   :  { %13551 = shalt.err (!%p13548_p10)
}
  0x96   :  { %s13552_s16 = scalar_lea.vmem %s245_s0, 16  ;;  %s13556_s18 = scalar_lea.vmem %s245_s0, 32 }
  0x97   :  { %p13553_p11 = scmp.ne.s32.totalorder %s245_s0, %s13552_s16  ;;  %p13557_p12 = scmp.lt.s32.totalorder %s245_s0, %s245_s0 }
  0x98   :  { %p13558_p13 = scmp.lt.s32.totalorder %s13556_s18, %s13552_s16 }
  0x9a   :  { %p13559_p0 = por %p13558_p13, %p13557_p12 }
  0x9c   :  { %p13560_p1 = pnand %p13559_p0, %p13553_p11 }
  0x9e   :  { %13563 = shalt.err (!%p13560_p1)
}
  0x9f   :  { %247 = dma.hbm_to_vmem [thread:$0]  %s14308_s17, 16, %s245_s0, [#allocation8]  }
  0xa0   :  { %s14094_s22 = smov [#allocation10]   ;;  %s14095_s23 = smov [#allocation13]  }
  0xa1   :  { %s264_s25 = sshll.u32 %s14094_s22, 4  ;;  %s288_s26 = sshll.u32 %s14095_s23, 4  ;;  %s265_s25 = int_to_ptr.vmem [resolvable:$true] %s264_s25  ;;  %s289_s26 = int_to_ptr.vmem [resolvable:$true] %s288_s26 }
  0xa2   :  { %s13564_s28 = scalar_lea.hbm %s14318_s12, 16 }
  0xa3   :  { %p13565_p2 = scmp.ne.s32.totalorder %s14318_s12, %s13564_s28  ;;  %p13568_p3 = scmp.lt.u32.totalorder %s13564_s28, %s14318_s12 }
  0xa5   :  { %p13570_p4 = pnand %p13568_p3, %p13565_p2 }
  0xa7   :  { %13573 = shalt.err (!%p13570_p4)
}
  0xa8   :  { %s13574_s1 = scalar_lea.vmem %s265_s25, 16  ;;  %s13578_s2 = scalar_lea.vmem %s265_s25, 32 }
  0xa9   :  { %p13575_p5 = scmp.ne.s32.totalorder %s265_s25, %s13574_s1  ;;  %p13579_p6 = scmp.lt.s32.totalorder %s265_s25, %s265_s25 }
  0xaa   :  { %p13580_p7 = scmp.lt.s32.totalorder %s13578_s2, %s13574_s1 }
  0xac   :  { %p13581_p8 = por %p13580_p7, %p13579_p6 }
  0xae   :  { %p13582_p9 = pnand %p13581_p8, %p13575_p5 }
  0xb0   :  { %13585 = shalt.err (!%p13582_p9)
}
  0xb1   :  { %267 = dma.hbm_to_vmem [thread:$0]  %s14318_s12, 16, %s265_s25, [#allocation11]  }
  0xb2   :  { %s13586_s17 = scalar_lea.hbm %s14338_s21, 16 }
  0xb3   :  { %p13587_p10 = scmp.ne.s32.totalorder %s14338_s21, %s13586_s17  ;;  %p13590_p11 = scmp.lt.u32.totalorder %s13586_s17, %s14338_s21 }
  0xb5   :  { %p13592_p12 = pnand %p13590_p11, %p13587_p10 }
  0xb7   :  { %13595 = shalt.err (!%p13592_p12)
}
  0xb8   :  { %s13596_s0 = scalar_lea.vmem %s289_s26, 16  ;;  %s13600_s7 = scalar_lea.vmem %s289_s26, 32 }
  0xb9   :  { %p13597_p13 = scmp.ne.s32.totalorder %s289_s26, %s13596_s0  ;;  %p13601_p0 = scmp.lt.s32.totalorder %s289_s26, %s289_s26 }
  0xba   :  { %p13602_p1 = scmp.lt.s32.totalorder %s13600_s7, %s13596_s0 }
  0xbc   :  { %p13603_p2 = por %p13602_p1, %p13601_p0 }
  0xbe   :  { %p13604_p3 = pnand %p13603_p2, %p13597_p13 }
  0xc0   :  { %13607 = shalt.err (!%p13604_p3)
}
  0xc1   :  { %291 = dma.hbm_to_vmem [thread:$0]  %s14338_s21, 16, %s289_s26, [#allocation14]  }
  0xc2   :  { %s14096_s10 = smov [#allocation16]   ;;  %s14097_s11 = smov [#allocation19]  }
  0xc3   :  { %s308_s12 = sshll.u32 %s14096_s10, 4  ;;  %s332_s15 = sshll.u32 %s14097_s11, 4  ;;  %s309_s12 = int_to_ptr.vmem [resolvable:$true] %s308_s12  ;;  %s333_s15 = int_to_ptr.vmem [resolvable:$true] %s332_s15 }
  0xc4   :  { %s13608_s16 = scalar_lea.hbm %s14348_s4, 16 }
  0xc5   :  { %p13609_p4 = scmp.ne.s32.totalorder %s14348_s4, %s13608_s16  ;;  %p13612_p5 = scmp.lt.u32.totalorder %s13608_s16, %s14348_s4 }
  0xc7   :  { %p13614_p6 = pnand %p13612_p5, %p13609_p4 }
  0xc9   :  { %13617 = shalt.err (!%p13614_p6)
}
  0xca   :  { %s13618_s18 = scalar_lea.vmem %s309_s12, 16  ;;  %s13622_s22 = scalar_lea.vmem %s309_s12, 32 }
  0xcb   :  { %p13619_p7 = scmp.ne.s32.totalorder %s309_s12, %s13618_s18  ;;  %p13623_p8 = scmp.lt.s32.totalorder %s309_s12, %s309_s12 }
  0xcc   :  { %p13624_p9 = scmp.lt.s32.totalorder %s13622_s22, %s13618_s18 }
  0xce   :  { %p13625_p10 = por %p13624_p9, %p13623_p8 }
  0xd0   :  { %p13626_p11 = pnand %p13625_p10, %p13619_p7 }
  0xd2   :  { %13629 = shalt.err (!%p13626_p11)
}
  0xd3   :  { %311 = dma.hbm_to_vmem [thread:$0]  %s14348_s4, 16, %s309_s12, [#allocation17]  }
  0xd4   :  { %s13630_s21 = scalar_lea.hbm %s14368_s13, 16 }
  0xd5   :  { %p13631_p12 = scmp.ne.s32.totalorder %s14368_s13, %s13630_s21  ;;  %p13634_p13 = scmp.lt.u32.totalorder %s13630_s21, %s14368_s13 }
  0xd7   :  { %p13636_p0 = pnand %p13634_p13, %p13631_p12 }
  0xd9   :  { %13639 = shalt.err (!%p13636_p0)
}
  0xda   :  { %s13640_s25 = scalar_lea.vmem %s333_s15, 16  ;;  %s13644_s23 = scalar_lea.vmem %s333_s15, 32 }
  0xdb   :  { %p13641_p1 = scmp.ne.s32.totalorder %s333_s15, %s13640_s25  ;;  %p13645_p2 = scmp.lt.s32.totalorder %s333_s15, %s333_s15 }
  0xdc   :  { %p13646_p3 = scmp.lt.s32.totalorder %s13644_s23, %s13640_s25 }
  0xde   :  { %p13647_p4 = por %p13646_p3, %p13645_p2 }
  0xe0   :  { %p13648_p5 = pnand %p13647_p4, %p13641_p1 }
  0xe2   :  { %13651 = shalt.err (!%p13648_p5)
}
  0xe3   :  { %335 = dma.hbm_to_vmem [thread:$0]  %s14368_s13, 16, %s333_s15, [#allocation20]  }
  0xe4   :  { %s14098_s26 = smov [#allocation22]   ;;  %s14099_s28 = smov [#allocation25]  }
  0xe5   :  { %s352_s4 = sshll.u32 %s14098_s26, 4  ;;  %s376_s1 = sshll.u32 %s14099_s28, 4  ;;  %s353_s4 = int_to_ptr.vmem [resolvable:$true] %s352_s4  ;;  %s377_s1 = int_to_ptr.vmem [resolvable:$true] %s376_s1 }
  0xe6   :  { %s13652_s2 = scalar_lea.hbm %s14378_s9, 16 }
  0xe7   :  { %p13653_p6 = scmp.ne.s32.totalorder %s14378_s9, %s13652_s2  ;;  %p13656_p7 = scmp.lt.u32.totalorder %s13652_s2, %s14378_s9 }
  0xe9   :  { %p13658_p8 = pnand %p13656_p7, %p13653_p6 }
  0xeb   :  { %13661 = shalt.err (!%p13658_p8)
}
  0xec   :  { %s13662_s17 = scalar_lea.vmem %s353_s4, 16  ;;  %s13666_s0 = scalar_lea.vmem %s353_s4, 32 }
  0xed   :  { %p13663_p9 = scmp.ne.s32.totalorder %s353_s4, %s13662_s17  ;;  %p13667_p10 = scmp.lt.s32.totalorder %s353_s4, %s353_s4 }
  0xee   :  { %p13668_p11 = scmp.lt.s32.totalorder %s13666_s0, %s13662_s17 }
  0xf0   :  { %p13669_p12 = por %p13668_p11, %p13667_p10 }
  0xf2   :  { %p13670_p13 = pnand %p13669_p12, %p13663_p9 }
  0xf4   :  { %13673 = shalt.err (!%p13670_p13)
}
  0xf5   :  { %355 = dma.hbm_to_vmem [thread:$0]  %s14378_s9, 16, %s353_s4, [#allocation23]  }
  0xf6   :  { %s13674_s13 = scalar_lea.hbm %s14398_s5, 16 }
  0xf7   :  { %p13675_p0 = scmp.ne.s32.totalorder %s14398_s5, %s13674_s13  ;;  %p13678_p1 = scmp.lt.u32.totalorder %s13674_s13, %s14398_s5 }
  0xf9   :  { %p13680_p2 = pnand %p13678_p1, %p13675_p0 }
  0xfb   :  { %13683 = shalt.err (!%p13680_p2)
}
  0xfc   :  { %s13684_s7 = scalar_lea.vmem %s377_s1, 16  ;;  %s13688_s10 = scalar_lea.vmem %s377_s1, 32 }
  0xfd   :  { %p13685_p3 = scmp.ne.s32.totalorder %s377_s1, %s13684_s7  ;;  %p13689_p4 = scmp.lt.s32.totalorder %s377_s1, %s377_s1 }
  0xfe   :  { %p13690_p5 = scmp.lt.s32.totalorder %s13688_s10, %s13684_s7 }
 0x100   :  { %p13691_p6 = por %p13690_p5, %p13689_p4 }
 0x102   :  { %p13692_p7 = pnand %p13691_p6, %p13685_p3 }
 0x104   :  { %13695 = shalt.err (!%p13692_p7)
}
 0x105   :  { %379 = dma.hbm_to_vmem [thread:$0]  %s14398_s5, 16, %s377_s1, [#allocation26]  }
 0x106   :  { %s14100_s12 = smov [#allocation28]   ;;  %s14101_s11 = smov [#allocation31]  }
 0x107   :  { %s396_s9 = sshll.u32 %s14100_s12, 4  ;;  %s420_s15 = sshll.u32 %s14101_s11, 4  ;;  %s397_s9 = int_to_ptr.vmem [resolvable:$true] %s396_s9  ;;  %s421_s15 = int_to_ptr.vmem [resolvable:$true] %s420_s15 }
 0x108   :  { %s13696_s16 = scalar_lea.hbm %s14408_s20, 16 }
 0x109   :  { %p13697_p8 = scmp.ne.s32.totalorder %s14408_s20, %s13696_s16  ;;  %p13700_p9 = scmp.lt.u32.totalorder %s13696_s16, %s14408_s20 }
 0x10b   :  { %p13702_p10 = pnand %p13700_p9, %p13697_p8 }
 0x10d   :  { %13705 = shalt.err (!%p13702_p10)
}
 0x10e   :  { %s13706_s18 = scalar_lea.vmem %s397_s9, 16  ;;  %s13710_s22 = scalar_lea.vmem %s397_s9, 32 }
 0x10f   :  { %p13707_p11 = scmp.ne.s32.totalorder %s397_s9, %s13706_s18  ;;  %p13711_p12 = scmp.lt.s32.totalorder %s397_s9, %s397_s9 }
 0x110   :  { %p13712_p13 = scmp.lt.s32.totalorder %s13710_s22, %s13706_s18 }
 0x112   :  { %p13713_p0 = por %p13712_p13, %p13711_p12 }
 0x114   :  { %p13714_p1 = pnand %p13713_p0, %p13707_p11 }
 0x116   :  { %13717 = shalt.err (!%p13714_p1)
}
 0x117   :  { %399 = dma.hbm_to_vmem [thread:$0]  %s14408_s20, 16, %s397_s9, [#allocation29]  }
 0x118   :  { %s13718_s5 = scalar_lea.hbm %s14428_s30, 16 }
 0x119   :  { %p13719_p2 = scmp.ne.s32.totalorder %s14428_s30, %s13718_s5  ;;  %p13722_p3 = scmp.lt.u32.totalorder %s13718_s5, %s14428_s30 }
 0x11b   :  { %p13724_p4 = pnand %p13722_p3, %p13719_p2 }
 0x11d   :  { %13727 = shalt.err (!%p13724_p4)
}
 0x11e   :  { %s13728_s21 = scalar_lea.vmem %s421_s15, 16  ;;  %s13732_s25 = scalar_lea.vmem %s421_s15, 32 }
 0x11f   :  { %p13729_p5 = scmp.ne.s32.totalorder %s421_s15, %s13728_s21  ;;  %p13733_p6 = scmp.lt.s32.totalorder %s421_s15, %s421_s15 }
 0x120   :  { %p13734_p7 = scmp.lt.s32.totalorder %s13732_s25, %s13728_s21 }
 0x122   :  { %p13735_p8 = por %p13734_p7, %p13733_p6 }
 0x124   :  { %p13736_p9 = pnand %p13735_p8, %p13729_p5 }
 0x126   :  { %13739 = shalt.err (!%p13736_p9)
}
 0x127   :  { %423 = dma.hbm_to_vmem [thread:$0]  %s14428_s30, 16, %s421_s15, [#allocation32]  }
 0x128   :  { %s14102_s23 = smov [#allocation2]   ;;  %s14103_s26 = smov [#allocation6]  }
 0x129   :  { %s210_s20 = sshll.u32 %s14102_s23, 4  ;;  %s234_s4 = sshll.u32 %s14103_s26, 4  ;;  %s211_s20 = int_to_ptr.vmem [resolvable:$true] %s210_s20  ;;  %s235_s4 = int_to_ptr.vmem [resolvable:$true] %s234_s4 }
 0x12a   :  { %s13740_s28 = scalar_lea.hbm %s14283_s14, 16 }
 0x12b   :  { %p13741_p10 = scmp.ne.s32.totalorder %s14283_s14, %s13740_s28  ;;  %p13744_p11 = scmp.lt.u32.totalorder %s13740_s28, %s14283_s14 }
 0x12d   :  { %p13746_p12 = pnand %p13744_p11, %p13741_p10 }
 0x12f   :  { %13749 = shalt.err (!%p13746_p12)
}
 0x130   :  { %s13750_s1 = scalar_lea.vmem %s211_s20, 16  ;;  %s13754_s2 = scalar_lea.vmem %s211_s20, 32 }
 0x131   :  { %p13751_p13 = scmp.ne.s32.totalorder %s211_s20, %s13750_s1  ;;  %p13755_p0 = scmp.lt.s32.totalorder %s211_s20, %s211_s20 }
 0x132   :  { %p13756_p1 = scmp.lt.s32.totalorder %s13754_s2, %s13750_s1 }
 0x134   :  { %p13757_p2 = por %p13756_p1, %p13755_p0 }
 0x136   :  { %p13758_p3 = pnand %p13757_p2, %p13751_p13 }
 0x138   :  { %13761 = shalt.err (!%p13758_p3)
}
 0x139   :  { %213 = dma.hbm_to_vmem [thread:$0]  %s14283_s14, 16, %s211_s20, [#allocation3]  }
 0x13a   :  { %s13762_s30 = scalar_lea.hbm %s14303_s6, 16 }
 0x13b   :  { %p13763_p4 = scmp.ne.s32.totalorder %s14303_s6, %s13762_s30  ;;  %p13766_p5 = scmp.lt.u32.totalorder %s13762_s30, %s14303_s6 }
 0x13d   :  { %p13768_p6 = pnand %p13766_p5, %p13763_p4 }
 0x13f   :  { %13771 = shalt.err (!%p13768_p6)
}
 0x140   :  { %s13772_s17 = scalar_lea.vmem %s235_s4, 16  ;;  %s13776_s0 = scalar_lea.vmem %s235_s4, 32 }
 0x141   :  { %p13773_p7 = scmp.ne.s32.totalorder %s235_s4, %s13772_s17  ;;  %p13777_p8 = scmp.lt.s32.totalorder %s235_s4, %s235_s4 }
 0x142   :  { %p13778_p9 = scmp.lt.s32.totalorder %s13776_s0, %s13772_s17 }
 0x144   :  { %p13779_p10 = por %p13778_p9, %p13777_p8 }
 0x146   :  { %p13780_p11 = pnand %p13779_p10, %p13773_p7 }
 0x148   :  { %13783 = shalt.err (!%p13780_p11)
}
 0x149   :  { %237 = dma.hbm_to_vmem [thread:$0]  %s14303_s6, 16, %s235_s4, [#allocation5]  }
 0x14a   :  { %s14104_s13 = smov [#allocation9]   ;;  %s14105_s7 = smov [#allocation12]  }
 0x14b   :  { %s254_s14 = sshll.u32 %s14104_s13, 4  ;;  %s278_s10 = sshll.u32 %s14105_s7, 4  ;;  %s255_s14 = int_to_ptr.vmem [resolvable:$true] %s254_s14  ;;  %s279_s10 = int_to_ptr.vmem [resolvable:$true] %s278_s10 }
 0x14c   :  { %s13784_s12 = scalar_lea.hbm %s14313_s29, 16 }
 0x14d   :  { %p13785_p12 = scmp.ne.s32.totalorder %s14313_s29, %s13784_s12  ;;  %p13788_p13 = scmp.lt.u32.totalorder %s13784_s12, %s14313_s29 }
 0x14f   :  { %p13790_p0 = pnand %p13788_p13, %p13785_p12 }
 0x151   :  { %13793 = shalt.err (!%p13790_p0)
}
 0x152   :  { %s13794_s9 = scalar_lea.vmem %s255_s14, 16  ;;  %s13798_s11 = scalar_lea.vmem %s255_s14, 32 }
 0x153   :  { %p13795_p1 = scmp.ne.s32.totalorder %s255_s14, %s13794_s9  ;;  %p13799_p2 = scmp.lt.s32.totalorder %s255_s14, %s255_s14 }
 0x154   :  { %p13800_p3 = scmp.lt.s32.totalorder %s13798_s11, %s13794_s9 }
 0x156   :  { %p13801_p4 = por %p13800_p3, %p13799_p2 }
 0x158   :  { %p13802_p5 = pnand %p13801_p4, %p13795_p1 }
 0x15a   :  { %13805 = shalt.err (!%p13802_p5)
}
 0x15b   :  { %257 = dma.hbm_to_vmem [thread:$0]  %s14313_s29, 16, %s255_s14, [#allocation8]  }
 0x15c   :  { %s13806_s6 = scalar_lea.hbm %s14333_s24, 16 }
 0x15d   :  { %p13807_p6 = scmp.ne.s32.totalorder %s14333_s24, %s13806_s6  ;;  %p13810_p7 = scmp.lt.u32.totalorder %s13806_s6, %s14333_s24 }
 0x15f   :  { %p13812_p8 = pnand %p13810_p7, %p13807_p6 }
 0x161   :  { %13815 = shalt.err (!%p13812_p8)
}
 0x162   :  { %s13816_s15 = scalar_lea.vmem %s279_s10, 16  ;;  %s13820_s16 = scalar_lea.vmem %s279_s10, 32 }
 0x163   :  { %p13817_p9 = scmp.ne.s32.totalorder %s279_s10, %s13816_s15  ;;  %p13821_p10 = scmp.lt.s32.totalorder %s279_s10, %s279_s10 }
 0x164   :  { %p13822_p11 = scmp.lt.s32.totalorder %s13820_s16, %s13816_s15 }
 0x166   :  { %p13823_p12 = por %p13822_p11, %p13821_p10 }
 0x168   :  { %p13824_p13 = pnand %p13823_p12, %p13817_p9 }
 0x16a   :  { %13827 = shalt.err (!%p13824_p13)
}
 0x16b   :  { %s15887_s18 = sld [smem:[#allocation81_spill]]  ;;  %s14106_s22 = smov [#allocation15]  }
 0x16c   :  { %281 = dma.hbm_to_vmem [thread:$0]  %s14333_s24, 16, %s279_s10, [#allocation11]  }
 0x16d   :  { %s298_s29 = sshll.u32 %s14106_s22, 4  ;;  %s14107_s5 = smov [#allocation18]   ;;  %s299_s29 = int_to_ptr.vmem [resolvable:$true] %s298_s29 }
 0x16e   :  { %s322_s21 = sshll.u32 %s14107_s5, 4  ;;  %s323_s21 = int_to_ptr.vmem [resolvable:$true] %s322_s21 }
 0x171   :  { %s13828_s25 = scalar_lea.hbm %s15887_s18, 16 }
 0x172   :  { %p13829_p0 = scmp.ne.s32.totalorder %s15887_s18, %s13828_s25  ;;  %p13832_p1 = scmp.lt.u32.totalorder %s13828_s25, %s15887_s18 }
 0x174   :  { %p13834_p2 = pnand %p13832_p1, %p13829_p0 }
 0x176   :  { %13837 = shalt.err (!%p13834_p2)
}
 0x177   :  { %s13838_s23 = scalar_lea.vmem %s299_s29, 16  ;;  %s13842_s20 = scalar_lea.vmem %s299_s29, 32 }
 0x178   :  { %p13839_p3 = scmp.ne.s32.totalorder %s299_s29, %s13838_s23  ;;  %p13843_p4 = scmp.lt.s32.totalorder %s299_s29, %s299_s29 }
 0x179   :  { %p13844_p5 = scmp.lt.s32.totalorder %s13842_s20, %s13838_s23 }
 0x17b   :  { %p13845_p6 = por %p13844_p5, %p13843_p4 }
 0x17d   :  { %p13846_p7 = pnand %p13845_p6, %p13839_p3 }
 0x17f   :  { %13849 = shalt.err (!%p13846_p7)
}
 0x180   :  { %s15888_s24 = sld [smem:[#allocation84_spill]] }
 0x181   :  { %301 = dma.hbm_to_vmem [thread:$0]  %s15887_s18, 16, %s299_s29, [#allocation14]  }
 0x186   :  { %s13850_s26 = scalar_lea.hbm %s15888_s24, 16 }
 0x187   :  { %p13851_p8 = scmp.ne.s32.totalorder %s15888_s24, %s13850_s26  ;;  %p13854_p9 = scmp.lt.u32.totalorder %s13850_s26, %s15888_s24 }
 0x189   :  { %p13856_p10 = pnand %p13854_p9, %p13851_p8 }
 0x18b   :  { %13859 = shalt.err (!%p13856_p10)
}
 0x18c   :  { %s13860_s4 = scalar_lea.vmem %s323_s21, 16  ;;  %s13864_s28 = scalar_lea.vmem %s323_s21, 32 }
 0x18d   :  { %p13861_p11 = scmp.ne.s32.totalorder %s323_s21, %s13860_s4  ;;  %p13865_p12 = scmp.lt.s32.totalorder %s323_s21, %s323_s21 }
 0x18e   :  { %p13866_p13 = scmp.lt.s32.totalorder %s13864_s28, %s13860_s4 }
 0x190   :  { %p13867_p0 = por %p13866_p13, %p13865_p12 }
 0x192   :  { %p13868_p1 = pnand %p13867_p0, %p13861_p11 }
 0x194   :  { %13871 = shalt.err (!%p13868_p1)
}
 0x195   :  { %s15889_s1 = sld [smem:[#allocation85_spill]]  ;;  %s14108_s2 = smov [#allocation21]  }
 0x196   :  { %325 = dma.hbm_to_vmem [thread:$0]  %s15888_s24, 16, %s323_s21, [#allocation17]  }
 0x197   :  { %s342_s30 = sshll.u32 %s14108_s2, 4  ;;  %s14109_s17 = smov [#allocation24]   ;;  %s343_s30 = int_to_ptr.vmem [resolvable:$true] %s342_s30 }
 0x198   :  { %s366_s0 = sshll.u32 %s14109_s17, 4  ;;  %s367_s0 = int_to_ptr.vmem [resolvable:$true] %s366_s0 }
 0x19b   :  { %s13872_s13 = scalar_lea.hbm %s15889_s1, 16 }
 0x19c   :  { %p13873_p2 = scmp.ne.s32.totalorder %s15889_s1, %s13872_s13  ;;  %p13876_p3 = scmp.lt.u32.totalorder %s13872_s13, %s15889_s1 }
 0x19e   :  { %p13878_p4 = pnand %p13876_p3, %p13873_p2 }
 0x1a0   :  { %13881 = shalt.err (!%p13878_p4)
}
 0x1a1   :  { %s13882_s14 = scalar_lea.vmem %s343_s30, 16  ;;  %s13886_s7 = scalar_lea.vmem %s343_s30, 32 }
 0x1a2   :  { %p13883_p5 = scmp.ne.s32.totalorder %s343_s30, %s13882_s14  ;;  %p13887_p6 = scmp.lt.s32.totalorder %s343_s30, %s343_s30 }
 0x1a3   :  { %p13888_p7 = scmp.lt.s32.totalorder %s13886_s7, %s13882_s14 }
 0x1a5   :  { %p13889_p8 = por %p13888_p7, %p13887_p6 }
 0x1a7   :  { %p13890_p9 = pnand %p13889_p8, %p13883_p5 }
 0x1a9   :  { %13893 = shalt.err (!%p13890_p9)
}
 0x1aa   :  { %s15890_s10 = sld [smem:[#allocation88_spill]] }
 0x1ab   :  { %345 = dma.hbm_to_vmem [thread:$0]  %s15889_s1, 16, %s343_s30, [#allocation20]  }
 0x1b0   :  { %s13894_s12 = scalar_lea.hbm %s15890_s10, 16 }
 0x1b1   :  { %p13895_p10 = scmp.ne.s32.totalorder %s15890_s10, %s13894_s12  ;;  %p13898_p11 = scmp.lt.u32.totalorder %s13894_s12, %s15890_s10 }
 0x1b3   :  { %p13900_p12 = pnand %p13898_p11, %p13895_p10 }
 0x1b5   :  { %13903 = shalt.err (!%p13900_p12)
}
 0x1b6   :  { %s13904_s9 = scalar_lea.vmem %s367_s0, 16  ;;  %s13908_s11 = scalar_lea.vmem %s367_s0, 32 }
 0x1b7   :  { %p13905_p13 = scmp.ne.s32.totalorder %s367_s0, %s13904_s9  ;;  %p13909_p0 = scmp.lt.s32.totalorder %s367_s0, %s367_s0 }
 0x1b8   :  { %p13910_p1 = scmp.lt.s32.totalorder %s13908_s11, %s13904_s9 }
 0x1ba   :  { %p13911_p2 = por %p13910_p1, %p13909_p0 }
 0x1bc   :  { %p13912_p3 = pnand %p13911_p2, %p13905_p13 }
 0x1be   :  { %13915 = shalt.err (!%p13912_p3)
}
 0x1bf   :  { %s15891_s6 = sld [smem:[#allocation89_spill]]  ;;  %s14110_s15 = smov [#allocation27]  }
 0x1c0   :  { %369 = dma.hbm_to_vmem [thread:$0]  %s15890_s10, 16, %s367_s0, [#allocation23]  }
 0x1c1   :  { %s386_s16 = sshll.u32 %s14110_s15, 4  ;;  %s14111_s18 = smov [#allocation30]   ;;  %s387_s16 = int_to_ptr.vmem [resolvable:$true] %s386_s16 }
 0x1c2   :  { %s410_s22 = sshll.u32 %s14111_s18, 4  ;;  %s411_s22 = int_to_ptr.vmem [resolvable:$true] %s410_s22 }
 0x1c5   :  { %s13916_s29 = scalar_lea.hbm %s15891_s6, 16 }
 0x1c6   :  { %p13917_p4 = scmp.ne.s32.totalorder %s15891_s6, %s13916_s29  ;;  %p13920_p5 = scmp.lt.u32.totalorder %s13916_s29, %s15891_s6 }
 0x1c8   :  { %p13922_p6 = pnand %p13920_p5, %p13917_p4 }
 0x1ca   :  { %13925 = shalt.err (!%p13922_p6)
}
 0x1cb   :  { %s13926_s5 = scalar_lea.vmem %s387_s16, 16  ;;  %s13930_s21 = scalar_lea.vmem %s387_s16, 32 }
 0x1cc   :  { %p13927_p7 = scmp.ne.s32.totalorder %s387_s16, %s13926_s5  ;;  %p13931_p8 = scmp.lt.s32.totalorder %s387_s16, %s387_s16 }
 0x1cd   :  { %p13932_p9 = scmp.lt.s32.totalorder %s13930_s21, %s13926_s5 }
 0x1cf   :  { %p13933_p10 = por %p13932_p9, %p13931_p8 }
 0x1d1   :  { %p13934_p11 = pnand %p13933_p10, %p13927_p7 }
 0x1d3   :  { %13937 = shalt.err (!%p13934_p11)
}
 0x1d4   :  { %s15892_s25 = sld [smem:[#allocation92_spill]] }
 0x1d5   :  { %389 = dma.hbm_to_vmem [thread:$0]  %s15891_s6, 16, %s387_s16, [#allocation26]  }
 0x1da   :  { %s13938_s23 = scalar_lea.hbm %s15892_s25, 16 }
 0x1db   :  { %p13939_p12 = scmp.ne.s32.totalorder %s15892_s25, %s13938_s23  ;;  %p13942_p13 = scmp.lt.u32.totalorder %s13938_s23, %s15892_s25 }
 0x1dd   :  { %p13944_p0 = pnand %p13942_p13, %p13939_p12 }
 0x1df   :  { %13947 = shalt.err (!%p13944_p0)
}
 0x1e0   :  { %s13948_s20 = scalar_lea.vmem %s411_s22, 16  ;;  %s13952_s24 = scalar_lea.vmem %s411_s22, 32 }
 0x1e1   :  { %p13949_p1 = scmp.ne.s32.totalorder %s411_s22, %s13948_s20  ;;  %p13953_p2 = scmp.lt.s32.totalorder %s411_s22, %s411_s22 }
 0x1e2   :  { %p13954_p3 = scmp.lt.s32.totalorder %s13952_s24, %s13948_s20 }
 0x1e4   :  { %p13955_p4 = por %p13954_p3, %p13953_p2 }
 0x1e6   :  { %p13956_p5 = pnand %p13955_p4, %p13949_p1 }
 0x1e8   :  { %13959 = shalt.err (!%p13956_p5)
}
 0x1e9   :  { %s15893_s26 = sld [smem:[#allocation93_spill]]  ;;  %s14112_s4 = smov [#allocation33]  }
 0x1ea   :  { %413 = dma.hbm_to_vmem [thread:$0]  %s15892_s25, 16, %s411_s22, [#allocation29]  }
 0x1eb   :  { %s430_s28 = sshll.u32 %s14112_s4, 4  ;;  %s14113_s1 = smov [#allocation34]   ;;  %s431_s28 = int_to_ptr.vmem [resolvable:$true] %s430_s28 }
 0x1ec   :  { %s440_s2 = sshll.u32 %s14113_s1, 4  ;;  %s441_s2 = int_to_ptr.vmem [resolvable:$true] %s440_s2 }
 0x1ef   :  { %s13960_s30 = scalar_lea.hbm %s15893_s26, 16 }
 0x1f0   :  { %p13961_p6 = scmp.ne.s32.totalorder %s15893_s26, %s13960_s30  ;;  %p13964_p7 = scmp.lt.u32.totalorder %s13960_s30, %s15893_s26 }
 0x1f2   :  { %p13966_p8 = pnand %p13964_p7, %p13961_p6 }
 0x1f4   :  { %13969 = shalt.err (!%p13966_p8)
}
 0x1f5   :  { %s13970_s17 = scalar_lea.vmem %s431_s28, 16  ;;  %s13974_s0 = scalar_lea.vmem %s431_s28, 32 }
 0x1f6   :  { %p13971_p9 = scmp.ne.s32.totalorder %s431_s28, %s13970_s17  ;;  %p13975_p10 = scmp.lt.s32.totalorder %s431_s28, %s431_s28 }
 0x1f7   :  { %p13976_p11 = scmp.lt.s32.totalorder %s13974_s0, %s13970_s17 }
 0x1f9   :  { %p13977_p12 = por %p13976_p11, %p13975_p10 }
 0x1fb   :  { %p13978_p13 = pnand %p13977_p12, %p13971_p9 }
 0x1fd   :  { %13981 = shalt.err (!%p13978_p13)
}
 0x1fe   :  { %s15894_s13 = sld [smem:[#allocation94_spill]] }
 0x1ff   :  { %433 = dma.hbm_to_vmem [thread:$0]  %s15893_s26, 16, %s431_s28, [#allocation32]  }
 0x204   :  { %s13982_s14 = scalar_lea.hbm %s15894_s13, 16 }
 0x205   :  { %p13983_p0 = scmp.ne.s32.totalorder %s15894_s13, %s13982_s14  ;;  %p13986_p1 = scmp.lt.u32.totalorder %s13982_s14, %s15894_s13 }
 0x207   :  { %p13988_p2 = pnand %p13986_p1, %p13983_p0 }
 0x209   :  { %13991 = shalt.err (!%p13988_p2)
}
 0x20a   :  { %s13992_s7 = scalar_lea.vmem %s441_s2, 16  ;;  %s13996_s10 = scalar_lea.vmem %s441_s2, 32 }
 0x20b   :  { %p13993_p3 = scmp.ne.s32.totalorder %s441_s2, %s13992_s7  ;;  %p13997_p4 = scmp.lt.s32.totalorder %s441_s2, %s441_s2 }
 0x20c   :  { %p13998_p5 = scmp.lt.s32.totalorder %s13996_s10, %s13992_s7 }
 0x20e   :  { %p13999_p6 = por %p13998_p5, %p13997_p4 }
 0x210   :  { %p14000_p7 = pnand %p13999_p6, %p13993_p3 }
 0x212   :  { %14003 = shalt.err (!%p14000_p7)
}
 0x213   :  { %443 = dma.hbm_to_vmem [thread:$0]  %s15894_s13, 16, %s441_s2, [#allocation35]  }
 0x214   :  { %14004 = dma.done.wait [#allocation3], 16  }
 0x215   :  { %14005 = vsyncadd [#allocation3], 4294967280 }
 0x216   :  { %14006 = dma.done.wait [#allocation5], 32  }
 0x217   :  { %14007 = vsyncadd [#allocation5], 4294967264 }
 0x218   :  { %14008 = dma.done.wait [#allocation8], 32  }
 0x219   :  { %14009 = vsyncadd [#allocation8], 4294967264 }
 0x21a   :  { %14010 = dma.done.wait [#allocation11], 32  }
 0x21b   :  { %14011 = vsyncadd [#allocation11], 4294967264 }
 0x21c   :  { %14012 = dma.done.wait [#allocation14], 32  }
 0x21d   :  { %14013 = vsyncadd [#allocation14], 4294967264 }
 0x21e   :  { %14014 = dma.done.wait [#allocation17], 32  }
 0x21f   :  { %14015 = vsyncadd [#allocation17], 4294967264 }
 0x220   :  { %14016 = dma.done.wait [#allocation20], 32  }
 0x221   :  { %14017 = vsyncadd [#allocation20], 4294967264 }
 0x222   :  { %14018 = dma.done.wait [#allocation23], 32  }
 0x223   :  { %14019 = vsyncadd [#allocation23], 4294967264 }
 0x224   :  { %14020 = dma.done.wait [#allocation26], 32  }
 0x225   :  { %14021 = vsyncadd [#allocation26], 4294967264 }
 0x226   :  { %14022 = dma.done.wait [#allocation29], 32  }
 0x227   :  { %14023 = vsyncadd [#allocation29], 4294967264 }
 0x228   :  { %14024 = dma.done.wait [#allocation32], 32  }
 0x229   :  { %14025 = vsyncadd [#allocation32], 4294967264 }
 0x22a   :  { %14026 = dma.done.wait [#allocation35], 16  }
 0x22b   :  { %14027 = vsyncadd [#allocation35], 4294967280  ;;  %s15895_s12 = sld [smem:[#allocation87_spill]]  ;;  %s15896_s9 = sld [smem:[#allocation48_spill]]  ;;  %vm666_vm0 = vcmask 261120   ;;  %v14114_v8 = vmov 0.0  }
 0x22c   :  { %12136 = vmatprep.subr.mxu1 %v14114_v8  ;;  %vm14115_vm1 = vmmov 0   ;;  %v11533_v9 = vld [vmem:[#allocation19] ss:$0 sm:$0xff]  ;;  %s14116_s11 = smov 120   ;;  %s14117_s6 = smov 96   ;;  %vm751_vm2 = vcmask 64512  }
 0x22d   :  { %12138 = vmatprep.mubr.msk.f32.mxu1 %vm14115_vm1, %v14114_v8  ;;  %s14118_s15 = smov 80   ;;  %s14119_s16 = smov 88   ;;  %vm2101_vm3 = vcmask 130048   ;;  %vm2104_vm4 = vcmask 195584   ;;  %vm2334_vm5 = vcmask 523264  }
 0x22e   :  { %s14120_s18 = smov 112   ;;  %s14121_s22 = smov 72  }
 0x22f   :  { %s14122_s29 = smov 104   ;;  %s14123_s5 = smov 64  }
 0x230   :  { %s14124_s21 = smov 56   ;;  %s14125_s25 = smov 48  }
 0x231   :  { %v620_v0 = vld [vmem:[%s15895_s12] sm:$0xff]  ;;  %v621_v1 = vld [vmem:[%s15895_s12 + $0x8] sm:$0xff]  ;;  %v622_v2 = vld [vmem:[%s15895_s12 + $0x10] sm:$0xff]  ;;  %s14126_s23 = smov 40   ;;  %s15897_s20 = sld [smem:[#allocation86_spill]] }
 0x232   :  { %v12912_v3 = vpack.c.bf16 %v621_v1, %v620_v0  ;;  %v623_v4 = vld [vmem:[%s15895_s12 + $0x18] sm:$0xff]  ;;  %v14553_v5 = vld [vmem:[%s15896_s9] sm:$0xff]  ;;  %v14558_v7 = vld [vmem:[%s15896_s9 + $0x8] sm:$0xff]  ;;  %s14127_s24 = smov 8   ;;  %s14128_s26 = smov 16  }
 0x233   :  { %v12916_v6 = vpack.c.bf16 %v623_v4, %v622_v2  ;;  %12133 = vmatprep.mubr.msk.f32.mxu0 %vm666_vm0, %v14553_v5  ;;  %s14129_s4 = smov 24   ;;  %s15898_s28 = sld [smem:[#allocation82_spill]] }
 0x234   :  { %12913 = vmatprep.subr.bf16.mxu0 %v12912_v3  ;;  %s15899_s1 = sld [smem:[#allocation83_spill]]  ;;  %s15903_s30 = sld [smem:[#allocation49_spill]] }
 0x235   :  { %12915 = vmatpush3.bf16.msra.mxu0 %v12912_v3  ;;  %s15902_s2 = sld [smem:[#allocation91_spill]]  ;;  %s15904_s17 = sld [smem:[#allocation64_spill]] }
 0x236   :  { %12917 = vmatprep.subr.bf16.mxu0 %v12916_v6  ;;  %s15905_s0 = sld [smem:[#allocation50_spill]]  ;;  %s15906_s13 = sld [smem:[#allocation67_spill]] }
 0x237   :  { %s15907_s14 = sld [smem:[#allocation63_spill]]  ;;  %s15908_s7 = sld [smem:[#allocation56_spill]] }
 0x238   :  { %s15909_s10 = sld [smem:[#allocation52_spill]]  ;;  %s15910_s12 = sld [smem:[#allocation66_spill]] }
 0x239   :  { %12919 = vmatpush3.bf16.msra.mxu0 %v12916_v6  ;;  %s15911_s9 = sld [smem:[#allocation65_spill]] }
 0x23a   :  { %12156 = vmatprep.subr.mxu0 %v14114_v8 }
 0x23c   :  { %12134 = vmatmul.mubr.msk.f32.vlgmr.msra.gmra.mrb[0].mxu0 %vm666_vm0, %v14558_v7 }
 0x23d   :  { %12158 = vmatprep.mubr.msk.f32.mxu0 %vm14115_vm1, %v14114_v8 }
 0x30f   :  { %v12135_v10 = vpop.f32.mrb[0].mxu0 }
 0x310   :  { %v14568_v11 = vadd.f32 %v12135_v10, %v11533_v9  ;;  %v739_v12 = vpop.f32.mrb[1].mxu0 }
 0x311   :  { %v14570_v13 = vadd.f32 %v11533_v9, %v739_v12 }
 0x312   :  { %983 = vrot.lane.b32.xlu1 %v14568_v11, %s14116_s11 }
 0x313   :  { %749 = vrot.lane.b32.xlu0 %v14570_v13, %s14117_s6 }
 0x316   :  { %1143 = vrot.lane.b32.xlu1 %v14568_v11, %s14118_s15 }
 0x317   :  { %827 = vrot.lane.b32.xlu0 %v14568_v11, %s14117_s6 }
 0x31a   :  { %907 = vrot.lane.b32.xlu1 %v14570_v13, %s14119_s16 }
 0x31b   :  { %985 = vrot.lane.b32.xlu0 %v14568_v11, %s14119_s16 }
 0x31e   :  { %905 = vrot.lane.b32.xlu1 %v14570_v13, %s14116_s11 }
 0x31f   :  { %1065 = vrot.lane.b32.xlu0 %v14570_v13, %s14118_s15 }
 0x322   :  { %1141 = vrot.lane.b32.xlu1 %v14568_v11, %s14120_s18 }
 0x323   :  { %1063 = vrot.lane.b32.xlu0 %v14570_v13, %s14120_s18 }
 0x326   :  { %1301 = vrot.lane.b32.xlu1 %v14568_v11, %s14121_s22 }
 0x327   :  { %1223 = vrot.lane.b32.xlu0 %v14570_v13, %s14121_s22 }
 0x32a   :  { %1299 = vrot.lane.b32.xlu1 %v14568_v11, %s14122_s29 }
 0x32b   :  { %1221 = vrot.lane.b32.xlu0 %v14570_v13, %s14122_s29 }
 0x384   :  { %v984_v14 = vpop.permute.xlu1 %983 }
 0x385   :  { %v750_v15 = vpop.permute.xlu0 %749 }
 0x386   :  { %12137 = vmatpush3.xpose.msk.msra.mxu1 %vm751_vm2, %v750_v15 }
 0x387   :  { %12141 = vmatprep.subr.mxu1 %v14114_v8 }
 0x388   :  { %v1144_v16 = vpop.permute.xlu1 %1143 }
 0x389   :  { %12139 = vmatmul.mubr.msk.f32.vlgmr.msra.gmra.mrb[0].mxu1 %vm751_vm2, %v14570_v13  ;;  %v828_v17 = vpop.permute.xlu0 %827 }
 0x38a   :  { %12142 = vmatpush3.xpose.msk.msra.mxu1 %vm751_vm2, %v828_v17  ;;  %12143 = vmatprep.mubr.msk.f32.mxu1 %vm14115_vm1, %v14114_v8 }
 0x38b   :  { %12146 = vmatprep.subr.mxu1 %v14114_v8 }
 0x38c   :  { %v908_v18 = vpop.permute.xlu1 %907 }
 0x38d   :  { %12144 = vmatmul.mubr.msk.f32.vlgmr.msra.gmra.mrb[2].mxu1 %vm751_vm2, %v14568_v11  ;;  %v986_v19 = vpop.permute.xlu0 %985 }
 0x38e   :  { %12147 = vmatpush3.xpose.msk.msra.mxu1 %vm751_vm2, %v908_v18  ;;  %12148 = vmatprep.mubr.msk.f32.mxu1 %vm14115_vm1, %v14114_v8 }
 0x38f   :  { %12151 = vmatprep.subr.mxu1 %v14114_v8 }
 0x390   :  { %v906_v20 = vpop.permute.xlu1 %905 }
 0x391   :  { %12149 = vmatmul.mubr.msk.f32.vlgmr.msra.gmra.mrb[4].mxu1 %vm751_vm2, %v906_v20  ;;  %v1066_v21 = vpop.permute.xlu0 %1065 }
 0x392   :  { %12152 = vmatpush3.xpose.msk.msra.mxu1 %vm751_vm2, %v986_v19  ;;  %12157 = vmatpush3.xpose.msk.msra.mxu0 %vm751_vm2, %v1066_v21 }
 0x393   :  { %12153 = vmatprep.mubr.msk.f32.mxu1 %vm14115_vm1, %v14114_v8  ;;  %12161 = vmatprep.subr.mxu1 %v14114_v8 }
 0x394   :  { %v1142_v22 = vpop.permute.xlu1 %1141  ;;  %12166 = vmatprep.subr.mxu0 %v14114_v8 }
 0x395   :  { %12154 = vmatmul.mubr.msk.f32.vlgmr.msra.gmra.mrb[6].mxu1 %vm751_vm2, %v984_v14  ;;  %v1064_v23 = vpop.permute.xlu0 %1063 }
 0x396   :  { %12159 = vmatmul.mubr.msk.f32.vlgmr.msra.gmra.mrb[2].mxu0 %vm751_vm2, %v1064_v23  ;;  %12162 = vmatpush3.xpose.msk.msra.mxu1 %vm751_vm2, %v1144_v16 }
 0x397   :  { %12163 = vmatprep.mubr.msk.f32.mxu1 %vm14115_vm1, %v14114_v8  ;;  %12171 = vmatprep.subr.mxu1 %v14114_v8 }
 0x398   :  { %v1302_v24 = vpop.permute.xlu1 %1301  ;;  %12168 = vmatprep.mubr.msk.f32.mxu0 %vm14115_vm1, %v14114_v8 }
 0x399   :  { %12164 = vmatmul.mubr.msk.f32.vlgmr.msra.gmra.mrb[8].mxu1 %vm751_vm2, %v1142_v22  ;;  %v1224_v25 = vpop.permute.xlu0 %1223 }
 0x39a   :  { %12167 = vmatpush3.xpose.msk.msra.mxu0 %vm751_vm2, %v1224_v25  ;;  %12172 = vmatpush3.xpose.msk.msra.mxu1 %vm751_vm2, %v1302_v24 }
 0x39b   :  { %12173 = vmatprep.mubr.msk.f32.mxu1 %vm14115_vm1, %v14114_v8  ;;  %12181 = vmatprep.subr.mxu1 %v14114_v8 }
 0x39c   :  { %v1300_v26 = vpop.permute.xlu1 %1299  ;;  %12176 = vmatprep.subr.mxu0 %v14114_v8 }
 0x39d   :  { %12174 = vmatmul.mubr.msk.f32.vlgmr.msra.gmra.mrb[10].mxu1 %vm751_vm2, %v1300_v26  ;;  %v1222_v27 = vpop.permute.xlu0 %1221 }
 0x39e   :  { %12169 = vmatmul.mubr.msk.f32.vlgmr.msra.gmra.mrb[4].mxu0 %vm751_vm2, %v1222_v27  ;;  %12183 = vmatprep.mubr.msk.f32.mxu1 %vm14115_vm1, %v14114_v8 }
 0x39f   :  { %12178 = vmatprep.mubr.msk.f32.mxu0 %vm14115_vm1, %v14114_v8 }
 0x45c   :  { %v822_v28 = vpop.f32.mrb[0].mxu1 }
 0x45d   :  { %v903_v29 = vmul.f32 0.35355338, %v822_v28  ;;  %v12140_v30 = vpop.f32.mrb[1].mxu1 }
 0x45f   :  { %v1379_v31 = vsel %vm751_vm2, %v903_v29, -inf }
 0x460   :  { %1380 = vmax.xlane.f32.xlu0 %v1379_v31  ;;  %v899_v32 = vpop.f32.mrb[2].mxu1 }
 0x461   :  { %v904_v33 = vmul.f32 0.35355338, %v899_v32  ;;  %v12145_v34 = vpop.f32.mrb[3].mxu1 }
 0x463   :  { %v1391_v35 = vsel %vm751_vm2, %v904_v33, -inf }
 0x464   :  { %1392 = vmax.xlane.f32.xlu1 %v1391_v35  ;;  %v979_v36 = vpop.f32.mrb[4].mxu1 }
 0x465   :  { %v14644_v37 = vmul.f32 0.35355338, %v979_v36  ;;  %v12150_v38 = vpop.f32.mrb[5].mxu1 }
 0x467   :  { %v1382_v39 = vsel %vm751_vm2, %v14644_v37, -inf }
 0x468   :  { %1383 = vmax.xlane.f32.xlu0 %v1382_v39  ;;  %v1057_v40 = vpop.f32.mrb[6].mxu1 }
 0x469   :  { %v1062_v41 = vmul.f32 0.35355338, %v1057_v40  ;;  %v12155_v42 = vpop.f32.mrb[7].mxu1  ;;  %v1137_v43 = vpop.f32.mrb[2].mxu0 }
 0x46a   :  { %v1219_v44 = vmul.f32 0.35355338, %v1137_v43  ;;  %v12160_v45 = vpop.f32.mrb[3].mxu0 }
 0x46b   :  { %v1394_v46 = vsel %vm751_vm2, %v1062_v41, -inf }
 0x46c   :  { %1395 = vmax.xlane.f32.xlu0 %v1394_v46  ;;  %v1215_v47 = vpop.f32.mrb[8].mxu1  ;;  %v1385_v48 = vsel %vm751_vm2, %v1219_v44, -inf }
 0x46d   :  { %v1220_v49 = vmul.f32 0.35355338, %v1215_v47  ;;  %v12165_v50 = vpop.f32.mrb[9].mxu1  ;;  %1386 = vmax.xlane.f32.xlu1 %v1385_v48 }
 0x46f   :  { %v1397_v51 = vsel %vm751_vm2, %v1220_v49, -inf }
 0x470   :  { %1398 = vmax.xlane.f32.xlu0 %v1397_v51  ;;  %v1373_v52 = vpop.f32.mrb[10].mxu1 }
 0x471   :  { %v1378_v53 = vmul.f32 0.35355338, %v1373_v52  ;;  %v1295_v54 = vpop.f32.mrb[4].mxu0  ;;  %v12175_v55 = vpop.f32.mrb[11].mxu1 }
 0x472   :  { %v1377_v56 = vmul.f32 0.35355338, %v1295_v54  ;;  %v12170_v57 = vpop.f32.mrb[5].mxu0 }
 0x473   :  { %v1400_v58 = vsel %vm751_vm2, %v1378_v53, -inf }
 0x474   :  { %1401 = vmax.xlane.f32.xlu0 %v1400_v58  ;;  %v1388_v59 = vsel %vm751_vm2, %v1377_v56, -inf }
 0x475   :  { %1389 = vmax.xlane.f32.xlu1 %v1388_v59 }
 0x486   :  { %1467 = vrot.lane.b32.xlu1 %v14570_v13, %s14123_s5 }
 0x48a   :  { %1543 = vrot.lane.b32.xlu0 %v14568_v11, %s14123_s5  ;;  %1619 = vrot.lane.b32.xlu1 %v14570_v13, %s14124_s21 }
 0x48e   :  { %1771 = vrot.lane.b32.xlu0 %v14570_v13, %s14125_s25  ;;  %1695 = vrot.lane.b32.xlu1 %v14568_v11, %s14124_s21 }
 0x492   :  { %1847 = vrot.lane.b32.xlu1 %v14568_v11, %s14125_s25 }
 0x4ed   :  { %v1381_v60 = vpop.xlane.xlu0 %1380 }
 0x4ee   :  { %v1403_v61 = vsub.f32 %v903_v29, %v1381_v60 }
 0x4f0   :  { %v1411_v62 = vmul.f32 1.442695, %v1403_v61 }
 0x4f1   :  { %v1393_v63 = vpop.xlane.xlu1 %1392 }
 0x4f2   :  { %13286 = vpow2.f32 %v1411_v62  ;;  %v1407_v0 = vsub.f32 %v904_v33, %v1393_v63 }
 0x4f4   :  { %v1419_v1 = vmul.f32 1.442695, %v1407_v0 }
 0x4f5   :  { %v1384_v2 = vpop.xlane.xlu0 %1383 }
 0x4f6   :  { %13288 = vpow2.f32 %v1419_v1  ;;  %v1404_v20 = vsub.f32 %v14644_v37, %v1384_v2 }
 0x4f8   :  { %v1413_v27 = vmul.f32 1.442695, %v1404_v20 }
 0x4f9   :  { %v1396_v3 = vpop.xlane.xlu0 %1395 }
 0x4fa   :  { %v1408_v4 = vsub.f32 %v1062_v41, %v1396_v3  ;;  %v1387_v6 = vpop.xlane.xlu1 %1386 }
 0x4fb   :  { %v1405_v9 = vsub.f32 %v1219_v44, %v1387_v6 }
 0x4fc   :  { %v13287_v10 = vpop.eup %13286  ;;  %v1421_v12 = vmul.f32 1.442695, %v1408_v4 }
 0x4fd   :  { %v1415_v14 = vmul.f32 1.442695, %v1405_v9  ;;  %v1399_v15 = vpop.xlane.xlu0 %1398  ;;  %v1427_v16 = vsel %vm751_vm2, %v13287_v10, 0.0 }
 0x4fe   :  { %13290 = vpow2.f32 %v1421_v12  ;;  %v1409_v17 = vsub.f32 %v1220_v49, %v1399_v15  ;;  %1428 = vadd.xlane.f32.xlu1 %v1427_v16 }
 0x4ff   :  { %13292 = vpow2.f32 %v1415_v14 }
 0x500   :  { %v13289_v18 = vpop.eup %13288  ;;  %v1423_v19 = vmul.f32 1.442695, %v1409_v17 }
 0x501   :  { %v1402_v21 = vpop.xlane.xlu0 %1401  ;;  %v1439_v22 = vsel %vm751_vm2, %v13289_v18, 0.0 }
 0x502   :  { %13294 = vpow2.f32 %v1423_v19  ;;  %v1410_v23 = vsub.f32 %v1378_v53, %v1402_v21  ;;  %1440 = vadd.xlane.f32.xlu0 %v1439_v22  ;;  %v1390_v24 = vpop.xlane.xlu1 %1389  ;;  %v617_v19 = vld [vmem:[%s15897_s20 + $0x8] sm:$0xff] }
 0x503   :  { %v1406_v25 = vsub.f32 %v1377_v56, %v1390_v24  ;;  %v619_v24 = vld [vmem:[%s15897_s20 + $0x18] sm:$0xff] }
 0x504   :  { %v1425_v26 = vmul.f32 1.442695, %v1410_v23  ;;  %v618_v23 = vld [vmem:[%s15897_s20 + $0x10] sm:$0xff] }
 0x505   :  { %v1417_v28 = vmul.f32 1.442695, %v1406_v25  ;;  %v1544_v29 = vpop.permute.xlu0 %1543  ;;  %v12924_v25 = vpack.c.bf16 %v619_v24, %v618_v23  ;;  %v11563_v24 = vld [vmem:[#allocation22] ss:$0 sm:$0xff] }
 0x506   :  { %13296 = vpow2.f32 %v1425_v26  ;;  %v1468_v30 = vpop.permute.xlu1 %1467  ;;  %12182 = vmatpush3.msra.mxu1 %v1544_v29 }
 0x507   :  { %13298 = vpow2.f32 %v1417_v28  ;;  %12177 = vmatpush3.msra.mxu0 %v1468_v30  ;;  %12191 = vmatprep.subr.mxu1 %v14114_v8 }
 0x508   :  { %v13291_v31 = vpop.eup %13290  ;;  %12186 = vmatprep.subr.mxu0 %v14114_v8  ;;  %13300 = vpow2.f32 %v1413_v27 }
 0x509   :  { %v14670_v32 = vpop.eup %13292  ;;  %v1442_v33 = vsel %vm751_vm2, %v13291_v31, 0.0  ;;  %v1772_v46 = vpop.permute.xlu0 %1771 }
 0x50a   :  { %1443 = vadd.xlane.f32.xlu0 %v1442_v33  ;;  %v1433_v34 = vsel %vm751_vm2, %v14670_v32, 0.0  ;;  %v1620_v43 = vpop.permute.xlu1 %1619 }
 0x50b   :  { %1434 = vadd.xlane.f32.xlu1 %v1433_v34 }
 0x50c   :  { %v13295_v35 = vpop.eup %13294 }
 0x50d   :  { %v1445_v36 = vsel %vm751_vm2, %v13295_v35, 0.0 }
 0x50e   :  { %1446 = vadd.xlane.f32.xlu0 %v1445_v36  ;;  %v1696_v44 = vpop.permute.xlu1 %1695 }
 0x510   :  { %v13297_v37 = vpop.eup %13296 }
 0x511   :  { %v14676_v38 = vpop.eup %13298  ;;  %v1448_v39 = vsel %vm751_vm2, %v13297_v37, 0.0 }
 0x512   :  { %1449 = vadd.xlane.f32.xlu0 %v1448_v39  ;;  %v1436_v40 = vsel %vm751_vm2, %v14676_v38, 0.0  ;;  %v13301_v41 = vpop.eup %13300  ;;  %v1848_v45 = vpop.permute.xlu1 %1847 }
 0x513   :  { %1437 = vadd.xlane.f32.xlu1 %v1436_v40  ;;  %v1430_v42 = vsel %vm751_vm2, %v13301_v41, 0.0 }
 0x517   :  { %1431 = vadd.xlane.f32.xlu1 %v1430_v42 }
 0x528   :  { %1999 = vrot.lane.b32.xlu1 %v14568_v11, %s14126_s23  ;;  %1923 = vrot.lane.b32.xlu0 %v14570_v13, %s14126_s23 }
 0x58b   :  { %v1429_v47 = vpop.xlane.xlu1 %1428 }
 0x58c   :  { %13302 = vrcp.f32 %v1429_v47 }
 0x58f   :  { %v1441_v48 = vpop.xlane.xlu0 %1440 }
 0x590   :  { %13304 = vrcp.f32 %v1441_v48 }
 0x596   :  { %v13303_v49 = vpop.eup %13302 }
 0x597   :  { %v1444_v50 = vpop.xlane.xlu0 %1443  ;;  %v1459_v51 = vmul.f32 %v13303_v49, %v13287_v10 }
 0x598   :  { %13306 = vrcp.f32 %v1444_v50  ;;  %v1435_v53 = vpop.xlane.xlu1 %1434 }
 0x599   :  { %12179 = vmatmul.mubr.msk.f32.vlgmr.msra.gmra.mrb[6].mxu0 %vm751_vm2, %v1459_v51 }
 0x59a   :  { %v13305_v52 = vpop.eup %13304  ;;  %12187 = vmatpush3.msra.mxu0 %v1620_v43  ;;  %12188 = vmatprep.mubr.msk.f32.mxu0 %vm14115_vm1, %v14114_v8 }
 0x59b   :  { %v1447_v11 = vpop.xlane.xlu0 %1446  ;;  %v1463_v13 = vmul.f32 %v13305_v52, %v13289_v18  ;;  %12196 = vmatprep.subr.mxu0 %v14114_v8  ;;  %v616_v18 = vld [vmem:[%s15897_s20] sm:$0xff]  ;;  %s15912_s20 = sld [smem:[#allocation55_spill]] }
 0x59c   :  { %13308 = vrcp.f32 %v1447_v11  ;;  %v12920_v20 = vpack.c.bf16 %v617_v19, %v616_v18 }
 0x59d   :  { %12184 = vmatmul.mubr.msk.f32.vlgmr.msra.gmra.mrb[12].mxu1 %vm751_vm2, %v1463_v13 }
 0x59e   :  { %12192 = vmatpush3.msra.mxu1 %v1696_v44  ;;  %12193 = vmatprep.mubr.msk.f32.mxu1 %vm14115_vm1, %v14114_v8 }
 0x59f   :  { %v1450_v54 = vpop.xlane.xlu0 %1449  ;;  %12201 = vmatprep.subr.mxu1 %v14114_v8 }
 0x5a0   :  { %13310 = vrcp.f32 %v1450_v54  ;;  %v1438_v55 = vpop.xlane.xlu1 %1437 }
 0x5a2   :  { %v13307_v56 = vpop.eup %13306 }
 0x5a3   :  { %v1464_v57 = vmul.f32 %v13307_v56, %v13291_v31  ;;  %v1924_v6 = vpop.permute.xlu0 %1923 }
 0x5a4   :  { %v1432_v58 = vpop.xlane.xlu1 %1431 }
 0x5a5   :  { %13312 = vrcp.f32 %v1432_v58  ;;  %12194 = vmatmul.mubr.msk.f32.vlgmr.msra.gmra.mrb[14].mxu1 %vm751_vm2, %v1464_v57 }
 0x5a6   :  { %v13309_v59 = vpop.eup %13308  ;;  %12202 = vmatpush3.msra.mxu1 %v1848_v45  ;;  %12203 = vmatprep.mubr.msk.f32.mxu1 %vm14115_vm1, %v14114_v8  ;;  %13314 = vrcp.f32 %v1435_v53 }
 0x5a7   :  { %12211 = vmatprep.subr.mxu1 %v14114_v8  ;;  %v1465_v60 = vmul.f32 %v13309_v59, %v13295_v35  ;;  %13316 = vrcp.f32 %v1438_v55 }
 0x5a8   :  { %v2000_v61 = vpop.permute.xlu1 %1999 }
 0x5a9   :  { %12204 = vmatmul.mubr.msk.f32.vlgmr.msra.gmra.mrb[16].mxu1 %vm751_vm2, %v1465_v60 }
 0x5aa   :  { %v13311_v62 = vpop.eup %13310  ;;  %12212 = vmatpush3.msra.mxu1 %v2000_v61  ;;  %12213 = vmatprep.mubr.msk.f32.mxu1 %vm14115_vm1, %v14114_v8  ;;  %v600_v61 = vld [vmem:[%s15898_s28] sm:$0xff] }
 0x5ab   :  { %v1466_v63 = vmul.f32 %v13311_v62, %v13297_v37  ;;  %v601_v62 = vld [vmem:[%s15898_s28 + $0x8] sm:$0xff] }
 0x5ad   :  { %12214 = vmatmul.mubr.msk.f32.vlgmr.msra.gmra.mrb[18].mxu1 %vm751_vm2, %v1466_v63  ;;  %v602_v63 = vld [vmem:[%s15898_s28 + $0x10] sm:$0xff] }
 0x5af   :  { %v13313_v0 = vpop.eup %13312 }
 0x5b0   :  { %v1460_v1 = vmul.f32 %v13313_v0, %v13301_v41  ;;  %v13315_v2 = vpop.eup %13314  ;;  %v12928_v0 = vpack.c.bf16 %v601_v62, %v600_v61  ;;  %v651_v62 = vld [vmem:[%s14448_s3 + $0x18] sm:$0xff] }
 0x5b1   :  { %v1461_v3 = vmul.f32 %v13315_v2, %v14670_v32  ;;  %v13317_v4 = vpop.eup %13316 }
 0x5b2   :  { %12189 = vmatmul.mubr.msk.f32.vlgmr.msra.gmra.mrb[8].mxu0 %vm751_vm2, %v1460_v1  ;;  %v1462_v9 = vmul.f32 %v13317_v4, %v14676_v38  ;;  %v603_v1 = vld [vmem:[%s15898_s28 + $0x18] sm:$0xff]  ;;  %12929 = vmatprep.subr.bf16.mxu1 %v12928_v0  ;;  %v605_v4 = vld [vmem:[%s15899_s1 + $0x8] sm:$0xff]  ;;  %s15913_s28 = sld [smem:[#allocation51_spill]] }
 0x5b3   :  { %12197 = vmatpush3.msra.mxu0 %v1772_v46  ;;  %12198 = vmatprep.mubr.msk.f32.mxu0 %vm14115_vm1, %v14114_v8  ;;  %v11560_v46 = vld [vmem:[#allocation18] ss:$0 sm:$0xff]  ;;  %v12932_v2 = vpack.c.bf16 %v603_v1, %v602_v63 }
 0x5b4   :  { %12206 = vmatprep.subr.mxu0 %v14114_v8  ;;  %12931 = vmatpush3.bf16.msra.mxu1 %v12928_v0 }
 0x5b5   :  { %12933 = vmatprep.subr.bf16.mxu1 %v12932_v2 }
 0x5b6   :  { %12199 = vmatmul.mubr.msk.f32.vlgmr.msra.gmra.mrb[10].mxu0 %vm751_vm2, %v1461_v3  ;;  %v604_v3 = vld [vmem:[%s15899_s1] sm:$0xff] }
 0x5b7   :  { %12207 = vmatpush3.msra.mxu0 %v1924_v6  ;;  %12208 = vmatprep.mubr.msk.f32.mxu0 %vm14115_vm1, %v14114_v8  ;;  %v606_v6 = vld [vmem:[%s15899_s1 + $0x10] sm:$0xff] }
 0x5b8   :  { %12921 = vmatprep.subr.bf16.mxu0 %v12920_v20  ;;  %12935 = vmatpush3.bf16.msra.mxu1 %v12932_v2 }
 0x5ba   :  { %12209 = vmatmul.mubr.msk.f32.vlgmr.msra.gmra.mrb[12].mxu0 %vm751_vm2, %v1462_v9  ;;  %v12936_v9 = vpack.c.bf16 %v605_v4, %v604_v3 }
 0x5bb   :  { %12923 = vmatpush3.bf16.msra.mxu0 %v12920_v20 }
 0x5bc   :  { %12925 = vmatprep.subr.bf16.mxu0 %v12924_v25 }
 0x5bf   :  { %12927 = vmatpush3.bf16.msra.mxu0 %v12924_v25 }
 0x5c0   :  { %12937 = vmatprep.subr.bf16.mxu0 %v12936_v9 }
 0x66c   :  { %v1539_v10 = vpop.f32.mrb[6].mxu0 }
 0x66d   :  { %v12180_v12 = vpop.f32.mrb[7].mxu0 }
 0x670   :  { %v1615_v14 = vpop.f32.mrb[12].mxu1 }
 0x671   :  { %v12185_v15 = vpop.f32.mrb[13].mxu1 }
 0x672   :  { %v609_v15 = vld [vmem:[%s15899_s1 + $0x28] sm:$0xff] }
 0x678   :  { %v1767_v16 = vpop.f32.mrb[14].mxu1 }
 0x679   :  { %2079 = vrot.lane.b32.xlu1 %v1767_v16, %s14127_s24  ;;  %v12195_v17 = vpop.f32.mrb[15].mxu1 }
 0x67c   :  { %v1919_v21 = vpop.f32.mrb[16].mxu1 }
 0x67d   :  { %2087 = vrot.lane.b32.xlu1 %v1919_v21, %s14128_s26  ;;  %v12205_v22 = vpop.f32.mrb[17].mxu1 }
 0x680   :  { %v2071_v26 = vpop.f32.mrb[18].mxu1 }
 0x681   :  { %2095 = vrot.lane.b32.xlu1 %v2071_v26, %s14129_s4  ;;  %v12215_v27 = vpop.f32.mrb[19].mxu1  ;;  %v11564_v26 = vld [vmem:[#allocation21] ss:$0 sm:$0xff] }
 0x685   :  { %v1691_v28 = vpop.f32.mrb[8].mxu0 }
 0x686   :  { %v12190_v29 = vpop.f32.mrb[9].mxu0  ;;  %2077 = vrot.lane.b32.xlu0 %v1691_v28, %s14127_s24 }
 0x689   :  { %v1843_v30 = vpop.f32.mrb[10].mxu0 }
 0x68a   :  { %2085 = vrot.lane.b32.xlu0 %v1843_v30, %s14128_s26  ;;  %v12200_v31 = vpop.f32.mrb[11].mxu0 }
 0x68d   :  { %v1995_v32 = vpop.f32.mrb[12].mxu0 }
 0x68e   :  { %2093 = vrot.lane.b32.xlu0 %v1995_v32, %s14129_s4  ;;  %v12210_v33 = vpop.f32.mrb[13].mxu0 }
 0x68f   :  { %v610_v33 = vld [vmem:[%s15899_s1 + $0x30] sm:$0xff] }
 0x6eb   :  { %v2080_v34 = vpop.permute.xlu1 %2079 }
 0x6ec   :  { %v2100_v40 = vsel %vm751_vm2, %v1615_v14, %v2080_v34  ;;  %v608_v14 = vld [vmem:[%s15899_s1 + $0x20] sm:$0xff]  ;;  %v611_v34 = vld [vmem:[%s15899_s1 + $0x38] sm:$0xff] }
 0x6ed   :  { %v12944_v16 = vpack.c.bf16 %v609_v15, %v608_v14 }
 0x6ef   :  { %v2088_v36 = vpop.permute.xlu1 %2087 }
 0x6f0   :  { %v2103_v43 = vsel %vm2101_vm3, %v2100_v40, %v2088_v36  ;;  %v11565_v36 = vld [vmem:[#allocation12] ss:$0 sm:$0xff] }
 0x6f3   :  { %v2096_v38 = vpop.permute.xlu1 %2095 }
 0x6f4   :  { %v2106_v45 = vsel %vm2104_vm4, %v2103_v43, %v2096_v38  ;;  %v11568_v43 = vld [vmem:[#allocation13] ss:$0 sm:$0xff] }
 0x6f8   :  { %v2078_v35 = vpop.permute.xlu0 %2077 }
 0x6f9   :  { %v2099_v39 = vsel %vm751_vm2, %v1539_v10, %v2078_v35  ;;  %v607_v10 = vld [vmem:[%s15899_s1 + $0x18] sm:$0xff]  ;;  %v12948_v35 = vpack.c.bf16 %v611_v34, %v610_v33  ;;  %s15914_s1 = sld [smem:[#allocation61_spill]] }
 0x6fa   :  { %v12940_v12 = vpack.c.bf16 %v607_v10, %v606_v6  ;;  %v11571_v10 = vld [vmem:[#allocation16] ss:$0 sm:$0xff] }
 0x6fc   :  { %v2086_v37 = vpop.permute.xlu0 %2085 }
 0x6fd   :  { %v2102_v41 = vsel %vm2101_vm3, %v2099_v39, %v2086_v37 }
 0x700   :  { %v2094_v42 = vpop.permute.xlu0 %2093 }
 0x701   :  { %v2105_v44 = vsel %vm2104_vm4, %v2102_v41, %v2094_v42 }
 0x702   :  { %12224 = vmatprep.mubr.msk.f32.mxu0 %vm666_vm0, %v2105_v44 }
 0x703   :  { %12225 = vmatmul.mubr.msk.f32.vlgmr.msra.gmra.mrb[14].mxu0 %vm666_vm0, %v2106_v45 }
 0x704   :  { %12939 = vmatpush3.bf16.msra.mxu0 %v12936_v9 }
 0x705   :  { %12941 = vmatprep.subr.bf16.mxu0 %v12940_v12 }
 0x708   :  { %12943 = vmatpush3.bf16.msra.mxu0 %v12940_v12 }
 0x709   :  { %12945 = vmatprep.subr.bf16.mxu0 %v12944_v16 }
 0x70c   :  { %12947 = vmatpush3.bf16.msra.mxu0 %v12944_v16  ;;  %v11572_v16 = vld [vmem:[#allocation15] ss:$0 sm:$0xff] }
 0x70d   :  { %12949 = vmatprep.subr.bf16.mxu0 %v12948_v35 }
 0x710   :  { %12951 = vmatpush3.bf16.msra.mxu0 %v12948_v35 }
 0x711   :  { %12278 = vmatprep.subr.mxu0 %v14114_v8 }
 0x7d6   :  { %v12226_v47 = vpop.f32.mrb[14].mxu0 }
 0x7d7   :  { %v2191_v48 = vadd.f32 %v12226_v47, %v11560_v46  ;;  %v2185_v49 = vpop.f32.mrb[15].mxu0 }
 0x7d8   :  { %v2186_v50 = vadd.f32 %v11560_v46, %v2185_v49 }
 0x7d9   :  { %v2195_v51 = vadd.f32 %v2191_v48, %v14558_v7 }
 0x7da   :  { %v2194_v52 = vadd.f32 %v2186_v50, %v14553_v5 }
 0x7db   :  { %v2199_v11 = vsel %vm666_vm0, %v2195_v51, 0.0 }
 0x7dc   :  { %2200 = vadd.xlane.f32.xlu1 %v2199_v11  ;;  %v2196_v13 = vsel %vm666_vm0, %v2194_v52, 0.0 }
 0x7dd   :  { %2197 = vadd.xlane.f32.xlu0 %v2196_v13 }
 0x869   :  { %v2201_v53 = vpop.xlane.xlu1 %2200 }
 0x86a   :  { %v2204_v54 = vmul.f32 0.03125, %v2201_v53  ;;  %v2198_v55 = vpop.xlane.xlu0 %2197 }
 0x86b   :  { %v2203_v56 = vmul.f32 0.03125, %v2198_v55 }
 0x86c   :  { %v2206_v57 = vsub.f32 %v2195_v51, %v2204_v54 }
 0x86d   :  { %v2205_v58 = vsub.f32 %v2194_v52, %v2203_v56 }
 0x86e   :  { %v2208_v7 = vmul.f32 %v2206_v57, %v2206_v57 }
 0x86f   :  { %v2207_v59 = vmul.f32 %v2205_v58, %v2205_v58 }
 0x870   :  { %v2212_v60 = vsel %vm666_vm0, %v2208_v7, 0.0  ;;  %v649_v7 = vld [vmem:[%s14448_s3 + $0x8] sm:$0xff] }
 0x871   :  { %v2209_v5 = vsel %vm666_vm0, %v2207_v59, 0.0 }
 0x872   :  { %2210 = vadd.xlane.f32.xlu0 %v2209_v5  ;;  %v648_v5 = vld [vmem:[%s14448_s3] sm:$0xff] }
 0x873   :  { %v12952_v61 = vpack.c.bf16 %v649_v7, %v648_v5 }
 0x875   :  { %12953 = vmatprep.subr.bf16.mxu1 %v12952_v61 }
 0x876   :  { %2213 = vadd.xlane.f32.xlu0 %v2212_v60  ;;  %v650_v60 = vld [vmem:[%s14448_s3 + $0x10] sm:$0xff]  ;;  %s15900_s3 = sld [smem:[#allocation90_spill]] }
 0x877   :  { %v12956_v63 = vpack.c.bf16 %v651_v62, %v650_v60 }
 0x8ff   :  { %v2211_v17 = vpop.xlane.xlu0 %2210 }
 0x900   :  { %v2215_v18 = vmul.f32 0.03125, %v2211_v17 }
 0x902   :  { %v2217_v19 = vadd.f32 1e-05, %v2215_v18 }
 0x903   :  { %v2214_v20 = vpop.xlane.xlu0 %2213 }
 0x904   :  { %13318 = vrsqrt.f32 %v2217_v19  ;;  %v2216_v21 = vmul.f32 0.03125, %v2214_v20 }
 0x906   :  { %v2218_v22 = vadd.f32 1e-05, %v2216_v21  ;;  %v11573_v21 = vld [vmem:[#allocation31] ss:$0 sm:$0xff] }
 0x908   :  { %13320 = vrsqrt.f32 %v2218_v22 }
 0x90e   :  { %v13319_v23 = vpop.eup %13318 }
 0x90f   :  { %v2221_v25 = vmul.f32 %v13319_v23, %v2205_v58 }
 0x911   :  { %v2229_v27 = vmul.f32 %v11563_v24, %v2221_v25 }
 0x912   :  { %v13321_v28 = vpop.eup %13320 }
 0x913   :  { %v2222_v29 = vmul.f32 %v13321_v28, %v2206_v57  ;;  %v2237_v30 = vadd.f32 %v11564_v26, %v2229_v27 }
 0x915   :  { %v2230_v31 = vmul.f32 %v11563_v24, %v2222_v29  ;;  %12235 = vmatprep.mubr.msk.f32.mxu1 %vm666_vm0, %v2237_v30 }
 0x917   :  { %v2238_v32 = vadd.f32 %v11564_v26, %v2230_v31 }
 0x919   :  { %12236 = vmatmul.mubr.msk.f32.vlgmr.msra.gmra.mrb[20].mxu1 %vm666_vm0, %v2238_v32 }
 0x91a   :  { %12955 = vmatpush3.bf16.msra.mxu1 %v12952_v61 }
 0x91b   :  { %12957 = vmatprep.subr.bf16.mxu1 %v12956_v63 }
 0x91e   :  { %12959 = vmatpush3.bf16.msra.mxu1 %v12956_v63 }
 0x91f   :  { %12268 = vmatprep.subr.mxu1 %v14114_v8 }
 0x9ec   :  { %v12237_v37 = vpop.f32.mrb[20].mxu1 }
 0x9ed   :  { %v2323_v38 = vadd.f32 %v12237_v37, %v11565_v36  ;;  %v2317_v39 = vpop.f32.mrb[21].mxu1 }
 0x9ee   :  { %v2318_v40 = vadd.f32 %v11565_v36, %v2317_v39 }
 0x9ef   :  { %v2327_v42 = vmax.f32 %v2323_v38, 0.0 }
 0x9f0   :  { %v2326_v41 = vmax.f32 %v2318_v40, 0.0 }
 0x9f2   :  { %12254 = vmatprep.mubr.msk.f32.mxu0 %vm2334_vm5, %v2326_v41 }
 0x9f3   :  { %12255 = vmatmul.mubr.msk.f32.vlgmr.msra.gmra.mrb[16].mxu0 %vm2334_vm5, %v2327_v42 }
 0x9f4   :  { %12280 = vmatprep.mubr.msk.f32.mxu0 %vm14115_vm1, %v14114_v8 }
 0xac6   :  { %v12256_v44 = vpop.f32.mrb[16].mxu0 }
 0xac7   :  { %v2413_v45 = vadd.f32 %v12256_v44, %v11568_v43  ;;  %v2407_v46 = vpop.f32.mrb[17].mxu0 }
 0xac8   :  { %v2408_v47 = vadd.f32 %v11568_v43, %v2407_v46 }
 0xac9   :  { %v2417_v48 = vadd.f32 %v2413_v45, %v2238_v32 }
 0xaca   :  { %v2416_v49 = vadd.f32 %v2408_v47, %v2237_v30 }
 0xacb   :  { %v2421_v50 = vsel %vm666_vm0, %v2417_v48, 0.0 }
 0xacc   :  { %2422 = vadd.xlane.f32.xlu0 %v2421_v50  ;;  %v2418_v51 = vsel %vm666_vm0, %v2416_v49, 0.0 }
 0xacd   :  { %2419 = vadd.xlane.f32.xlu1 %v2418_v51 }
 0xb59   :  { %v2423_v52 = vpop.xlane.xlu0 %2422 }
 0xb5a   :  { %v2425_v11 = vmul.f32 0.03125, %v2423_v52  ;;  %v2420_v13 = vpop.xlane.xlu1 %2419 }
 0xb5b   :  { %v2424_v53 = vmul.f32 0.03125, %v2420_v13 }
 0xb5c   :  { %v2427_v54 = vsub.f32 %v2417_v48, %v2425_v11 }
 0xb5d   :  { %v2426_v55 = vsub.f32 %v2416_v49, %v2424_v53 }
 0xb5e   :  { %v2429_v56 = vmul.f32 %v2427_v54, %v2427_v54 }
 0xb5f   :  { %v2428_v57 = vmul.f32 %v2426_v55, %v2426_v55 }
 0xb60   :  { %v2433_v58 = vsel %vm666_vm0, %v2429_v56, 0.0 }
 0xb61   :  { %2434 = vadd.xlane.f32.xlu0 %v2433_v58  ;;  %v2430_v59 = vsel %vm666_vm0, %v2428_v57, 0.0 }
 0xb62   :  { %2431 = vadd.xlane.f32.xlu1 %v2430_v59 }
 0xbee   :  { %v2435_v0 = vpop.xlane.xlu0 %2434 }
 0xbef   :  { %v2437_v1 = vmul.f32 0.03125, %v2435_v0  ;;  %v2432_v2 = vpop.xlane.xlu1 %2431 }
 0xbf0   :  { %v2436_v3 = vmul.f32 0.03125, %v2432_v2 }
 0xbf1   :  { %v2439_v4 = vadd.f32 1e-05, %v2437_v1 }
 0xbf2   :  { %v2438_v6 = vadd.f32 1e-05, %v2436_v3 }
 0xbf3   :  { %13322 = vrsqrt.f32 %v2439_v4 }
 0xbf4   :  { %13324 = vrsqrt.f32 %v2438_v6 }
 0xbfd   :  { %v13323_v9 = vpop.eup %13322 }
 0xbfe   :  { %v13325_v12 = vpop.eup %13324  ;;  %v2443_v14 = vmul.f32 %v13323_v9, %v2427_v54 }
 0xbff   :  { %v2442_v15 = vmul.f32 %v13325_v12, %v2426_v55 }
 0xc00   :  { %v2451_v17 = vmul.f32 %v11571_v10, %v2443_v14 }
 0xc01   :  { %v2450_v18 = vmul.f32 %v11571_v10, %v2442_v15 }
 0xc02   :  { %v14766_v20 = vadd.f32 %v11572_v16, %v2451_v17 }
 0xc03   :  { %v14764_v19 = vadd.f32 %v11572_v16, %v2450_v18 }
 0xc05   :  { %12265 = vmatprep.mubr.msk.f32.mxu1 %vm666_vm0, %v14764_v19 }
 0xc06   :  { %12266 = vmatmul.mubr.msk.f32.vlgmr.msra.gmra.mrb[22].mxu1 %vm666_vm0, %v14766_v20 }
 0xc07   :  { %12270 = vmatprep.mubr.msk.f32.mxu1 %vm14115_vm1, %v14114_v8 }
 0xcd9   :  { %v12267_v22 = vpop.f32.mrb[22].mxu1 }
 0xcda   :  { %v14774_v23 = vadd.f32 %v12267_v22, %v11573_v21  ;;  %v2538_v24 = vpop.f32.mrb[23].mxu1 }
 0xcdb   :  { %v14780_v25 = vadd.f32 %v11573_v21, %v2538_v24 }
 0xcdc   :  { %2783 = vrot.lane.b32.xlu1 %v14774_v23, %s14119_s16  ;;  %2625 = vrot.lane.b32.xlu0 %v14774_v23, %s14117_s6 }
 0xce0   :  { %2781 = vrot.lane.b32.xlu1 %v14774_v23, %s14116_s11  ;;  %2703 = vrot.lane.b32.xlu0 %v14780_v25, %s14116_s11 }
 0xce4   :  { %2863 = vrot.lane.b32.xlu0 %v14780_v25, %s14118_s15  ;;  %2548 = vrot.lane.b32.xlu1 %v14780_v25, %s14117_s6 }
 0xce8   :  { %2861 = vrot.lane.b32.xlu0 %v14780_v25, %s14120_s18  ;;  %2941 = vrot.lane.b32.xlu1 %v14774_v23, %s14118_s15 }
 0xcec   :  { %3021 = vrot.lane.b32.xlu0 %v14780_v25, %s14121_s22  ;;  %2705 = vrot.lane.b32.xlu1 %v14780_v25, %s14119_s16 }
 0xcf0   :  { %3019 = vrot.lane.b32.xlu0 %v14780_v25, %s14122_s29  ;;  %2939 = vrot.lane.b32.xlu1 %v14774_v23, %s14120_s18 }
 0xcf4   :  { %3099 = vrot.lane.b32.xlu1 %v14774_v23, %s14121_s22 }
 0xcf8   :  { %3097 = vrot.lane.b32.xlu1 %v14774_v23, %s14122_s29 }
 0xd4e   :  { %v2784_v26 = vpop.permute.xlu1 %2783  ;;  %v2626_v27 = vpop.permute.xlu0 %2625 }
 0xd52   :  { %v2782_v28 = vpop.permute.xlu1 %2781  ;;  %v2704_v29 = vpop.permute.xlu0 %2703 }
 0xd56   :  { %v2549_v30 = vpop.permute.xlu1 %2548  ;;  %v2864_v31 = vpop.permute.xlu0 %2863 }
 0xd57   :  { %12269 = vmatpush3.xpose.msk.msra.mxu1 %vm751_vm2, %v2549_v30 }
 0xd58   :  { %12273 = vmatprep.subr.mxu1 %v14114_v8 }
 0xd5a   :  { %12271 = vmatmul.mubr.msk.f32.vlgmr.msra.gmra.mrb[24].mxu1 %vm751_vm2, %v14780_v25  ;;  %v2942_v32 = vpop.permute.xlu1 %2941  ;;  %v2862_v33 = vpop.permute.xlu0 %2861 }
 0xd5b   :  { %12274 = vmatpush3.xpose.msk.msra.mxu1 %vm751_vm2, %v2626_v27  ;;  %12275 = vmatprep.mubr.msk.f32.mxu1 %vm14115_vm1, %v14114_v8 }
 0xd5c   :  { %12283 = vmatprep.subr.mxu1 %v14114_v8 }
 0xd5e   :  { %12276 = vmatmul.mubr.msk.f32.vlgmr.msra.gmra.mrb[26].mxu1 %vm751_vm2, %v14774_v23  ;;  %v2706_v34 = vpop.permute.xlu1 %2705  ;;  %v3022_v36 = vpop.permute.xlu0 %3021 }
 0xd5f   :  { %12279 = vmatpush3.xpose.msk.msra.mxu0 %vm751_vm2, %v2706_v34  ;;  %12284 = vmatpush3.xpose.msk.msra.mxu1 %vm751_vm2, %v2784_v26 }
 0xd60   :  { %12285 = vmatprep.mubr.msk.f32.mxu1 %vm14115_vm1, %v14114_v8  ;;  %12288 = vmatprep.subr.mxu0 %v14114_v8 }
 0xd61   :  { %12293 = vmatprep.subr.mxu1 %v14114_v8 }
 0xd62   :  { %12281 = vmatmul.mubr.msk.f32.vlgmr.msra.gmra.mrb[18].mxu0 %vm751_vm2, %v2704_v29  ;;  %12286 = vmatmul.mubr.msk.f32.vlgmr.msra.gmra.mrb[28].mxu1 %vm751_vm2, %v2782_v28  ;;  %v2940_v35 = vpop.permute.xlu1 %2939  ;;  %v3020_v38 = vpop.permute.xlu0 %3019 }
 0xd63   :  { %12289 = vmatpush3.xpose.msk.msra.mxu0 %vm751_vm2, %v2864_v31  ;;  %12294 = vmatpush3.xpose.msk.msra.mxu1 %vm751_vm2, %v2942_v32 }
 0xd64   :  { %12290 = vmatprep.mubr.msk.f32.mxu0 %vm14115_vm1, %v14114_v8  ;;  %12295 = vmatprep.mubr.msk.f32.mxu1 %vm14115_vm1, %v14114_v8 }
 0xd65   :  { %12298 = vmatprep.subr.mxu0 %v14114_v8  ;;  %12303 = vmatprep.subr.mxu1 %v14114_v8 }
 0xd66   :  { %12291 = vmatmul.mubr.msk.f32.vlgmr.msra.gmra.mrb[20].mxu0 %vm751_vm2, %v2862_v33  ;;  %12296 = vmatmul.mubr.msk.f32.vlgmr.msra.gmra.mrb[30].mxu1 %vm751_vm2, %v2940_v35  ;;  %v3100_v37 = vpop.permute.xlu1 %3099 }
 0xd67   :  { %12299 = vmatpush3.xpose.msk.msra.mxu0 %vm751_vm2, %v3022_v36  ;;  %12304 = vmatpush3.xpose.msk.msra.mxu1 %vm751_vm2, %v3100_v37 }
 0xd68   :  { %12300 = vmatprep.mubr.msk.f32.mxu0 %vm14115_vm1, %v14114_v8  ;;  %12305 = vmatprep.mubr.msk.f32.mxu1 %vm14115_vm1, %v14114_v8 }
 0xd69   :  { %12308 = vmatprep.subr.mxu0 %v14114_v8  ;;  %12313 = vmatprep.subr.mxu1 %v14114_v8 }
 0xd6a   :  { %12301 = vmatmul.mubr.msk.f32.vlgmr.msra.gmra.mrb[22].mxu0 %vm751_vm2, %v3020_v38  ;;  %v3098_v39 = vpop.permute.xlu1 %3097 }
 0xd6b   :  { %12306 = vmatmul.mubr.msk.f32.vlgmr.msra.gmra.mrb[32].mxu1 %vm751_vm2, %v3098_v39  ;;  %12310 = vmatprep.mubr.msk.f32.mxu0 %vm14115_vm1, %v14114_v8 }
 0xd6c   :  { %12315 = vmatprep.mubr.msk.f32.mxu1 %vm14115_vm1, %v14114_v8 }
 0xe2d   :  { %v2620_v40 = vpop.f32.mrb[24].mxu1 }
 0xe2e   :  { %v2701_v41 = vmul.f32 0.35355338, %v2620_v40  ;;  %v12272_v42 = vpop.f32.mrb[25].mxu1 }
 0xe30   :  { %v3177_v43 = vsel %vm751_vm2, %v2701_v41, -inf }
 0xe31   :  { %3178 = vmax.xlane.f32.xlu0 %v3177_v43  ;;  %v2697_v44 = vpop.f32.mrb[26].mxu1 }
 0xe32   :  { %v2702_v45 = vmul.f32 0.35355338, %v2697_v44  ;;  %v12277_v46 = vpop.f32.mrb[27].mxu1 }
 0xe34   :  { %v3189_v47 = vsel %vm751_vm2, %v2702_v45, -inf }
 0xe35   :  { %3190 = vmax.xlane.f32.xlu1 %v3189_v47  ;;  %v2777_v48 = vpop.f32.mrb[18].mxu0  ;;  %v2855_v49 = vpop.f32.mrb[28].mxu1 }
 0xe36   :  { %v2859_v50 = vmul.f32 0.35355338, %v2777_v48  ;;  %v12282_v51 = vpop.f32.mrb[19].mxu0  ;;  %v12287_v52 = vpop.f32.mrb[29].mxu1  ;;  %v2860_v11 = vmul.f32 0.35355338, %v2855_v49 }
 0xe38   :  { %v3180_v13 = vsel %vm751_vm2, %v2859_v50, -inf  ;;  %v3192_v59 = vsel %vm751_vm2, %v2860_v11, -inf }
 0xe39   :  { %3181 = vmax.xlane.f32.xlu0 %v3180_v13  ;;  %v2935_v53 = vpop.f32.mrb[20].mxu0  ;;  %v3013_v54 = vpop.f32.mrb[30].mxu1 }
 0xe3a   :  { %v3017_v55 = vmul.f32 0.35355338, %v2935_v53  ;;  %v12292_v56 = vpop.f32.mrb[21].mxu0  ;;  %v12297_v57 = vpop.f32.mrb[31].mxu1  ;;  %v3018_v58 = vmul.f32 0.35355338, %v3013_v54 }
 0xe3c   :  { %v3183_v5 = vsel %vm751_vm2, %v3017_v55, -inf  ;;  %v3195_v2 = vsel %vm751_vm2, %v3018_v58, -inf }
 0xe3d   :  { %3193 = vmax.xlane.f32.xlu0 %v3192_v59  ;;  %3184 = vmax.xlane.f32.xlu1 %v3183_v5  ;;  %v3093_v7 = vpop.f32.mrb[22].mxu0 }
 0xe3e   :  { %v3175_v60 = vmul.f32 0.35355338, %v3093_v7  ;;  %v12302_v61 = vpop.f32.mrb[23].mxu0  ;;  %v3171_v62 = vpop.f32.mrb[32].mxu1 }
 0xe3f   :  { %v12307_v63 = vpop.f32.mrb[33].mxu1  ;;  %v3176_v0 = vmul.f32 0.35355338, %v3171_v62 }
 0xe40   :  { %v3186_v1 = vsel %vm751_vm2, %v3175_v60, -inf }
 0xe41   :  { %3187 = vmax.xlane.f32.xlu1 %v3186_v1  ;;  %3196 = vmax.xlane.f32.xlu0 %v3195_v2  ;;  %v3198_v3 = vsel %vm751_vm2, %v3176_v0, -inf }
 0xe45   :  { %3199 = vmax.xlane.f32.xlu0 %v3198_v3 }
 0xe52   :  { %3265 = vrot.lane.b32.xlu1 %v14780_v25, %s14123_s5 }
 0xe56   :  { %3417 = vrot.lane.b32.xlu1 %v14780_v25, %s14124_s21 }
 0xe5a   :  { %3493 = vrot.lane.b32.xlu1 %v14774_v23, %s14124_s21 }
 0xe5b   :  { %3341 = vrot.lane.b32.xlu0 %v14774_v23, %s14123_s5 }
 0xe5e   :  { %3645 = vrot.lane.b32.xlu1 %v14774_v23, %s14125_s25 }
 0xe5f   :  { %3569 = vrot.lane.b32.xlu0 %v14780_v25, %s14125_s25 }
 0xebe   :  { %v3179_v4 = vpop.xlane.xlu0 %3178 }
 0xebf   :  { %v3201_v6 = vsub.f32 %v2701_v41, %v3179_v4 }
 0xec1   :  { %v3209_v9 = vmul.f32 1.442695, %v3201_v6 }
 0xec2   :  { %v3191_v10 = vpop.xlane.xlu1 %3190 }
 0xec3   :  { %13326 = vpow2.f32 %v3209_v9  ;;  %v3205_v12 = vsub.f32 %v2702_v45, %v3191_v10 }
 0xec5   :  { %v3217_v14 = vmul.f32 1.442695, %v3205_v12 }
 0xec6   :  { %v3182_v15 = vpop.xlane.xlu0 %3181 }
 0xec7   :  { %13328 = vpow2.f32 %v3217_v14  ;;  %v3202_v16 = vsub.f32 %v2859_v50, %v3182_v15 }
 0xec9   :  { %v3211_v17 = vmul.f32 1.442695, %v3202_v16 }
 0xeca   :  { %v3194_v18 = vpop.xlane.xlu0 %3193  ;;  %v3185_v21 = vpop.xlane.xlu1 %3184 }
 0xecb   :  { %13330 = vpow2.f32 %v3211_v17  ;;  %v3206_v22 = vsub.f32 %v2860_v11, %v3194_v18  ;;  %v3203_v24 = vsub.f32 %v3017_v55, %v3185_v21 }
 0xecd   :  { %v13327_v26 = vpop.eup %13326  ;;  %v3219_v27 = vmul.f32 1.442695, %v3206_v22  ;;  %v3213_v28 = vmul.f32 1.442695, %v3203_v24  ;;  %v644_v24 = vld [vmem:[%s14443_s19] sm:$0xff] }
 0xece   :  { %v3197_v29 = vpop.xlane.xlu0 %3196  ;;  %v3188_v30 = vpop.xlane.xlu1 %3187  ;;  %v3225_v31 = vsel %vm751_vm2, %v13327_v26, 0.0 }
 0xecf   :  { %13332 = vpow2.f32 %v3219_v27  ;;  %v3207_v32 = vsub.f32 %v3018_v58, %v3197_v29  ;;  %v3204_v33 = vsub.f32 %v3175_v60, %v3188_v30  ;;  %3226 = vadd.xlane.f32.xlu1 %v3225_v31  ;;  %v646_v30 = vld [vmem:[%s14443_s19 + $0x10] sm:$0xff]  ;;  %v647_v31 = vld [vmem:[%s14443_s19 + $0x18] sm:$0xff] }
 0xed0   :  { %13334 = vpow2.f32 %v3213_v28 }
 0xed1   :  { %v13329_v34 = vpop.eup %13328  ;;  %v3221_v35 = vmul.f32 1.442695, %v3207_v32  ;;  %v3215_v36 = vmul.f32 1.442695, %v3204_v33  ;;  %v12964_v33 = vpack.c.bf16 %v647_v31, %v646_v30  ;;  %v637_v30 = vld [vmem:[%s15902_s2 + $0x28] sm:$0xff] }
 0xed2   :  { %v3200_v37 = vpop.xlane.xlu0 %3199  ;;  %v3266_v38 = vpop.permute.xlu1 %3265  ;;  %v3237_v39 = vsel %vm751_vm2, %v13329_v34, 0.0 }
 0xed3   :  { %13336 = vpow2.f32 %v3221_v35  ;;  %v3208_v40 = vsub.f32 %v3176_v0, %v3200_v37  ;;  %3238 = vadd.xlane.f32.xlu0 %v3237_v39  ;;  %12309 = vmatpush3.msra.mxu0 %v3266_v38 }
 0xed4   :  { %13338 = vpow2.f32 %v3215_v36  ;;  %12318 = vmatprep.subr.mxu0 %v14114_v8 }
 0xed5   :  { %v13331_v41 = vpop.eup %13330  ;;  %v3223_v42 = vmul.f32 1.442695, %v3208_v40 }
 0xed6   :  { %v3342_v43 = vpop.permute.xlu0 %3341  ;;  %v3228_v44 = vsel %vm751_vm2, %v13331_v41, 0.0  ;;  %v3418_v53 = vpop.permute.xlu1 %3417 }
 0xed7   :  { %13340 = vpow2.f32 %v3223_v42  ;;  %3229 = vadd.xlane.f32.xlu1 %v3228_v44  ;;  %12314 = vmatpush3.msra.mxu1 %v3342_v43 }
 0xed8   :  { %12323 = vmatprep.subr.mxu1 %v14114_v8 }
 0xed9   :  { %v13333_v45 = vpop.eup %13332 }
 0xeda   :  { %v13335_v46 = vpop.eup %13334  ;;  %v3240_v47 = vsel %vm751_vm2, %v13333_v45, 0.0  ;;  %v3494_v54 = vpop.permute.xlu1 %3493 }
 0xedb   :  { %3241 = vadd.xlane.f32.xlu0 %v3240_v47  ;;  %v3231_v48 = vsel %vm751_vm2, %v13335_v46, 0.0  ;;  %v3570_v56 = vpop.permute.xlu0 %3569 }
 0xedc   :  { %3232 = vadd.xlane.f32.xlu1 %v3231_v48 }
 0xedd   :  { %v13337_v49 = vpop.eup %13336 }
 0xede   :  { %v14875_v50 = vpop.eup %13338  ;;  %v3243_v51 = vsel %vm751_vm2, %v13337_v49, 0.0  ;;  %v3646_v55 = vpop.permute.xlu1 %3645 }
 0xedf   :  { %3244 = vadd.xlane.f32.xlu0 %v3243_v51  ;;  %v3234_v52 = vsel %vm751_vm2, %v14875_v50, 0.0 }
 0xee0   :  { %3235 = vadd.xlane.f32.xlu1 %v3234_v52 }
 0xee1   :  { %v14880_v11 = vpop.eup %13340 }
 0xee2   :  { %v3246_v13 = vsel %vm751_vm2, %v14880_v11, 0.0 }
 0xee3   :  { %3247 = vadd.xlane.f32.xlu0 %v3246_v13 }
 0xef1   :  { %3797 = vrot.lane.b32.xlu1 %v14774_v23, %s14126_s23 }
 0xef9   :  { %3721 = vrot.lane.b32.xlu0 %v14780_v25, %s14126_s23 }
 0xf5c   :  { %v3227_v57 = vpop.xlane.xlu1 %3226 }
 0xf5d   :  { %13342 = vrcp.f32 %v3227_v57 }
 0xf60   :  { %v3239_v58 = vpop.xlane.xlu0 %3238 }
 0xf61   :  { %13344 = vrcp.f32 %v3239_v58 }
 0xf64   :  { %v3230_v59 = vpop.xlane.xlu1 %3229 }
 0xf65   :  { %13346 = vrcp.f32 %v3230_v59 }
 0xf67   :  { %v13343_v5 = vpop.eup %13342 }
 0xf68   :  { %v3242_v7 = vpop.xlane.xlu0 %3241  ;;  %v3257_v60 = vmul.f32 %v13343_v5, %v13327_v26  ;;  %v645_v26 = vld [vmem:[%s14443_s19 + $0x8] sm:$0xff]  ;;  %s15901_s19 = sld [smem:[#allocation68_spill]] }
 0xf69   :  { %13348 = vrcp.f32 %v3242_v7  ;;  %v3233_v61 = vpop.xlane.xlu1 %3232  ;;  %v12960_v28 = vpack.c.bf16 %v645_v26, %v644_v24  ;;  %v634_v24 = vld [vmem:[%s15902_s2 + $0x10] sm:$0xff] }
 0xf6a   :  { %13350 = vrcp.f32 %v3233_v61  ;;  %12311 = vmatmul.mubr.msk.f32.vlgmr.msra.gmra.mrb[24].mxu0 %vm751_vm2, %v3257_v60 }
 0xf6b   :  { %v13345_v23 = vpop.eup %13344  ;;  %12319 = vmatpush3.msra.mxu0 %v3418_v53  ;;  %12320 = vmatprep.mubr.msk.f32.mxu0 %vm14115_vm1, %v14114_v8 }
 0xf6c   :  { %v3245_v25 = vpop.xlane.xlu0 %3244  ;;  %v3261_v62 = vmul.f32 %v13345_v23, %v13329_v34  ;;  %12328 = vmatprep.subr.mxu0 %v14114_v8 }
 0xf6d   :  { %13352 = vrcp.f32 %v3245_v25  ;;  %v3236_v63 = vpop.xlane.xlu1 %3235 }
 0xf6e   :  { %13354 = vrcp.f32 %v3236_v63  ;;  %12316 = vmatmul.mubr.msk.f32.vlgmr.msra.gmra.mrb[34].mxu1 %vm751_vm2, %v3261_v62 }
 0xf6f   :  { %v13347_v0 = vpop.eup %13346  ;;  %12324 = vmatpush3.msra.mxu1 %v3494_v54  ;;  %12325 = vmatprep.mubr.msk.f32.mxu1 %vm14115_vm1, %v14114_v8 }
 0xf70   :  { %v3248_v1 = vpop.xlane.xlu0 %3247  ;;  %v3258_v2 = vmul.f32 %v13347_v0, %v13331_v41  ;;  %12333 = vmatprep.subr.mxu1 %v14114_v8 }
 0xf71   :  { %13356 = vrcp.f32 %v3248_v1  ;;  %v3798_v17 = vpop.permute.xlu1 %3797 }
 0xf72   :  { %12321 = vmatmul.mubr.msk.f32.vlgmr.msra.gmra.mrb[26].mxu0 %vm751_vm2, %v3258_v2 }
 0xf73   :  { %v13349_v3 = vpop.eup %13348  ;;  %12329 = vmatpush3.msra.mxu0 %v3570_v56  ;;  %12330 = vmatprep.mubr.msk.f32.mxu0 %vm14115_vm1, %v14114_v8  ;;  %v11600_v56 = vld [vmem:[#allocation30] ss:$0 sm:$0xff] }
 0xf74   :  { %v13351_v4 = vpop.eup %13350  ;;  %12338 = vmatprep.subr.mxu0 %v14114_v8  ;;  %v3262_v6 = vmul.f32 %v13349_v3, %v13333_v45  ;;  %v3722_v9 = vpop.permute.xlu0 %3721 }
 0xf75   :  { %v3259_v10 = vmul.f32 %v13351_v4, %v13335_v46 }
 0xf76   :  { %12326 = vmatmul.mubr.msk.f32.vlgmr.msra.gmra.mrb[36].mxu1 %vm751_vm2, %v3262_v6  ;;  %v628_v6 = vld [vmem:[%s15900_s3] sm:$0xff] }
 0xf77   :  { %v13353_v12 = vpop.eup %13352  ;;  %12331 = vmatmul.mubr.msk.f32.vlgmr.msra.gmra.mrb[28].mxu0 %vm751_vm2, %v3259_v10  ;;  %12334 = vmatpush3.msra.mxu1 %v3646_v55  ;;  %v630_v10 = vld [vmem:[%s15900_s3 + $0x10] sm:$0xff] }
 0xf78   :  { %v13355_v14 = vpop.eup %13354  ;;  %12339 = vmatpush3.msra.mxu0 %v3722_v9  ;;  %12335 = vmatprep.mubr.msk.f32.mxu1 %vm14115_vm1, %v14114_v8  ;;  %v3263_v15 = vmul.f32 %v13353_v12, %v13337_v49  ;;  %v629_v9 = vld [vmem:[%s15900_s3 + $0x8] sm:$0xff] }
 0xf79   :  { %12340 = vmatprep.mubr.msk.f32.mxu0 %vm14115_vm1, %v14114_v8  ;;  %12343 = vmatprep.subr.mxu1 %v14114_v8  ;;  %v3260_v16 = vmul.f32 %v13355_v14, %v14875_v50  ;;  %v12968_v12 = vpack.c.bf16 %v629_v9, %v628_v6  ;;  %v631_v14 = vld [vmem:[%s15900_s3 + $0x18] sm:$0xff]  ;;  %s15915_s3 = sld [smem:[#allocation62_spill]] }
 0xf7a   :  { %12336 = vmatmul.mubr.msk.f32.vlgmr.msra.gmra.mrb[38].mxu1 %vm751_vm2, %v3263_v15  ;;  %12961 = vmatprep.subr.bf16.mxu0 %v12960_v28  ;;  %v12972_v15 = vpack.c.bf16 %v631_v14, %v630_v10 }
 0xf7b   :  { %v13357_v18 = vpop.eup %13356  ;;  %12341 = vmatmul.mubr.msk.f32.vlgmr.msra.gmra.mrb[30].mxu0 %vm751_vm2, %v3260_v16  ;;  %12344 = vmatpush3.msra.mxu1 %v3798_v17  ;;  %v552_v16 = vld [vmem:[%s15901_s19] sm:$0xff]  ;;  %v553_v17 = vld [vmem:[%s15901_s19 + $0x8] sm:$0xff] }
 0xf7c   :  { %12345 = vmatprep.mubr.msk.f32.mxu1 %vm14115_vm1, %v14114_v8  ;;  %v3264_v21 = vmul.f32 %v13357_v18, %v14880_v11  ;;  %12963 = vmatpush3.bf16.msra.mxu0 %v12960_v28  ;;  %v12992_v18 = vpack.c.bf16 %v553_v17, %v552_v16  ;;  %v656_v17 = vld [vmem:[%s15905_s0] sm:$0xff] }
 0xf7d   :  { %12965 = vmatprep.subr.bf16.mxu0 %v12964_v33  ;;  %12969 = vmatprep.subr.bf16.mxu1 %v12968_v12 }
 0xf7e   :  { %12346 = vmatmul.mubr.msk.f32.vlgmr.msra.gmra.mrb[40].mxu1 %vm751_vm2, %v3264_v21  ;;  %v632_v21 = vld [vmem:[%s15902_s2] sm:$0xff] }
 0xf7f   :  { %12971 = vmatpush3.bf16.msra.mxu1 %v12968_v12 }
 0xf80   :  { %12967 = vmatpush3.bf16.msra.mxu0 %v12964_v33  ;;  %12973 = vmatprep.subr.bf16.mxu1 %v12972_v15 }
 0xf83   :  { %12975 = vmatpush3.bf16.msra.mxu1 %v12972_v15 }
 0xf84   :  { %12993 = vmatprep.subr.bf16.mxu1 %v12992_v18 }
0x103d   :  { %v3337_v22 = vpop.f32.mrb[24].mxu0 }
0x103e   :  { %v12312_v27 = vpop.f32.mrb[25].mxu0 }
0x103f   :  { %v635_v27 = vld [vmem:[%s15902_s2 + $0x18] sm:$0xff] }
0x1040   :  { %v12980_v28 = vpack.c.bf16 %v635_v27, %v634_v24 }
0x1041   :  { %v3413_v29 = vpop.f32.mrb[34].mxu1 }
0x1042   :  { %v12317_v32 = vpop.f32.mrb[35].mxu1 }
0x1045   :  { %v3489_v34 = vpop.f32.mrb[26].mxu0 }
0x1046   :  { %3875 = vrot.lane.b32.xlu0 %v3489_v34, %s14127_s24  ;;  %v12322_v35 = vpop.f32.mrb[27].mxu0 }
0x1049   :  { %v3565_v36 = vpop.f32.mrb[36].mxu1 }
0x104a   :  { %v3641_v37 = vpop.f32.mrb[28].mxu0  ;;  %3877 = vrot.lane.b32.xlu1 %v3565_v36, %s14127_s24  ;;  %v12327_v38 = vpop.f32.mrb[37].mxu1 }
0x104b   :  { %3883 = vrot.lane.b32.xlu0 %v3641_v37, %s14128_s26  ;;  %v12332_v39 = vpop.f32.mrb[29].mxu0 }
0x104c   :  { %v11603_v39 = vld [vmem:[#allocation34] ss:$0 sm:$0xff] }
0x104d   :  { %v3717_v40 = vpop.f32.mrb[38].mxu1 }
0x104e   :  { %v3793_v41 = vpop.f32.mrb[30].mxu0  ;;  %3885 = vrot.lane.b32.xlu1 %v3717_v40, %s14128_s26  ;;  %v12337_v42 = vpop.f32.mrb[39].mxu1 }
0x104f   :  { %3891 = vrot.lane.b32.xlu0 %v3793_v41, %s14129_s4  ;;  %v12342_v43 = vpop.f32.mrb[31].mxu0  ;;  %v11604_v41 = vld [vmem:[#allocation33] ss:$0 sm:$0xff] }
0x1051   :  { %v3869_v44 = vpop.f32.mrb[40].mxu1 }
0x1052   :  { %3893 = vrot.lane.b32.xlu1 %v3869_v44, %s14129_s4  ;;  %v12347_v45 = vpop.f32.mrb[41].mxu1 }
0x10b8   :  { %v3876_v46 = vpop.permute.xlu0 %3875 }
0x10b9   :  { %v3897_v49 = vsel %vm751_vm2, %v3337_v22, %v3876_v46  ;;  %v633_v22 = vld [vmem:[%s15902_s2 + $0x8] sm:$0xff]  ;;  %v554_v46 = vld [vmem:[%s15901_s19 + $0x10] sm:$0xff] }
0x10ba   :  { %v12976_v26 = vpack.c.bf16 %v633_v22, %v632_v21 }
0x10bc   :  { %v3878_v47 = vpop.permute.xlu1 %3877  ;;  %12977 = vmatprep.subr.bf16.mxu0 %v12976_v26 }
0x10bd   :  { %v3884_v48 = vpop.permute.xlu0 %3883  ;;  %v3898_v13 = vsel %vm751_vm2, %v3413_v29, %v3878_v47  ;;  %v636_v29 = vld [vmem:[%s15902_s2 + $0x20] sm:$0xff]  ;;  %v555_v47 = vld [vmem:[%s15901_s19 + $0x18] sm:$0xff]  ;;  %s15916_s19 = sld [smem:[#allocation54_spill]] }
0x10be   :  { %v3899_v51 = vsel %vm2101_vm3, %v3897_v49, %v3884_v48  ;;  %v12984_v31 = vpack.c.bf16 %v637_v30, %v636_v29 }
0x10c0   :  { %v3886_v50 = vpop.permute.xlu1 %3885 }
0x10c1   :  { %v3892_v52 = vpop.permute.xlu0 %3891  ;;  %v3900_v53 = vsel %vm2101_vm3, %v3898_v13, %v3886_v50  ;;  %v12996_v50 = vpack.c.bf16 %v555_v47, %v554_v46  ;;  %v639_v13 = vld [vmem:[%s15902_s2 + $0x38] sm:$0xff] }
0x10c2   :  { %v3901_v11 = vsel %vm2104_vm4, %v3899_v51, %v3892_v52  ;;  %v14959_v51 = vld [vmem:[%s15903_s30] sm:$0xff]  ;;  %v14966_v52 = vld [vmem:[%s15903_s30 + $0x8] sm:$0xff]  ;;  %s15918_s30 = sld [smem:[#allocation57_spill]] }
0x10c3   :  { %12356 = vmatprep.mubr.msk.f32.mxu0 %vm666_vm0, %v3901_v11  ;;  %v638_v11 = vld [vmem:[%s15902_s2 + $0x30] sm:$0xff]  ;;  %s15917_s2 = sld [smem:[#allocation53_spill]] }
0x10c4   :  { %v3894_v54 = vpop.permute.xlu1 %3893 }
0x10c5   :  { %v3902_v55 = vsel %vm2104_vm4, %v3900_v53, %v3894_v54  ;;  %v12988_v53 = vpack.c.bf16 %v639_v13, %v638_v11  ;;  %v11605_v54 = vld [vmem:[#allocation24] ss:$0 sm:$0xff] }
0x10c6   :  { %12357 = vmatmul.mubr.msk.f32.vlgmr.msra.gmra.mrb[32].mxu0 %vm666_vm0, %v3902_v55 }
0x10c7   :  { %12979 = vmatpush3.bf16.msra.mxu0 %v12976_v26  ;;  %v657_v26 = vld [vmem:[%s15905_s0 + $0x8] sm:$0xff] }
0x10c8   :  { %12981 = vmatprep.subr.bf16.mxu0 %v12980_v28 }
0x10cb   :  { %12983 = vmatpush3.bf16.msra.mxu0 %v12980_v28 }
0x10cc   :  { %12985 = vmatprep.subr.bf16.mxu0 %v12984_v31 }
0x10cf   :  { %12987 = vmatpush3.bf16.msra.mxu0 %v12984_v31 }
0x10d0   :  { %12989 = vmatprep.subr.bf16.mxu0 %v12988_v53 }
0x10d3   :  { %12991 = vmatpush3.bf16.msra.mxu0 %v12988_v53 }
0x10d4   :  { %12410 = vmatprep.subr.mxu0 %v14114_v8 }
0x1199   :  { %v12358_v57 = vpop.f32.mrb[32].mxu0 }
0x119a   :  { %v3987_v58 = vadd.f32 %v12358_v57, %v11600_v56  ;;  %v3981_v59 = vpop.f32.mrb[33].mxu0 }
0x119b   :  { %v3982_v5 = vadd.f32 %v11600_v56, %v3981_v59 }
0x119c   :  { %v3991_v7 = vadd.f32 %v3987_v58, %v14766_v20 }
0x119d   :  { %v3990_v60 = vadd.f32 %v3982_v5, %v14764_v19 }
0x119e   :  { %v3995_v61 = vsel %vm666_vm0, %v3991_v7, 0.0 }
0x119f   :  { %3996 = vadd.xlane.f32.xlu1 %v3995_v61  ;;  %v3992_v23 = vsel %vm666_vm0, %v3990_v60, 0.0 }
0x11a0   :  { %3993 = vadd.xlane.f32.xlu0 %v3992_v23 }
0x122c   :  { %v3997_v25 = vpop.xlane.xlu1 %3996 }
0x122d   :  { %v3999_v62 = vmul.f32 0.03125, %v3997_v25  ;;  %v3994_v63 = vpop.xlane.xlu0 %3993 }
0x122e   :  { %v3998_v0 = vmul.f32 0.03125, %v3994_v63 }
0x122f   :  { %v4001_v1 = vsub.f32 %v3991_v7, %v3999_v62  ;;  %v11613_v7 = vld [vmem:[%s15904_s17] ss:$0 sm:$0xff]  ;;  %s15919_s17 = sld [smem:[#allocation58_spill]] }
0x1230   :  { %v4000_v2 = vsub.f32 %v3990_v60, %v3998_v0 }
0x1231   :  { %v4003_v20 = vmul.f32 %v4001_v1, %v4001_v1 }
0x1232   :  { %v4002_v3 = vmul.f32 %v4000_v2, %v4000_v2 }
0x1233   :  { %v4007_v4 = vsel %vm666_vm0, %v4003_v20, 0.0 }
0x1234   :  { %v4004_v19 = vsel %vm666_vm0, %v4002_v3, 0.0 }
0x1235   :  { %4005 = vadd.xlane.f32.xlu0 %v4004_v19 }
0x1239   :  { %4008 = vadd.xlane.f32.xlu0 %v4007_v4 }
0x12c2   :  { %v4006_v32 = vpop.xlane.xlu0 %4005 }
0x12c3   :  { %v4010_v33 = vmul.f32 0.03125, %v4006_v32 }
0x12c5   :  { %v4012_v34 = vadd.f32 1e-05, %v4010_v33 }
0x12c6   :  { %v4009_v35 = vpop.xlane.xlu0 %4008 }
0x12c7   :  { %13358 = vrsqrt.f32 %v4012_v34  ;;  %v4011_v36 = vmul.f32 0.03125, %v4009_v35 }
0x12c9   :  { %v4013_v37 = vadd.f32 1e-05, %v4011_v36 }
0x12cb   :  { %13360 = vrsqrt.f32 %v4013_v37 }
0x12d1   :  { %v13359_v38 = vpop.eup %13358 }
0x12d2   :  { %v4016_v40 = vmul.f32 %v13359_v38, %v4000_v2 }
0x12d4   :  { %v4024_v42 = vmul.f32 %v11603_v39, %v4016_v40 }
0x12d5   :  { %v13361_v43 = vpop.eup %13360 }
0x12d6   :  { %v4017_v44 = vmul.f32 %v13361_v43, %v4001_v1  ;;  %v14950_v45 = vadd.f32 %v11604_v41, %v4024_v42 }
0x12d8   :  { %v4025_v48 = vmul.f32 %v11603_v39, %v4017_v44  ;;  %12367 = vmatprep.mubr.msk.f32.mxu1 %vm666_vm0, %v14950_v45 }
0x12da   :  { %v14956_v49 = vadd.f32 %v11604_v41, %v4025_v48 }
0x12dc   :  { %12368 = vmatmul.mubr.msk.f32.vlgmr.msra.gmra.mrb[42].mxu1 %vm666_vm0, %v14956_v49 }
0x12dd   :  { %12995 = vmatpush3.bf16.msra.mxu1 %v12992_v18  ;;  %12397 = vmatprep.mubr.msk.f32.mxu1 %vm666_vm0, %v14959_v51 }
0x12de   :  { %12997 = vmatprep.subr.bf16.mxu1 %v12996_v50 }
0x12e1   :  { %12999 = vmatpush3.bf16.msra.mxu1 %v12996_v50 }
0x12e2   :  { %12400 = vmatprep.subr.mxu1 %v14114_v8 }
0x12e4   :  { %12398 = vmatmul.mubr.msk.f32.vlgmr.msra.gmra.mrb[44].mxu1 %vm666_vm0, %v14966_v52 }
0x12e5   :  { %12402 = vmatprep.mubr.msk.f32.mxu1 %vm14115_vm1, %v14114_v8 }
0x13af   :  { %v12369_v55 = vpop.f32.mrb[42].mxu1 }
0x13b0   :  { %v4118_v56 = vadd.f32 %v12369_v55, %v11605_v54  ;;  %v4112_v57 = vpop.f32.mrb[43].mxu1 }
0x13b1   :  { %v4113_v58 = vadd.f32 %v11605_v54, %v4112_v57 }
0x13b2   :  { %v4122_v5 = vmax.f32 %v4118_v56, 0.0 }
0x13b3   :  { %v4121_v59 = vmax.f32 %v4113_v58, 0.0 }
0x13b5   :  { %12386 = vmatprep.mubr.msk.f32.mxu0 %vm2334_vm5, %v4121_v59 }
0x13b6   :  { %12387 = vmatmul.mubr.msk.f32.vlgmr.msra.gmra.mrb[34].mxu0 %vm2334_vm5, %v4122_v5 }
0x13b7   :  { %v12399_v60 = vpop.f32.mrb[44].mxu1  ;;  %12412 = vmatprep.mubr.msk.f32.mxu0 %vm14115_vm1, %v14114_v8 }
0x13b8   :  { %v14981_v61 = vadd.f32 %v12399_v60, %v11613_v7  ;;  %v4334_v23 = vpop.f32.mrb[45].mxu1 }
0x13b9   :  { %v14987_v25 = vadd.f32 %v11613_v7, %v4334_v23 }
0x13ba   :  { %4581 = vrot.lane.b32.xlu1 %v14981_v61, %s14119_s16  ;;  %4421 = vrot.lane.b32.xlu0 %v14981_v61, %s14117_s6 }
0x13be   :  { %4579 = vrot.lane.b32.xlu1 %v14981_v61, %s14116_s11  ;;  %4501 = vrot.lane.b32.xlu0 %v14987_v25, %s14116_s11 }
0x13c2   :  { %4663 = vrot.lane.b32.xlu0 %v14987_v25, %s14118_s15  ;;  %4344 = vrot.lane.b32.xlu1 %v14987_v25, %s14117_s6 }
0x13c6   :  { %4661 = vrot.lane.b32.xlu0 %v14987_v25, %s14120_s18  ;;  %4741 = vrot.lane.b32.xlu1 %v14981_v61, %s14118_s15 }
0x13ca   :  { %4823 = vrot.lane.b32.xlu0 %v14987_v25, %s14121_s22  ;;  %4503 = vrot.lane.b32.xlu1 %v14987_v25, %s14119_s16 }
0x13ce   :  { %4821 = vrot.lane.b32.xlu0 %v14987_v25, %s14122_s29  ;;  %4739 = vrot.lane.b32.xlu1 %v14981_v61, %s14120_s18 }
0x13d2   :  { %4901 = vrot.lane.b32.xlu1 %v14981_v61, %s14121_s22 }
0x13d6   :  { %4899 = vrot.lane.b32.xlu1 %v14981_v61, %s14122_s29 }
0x142c   :  { %v4582_v62 = vpop.permute.xlu1 %4581  ;;  %v4422_v63 = vpop.permute.xlu0 %4421 }
0x1430   :  { %v4580_v0 = vpop.permute.xlu1 %4579  ;;  %v4502_v1 = vpop.permute.xlu0 %4501 }
0x1434   :  { %v4345_v2 = vpop.permute.xlu1 %4344  ;;  %v4664_v3 = vpop.permute.xlu0 %4663 }
0x1435   :  { %12401 = vmatpush3.xpose.msk.msra.mxu1 %vm751_vm2, %v4345_v2 }
0x1436   :  { %12405 = vmatprep.subr.mxu1 %v14114_v8 }
0x1438   :  { %12403 = vmatmul.mubr.msk.f32.vlgmr.msra.gmra.mrb[46].mxu1 %vm751_vm2, %v14987_v25  ;;  %v4742_v19 = vpop.permute.xlu1 %4741  ;;  %v4662_v20 = vpop.permute.xlu0 %4661 }
0x1439   :  { %12406 = vmatpush3.xpose.msk.msra.mxu1 %vm751_vm2, %v4422_v63  ;;  %12407 = vmatprep.mubr.msk.f32.mxu1 %vm14115_vm1, %v14114_v8 }
0x143a   :  { %12415 = vmatprep.subr.mxu1 %v14114_v8 }
0x143c   :  { %12408 = vmatmul.mubr.msk.f32.vlgmr.msra.gmra.mrb[48].mxu1 %vm751_vm2, %v14981_v61  ;;  %v4504_v4 = vpop.permute.xlu1 %4503  ;;  %v4824_v9 = vpop.permute.xlu0 %4823 }
0x143d   :  { %12411 = vmatpush3.xpose.msk.msra.mxu0 %vm751_vm2, %v4504_v4  ;;  %12416 = vmatpush3.xpose.msk.msra.mxu1 %vm751_vm2, %v4582_v62 }
0x143e   :  { %12417 = vmatprep.mubr.msk.f32.mxu1 %vm14115_vm1, %v14114_v8  ;;  %12420 = vmatprep.subr.mxu0 %v14114_v8 }
0x143f   :  { %12425 = vmatprep.subr.mxu1 %v14114_v8 }
0x1440   :  { %12413 = vmatmul.mubr.msk.f32.vlgmr.msra.gmra.mrb[36].mxu0 %vm751_vm2, %v4502_v1  ;;  %12418 = vmatmul.mubr.msk.f32.vlgmr.msra.gmra.mrb[50].mxu1 %vm751_vm2, %v4580_v0  ;;  %v4740_v6 = vpop.permute.xlu1 %4739  ;;  %v4822_v12 = vpop.permute.xlu0 %4821 }
0x1441   :  { %12421 = vmatpush3.xpose.msk.msra.mxu0 %vm751_vm2, %v4664_v3  ;;  %12426 = vmatpush3.xpose.msk.msra.mxu1 %vm751_vm2, %v4742_v19 }
0x1442   :  { %12422 = vmatprep.mubr.msk.f32.mxu0 %vm14115_vm1, %v14114_v8  ;;  %12427 = vmatprep.mubr.msk.f32.mxu1 %vm14115_vm1, %v14114_v8 }
0x1443   :  { %12430 = vmatprep.subr.mxu0 %v14114_v8  ;;  %12435 = vmatprep.subr.mxu1 %v14114_v8 }
0x1444   :  { %12423 = vmatmul.mubr.msk.f32.vlgmr.msra.gmra.mrb[38].mxu0 %vm751_vm2, %v4662_v20  ;;  %12428 = vmatmul.mubr.msk.f32.vlgmr.msra.gmra.mrb[52].mxu1 %vm751_vm2, %v4740_v6  ;;  %v4902_v10 = vpop.permute.xlu1 %4901 }
0x1445   :  { %12431 = vmatpush3.xpose.msk.msra.mxu0 %vm751_vm2, %v4824_v9  ;;  %12436 = vmatpush3.xpose.msk.msra.mxu1 %vm751_vm2, %v4902_v10 }
0x1446   :  { %12432 = vmatprep.mubr.msk.f32.mxu0 %vm14115_vm1, %v14114_v8  ;;  %12437 = vmatprep.mubr.msk.f32.mxu1 %vm14115_vm1, %v14114_v8 }
0x1447   :  { %12440 = vmatprep.subr.mxu0 %v14114_v8  ;;  %12445 = vmatprep.subr.mxu1 %v14114_v8 }
0x1448   :  { %12433 = vmatmul.mubr.msk.f32.vlgmr.msra.gmra.mrb[40].mxu0 %vm751_vm2, %v4822_v12  ;;  %v4900_v14 = vpop.permute.xlu1 %4899 }
0x1449   :  { %12438 = vmatmul.mubr.msk.f32.vlgmr.msra.gmra.mrb[54].mxu1 %vm751_vm2, %v4900_v14  ;;  %12442 = vmatprep.mubr.msk.f32.mxu0 %vm14115_vm1, %v14114_v8 }
0x144a   :  { %12447 = vmatprep.mubr.msk.f32.mxu1 %vm14115_vm1, %v14114_v8 }
0x1489   :  { %v15055_v15 = vpop.f32.mrb[34].mxu0 }
0x148a   :  { %v15057_v16 = vpop.f32.mrb[35].mxu0 }
0x150b   :  { %v4416_v18 = vpop.f32.mrb[46].mxu1 }
0x150c   :  { %v4497_v21 = vmul.f32 0.35355338, %v4416_v18  ;;  %v12404_v22 = vpop.f32.mrb[47].mxu1 }
0x150e   :  { %v4499_v24 = vadd.f32 %v4497_v21, %v656_v17 }
0x150f   :  { %v4493_v27 = vpop.f32.mrb[48].mxu1 }
0x1510   :  { %v4498_v28 = vmul.f32 0.35355338, %v4493_v27  ;;  %v12409_v29 = vpop.f32.mrb[49].mxu1  ;;  %v4981_v30 = vsel %vm751_vm2, %v4499_v24, -inf }
0x1511   :  { %4982 = vmax.xlane.f32.xlu0 %v4981_v30 }
0x1512   :  { %v4500_v31 = vadd.f32 %v4498_v28, %v657_v26 }
0x1513   :  { %v4575_v32 = vpop.f32.mrb[36].mxu0  ;;  %v4653_v33 = vpop.f32.mrb[50].mxu1 }
0x1514   :  { %v4657_v34 = vmul.f32 0.35355338, %v4575_v32  ;;  %v12414_v35 = vpop.f32.mrb[37].mxu0  ;;  %v12419_v36 = vpop.f32.mrb[51].mxu1  ;;  %v4658_v37 = vmul.f32 0.35355338, %v4653_v33 }
0x1515   :  { %v4993_v38 = vsel %vm751_vm2, %v4500_v31, -inf }
0x1516   :  { %v4659_v39 = vadd.f32 %v4657_v34, %v656_v17  ;;  %4994 = vmax.xlane.f32.xlu1 %v4993_v38  ;;  %v4660_v46 = vadd.f32 %v4658_v37, %v657_v26 }
0x1517   :  { %v4735_v40 = vpop.f32.mrb[38].mxu0  ;;  %v4813_v41 = vpop.f32.mrb[52].mxu1 }
0x1518   :  { %v4817_v42 = vmul.f32 0.35355338, %v4735_v40  ;;  %v12424_v43 = vpop.f32.mrb[39].mxu0  ;;  %v12429_v44 = vpop.f32.mrb[53].mxu1  ;;  %v4818_v47 = vmul.f32 0.35355338, %v4813_v41 }
0x1519   :  { %v4984_v48 = vsel %vm751_vm2, %v4659_v39, -inf  ;;  %v4996_v58 = vsel %vm751_vm2, %v4660_v46, -inf }
0x151a   :  { %v4819_v50 = vadd.f32 %v4817_v42, %v656_v17  ;;  %4985 = vmax.xlane.f32.xlu0 %v4984_v48  ;;  %v4820_v56 = vadd.f32 %v4818_v47, %v657_v26 }
0x151b   :  { %v4895_v11 = vpop.f32.mrb[40].mxu0 }
0x151c   :  { %v4977_v13 = vmul.f32 0.35355338, %v4895_v11  ;;  %v12434_v53 = vpop.f32.mrb[41].mxu0  ;;  %v4973_v54 = vpop.f32.mrb[54].mxu1  ;;  %v4987_v55 = vsel %vm751_vm2, %v4819_v50, -inf  ;;  %v4999_v23 = vsel %vm751_vm2, %v4820_v56, -inf }
0x151d   :  { %v4978_v57 = vmul.f32 0.35355338, %v4973_v54  ;;  %4988 = vmax.xlane.f32.xlu1 %v4987_v55  ;;  %v12439_v59 = vpop.f32.mrb[55].mxu1 }
0x151e   :  { %v4979_v5 = vadd.f32 %v4977_v13, %v656_v17  ;;  %4997 = vmax.xlane.f32.xlu0 %v4996_v58 }
0x151f   :  { %v4980_v60 = vadd.f32 %v4978_v57, %v657_v26 }
0x1520   :  { %v4990_v7 = vsel %vm751_vm2, %v4979_v5, -inf }
0x1521   :  { %4991 = vmax.xlane.f32.xlu1 %v4990_v7  ;;  %v5002_v62 = vsel %vm751_vm2, %v4980_v60, -inf }
0x1522   :  { %5000 = vmax.xlane.f32.xlu0 %v4999_v23 }
0x1526   :  { %5003 = vmax.xlane.f32.xlu0 %v5002_v62 }
0x1532   :  { %5069 = vrot.lane.b32.xlu1 %v14987_v25, %s14123_s5 }
0x1536   :  { %5221 = vrot.lane.b32.xlu1 %v14987_v25, %s14124_s21 }
0x153a   :  { %5297 = vrot.lane.b32.xlu1 %v14981_v61, %s14124_s21 }
0x153c   :  { %5145 = vrot.lane.b32.xlu0 %v14981_v61, %s14123_s5 }
0x153e   :  { %5449 = vrot.lane.b32.xlu1 %v14981_v61, %s14125_s25 }
0x1540   :  { %5373 = vrot.lane.b32.xlu0 %v14987_v25, %s14125_s25 }
0x159e   :  { %v4983_v63 = vpop.xlane.xlu0 %4982 }
0x159f   :  { %v5005_v0 = vsub.f32 %v4499_v24, %v4983_v63 }
0x15a1   :  { %v5013_v1 = vmul.f32 1.442695, %v5005_v0 }
0x15a3   :  { %13362 = vpow2.f32 %v5013_v1  ;;  %v4995_v2 = vpop.xlane.xlu1 %4994 }
0x15a4   :  { %v5009_v3 = vsub.f32 %v4500_v31, %v4995_v2 }
0x15a6   :  { %v5021_v19 = vmul.f32 1.442695, %v5009_v3 }
0x15a7   :  { %v4986_v20 = vpop.xlane.xlu0 %4985 }
0x15a8   :  { %13364 = vpow2.f32 %v5021_v19  ;;  %v5006_v4 = vsub.f32 %v4659_v39, %v4986_v20 }
0x15aa   :  { %v5015_v6 = vmul.f32 1.442695, %v5006_v4  ;;  %v4989_v9 = vpop.xlane.xlu1 %4988 }
0x15ab   :  { %v4998_v10 = vpop.xlane.xlu0 %4997  ;;  %v5007_v12 = vsub.f32 %v4819_v50, %v4989_v9 }
0x15ac   :  { %13366 = vpow2.f32 %v5015_v6  ;;  %v5010_v14 = vsub.f32 %v4660_v46, %v4998_v10 }
0x15ad   :  { %v13363_v17 = vpop.eup %13362  ;;  %v5017_v18 = vmul.f32 1.442695, %v5007_v12 }
0x15ae   :  { %v5023_v21 = vmul.f32 1.442695, %v5010_v14  ;;  %v4992_v22 = vpop.xlane.xlu1 %4991  ;;  %v5029_v24 = vsel %vm751_vm2, %v13363_v17, 0.0 }
0x15af   :  { %13368 = vpow2.f32 %v5017_v18  ;;  %v5001_v26 = vpop.xlane.xlu0 %5000  ;;  %v5008_v27 = vsub.f32 %v4979_v5, %v4992_v22  ;;  %5030 = vadd.xlane.f32.xlu1 %v5029_v24  ;;  %v548_v24 = vld [vmem:[%s15906_s13] sm:$0xff] }
0x15b0   :  { %13370 = vpow2.f32 %v5023_v21  ;;  %v5011_v28 = vsub.f32 %v4820_v56, %v5001_v26  ;;  %v549_v26 = vld [vmem:[%s15906_s13 + $0x8] sm:$0xff] }
0x15b1   :  { %v5019_v29 = vmul.f32 1.442695, %v5008_v27  ;;  %v13000_v27 = vpack.c.bf16 %v549_v26, %v548_v24  ;;  %v15158_v24 = vld [vmem:[#allocation27] ss:$0 sm:$0xff] }
0x15b2   :  { %v13365_v30 = vpop.eup %13364  ;;  %v5025_v31 = vmul.f32 1.442695, %v5011_v28  ;;  %v5070_v32 = vpop.permute.xlu1 %5069 }
0x15b3   :  { %13372 = vpow2.f32 %v5019_v29  ;;  %v5004_v33 = vpop.xlane.xlu0 %5003  ;;  %v5041_v34 = vsel %vm751_vm2, %v13365_v30, 0.0  ;;  %12441 = vmatpush3.msra.mxu0 %v5070_v32  ;;  %v550_v29 = vld [vmem:[%s15906_s13 + $0x10] sm:$0xff] }
0x15b4   :  { %13374 = vpow2.f32 %v5025_v31  ;;  %v5012_v35 = vsub.f32 %v4980_v60, %v5004_v33  ;;  %5042 = vadd.xlane.f32.xlu0 %v5041_v34  ;;  %12450 = vmatprep.subr.mxu0 %v14114_v8 }
0x15b6   :  { %v13367_v36 = vpop.eup %13366  ;;  %v5027_v37 = vmul.f32 1.442695, %v5012_v35  ;;  %v5222_v13 = vpop.permute.xlu1 %5221 }
0x15b7   :  { %v5146_v38 = vpop.permute.xlu0 %5145  ;;  %v5032_v39 = vsel %vm751_vm2, %v13367_v36, 0.0 }
0x15b8   :  { %13376 = vpow2.f32 %v5027_v37  ;;  %5033 = vadd.xlane.f32.xlu1 %v5032_v39  ;;  %12446 = vmatpush3.msra.mxu1 %v5146_v38 }
0x15b9   :  { %v13369_v40 = vpop.eup %13368  ;;  %12455 = vmatprep.subr.mxu1 %v14114_v8 }
0x15ba   :  { %v13371_v41 = vpop.eup %13370  ;;  %v5035_v42 = vsel %vm751_vm2, %v13369_v40, 0.0  ;;  %v5298_v53 = vpop.permute.xlu1 %5297 }
0x15bb   :  { %v5044_v43 = vsel %vm751_vm2, %v13371_v41, 0.0  ;;  %v5374_v56 = vpop.permute.xlu0 %5373 }
0x15bc   :  { %5045 = vadd.xlane.f32.xlu0 %v5044_v43  ;;  %5036 = vadd.xlane.f32.xlu1 %v5035_v42 }
0x15bd   :  { %v15088_v44 = vpop.eup %13372 }
0x15be   :  { %v13375_v46 = vpop.eup %13374  ;;  %v5038_v47 = vsel %vm751_vm2, %v15088_v44, 0.0  ;;  %v5450_v54 = vpop.permute.xlu1 %5449 }
0x15bf   :  { %v5047_v48 = vsel %vm751_vm2, %v13375_v46, 0.0 }
0x15c0   :  { %5048 = vadd.xlane.f32.xlu0 %v5047_v48  ;;  %5039 = vadd.xlane.f32.xlu1 %v5038_v47 }
0x15c2   :  { %v15093_v50 = vpop.eup %13376 }
0x15c3   :  { %v5050_v11 = vsel %vm751_vm2, %v15093_v50, 0.0 }
0x15c4   :  { %5051 = vadd.xlane.f32.xlu0 %v5050_v11 }
0x15d1   :  { %5601 = vrot.lane.b32.xlu1 %v14981_v61, %s14126_s23 }
0x15da   :  { %5525 = vrot.lane.b32.xlu0 %v14987_v25, %s14126_s23 }
0x163c   :  { %v5031_v55 = vpop.xlane.xlu1 %5030 }
0x163d   :  { %13378 = vrcp.f32 %v5031_v55 }
0x1641   :  { %v5043_v57 = vpop.xlane.xlu0 %5042 }
0x1642   :  { %13380 = vrcp.f32 %v5043_v57 }
0x1645   :  { %v5034_v58 = vpop.xlane.xlu1 %5033 }
0x1646   :  { %13382 = vrcp.f32 %v5034_v58 }
0x1647   :  { %v13379_v59 = vpop.eup %13378 }
0x1648   :  { %v5061_v5 = vmul.f32 %v13379_v59, %v13363_v17 }
0x1649   :  { %v5046_v7 = vpop.xlane.xlu0 %5045  ;;  %v5037_v60 = vpop.xlane.xlu1 %5036 }
0x164a   :  { %13384 = vrcp.f32 %v5046_v7  ;;  %12443 = vmatmul.mubr.msk.f32.vlgmr.msra.gmra.mrb[42].mxu0 %vm751_vm2, %v5061_v5 }
0x164b   :  { %13386 = vrcp.f32 %v5037_v60  ;;  %12451 = vmatpush3.msra.mxu0 %v5222_v13  ;;  %12452 = vmatprep.mubr.msk.f32.mxu0 %vm14115_vm1, %v14114_v8 }
0x164c   :  { %v13381_v61 = vpop.eup %13380  ;;  %12460 = vmatprep.subr.mxu0 %v14114_v8 }
0x164d   :  { %v5049_v25 = vpop.xlane.xlu0 %5048  ;;  %v5040_v23 = vpop.xlane.xlu1 %5039  ;;  %v5065_v62 = vmul.f32 %v13381_v61, %v13365_v30  ;;  %v551_v30 = vld [vmem:[%s15906_s13 + $0x18] sm:$0xff]  ;;  %s15920_s13 = sld [smem:[#allocation80_spill]] }
0x164e   :  { %13388 = vrcp.f32 %v5049_v25  ;;  %v13004_v32 = vpack.c.bf16 %v551_v30, %v550_v29 }
0x164f   :  { %13390 = vrcp.f32 %v5040_v23  ;;  %12448 = vmatmul.mubr.msk.f32.vlgmr.msra.gmra.mrb[56].mxu1 %vm751_vm2, %v5065_v62 }
0x1650   :  { %v13383_v63 = vpop.eup %13382  ;;  %12456 = vmatpush3.msra.mxu1 %v5298_v53  ;;  %12457 = vmatprep.mubr.msk.f32.mxu1 %vm14115_vm1, %v14114_v8 }
0x1651   :  { %v5052_v0 = vpop.xlane.xlu0 %5051  ;;  %v5062_v1 = vmul.f32 %v13383_v63, %v13367_v36  ;;  %12465 = vmatprep.subr.mxu1 %v14114_v8  ;;  %v5602_v14 = vpop.permute.xlu1 %5601 }
0x1652   :  { %13392 = vrcp.f32 %v5052_v0 }
0x1653   :  { %12453 = vmatmul.mubr.msk.f32.vlgmr.msra.gmra.mrb[44].mxu0 %vm751_vm2, %v5062_v1 }
0x1654   :  { %v13385_v2 = vpop.eup %13384  ;;  %12461 = vmatpush3.msra.mxu0 %v5374_v56  ;;  %12462 = vmatprep.mubr.msk.f32.mxu0 %vm14115_vm1, %v14114_v8 }
0x1655   :  { %v13387_v3 = vpop.eup %13386  ;;  %12470 = vmatprep.subr.mxu0 %v14114_v8  ;;  %v5066_v19 = vmul.f32 %v13385_v2, %v13371_v41  ;;  %v5526_v20 = vpop.permute.xlu0 %5525 }
0x1656   :  { %v5063_v4 = vmul.f32 %v13387_v3, %v13369_v40  ;;  %v11640_v3 = vld [vmem:[%s15907_s14] ss:$0 sm:$0xff]  ;;  %s15921_s14 = sld [smem:[#allocation60_spill]] }
0x1657   :  { %12458 = vmatmul.mubr.msk.f32.vlgmr.msra.gmra.mrb[58].mxu1 %vm751_vm2, %v5066_v19 }
0x1658   :  { %v13389_v6 = vpop.eup %13388  ;;  %12463 = vmatmul.mubr.msk.f32.vlgmr.msra.gmra.mrb[46].mxu0 %vm751_vm2, %v5063_v4  ;;  %12466 = vmatpush3.msra.mxu1 %v5450_v54 }
0x1659   :  { %v13391_v9 = vpop.eup %13390  ;;  %12471 = vmatpush3.msra.mxu0 %v5526_v20  ;;  %12467 = vmatprep.mubr.msk.f32.mxu1 %vm14115_vm1, %v14114_v8  ;;  %v5067_v10 = vmul.f32 %v13389_v6, %v13375_v46  ;;  %v11608_v46 = vld [vmem:[#allocation25] ss:$0 sm:$0xff] }
0x165a   :  { %12472 = vmatprep.mubr.msk.f32.mxu0 %vm14115_vm1, %v14114_v8  ;;  %12475 = vmatprep.subr.mxu1 %v14114_v8  ;;  %v5064_v12 = vmul.f32 %v13391_v9, %v15088_v44  ;;  %v4202_v47 = vadd.f32 %v11608_v46, %v15057_v16 }
0x165b   :  { %12468 = vmatmul.mubr.msk.f32.vlgmr.msra.gmra.mrb[60].mxu1 %vm751_vm2, %v5067_v10  ;;  %13001 = vmatprep.subr.bf16.mxu0 %v13000_v27 }
0x165c   :  { %v13393_v17 = vpop.eup %13392  ;;  %12473 = vmatmul.mubr.msk.f32.vlgmr.msra.gmra.mrb[48].mxu0 %vm751_vm2, %v5064_v12  ;;  %12476 = vmatpush3.msra.mxu1 %v5602_v14  ;;  %v4210_v48 = vadd.f32 %v4202_v47, %v14950_v45 }
0x165d   :  { %12477 = vmatprep.mubr.msk.f32.mxu1 %vm14115_vm1, %v14114_v8  ;;  %v5068_v18 = vmul.f32 %v13393_v17, %v15093_v50  ;;  %13003 = vmatpush3.bf16.msra.mxu0 %v13000_v27  ;;  %v4207_v50 = vadd.f32 %v15055_v15, %v11608_v46 }
0x165e   :  { %13005 = vmatprep.subr.bf16.mxu0 %v13004_v32  ;;  %v4212_v11 = vsel %vm666_vm0, %v4210_v48, 0.0 }
0x165f   :  { %12478 = vmatmul.mubr.msk.f32.vlgmr.msra.gmra.mrb[62].mxu1 %vm751_vm2, %v5068_v18  ;;  %v4211_v13 = vadd.f32 %v4207_v50, %v14956_v49 }
0x1661   :  { %13007 = vmatpush3.bf16.msra.mxu0 %v13004_v32  ;;  %v4215_v53 = vsel %vm666_vm0, %v4211_v13, 0.0 }
0x171d   :  { %v5141_v21 = vpop.f32.mrb[42].mxu0 }
0x171e   :  { %v12444_v22 = vpop.f32.mrb[43].mxu0 }
0x1722   :  { %v5217_v28 = vpop.f32.mrb[56].mxu1 }
0x1723   :  { %v12449_v31 = vpop.f32.mrb[57].mxu1 }
0x1726   :  { %v5293_v33 = vpop.f32.mrb[44].mxu0 }
0x1727   :  { %5679 = vrot.lane.b32.xlu0 %v5293_v33, %s14127_s24  ;;  %v12454_v34 = vpop.f32.mrb[45].mxu0 }
0x172a   :  { %v5369_v35 = vpop.f32.mrb[58].mxu1 }
0x172b   :  { %v5445_v36 = vpop.f32.mrb[46].mxu0  ;;  %5681 = vrot.lane.b32.xlu1 %v5369_v35, %s14127_s24  ;;  %v12459_v37 = vpop.f32.mrb[59].mxu1 }
0x172c   :  { %5687 = vrot.lane.b32.xlu0 %v5445_v36, %s14128_s26  ;;  %v12464_v38 = vpop.f32.mrb[47].mxu0 }
0x172e   :  { %v5521_v39 = vpop.f32.mrb[60].mxu1 }
0x172f   :  { %v5597_v40 = vpop.f32.mrb[48].mxu0  ;;  %5689 = vrot.lane.b32.xlu1 %v5521_v39, %s14128_s26  ;;  %v12469_v41 = vpop.f32.mrb[61].mxu1  ;;  %v524_v39 = vld [vmem:[%s15908_s7] sm:$0xff] }
0x1730   :  { %5695 = vrot.lane.b32.xlu0 %v5597_v40, %s14129_s4  ;;  %v12474_v42 = vpop.f32.mrb[49].mxu0  ;;  %v525_v40 = vld [vmem:[%s15908_s7 + $0x8] sm:$0xff] }
0x1731   :  { %v13246_v41 = vpack.i.bf16 %v525_v40, %v524_v39  ;;  %v15182_v42 = vld [vmem:[%s15909_s10] ss:$0 sm:$0xff]  ;;  %v13008_v47 = vpack.c.bf16 %v525_v40, %v524_v39 }
0x1732   :  { %v5673_v43 = vpop.f32.mrb[62].mxu1 }
0x1733   :  { %5697 = vrot.lane.b32.xlu1 %v5673_v43, %s14129_s4  ;;  %v12479_v44 = vpop.f32.mrb[63].mxu1  ;;  %v526_v43 = vld [vmem:[%s15908_s7 + $0x10] sm:$0xff]  ;;  %13009 = vmatprep.subr.bf16.mxu1 %v13008_v47 }
0x1734   :  { %v527_v44 = vld [vmem:[%s15908_s7 + $0x18] sm:$0xff]  ;;  %13011 = vmatpush3.bf16.msra.mxu1 %v13008_v47  ;;  %s15922_s7 = sld [smem:[#allocation59_spill]] }
0x1735   :  { %v13251_v46 = vpack.i.bf16 %v527_v44, %v526_v43 }
0x174f   :  { %4213 = vadd.xlane.f32.xlu0 %v4212_v11 }
0x1757   :  { %4216 = vadd.xlane.f32.xlu1 %v4215_v53 }
0x1799   :  { %v5680_v54 = vpop.permute.xlu0 %5679 }
0x179a   :  { %v5701_v57 = vsel %vm751_vm2, %v5141_v21, %v5680_v54  ;;  %v15156_v21 = vld [vmem:[#allocation28] ss:$0 sm:$0xff] }
0x179d   :  { %v5682_v55 = vpop.permute.xlu1 %5681 }
0x179e   :  { %v5688_v56 = vpop.permute.xlu0 %5687  ;;  %v5702_v15 = vsel %vm751_vm2, %v5217_v28, %v5682_v55 }
0x179f   :  { %v5703_v16 = vsel %vm2101_vm3, %v5701_v57, %v5688_v56 }
0x17a1   :  { %v5690_v58 = vpop.permute.xlu1 %5689 }
0x17a2   :  { %v5696_v59 = vpop.permute.xlu0 %5695  ;;  %v5704_v49 = vsel %vm2101_vm3, %v5702_v15, %v5690_v58 }
0x17a3   :  { %v5705_v45 = vsel %vm2104_vm4, %v5703_v16, %v5696_v59 }
0x17a4   :  { %12488 = vmatprep.mubr.msk.f32.mxu0 %vm666_vm0, %v5705_v45 }
0x17a5   :  { %v5698_v5 = vpop.permute.xlu1 %5697 }
0x17a6   :  { %v5706_v7 = vsel %vm2104_vm4, %v5704_v49, %v5698_v5 }
0x17a7   :  { %12489 = vmatmul.mubr.msk.f32.vlgmr.msra.gmra.mrb[50].mxu0 %vm666_vm0, %v5706_v7 }
0x17dc   :  { %v4214_v60 = vpop.xlane.xlu0 %4213 }
0x17dd   :  { %v4218_v61 = vmul.f32 0.03125, %v4214_v60 }
0x17df   :  { %v4220_v25 = vsub.f32 %v4210_v48, %v4218_v61  ;;  %v13012_v48 = vpack.c.bf16 %v527_v44, %v526_v43 }
0x17e1   :  { %v4222_v23 = vmul.f32 %v4220_v25, %v4220_v25  ;;  %13013 = vmatprep.subr.bf16.mxu1 %v13012_v48 }
0x17e2   :  { %13015 = vmatpush3.bf16.msra.mxu1 %v13012_v48 }
0x17e3   :  { %v4224_v62 = vsel %vm666_vm0, %v4222_v23, 0.0 }
0x17e4   :  { %4225 = vadd.xlane.f32.xlu1 %v4224_v62  ;;  %v4217_v63 = vpop.xlane.xlu1 %4216 }
0x17e5   :  { %v4219_v4 = vmul.f32 0.03125, %v4217_v63 }
0x17e7   :  { %v4221_v14 = vsub.f32 %v4211_v13, %v4219_v4 }
0x17e9   :  { %v4223_v28 = vmul.f32 %v4221_v14, %v4221_v14 }
0x1871   :  { %v4226_v0 = vpop.xlane.xlu1 %4225 }
0x1872   :  { %v4230_v1 = vmul.f32 0.03125, %v4226_v0 }
0x1874   :  { %v4232_v2 = vadd.f32 1e-05, %v4230_v1 }
0x1876   :  { %13394 = vrsqrt.f32 %v4232_v2 }
0x187a   :  { %v12490_v19 = vpop.f32.mrb[50].mxu0 }
0x187b   :  { %v5785_v20 = vpop.f32.mrb[51].mxu0  ;;  %v5791_v6 = vadd.f32 %v12490_v19, %v11640_v3  ;;  %v11643_v19 = vld [vmem:[%s15910_s12] ss:$0 sm:$0xff] }
0x187c   :  { %v5786_v9 = vadd.f32 %v11640_v3, %v5785_v20 }
0x187d   :  { %v5795_v17 = vadd.f32 %v5791_v6, %v14966_v52  ;;  %v4227_v52 = vsel %vm666_vm0, %v4223_v28, 0.0  ;;  %v11644_v6 = vld [vmem:[%s15911_s9] ss:$0 sm:$0xff] }
0x187e   :  { %v5794_v10 = vadd.f32 %v5786_v9, %v14959_v51 }
0x187f   :  { %v5799_v27 = vsel %vm666_vm0, %v5795_v17, 0.0 }
0x1880   :  { %v13395_v12 = vpop.eup %13394  ;;  %v5796_v18 = vsel %vm666_vm0, %v5794_v10, 0.0 }
0x1881   :  { %5797 = vadd.xlane.f32.xlu0 %v5796_v18  ;;  %v4236_v22 = vmul.f32 %v13395_v12, %v4220_v25 }
0x1883   :  { %v4244_v26 = vmul.f32 %v15156_v21, %v4236_v22 }
0x1885   :  { %5800 = vadd.xlane.f32.xlu0 %v5799_v27  ;;  %v15163_v51 = vadd.f32 %v15158_v24, %v4244_v26 }
0x1887   :  { %12510 = vmatprep.mubr.msk.f32.mxu0 %vm666_vm0, %v15163_v51 }
0x1889   :  { %4228 = vadd.xlane.f32.xlu0 %v4227_v52 }
0x190e   :  { %v5798_v29 = vpop.xlane.xlu0 %5797 }
0x190f   :  { %v5802_v30 = vmul.f32 0.03125, %v5798_v29 }
0x1911   :  { %v15168_v31 = vsub.f32 %v5794_v10, %v5802_v30 }
0x1912   :  { %v5801_v32 = vpop.xlane.xlu0 %5800 }
0x1913   :  { %v5803_v33 = vmul.f32 0.03125, %v5801_v32  ;;  %v5806_v34 = vmul.f32 %v15168_v31, %v15168_v31 }
0x1915   :  { %v15172_v35 = vsub.f32 %v5795_v17, %v5803_v33  ;;  %v5808_v36 = vsel %vm666_vm0, %v5806_v34, 0.0 }
0x1916   :  { %5809 = vadd.xlane.f32.xlu1 %v5808_v36  ;;  %v4229_v50 = vpop.xlane.xlu0 %4228 }
0x1917   :  { %v5807_v37 = vmul.f32 %v15172_v35, %v15172_v35  ;;  %v4231_v11 = vmul.f32 0.03125, %v4229_v50 }
0x1919   :  { %v5811_v38 = vsel %vm666_vm0, %v5807_v37, 0.0  ;;  %v4233_v13 = vadd.f32 1e-05, %v4231_v11 }
0x191a   :  { %5812 = vadd.xlane.f32.xlu0 %v5811_v38 }
0x191b   :  { %13396 = vrsqrt.f32 %v4233_v13 }
0x1925   :  { %v13397_v56 = vpop.eup %13396 }
0x1926   :  { %v4237_v15 = vmul.f32 %v13397_v56, %v4221_v14 }
0x1927   :  { %13247 = vrot.lane.b32.xlu1 %v13246_v41, %s14117_s6 }
0x1928   :  { %v4245_v62 = vmul.f32 %v15156_v21, %v4237_v15 }
0x192a   :  { %v15193_v3 = vadd.f32 %v15158_v24, %v4245_v62 }
0x192b   :  { %5941 = vrot.lane.b32.xlu1 %v15182_v42, %s14117_s6 }
0x192f   :  { %13257 = vrot.lane.b32.xlu1 %v13246_v41, %s14123_s5 }
0x1930   :  { %13252 = vrot.lane.b32.xlu0 %v13251_v46, %s14117_s6 }
0x1934   :  { %13262 = vrot.lane.b32.xlu0 %v13251_v46, %s14123_s5 }
0x19a3   :  { %v5810_v53 = vpop.xlane.xlu1 %5809 }
0x19a4   :  { %v5814_v54 = vmul.f32 0.03125, %v5810_v53 }
0x19a6   :  { %v5816_v55 = vadd.f32 1e-05, %v5814_v54 }
0x19a7   :  { %v5813_v57 = vpop.xlane.xlu0 %5812  ;;  %v13248_v58 = vpop.permute.xlu1 %13247 }
0x19a8   :  { %13398 = vrsqrt.f32 %v5816_v55  ;;  %v5815_v16 = vmul.f32 0.03125, %v5813_v57  ;;  %v13250_v59 = vunpack.i.h.bf16 %v13248_v58  ;;  %v13249_v45 = vunpack.i.l.bf16 %v13248_v58 }
0x19aa   :  { %v5817_v49 = vadd.f32 1e-05, %v5815_v16  ;;  %v13016_v5 = vpack.c.bf16 %v13250_v59, %v13249_v45 }
0x19ab   :  { %v13253_v7 = vpop.permute.xlu0 %13252  ;;  %v5942_v60 = vpop.permute.xlu1 %5941 }
0x19ac   :  { %13400 = vrsqrt.f32 %v5817_v49  ;;  %v13255_v61 = vunpack.i.h.bf16 %v13253_v7  ;;  %v13254_v25 = vunpack.i.l.bf16 %v13253_v7  ;;  %13017 = vmatprep.subr.bf16.mxu0 %v13016_v5 }
0x19ad   :  { %13019 = vmatpush3.bf16.msra.mxu0 %v13016_v5 }
0x19ae   :  { %v13020_v23 = vpack.c.bf16 %v13255_v61, %v13254_v25 }
0x19af   :  { %v13258_v63 = vpop.permute.xlu1 %13257  ;;  %v13263_v9 = vpop.permute.xlu0 %13262 }
0x19b0   :  { %13021 = vmatprep.subr.bf16.mxu0 %v13020_v23  ;;  %v13260_v0 = vunpack.i.h.bf16 %v13258_v63  ;;  %v13259_v1 = vunpack.i.l.bf16 %v13258_v63  ;;  %v13265_v18 = vunpack.i.h.bf16 %v13263_v9  ;;  %v13264_v21 = vunpack.i.l.bf16 %v13263_v9 }
0x19b1   :  { %13023 = vmatpush3.bf16.msra.mxu0 %v13020_v23 }
0x19b2   :  { %v13399_v2 = vpop.eup %13398  ;;  %v13024_v20 = vpack.c.bf16 %v13260_v0, %v13259_v1  ;;  %12524 = vmatprep.subr.mxu0 %v14114_v8  ;;  %v13028_v26 = vpack.c.bf16 %v13265_v18, %v13264_v21 }
0x19b3   :  { %v5820_v4 = vmul.f32 %v13399_v2, %v15168_v31 }
0x19b4   :  { %12511 = vmatmul.mubr.msk.f32.vlgmr.msra.gmra.mrb[52].mxu0 %vm666_vm0, %v15193_v3  ;;  %13025 = vmatprep.subr.bf16.mxu1 %v13024_v20 }
0x19b5   :  { %v5828_v10 = vmul.f32 %v11643_v19, %v5820_v4  ;;  %12526 = vmatprep.mubr.msk.f32.mxu0 %vm14115_vm1, %v14114_v8 }
0x19b6   :  { %v13401_v12 = vpop.eup %13400 }
0x19b7   :  { %v5821_v14 = vmul.f32 %v13401_v12, %v15172_v35  ;;  %v15204_v17 = vadd.f32 %v11644_v6, %v5828_v10 }
0x19b9   :  { %v5829_v22 = vmul.f32 %v11643_v19, %v5821_v14  ;;  %12499 = vmatprep.mubr.msk.f32.mxu1 %vm666_vm0, %v15204_v17 }
0x19bb   :  { %v15208_v24 = vadd.f32 %v11644_v6, %v5829_v22 }
0x19bd   :  { %12500 = vmatmul.mubr.msk.f32.vlgmr.msra.gmra.mrb[64].mxu1 %vm666_vm0, %v15208_v24 }
0x19be   :  { %13027 = vmatpush3.bf16.msra.mxu1 %v13024_v20  ;;  %12521 = vmatprep.mubr.msk.f32.mxu1 %vm666_vm0, %v15163_v51 }
0x19bf   :  { %13029 = vmatprep.subr.bf16.mxu1 %v13028_v26 }
0x19c2   :  { %13031 = vmatpush3.bf16.msra.mxu1 %v13028_v26 }
0x19c3   :  { %12529 = vmatprep.subr.mxu1 %v14114_v8 }
0x19c5   :  { %12522 = vmatmul.mubr.msk.f32.vlgmr.msra.gmra.mrb[66].mxu1 %vm666_vm0, %v15193_v3 }
0x19c6   :  { %12531 = vmatprep.mubr.msk.f32.mxu1 %vm14115_vm1, %v14114_v8 }
0x1a87   :  { %v12512_v27 = vpop.f32.mrb[52].mxu0 }
0x1a88   :  { %v6022_v28 = vadd.f32 %v12512_v27, %v5942_v60  ;;  %v6016_v52 = vpop.f32.mrb[53].mxu0 }
0x1a89   :  { %v6017_v29 = vadd.f32 %v6016_v52, %v5942_v60 }
0x1a8a   :  { %6349 = vrot.lane.b32.xlu0 %v6022_v28, %s14116_s11  ;;  %12530 = vmatpush3.xpose.msk.msra.mxu1 %vm751_vm2, %v6022_v28 }
0x1a8b   :  { %6271 = vrot.lane.b32.xlu1 %v6017_v29, %s14116_s11  ;;  %12525 = vmatpush3.xpose.msk.msra.mxu0 %vm751_vm2, %v6017_v29 }
0x1a8c   :  { %12539 = vmatprep.subr.mxu1 %v14114_v8  ;;  %12534 = vmatprep.subr.mxu0 %v14114_v8 }
0x1a8e   :  { %6507 = vrot.lane.b32.xlu0 %v6022_v28, %s14120_s18 }
0x1a8f   :  { %6429 = vrot.lane.b32.xlu1 %v6017_v29, %s14120_s18 }
0x1a90   :  { %v12501_v30 = vpop.f32.mrb[64].mxu1 }
0x1a91   :  { %v5922_v31 = vadd.f32 %v12501_v30, %v15182_v42  ;;  %v5916_v32 = vpop.f32.mrb[65].mxu1 }
0x1a92   :  { %v5917_v33 = vadd.f32 %v15182_v42, %v5916_v32  ;;  %6665 = vrot.lane.b32.xlu0 %v6022_v28, %s14122_s29 }
0x1a93   :  { %6587 = vrot.lane.b32.xlu1 %v6017_v29, %s14122_s29  ;;  %12532 = vmatmul.mubr.msk.f32.vlgmr.msra.gmra.mrb[68].mxu1 %vm751_vm2, %v5922_v31 }
0x1a94   :  { %12527 = vmatmul.mubr.msk.f32.vlgmr.msra.gmra.mrb[54].mxu0 %vm751_vm2, %v5917_v33  ;;  %12541 = vmatprep.mubr.msk.f32.mxu1 %vm14115_vm1, %v14114_v8 }
0x1a95   :  { %12536 = vmatprep.mubr.msk.f32.mxu0 %vm14115_vm1, %v14114_v8 }
0x1a96   :  { %6347 = vrot.lane.b32.xlu0 %v5922_v31, %s14116_s11 }
0x1a97   :  { %6269 = vrot.lane.b32.xlu1 %v5917_v33, %s14116_s11 }
0x1a98   :  { %v15239_v34 = vpop.f32.mrb[66].mxu1 }
0x1a99   :  { %v15241_v35 = vpop.f32.mrb[67].mxu1 }
0x1a9a   :  { %6505 = vrot.lane.b32.xlu0 %v5922_v31, %s14120_s18 }
0x1a9b   :  { %6427 = vrot.lane.b32.xlu1 %v5917_v33, %s14120_s18 }
0x1a9e   :  { %6663 = vrot.lane.b32.xlu0 %v5922_v31, %s14122_s29 }
0x1a9f   :  { %6585 = vrot.lane.b32.xlu1 %v5917_v33, %s14122_s29 }
0x1afc   :  { %v6350_v36 = vpop.permute.xlu0 %6349 }
0x1afd   :  { %v6272_v37 = vpop.permute.xlu1 %6271  ;;  %12540 = vmatpush3.xpose.msk.msra.mxu1 %vm751_vm2, %v6350_v36 }
0x1afe   :  { %12535 = vmatpush3.xpose.msk.msra.mxu0 %vm751_vm2, %v6272_v37  ;;  %12549 = vmatprep.subr.mxu1 %v14114_v8 }
0x1aff   :  { %12544 = vmatprep.subr.mxu0 %v14114_v8 }
0x1b00   :  { %v6508_v38 = vpop.permute.xlu0 %6507 }
0x1b01   :  { %v6430_v39 = vpop.permute.xlu1 %6429 }
0x1b04   :  { %v6666_v40 = vpop.permute.xlu0 %6665 }
0x1b05   :  { %v6588_v41 = vpop.permute.xlu1 %6587 }
0x1b08   :  { %v6348_v43 = vpop.permute.xlu0 %6347 }
0x1b09   :  { %12542 = vmatmul.mubr.msk.f32.vlgmr.msra.gmra.mrb[70].mxu1 %vm751_vm2, %v6348_v43  ;;  %v6270_v44 = vpop.permute.xlu1 %6269 }
0x1b0a   :  { %12550 = vmatpush3.xpose.msk.msra.mxu1 %vm751_vm2, %v6508_v38  ;;  %12537 = vmatmul.mubr.msk.f32.vlgmr.msra.gmra.mrb[56].mxu0 %vm751_vm2, %v6270_v44 }
0x1b0b   :  { %12545 = vmatpush3.xpose.msk.msra.mxu0 %vm751_vm2, %v6430_v39  ;;  %12551 = vmatprep.mubr.msk.f32.mxu1 %vm14115_vm1, %v14114_v8 }
0x1b0c   :  { %v6506_v46 = vpop.permute.xlu0 %6505  ;;  %12559 = vmatprep.subr.mxu1 %v14114_v8  ;;  %12546 = vmatprep.mubr.msk.f32.mxu0 %vm14115_vm1, %v14114_v8 }
0x1b0d   :  { %12552 = vmatmul.mubr.msk.f32.vlgmr.msra.gmra.mrb[72].mxu1 %vm751_vm2, %v6506_v46  ;;  %v6428_v47 = vpop.permute.xlu1 %6427  ;;  %12554 = vmatprep.subr.mxu0 %v14114_v8 }
0x1b0e   :  { %12560 = vmatpush3.xpose.msk.msra.mxu1 %vm751_vm2, %v6666_v40  ;;  %12547 = vmatmul.mubr.msk.f32.vlgmr.msra.gmra.mrb[58].mxu0 %vm751_vm2, %v6428_v47 }
0x1b0f   :  { %12555 = vmatpush3.xpose.msk.msra.mxu0 %vm751_vm2, %v6588_v41  ;;  %12561 = vmatprep.mubr.msk.f32.mxu1 %vm14115_vm1, %v14114_v8 }
0x1b10   :  { %v6664_v48 = vpop.permute.xlu0 %6663  ;;  %12556 = vmatprep.mubr.msk.f32.mxu0 %vm14115_vm1, %v14114_v8  ;;  %12564 = vmatprep.subr.mxu0 %v14114_v8 }
0x1b11   :  { %12562 = vmatmul.mubr.msk.f32.vlgmr.msra.gmra.mrb[74].mxu1 %vm751_vm2, %v6664_v48  ;;  %v6586_v50 = vpop.permute.xlu1 %6585  ;;  %12569 = vmatprep.subr.mxu1 %v14114_v8 }
0x1b12   :  { %12557 = vmatmul.mubr.msk.f32.vlgmr.msra.gmra.mrb[60].mxu0 %vm751_vm2, %v6586_v50  ;;  %12571 = vmatprep.mubr.msk.f32.mxu1 %vm14115_vm1, %v14114_v8 }
0x1b13   :  { %12566 = vmatprep.mubr.msk.f32.mxu0 %vm14115_vm1, %v14114_v8 }
0x1b66   :  { %v6263_v11 = vpop.f32.mrb[68].mxu1 }
0x1b67   :  { %v6268_v13 = vmul.f32 0.35355338, %v6263_v11  ;;  %v6187_v53 = vpop.f32.mrb[54].mxu0  ;;  %v12533_v54 = vpop.f32.mrb[69].mxu1 }
0x1b68   :  { %v15277_v55 = vmul.f32 0.35355338, %v6187_v53  ;;  %v12528_v56 = vpop.f32.mrb[55].mxu0 }
0x1b69   :  { %v6755_v57 = vsel %vm751_vm2, %v6268_v13, -inf }
0x1b6a   :  { %6756 = vmax.xlane.f32.xlu0 %v6755_v57  ;;  %v6743_v58 = vsel %vm751_vm2, %v15277_v55, -inf }
0x1b6b   :  { %6744 = vmax.xlane.f32.xlu1 %v6743_v58 }
0x1bdc   :  { %v6421_v16 = vpop.f32.mrb[70].mxu1 }
0x1bdd   :  { %v6426_v59 = vmul.f32 0.35355338, %v6421_v16  ;;  %v6343_v45 = vpop.f32.mrb[56].mxu0  ;;  %v12543_v15 = vpop.f32.mrb[71].mxu1 }
0x1bde   :  { %v6425_v49 = vmul.f32 0.35355338, %v6343_v45  ;;  %v12538_v5 = vpop.f32.mrb[57].mxu0 }
0x1bdf   :  { %v6758_v7 = vsel %vm751_vm2, %v6426_v59, -inf }
0x1be0   :  { %v6579_v60 = vpop.f32.mrb[72].mxu1  ;;  %6759 = vmax.xlane.f32.xlu1 %v6758_v7  ;;  %v6746_v61 = vsel %vm751_vm2, %v6425_v49, -inf }
0x1be1   :  { %v6584_v25 = vmul.f32 0.35355338, %v6579_v60  ;;  %v12553_v23 = vpop.f32.mrb[73].mxu1  ;;  %6747 = vmax.xlane.f32.xlu0 %v6746_v61  ;;  %v6501_v62 = vpop.f32.mrb[58].mxu0 }
0x1be2   :  { %v6583_v63 = vmul.f32 0.35355338, %v6501_v62  ;;  %v12548_v0 = vpop.f32.mrb[59].mxu0 }
0x1be3   :  { %v6761_v1 = vsel %vm751_vm2, %v6584_v25, -inf }
0x1be4   :  { %v6737_v2 = vpop.f32.mrb[74].mxu1  ;;  %6762 = vmax.xlane.f32.xlu1 %v6761_v1  ;;  %v6749_v19 = vsel %vm751_vm2, %v6583_v63, -inf }
0x1be5   :  { %v6742_v20 = vmul.f32 0.35355338, %v6737_v2  ;;  %v12563_v4 = vpop.f32.mrb[75].mxu1  ;;  %6750 = vmax.xlane.f32.xlu0 %v6749_v19  ;;  %v6659_v6 = vpop.f32.mrb[60].mxu0 }
0x1be6   :  { %v6741_v9 = vmul.f32 0.35355338, %v6659_v6  ;;  %v12558_v10 = vpop.f32.mrb[61].mxu0 }
0x1be7   :  { %v6764_v12 = vsel %vm751_vm2, %v6742_v20, -inf }
0x1be8   :  { %6765 = vmax.xlane.f32.xlu1 %v6764_v12  ;;  %v6752_v14 = vsel %vm751_vm2, %v6741_v9, -inf }
0x1be9   :  { %6753 = vmax.xlane.f32.xlu0 %v6752_v14 }
0x1bf7   :  { %v6757_v18 = vpop.xlane.xlu0 %6756 }
0x1bf8   :  { %v6771_v32 = vsub.f32 %v6268_v13, %v6757_v18  ;;  %v6745_v33 = vpop.xlane.xlu1 %6744 }
0x1bff   :  { %6037 = vrot.lane.b32.xlu0 %v15182_v42, %s14123_s5 }
0x1c6d   :  { %v6760_v36 = vpop.xlane.xlu1 %6759 }
0x1c6e   :  { %v6748_v21 = vpop.xlane.xlu0 %6747  ;;  %v6772_v38 = vsub.f32 %v6426_v59, %v6760_v36 }
0x1c6f   :  { %v6768_v40 = vsub.f32 %v6425_v49, %v6748_v21 }
0x1c70   :  { %v6785_v39 = vmul.f32 1.442695, %v6772_v38 }
0x1c71   :  { %v6763_v41 = vpop.xlane.xlu1 %6762  ;;  %v6777_v43 = vmul.f32 1.442695, %v6768_v40  ;;  %v521_v40 = vld [vmem:[%s15912_s20 + $0x8] sm:$0xff] }
0x1c72   :  { %v6751_v22 = vpop.xlane.xlu0 %6750  ;;  %v6773_v44 = vsub.f32 %v6584_v25, %v6763_v41 }
0x1c73   :  { %v6769_v48 = vsub.f32 %v6583_v63, %v6751_v22 }
0x1c74   :  { %v6787_v47 = vmul.f32 1.442695, %v6773_v44 }
0x1c75   :  { %v6766_v50 = vpop.xlane.xlu1 %6765  ;;  %v6779_v53 = vmul.f32 1.442695, %v6769_v48 }
0x1c76   :  { %v6754_v26 = vpop.xlane.xlu0 %6753  ;;  %v6774_v54 = vsub.f32 %v6742_v20, %v6766_v50 }
0x1c77   :  { %v6770_v27 = vsub.f32 %v6741_v9, %v6754_v26 }
0x1c78   :  { %v6789_v57 = vmul.f32 1.442695, %v6774_v54 }
0x1c79   :  { %v6781_v28 = vmul.f32 1.442695, %v6770_v27 }
0x1c7a   :  { %v6038_v52 = vpop.permute.xlu0 %6037 }
0x1c7b   :  { %13402 = vpow2.f32 %v6781_v28  ;;  %v6107_v29 = vadd.f32 %v15241_v35, %v6038_v52  ;;  %v6112_v30 = vadd.f32 %v15239_v34, %v6038_v52  ;;  %v6783_v34 = vmul.f32 1.442695, %v6771_v32 }
0x1c7c   :  { %v6767_v35 = vsub.f32 %v15277_v55, %v6745_v33 }
0x1c7d   :  { %12570 = vmatpush3.msra.mxu1 %v6112_v30  ;;  %6978 = vrot.lane.b32.xlu1 %v6107_v29, %s14116_s11  ;;  %13404 = vpow2.f32 %v6783_v34 }
0x1c7e   :  { %12565 = vmatpush3.msra.mxu0 %v6107_v29  ;;  %12579 = vmatprep.subr.mxu1 %v14114_v8  ;;  %v6775_v37 = vmul.f32 1.442695, %v6767_v35 }
0x1c7f   :  { %12574 = vmatprep.subr.mxu0 %v14114_v8 }
0x1c80   :  { %13406 = vpow2.f32 %v6775_v37 }
0x1c81   :  { %7055 = vrot.lane.b32.xlu1 %v6112_v30, %s14116_s11  ;;  %13408 = vpow2.f32 %v6785_v39  ;;  %v520_v39 = vld [vmem:[%s15912_s20] sm:$0xff] }
0x1c82   :  { %13410 = vpow2.f32 %v6777_v43  ;;  %v13032_v43 = vpack.c.bf16 %v521_v40, %v520_v39  ;;  %v540_v40 = vld [vmem:[%s15915_s3 + $0x20] sm:$0xff] }
0x1c83   :  { %13412 = vpow2.f32 %v6787_v47  ;;  %v523_v47 = vld [vmem:[%s15912_s20 + $0x18] sm:$0xff] }
0x1c84   :  { %13414 = vpow2.f32 %v6779_v53 }
0x1c85   :  { %v15296_v42 = vpop.eup %13402  ;;  %7131 = vrot.lane.b32.xlu1 %v6107_v29, %s14120_s18  ;;  %13416 = vpow2.f32 %v6789_v57 }
0x1c86   :  { %v6800_v31 = vsel %vm751_vm2, %v15296_v42, 0.0 }
0x1c87   :  { %6801 = vadd.xlane.f32.xlu0 %v6800_v31  ;;  %v13405_v46 = vpop.eup %13404 }
0x1c88   :  { %v6803_v11 = vsel %vm751_vm2, %v13405_v46, 0.0 }
0x1c8a   :  { %v13407_v13 = vpop.eup %13406 }
0x1c8b   :  { %v6791_v55 = vsel %vm751_vm2, %v13407_v13, 0.0  ;;  %v13409_v56 = vpop.eup %13408 }
0x1c8c   :  { %v6806_v58 = vsel %vm751_vm2, %v13409_v56, 0.0  ;;  %v13411_v16 = vpop.eup %13410 }
0x1c8d   :  { %v6794_v59 = vsel %vm751_vm2, %v13411_v16, 0.0  ;;  %v13413_v45 = vpop.eup %13412 }
0x1c8e   :  { %v6809_v15 = vsel %vm751_vm2, %v13413_v45, 0.0  ;;  %v13415_v49 = vpop.eup %13414 }
0x1c8f   :  { %v6797_v5 = vsel %vm751_vm2, %v13415_v49, 0.0  ;;  %v15309_v7 = vpop.eup %13416 }
0x1c90   :  { %v6812_v60 = vsel %vm751_vm2, %v15309_v7, 0.0 }
0x1c9d   :  { %7207 = vrot.lane.b32.xlu0 %v6112_v30, %s14120_s18 }
0x1ca9   :  { %6804 = vadd.xlane.f32.xlu1 %v6803_v11 }
0x1cad   :  { %6792 = vadd.xlane.f32.xlu1 %v6791_v55 }
0x1cb1   :  { %6807 = vadd.xlane.f32.xlu1 %v6806_v58 }
0x1cb5   :  { %6795 = vadd.xlane.f32.xlu1 %v6794_v59 }
0x1cb9   :  { %6810 = vadd.xlane.f32.xlu1 %v6809_v15 }
0x1cbd   :  { %6798 = vadd.xlane.f32.xlu1 %v6797_v5 }
0x1cc1   :  { %6813 = vadd.xlane.f32.xlu1 %v6812_v60 }
0x1cd2   :  { %7283 = vrot.lane.b32.xlu1 %v6107_v29, %s14122_s29 }
0x1cd6   :  { %7359 = vrot.lane.b32.xlu1 %v6112_v30, %s14122_s29 }
0x1cef   :  { %v6979_v61 = vpop.permute.xlu1 %6978 }
0x1cf3   :  { %v7056_v25 = vpop.permute.xlu1 %7055 }
0x1cf7   :  { %v7132_v23 = vpop.permute.xlu1 %7131 }
0x1d14   :  { %v6802_v4 = vpop.xlane.xlu0 %6801 }
0x1d18   :  { %v7208_v18 = vpop.permute.xlu0 %7207 }
0x1d36   :  { %v6805_v62 = vpop.xlane.xlu1 %6804 }
0x1d37   :  { %13418 = vrcp.f32 %v6805_v62 }
0x1d3a   :  { %v6793_v63 = vpop.xlane.xlu1 %6792 }
0x1d3b   :  { %13420 = vrcp.f32 %v6793_v63 }
0x1d3e   :  { %v6808_v0 = vpop.xlane.xlu1 %6807 }
0x1d3f   :  { %13422 = vrcp.f32 %v6808_v0  ;;  %v11676_v0 = vld [vmem:[%s15913_s28] ss:$0 sm:$0xff] }
0x1d41   :  { %v13419_v1 = vpop.eup %13418 }
0x1d42   :  { %v6796_v2 = vpop.xlane.xlu1 %6795  ;;  %v6827_v19 = vmul.f32 %v13419_v1, %v13405_v46  ;;  %v522_v46 = vld [vmem:[%s15912_s20 + $0x10] sm:$0xff] }
0x1d43   :  { %13424 = vrcp.f32 %v6796_v2  ;;  %v13036_v48 = vpack.c.bf16 %v523_v47, %v522_v46 }
0x1d44   :  { %12572 = vmatmul.mubr.msk.f32.vlgmr.msra.gmra.mrb[76].mxu1 %vm751_vm2, %v6827_v19 }
0x1d45   :  { %v13421_v20 = vpop.eup %13420  ;;  %12580 = vmatpush3.msra.mxu1 %v7056_v25  ;;  %12581 = vmatprep.mubr.msk.f32.mxu1 %vm14115_vm1, %v14114_v8 }
0x1d46   :  { %v6811_v6 = vpop.xlane.xlu1 %6810  ;;  %v6823_v9 = vmul.f32 %v13421_v20, %v13407_v13  ;;  %12589 = vmatprep.subr.mxu1 %v14114_v8 }
0x1d47   :  { %13426 = vrcp.f32 %v6811_v6 }
0x1d48   :  { %12567 = vmatmul.mubr.msk.f32.vlgmr.msra.gmra.mrb[62].mxu0 %vm751_vm2, %v6823_v9 }
0x1d49   :  { %v13423_v10 = vpop.eup %13422  ;;  %12575 = vmatpush3.msra.mxu0 %v6979_v61  ;;  %12576 = vmatprep.mubr.msk.f32.mxu0 %vm14115_vm1, %v14114_v8 }
0x1d4a   :  { %v6799_v12 = vpop.xlane.xlu1 %6798  ;;  %v6828_v14 = vmul.f32 %v13423_v10, %v13409_v56  ;;  %12584 = vmatprep.subr.mxu0 %v14114_v8 }
0x1d4b   :  { %13428 = vrcp.f32 %v6799_v12 }
0x1d4c   :  { %12582 = vmatmul.mubr.msk.f32.vlgmr.msra.gmra.mrb[78].mxu1 %vm751_vm2, %v6828_v14  ;;  %13430 = vrcp.f32 %v6802_v4 }
0x1d4d   :  { %v13425_v21 = vpop.eup %13424  ;;  %12590 = vmatpush3.msra.mxu1 %v7208_v18  ;;  %12591 = vmatprep.mubr.msk.f32.mxu1 %vm14115_vm1, %v14114_v8 }
0x1d4e   :  { %v6814_v22 = vpop.xlane.xlu1 %6813  ;;  %v6824_v26 = vmul.f32 %v13425_v21, %v13411_v16  ;;  %12599 = vmatprep.subr.mxu1 %v14114_v8 }
0x1d4f   :  { %13432 = vrcp.f32 %v6814_v22 }
0x1d50   :  { %12577 = vmatmul.mubr.msk.f32.vlgmr.msra.gmra.mrb[64].mxu0 %vm751_vm2, %v6824_v26 }
0x1d51   :  { %v13427_v27 = vpop.eup %13426  ;;  %12585 = vmatpush3.msra.mxu0 %v7132_v23  ;;  %12586 = vmatprep.mubr.msk.f32.mxu0 %vm14115_vm1, %v14114_v8 }
0x1d52   :  { %v7284_v28 = vpop.permute.xlu1 %7283  ;;  %v6829_v52 = vmul.f32 %v13427_v27, %v13413_v45  ;;  %12594 = vmatprep.subr.mxu0 %v14114_v8 }
0x1d54   :  { %12592 = vmatmul.mubr.msk.f32.vlgmr.msra.gmra.mrb[80].mxu1 %vm751_vm2, %v6829_v52  ;;  %v532_v52 = vld [vmem:[%s15914_s1] sm:$0xff] }
0x1d55   :  { %v13429_v29 = vpop.eup %13428  ;;  %12601 = vmatprep.mubr.msk.f32.mxu1 %vm14115_vm1, %v14114_v8 }
0x1d56   :  { %v7360_v30 = vpop.permute.xlu1 %7359  ;;  %v6825_v31 = vmul.f32 %v13429_v29, %v13415_v49  ;;  %v13431_v32 = vpop.eup %13430  ;;  %v533_v29 = vld [vmem:[%s15914_s1 + $0x8] sm:$0xff] }
0x1d57   :  { %12600 = vmatpush3.msra.mxu1 %v7360_v30  ;;  %v6826_v34 = vmul.f32 %v13431_v32, %v15296_v42  ;;  %v534_v30 = vld [vmem:[%s15914_s1 + $0x10] sm:$0xff]  ;;  %v535_v32 = vld [vmem:[%s15914_s1 + $0x18] sm:$0xff] }
0x1d58   :  { %12587 = vmatmul.mubr.msk.f32.vlgmr.msra.gmra.mrb[66].mxu0 %vm751_vm2, %v6825_v31  ;;  %v13040_v31 = vpack.c.bf16 %v533_v29, %v532_v52  ;;  %v593_v52 = vld [vmem:[%s15920_s13 + $0x8] sm:$0xff] }
0x1d59   :  { %v13433_v33 = vpop.eup %13432  ;;  %12595 = vmatpush3.msra.mxu0 %v7284_v28  ;;  %12596 = vmatprep.mubr.msk.f32.mxu0 %vm14115_vm1, %v14114_v8 }
0x1d5a   :  { %v6830_v35 = vmul.f32 %v13433_v33, %v15309_v7  ;;  %13033 = vmatprep.subr.bf16.mxu0 %v13032_v43  ;;  %v13044_v33 = vpack.c.bf16 %v535_v32, %v534_v30  ;;  %13041 = vmatprep.subr.bf16.mxu1 %v13040_v31  ;;  %v594_v30 = vld [vmem:[%s15920_s13 + $0x10] sm:$0xff] }
0x1d5c   :  { %12597 = vmatmul.mubr.msk.f32.vlgmr.msra.gmra.mrb[68].mxu0 %vm751_vm2, %v6826_v34  ;;  %12602 = vmatmul.mubr.msk.f32.vlgmr.msra.gmra.mrb[82].mxu1 %vm751_vm2, %v6830_v35  ;;  %v536_v34 = vld [vmem:[%s15915_s3] sm:$0xff]  ;;  %v537_v35 = vld [vmem:[%s15915_s3 + $0x8] sm:$0xff] }
0x1d5d   :  { %13035 = vmatpush3.bf16.msra.mxu0 %v13032_v43  ;;  %13043 = vmatpush3.bf16.msra.mxu1 %v13040_v31  ;;  %v595_v31 = vld [vmem:[%s15920_s13 + $0x18] sm:$0xff] }
0x1d5e   :  { %13037 = vmatprep.subr.bf16.mxu0 %v13036_v48  ;;  %13045 = vmatprep.subr.bf16.mxu1 %v13044_v33  ;;  %v13068_v32 = vpack.c.bf16 %v595_v31, %v594_v30 }
0x1d61   :  { %13039 = vmatpush3.bf16.msra.mxu0 %v13036_v48  ;;  %13047 = vmatpush3.bf16.msra.mxu1 %v13044_v33 }
0x1e17   :  { %v6973_v36 = vpop.f32.mrb[76].mxu1 }
0x1e18   :  { %v12573_v37 = vpop.f32.mrb[77].mxu1 }
0x1e19   :  { %v13048_v37 = vpack.c.bf16 %v537_v35, %v536_v34 }
0x1e1b   :  { %v6900_v38 = vpop.f32.mrb[62].mxu0  ;;  %13049 = vmatprep.subr.bf16.mxu0 %v13048_v37 }
0x1e1c   :  { %v12568_v41 = vpop.f32.mrb[63].mxu0 }
0x1e1d   :  { %v541_v41 = vld [vmem:[%s15915_s3 + $0x28] sm:$0xff] }
0x1e1e   :  { %v13056_v43 = vpack.c.bf16 %v541_v41, %v540_v40  ;;  %v11687_v40 = vld [vmem:[%s15921_s14] ss:$0 sm:$0xff] }
0x1e1f   :  { %v7127_v44 = vpop.f32.mrb[78].mxu1 }
0x1e20   :  { %7439 = vrot.lane.b32.xlu1 %v7127_v44, %s14127_s24  ;;  %v12583_v42 = vpop.f32.mrb[79].mxu1 }
0x1e23   :  { %v7050_v50 = vpop.f32.mrb[64].mxu0 }
0x1e24   :  { %7437 = vrot.lane.b32.xlu1 %v7050_v50, %s14127_s24  ;;  %v12578_v11 = vpop.f32.mrb[65].mxu0 }
0x1e27   :  { %v7279_v13 = vpop.f32.mrb[80].mxu1 }
0x1e28   :  { %v12593_v53 = vpop.f32.mrb[81].mxu1  ;;  %7447 = vrot.lane.b32.xlu1 %v7279_v13, %s14128_s26  ;;  %v11679_v13 = vld [vmem:[%s15916_s19] ss:$0 sm:$0xff] }
0x1e2b   :  { %v7203_v54 = vpop.f32.mrb[66].mxu0 }
0x1e2c   :  { %7445 = vrot.lane.b32.xlu1 %v7203_v54, %s14128_s26  ;;  %v12588_v55 = vpop.f32.mrb[67].mxu0  ;;  %v11680_v54 = vld [vmem:[%s15917_s2] ss:$0 sm:$0xff] }
0x1e2f   :  { %v7355_v56 = vpop.f32.mrb[68].mxu0  ;;  %v7431_v57 = vpop.f32.mrb[82].mxu1 }
0x1e30   :  { %v12603_v58 = vpop.f32.mrb[83].mxu1  ;;  %7455 = vrot.lane.b32.xlu1 %v7431_v57, %s14129_s4  ;;  %7453 = vrot.lane.b32.xlu0 %v7355_v56, %s14129_s4  ;;  %v12598_v16 = vpop.f32.mrb[69].mxu0 }
0x1e92   :  { %v7440_v59 = vpop.permute.xlu1 %7439 }
0x1e93   :  { %v7460_v5 = vsel %vm751_vm2, %v6973_v36, %v7440_v59  ;;  %v538_v36 = vld [vmem:[%s15915_s3 + $0x10] sm:$0xff] }
0x1e96   :  { %v7438_v45 = vpop.permute.xlu1 %7437 }
0x1e97   :  { %v7459_v7 = vsel %vm751_vm2, %v6900_v38, %v7438_v45  ;;  %v539_v38 = vld [vmem:[%s15915_s3 + $0x18] sm:$0xff]  ;;  %v542_v45 = vld [vmem:[%s15915_s3 + $0x30] sm:$0xff] }
0x1e98   :  { %v13052_v39 = vpack.c.bf16 %v539_v38, %v538_v36 }
0x1e9a   :  { %v7448_v15 = vpop.permute.xlu1 %7447 }
0x1e9b   :  { %v7462_v60 = vsel %vm2101_vm3, %v7460_v5, %v7448_v15  ;;  %v543_v15 = vld [vmem:[%s15915_s3 + $0x38] sm:$0xff]  ;;  %v11681_v5 = vld [vmem:[%s15918_s30] ss:$0 sm:$0xff] }
0x1e9e   :  { %v7446_v49 = vpop.permute.xlu1 %7445 }
0x1e9f   :  { %v7461_v61 = vsel %vm2101_vm3, %v7459_v7, %v7446_v49  ;;  %v13060_v49 = vpack.c.bf16 %v543_v15, %v542_v45 }
0x1ea2   :  { %v7456_v25 = vpop.permute.xlu1 %7455  ;;  %v7454_v23 = vpop.permute.xlu0 %7453 }
0x1ea3   :  { %v7464_v62 = vsel %vm2104_vm4, %v7462_v60, %v7456_v25  ;;  %v7463_v63 = vsel %vm2104_vm4, %v7461_v61, %v7454_v23 }
0x1ea4   :  { %12612 = vmatprep.mubr.msk.f32.mxu0 %vm666_vm0, %v7463_v63  ;;  %v11684_v63 = vld [vmem:[%s15919_s17] ss:$0 sm:$0xff] }
0x1ea5   :  { %12613 = vmatmul.mubr.msk.f32.vlgmr.msra.gmra.mrb[70].mxu0 %vm666_vm0, %v7464_v62 }
0x1ea6   :  { %13051 = vmatpush3.bf16.msra.mxu0 %v13048_v37 }
0x1ea7   :  { %13053 = vmatprep.subr.bf16.mxu0 %v13052_v39 }
0x1eaa   :  { %13055 = vmatpush3.bf16.msra.mxu0 %v13052_v39 }
0x1eab   :  { %13057 = vmatprep.subr.bf16.mxu0 %v13056_v43 }
0x1eae   :  { %13059 = vmatpush3.bf16.msra.mxu0 %v13056_v43 }
0x1eaf   :  { %13061 = vmatprep.subr.bf16.mxu0 %v13060_v49 }
0x1eb2   :  { %13063 = vmatpush3.bf16.msra.mxu0 %v13060_v49 }
0x1eb3   :  { %12666 = vmatprep.subr.mxu0 %v14114_v8 }
0x1f78   :  { %v12614_v1 = vpop.f32.mrb[70].mxu0 }
0x1f79   :  { %v7549_v2 = vadd.f32 %v12614_v1, %v11676_v0  ;;  %v7543_v19 = vpop.f32.mrb[71].mxu0 }
0x1f7a   :  { %v7544_v20 = vadd.f32 %v11676_v0, %v7543_v19 }
0x1f7b   :  { %v7553_v4 = vadd.f32 %v7549_v2, %v15208_v24 }
0x1f7c   :  { %v7552_v6 = vadd.f32 %v7544_v20, %v15204_v17 }
0x1f7d   :  { %v7557_v9 = vsel %vm666_vm0, %v7553_v4, 0.0 }
0x1f7e   :  { %7558 = vadd.xlane.f32.xlu1 %v7557_v9  ;;  %v7554_v10 = vsel %vm666_vm0, %v7552_v6, 0.0 }
0x1f7f   :  { %7555 = vadd.xlane.f32.xlu0 %v7554_v10 }
0x200b   :  { %v7559_v12 = vpop.xlane.xlu1 %7558 }
0x200c   :  { %v7561_v14 = vmul.f32 0.03125, %v7559_v12  ;;  %v7556_v18 = vpop.xlane.xlu0 %7555 }
0x200d   :  { %v7560_v21 = vmul.f32 0.03125, %v7556_v18 }
0x200e   :  { %v7563_v22 = vsub.f32 %v7553_v4, %v7561_v14 }
0x200f   :  { %v7562_v26 = vsub.f32 %v7552_v6, %v7560_v21 }
0x2010   :  { %v7565_v24 = vmul.f32 %v7563_v22, %v7563_v22 }
0x2011   :  { %v7564_v27 = vmul.f32 %v7562_v26, %v7562_v26 }
0x2012   :  { %v7569_v28 = vsel %vm666_vm0, %v7565_v24, 0.0 }
0x2013   :  { %v7566_v17 = vsel %vm666_vm0, %v7564_v27, 0.0 }
0x2014   :  { %7567 = vadd.xlane.f32.xlu0 %v7566_v17 }
0x2018   :  { %7570 = vadd.xlane.f32.xlu0 %v7569_v28  ;;  %v592_v28 = vld [vmem:[%s15920_s13] sm:$0xff] }
0x2019   :  { %v13064_v29 = vpack.c.bf16 %v593_v52, %v592_v28 }
0x201b   :  { %13065 = vmatprep.subr.bf16.mxu1 %v13064_v29 }
0x20a1   :  { %v7568_v44 = vpop.xlane.xlu0 %7567 }
0x20a2   :  { %v7572_v46 = vmul.f32 0.03125, %v7568_v44 }
0x20a4   :  { %v7574_v47 = vadd.f32 1e-05, %v7572_v46  ;;  %v11688_v46 = vld [vmem:[%s15922_s7] ss:$0 sm:$0xff] }
0x20a5   :  { %v7571_v42 = vpop.xlane.xlu0 %7570 }
0x20a6   :  { %13434 = vrsqrt.f32 %v7574_v47  ;;  %v7573_v48 = vmul.f32 0.03125, %v7571_v42 }
0x20a8   :  { %v7575_v50 = vadd.f32 1e-05, %v7573_v48 }
0x20aa   :  { %13436 = vrsqrt.f32 %v7575_v50 }
0x20b0   :  { %v13435_v11 = vpop.eup %13434 }
0x20b1   :  { %v7578_v53 = vmul.f32 %v13435_v11, %v7562_v26  ;;  %v11689_v11 = vld [vmem:[#allocation7] ss:$0 sm:$0xff] }
0x20b3   :  { %v7586_v55 = vmul.f32 %v11679_v13, %v7578_v53 }
0x20b4   :  { %v13437_v56 = vpop.eup %13436 }
0x20b5   :  { %v7579_v57 = vmul.f32 %v13437_v56, %v7563_v22  ;;  %v7594_v58 = vadd.f32 %v11680_v54, %v7586_v55 }
0x20b7   :  { %v7587_v16 = vmul.f32 %v11679_v13, %v7579_v57  ;;  %12623 = vmatprep.mubr.msk.f32.mxu1 %vm666_vm0, %v7594_v58 }
0x20b9   :  { %v7595_v59 = vadd.f32 %v11680_v54, %v7587_v16 }
0x20bb   :  { %12624 = vmatmul.mubr.msk.f32.vlgmr.msra.gmra.mrb[84].mxu1 %vm666_vm0, %v7595_v59 }
0x20bc   :  { %13067 = vmatpush3.bf16.msra.mxu1 %v13064_v29 }
0x20bd   :  { %13069 = vmatprep.subr.bf16.mxu1 %v13068_v32 }
0x20c0   :  { %13071 = vmatpush3.bf16.msra.mxu1 %v13068_v32 }
0x20c1   :  { %12656 = vmatprep.subr.mxu1 %v14114_v8 }
0x218e   :  { %v12625_v7 = vpop.f32.mrb[84].mxu1 }
0x218f   :  { %v7680_v60 = vadd.f32 %v12625_v7, %v11681_v5  ;;  %v7674_v61 = vpop.f32.mrb[85].mxu1 }
0x2190   :  { %v7675_v25 = vadd.f32 %v11681_v5, %v7674_v61 }
0x2191   :  { %v7684_v62 = vmax.f32 %v7680_v60, 0.0 }
0x2192   :  { %v7683_v23 = vmax.f32 %v7675_v25, 0.0 }
0x2194   :  { %12642 = vmatprep.mubr.msk.f32.mxu0 %vm2334_vm5, %v7683_v23 }
0x2195   :  { %12643 = vmatmul.mubr.msk.f32.vlgmr.msra.gmra.mrb[72].mxu0 %vm2334_vm5, %v7684_v62 }
0x2196   :  { %12668 = vmatprep.mubr.msk.f32.mxu0 %vm14115_vm1, %v14114_v8 }
0x2268   :  { %v12644_v0 = vpop.f32.mrb[72].mxu0 }
0x2269   :  { %v7769_v1 = vadd.f32 %v12644_v0, %v11684_v63  ;;  %v7763_v2 = vpop.f32.mrb[73].mxu0 }
0x226a   :  { %v7764_v19 = vadd.f32 %v11684_v63, %v7763_v2 }
0x226b   :  { %v7773_v20 = vadd.f32 %v7769_v1, %v7595_v59  ;;  %v13518_v1 = vld [vmem:[%s15905_s0] sm:$0xff] }
0x226c   :  { %v7772_v4 = vadd.f32 %v7764_v19, %v7594_v58 }
0x226d   :  { %v7777_v6 = vsel %vm666_vm0, %v7773_v20, 0.0 }
0x226e   :  { %7778 = vadd.xlane.f32.xlu1 %v7777_v6  ;;  %v7774_v9 = vsel %vm666_vm0, %v7772_v4, 0.0 }
0x226f   :  { %7775 = vadd.xlane.f32.xlu0 %v7774_v9  ;;  %v13519_v9 = vld [vmem:[%s15905_s0 + $0x8] sm:$0xff] }
0x22fb   :  { %v7779_v10 = vpop.xlane.xlu1 %7778 }
0x22fc   :  { %v7781_v12 = vmul.f32 0.03125, %v7779_v10  ;;  %v7776_v14 = vpop.xlane.xlu0 %7775 }
0x22fd   :  { %v7780_v18 = vmul.f32 0.03125, %v7776_v14 }
0x22fe   :  { %v7783_v21 = vsub.f32 %v7773_v20, %v7781_v12 }
0x22ff   :  { %v7782_v22 = vsub.f32 %v7772_v4, %v7780_v18 }
0x2300   :  { %v7785_v26 = vmul.f32 %v7783_v21, %v7783_v21 }
0x2301   :  { %v7784_v27 = vmul.f32 %v7782_v22, %v7782_v22 }
0x2302   :  { %v7789_v17 = vsel %vm666_vm0, %v7785_v26, 0.0 }
0x2303   :  { %7790 = vadd.xlane.f32.xlu1 %v7789_v17  ;;  %v7786_v24 = vsel %vm666_vm0, %v7784_v27, 0.0 }
0x2304   :  { %7787 = vadd.xlane.f32.xlu0 %v7786_v24 }
0x2390   :  { %v7791_v33 = vpop.xlane.xlu1 %7790 }
0x2391   :  { %v7793_v34 = vmul.f32 0.03125, %v7791_v33  ;;  %v7788_v35 = vpop.xlane.xlu0 %7787 }
0x2392   :  { %v7792_v36 = vmul.f32 0.03125, %v7788_v35 }
0x2393   :  { %v7795_v37 = vadd.f32 1e-05, %v7793_v34 }
0x2394   :  { %v7794_v38 = vadd.f32 1e-05, %v7792_v36 }
0x2395   :  { %13438 = vrsqrt.f32 %v7795_v37 }
0x2396   :  { %13440 = vrsqrt.f32 %v7794_v38 }
0x239f   :  { %v13439_v39 = vpop.eup %13438 }
0x23a0   :  { %v13441_v41 = vpop.eup %13440  ;;  %v7799_v43 = vmul.f32 %v13439_v39, %v7783_v21 }
0x23a1   :  { %v7798_v44 = vmul.f32 %v13441_v41, %v7782_v22 }
0x23a2   :  { %v7807_v47 = vmul.f32 %v11687_v40, %v7799_v43 }
0x23a3   :  { %v7806_v42 = vmul.f32 %v11687_v40, %v7798_v44 }
0x23a4   :  { %v15402_v50 = vadd.f32 %v11688_v46, %v7807_v47 }
0x23a5   :  { %v15400_v48 = vadd.f32 %v11688_v46, %v7806_v42 }
0x23a7   :  { %12653 = vmatprep.mubr.msk.f32.mxu1 %vm666_vm0, %v15400_v48 }
0x23a8   :  { %12654 = vmatmul.mubr.msk.f32.vlgmr.msra.gmra.mrb[86].mxu1 %vm666_vm0, %v15402_v50 }
0x23a9   :  { %12658 = vmatprep.mubr.msk.f32.mxu1 %vm14115_vm1, %v14114_v8 }
0x247b   :  { %v12655_v13 = vpop.f32.mrb[86].mxu1 }
0x247c   :  { %v15410_v53 = vadd.f32 %v12655_v13, %v11689_v11  ;;  %v7894_v54 = vpop.f32.mrb[87].mxu1 }
0x247d   :  { %v15412_v55 = vadd.f32 %v11689_v11, %v7894_v54 }
0x247e   :  { %7981 = vrot.lane.b32.xlu1 %v15410_v53, %s14117_s6 }
0x247f   :  { %7904 = vrot.lane.b32.xlu0 %v15412_v55, %s14117_s6 }
0x2482   :  { %8141 = vrot.lane.b32.xlu1 %v15410_v53, %s14119_s16 }
0x2483   :  { %8061 = vrot.lane.b32.xlu0 %v15412_v55, %s14116_s11 }
0x2486   :  { %8139 = vrot.lane.b32.xlu1 %v15410_v53, %s14116_s11 }
0x2487   :  { %8223 = vrot.lane.b32.xlu0 %v15412_v55, %s14118_s15 }
0x248a   :  { %8301 = vrot.lane.b32.xlu1 %v15410_v53, %s14118_s15  ;;  %s15923_s15 = sld [smem:[#allocation79_spill]] }
0x248b   :  { %8221 = vrot.lane.b32.xlu0 %v15412_v55, %s14120_s18 }
0x248e   :  { %8063 = vrot.lane.b32.xlu1 %v15412_v55, %s14119_s16  ;;  %s15924_s16 = sld [smem:[#allocation74_spill]] }
0x248f   :  { %8383 = vrot.lane.b32.xlu0 %v15412_v55, %s14121_s22 }
0x2492   :  { %8299 = vrot.lane.b32.xlu1 %v15410_v53, %s14120_s18 }
0x2493   :  { %8381 = vrot.lane.b32.xlu0 %v15412_v55, %s14122_s29 }
0x2496   :  { %8461 = vrot.lane.b32.xlu1 %v15410_v53, %s14121_s22  ;;  %s15925_s22 = sld [smem:[#allocation70_spill]] }
0x249a   :  { %8459 = vrot.lane.b32.xlu1 %v15410_v53, %s14122_s29 }
0x24f0   :  { %v7982_v56 = vpop.permute.xlu1 %7981 }
0x24f1   :  { %v7905_v57 = vpop.permute.xlu0 %7904 }
0x24f2   :  { %12657 = vmatpush3.xpose.msk.msra.mxu1 %vm751_vm2, %v7905_v57 }
0x24f3   :  { %12661 = vmatprep.subr.mxu1 %v14114_v8 }
0x24f4   :  { %v8142_v58 = vpop.permute.xlu1 %8141 }
0x24f5   :  { %12659 = vmatmul.mubr.msk.f32.vlgmr.msra.gmra.mrb[88].mxu1 %vm751_vm2, %v15412_v55  ;;  %v8062_v16 = vpop.permute.xlu0 %8061 }
0x24f6   :  { %12662 = vmatpush3.xpose.msk.msra.mxu1 %vm751_vm2, %v7982_v56  ;;  %12663 = vmatprep.mubr.msk.f32.mxu1 %vm14115_vm1, %v14114_v8 }
0x24f7   :  { %12671 = vmatprep.subr.mxu1 %v14114_v8 }
0x24f8   :  { %v8140_v59 = vpop.permute.xlu1 %8139 }
0x24f9   :  { %12664 = vmatmul.mubr.msk.f32.vlgmr.msra.gmra.mrb[90].mxu1 %vm751_vm2, %v15410_v53  ;;  %v8224_v45 = vpop.permute.xlu0 %8223 }
0x24fa   :  { %12672 = vmatpush3.xpose.msk.msra.mxu1 %vm751_vm2, %v8142_v58  ;;  %12673 = vmatprep.mubr.msk.f32.mxu1 %vm14115_vm1, %v14114_v8 }
0x24fb   :  { %12681 = vmatprep.subr.mxu1 %v14114_v8 }
0x24fc   :  { %v8302_v15 = vpop.permute.xlu1 %8301 }
0x24fd   :  { %12674 = vmatmul.mubr.msk.f32.vlgmr.msra.gmra.mrb[92].mxu1 %vm751_vm2, %v8140_v59  ;;  %v8222_v49 = vpop.permute.xlu0 %8221 }
0x24fe   :  { %12682 = vmatpush3.xpose.msk.msra.mxu1 %vm751_vm2, %v8302_v15  ;;  %12683 = vmatprep.mubr.msk.f32.mxu1 %vm14115_vm1, %v14114_v8 }
0x24ff   :  { %12691 = vmatprep.subr.mxu1 %v14114_v8 }
0x2500   :  { %v8064_v5 = vpop.permute.xlu1 %8063 }
0x2501   :  { %12667 = vmatpush3.xpose.msk.msra.mxu0 %vm751_vm2, %v8064_v5  ;;  %v8384_v60 = vpop.permute.xlu0 %8383 }
0x2502   :  { %12676 = vmatprep.subr.mxu0 %v14114_v8 }
0x2504   :  { %v8300_v7 = vpop.permute.xlu1 %8299  ;;  %12669 = vmatmul.mubr.msk.f32.vlgmr.msra.gmra.mrb[74].mxu0 %vm751_vm2, %v8062_v16 }
0x2505   :  { %12677 = vmatpush3.xpose.msk.msra.mxu0 %vm751_vm2, %v8224_v45  ;;  %12684 = vmatmul.mubr.msk.f32.vlgmr.msra.gmra.mrb[94].mxu1 %vm751_vm2, %v8300_v7  ;;  %v8382_v25 = vpop.permute.xlu0 %8381 }
0x2506   :  { %12678 = vmatprep.mubr.msk.f32.mxu0 %vm14115_vm1, %v14114_v8  ;;  %12686 = vmatprep.subr.mxu0 %v14114_v8 }
0x2507   :  { %12693 = vmatprep.mubr.msk.f32.mxu1 %vm14115_vm1, %v14114_v8 }
0x2508   :  { %v8462_v61 = vpop.permute.xlu1 %8461  ;;  %12679 = vmatmul.mubr.msk.f32.vlgmr.msra.gmra.mrb[76].mxu0 %vm751_vm2, %v8222_v49 }
0x2509   :  { %12687 = vmatpush3.xpose.msk.msra.mxu0 %vm751_vm2, %v8384_v60  ;;  %12692 = vmatpush3.xpose.msk.msra.mxu1 %vm751_vm2, %v8462_v61 }
0x250a   :  { %12688 = vmatprep.mubr.msk.f32.mxu0 %vm14115_vm1, %v14114_v8  ;;  %12701 = vmatprep.subr.mxu1 %v14114_v8 }
0x250b   :  { %12696 = vmatprep.subr.mxu0 %v14114_v8 }
0x250c   :  { %v8460_v23 = vpop.permute.xlu1 %8459  ;;  %12689 = vmatmul.mubr.msk.f32.vlgmr.msra.gmra.mrb[78].mxu0 %vm751_vm2, %v8382_v25 }
0x250d   :  { %12694 = vmatmul.mubr.msk.f32.vlgmr.msra.gmra.mrb[96].mxu1 %vm751_vm2, %v8460_v23  ;;  %12698 = vmatprep.mubr.msk.f32.mxu0 %vm14115_vm1, %v14114_v8 }
0x250e   :  { %12703 = vmatprep.mubr.msk.f32.mxu1 %vm14115_vm1, %v14114_v8 }
0x25c8   :  { %v7976_v62 = vpop.f32.mrb[88].mxu1 }
0x25c9   :  { %v8057_v63 = vmul.f32 0.35355338, %v7976_v62  ;;  %v12660_v0 = vpop.f32.mrb[89].mxu1 }
0x25cb   :  { %v8059_v2 = vadd.f32 %v13518_v1, %v8057_v63 }
0x25cc   :  { %v8053_v19 = vpop.f32.mrb[90].mxu1 }
0x25cd   :  { %v8058_v20 = vmul.f32 0.35355338, %v8053_v19  ;;  %v12665_v4 = vpop.f32.mrb[91].mxu1  ;;  %v8541_v6 = vsel %vm751_vm2, %v8059_v2, -inf }
0x25ce   :  { %8542 = vmax.xlane.f32.xlu0 %v8541_v6 }
0x25cf   :  { %v8060_v10 = vadd.f32 %v13519_v9, %v8058_v20 }
0x25d0   :  { %v8213_v12 = vpop.f32.mrb[92].mxu1 }
0x25d1   :  { %v12675_v14 = vpop.f32.mrb[93].mxu1  ;;  %v8553_v18 = vsel %vm751_vm2, %v8060_v10, -inf  ;;  %v8218_v22 = vmul.f32 0.35355338, %v8213_v12 }
0x25d2   :  { %8554 = vmax.xlane.f32.xlu1 %v8553_v18 }
0x25d3   :  { %v8220_v31 = vadd.f32 %v13519_v9, %v8218_v22 }
0x25d5   :  { %v8556_v41 = vsel %vm751_vm2, %v8220_v31, -inf }
0x25d7   :  { %v8135_v21 = vpop.f32.mrb[74].mxu0 }
0x25d8   :  { %v8217_v26 = vmul.f32 0.35355338, %v8135_v21  ;;  %v12670_v27 = vpop.f32.mrb[75].mxu0  ;;  %v8373_v17 = vpop.f32.mrb[94].mxu1 }
0x25d9   :  { %v8378_v24 = vmul.f32 0.35355338, %v8373_v17  ;;  %v12685_v28 = vpop.f32.mrb[95].mxu1 }
0x25da   :  { %v8219_v52 = vadd.f32 %v13518_v1, %v8217_v26 }
0x25db   :  { %v8380_v29 = vadd.f32 %v13519_v9, %v8378_v24  ;;  %v8295_v30 = vpop.f32.mrb[76].mxu0 }
0x25dc   :  { %v8377_v32 = vmul.f32 0.35355338, %v8295_v30  ;;  %v12680_v33 = vpop.f32.mrb[77].mxu0  ;;  %v8544_v34 = vsel %vm751_vm2, %v8219_v52, -inf }
0x25dd   :  { %8545 = vmax.xlane.f32.xlu0 %v8544_v34  ;;  %v8559_v35 = vsel %vm751_vm2, %v8380_v29, -inf }
0x25de   :  { %8560 = vmax.xlane.f32.xlu1 %v8559_v35  ;;  %v8379_v37 = vadd.f32 %v13518_v1, %v8377_v32 }
0x25df   :  { %v8455_v36 = vpop.f32.mrb[78].mxu0 }
0x25e0   :  { %v8537_v38 = vmul.f32 0.35355338, %v8455_v36  ;;  %v12690_v39 = vpop.f32.mrb[79].mxu0  ;;  %v8533_v40 = vpop.f32.mrb[96].mxu1  ;;  %v8547_v42 = vsel %vm751_vm2, %v8379_v37, -inf }
0x25e1   :  { %v8538_v43 = vmul.f32 0.35355338, %v8533_v40  ;;  %v12695_v44 = vpop.f32.mrb[97].mxu1  ;;  %8557 = vmax.xlane.f32.xlu0 %v8556_v41 }
0x25e2   :  { %v8539_v47 = vadd.f32 %v13518_v1, %v8537_v38 }
0x25e3   :  { %v8540_v46 = vadd.f32 %v13519_v9, %v8538_v43 }
0x25e4   :  { %v8550_v13 = vsel %vm751_vm2, %v8539_v47, -inf }
0x25e5   :  { %8548 = vmax.xlane.f32.xlu0 %v8547_v42  ;;  %v8562_v11 = vsel %vm751_vm2, %v8540_v46, -inf }
0x25e6   :  { %8563 = vmax.xlane.f32.xlu1 %v8562_v11 }
0x25e9   :  { %8551 = vmax.xlane.f32.xlu0 %v8550_v13 }
0x25f7   :  { %8705 = vrot.lane.b32.xlu1 %v15410_v53, %s14123_s5 }
0x25fb   :  { %8781 = vrot.lane.b32.xlu1 %v15412_v55, %s14124_s21 }
0x25ff   :  { %8857 = vrot.lane.b32.xlu1 %v15410_v53, %s14124_s21  ;;  %8629 = vrot.lane.b32.xlu0 %v15412_v55, %s14123_s5  ;;  %s15931_s21 = sld [smem:[#allocation71_spill]] }
0x2603   :  { %9009 = vrot.lane.b32.xlu1 %v15410_v53, %s14125_s25  ;;  %8933 = vrot.lane.b32.xlu0 %v15412_v55, %s14125_s25  ;;  %s15932_s25 = sld [smem:[#allocation75_spill]] }
0x265b   :  { %v8543_v54 = vpop.xlane.xlu0 %8542 }
0x265c   :  { %v8565_v56 = vsub.f32 %v8059_v2, %v8543_v54 }
0x265e   :  { %v8573_v57 = vmul.f32 1.442695, %v8565_v56 }
0x265f   :  { %v8555_v58 = vpop.xlane.xlu1 %8554 }
0x2660   :  { %13442 = vpow2.f32 %v8573_v57  ;;  %v8569_v16 = vsub.f32 %v8060_v10, %v8555_v58 }
0x2662   :  { %v8581_v59 = vmul.f32 1.442695, %v8569_v16 }
0x2664   :  { %13444 = vpow2.f32 %v8581_v59 }
0x266a   :  { %v15506_v45 = vpop.eup %13442  ;;  %v8546_v15 = vpop.xlane.xlu0 %8545 }
0x266b   :  { %v8566_v49 = vsub.f32 %v8219_v52, %v8546_v15  ;;  %v8561_v5 = vpop.xlane.xlu1 %8560  ;;  %v8589_v7 = vsel %vm751_vm2, %v15506_v45, 0.0 }
0x266c   :  { %8590 = vadd.xlane.f32.xlu0 %v8589_v7  ;;  %v8571_v61 = vsub.f32 %v8380_v29, %v8561_v5 }
0x266d   :  { %v8575_v60 = vmul.f32 1.442695, %v8566_v49 }
0x266e   :  { %v15510_v25 = vpop.eup %13444  ;;  %v8558_v23 = vpop.xlane.xlu0 %8557  ;;  %v8585_v0 = vmul.f32 1.442695, %v8571_v61 }
0x266f   :  { %13446 = vpow2.f32 %v8575_v60  ;;  %v8570_v62 = vsub.f32 %v8220_v31, %v8558_v23  ;;  %v8601_v63 = vsel %vm751_vm2, %v15510_v25, 0.0 }
0x2670   :  { %8602 = vadd.xlane.f32.xlu1 %v8601_v63 }
0x2671   :  { %v8583_v1 = vmul.f32 1.442695, %v8570_v62 }
0x2672   :  { %v8549_v2 = vpop.xlane.xlu0 %8548 }
0x2673   :  { %13448 = vpow2.f32 %v8583_v1  ;;  %v8567_v19 = vsub.f32 %v8379_v37, %v8549_v2  ;;  %v8564_v20 = vpop.xlane.xlu1 %8563  ;;  %v589_v1 = vld [vmem:[%s15923_s15 + $0x8] sm:$0xff] }
0x2674   :  { %v8572_v4 = vsub.f32 %v8540_v46, %v8564_v20  ;;  %13450 = vpow2.f32 %v8585_v0  ;;  %v588_v0 = vld [vmem:[%s15923_s15] sm:$0xff]  ;;  %v591_v20 = vld [vmem:[%s15923_s15 + $0x18] sm:$0xff] }
0x2675   :  { %v8577_v6 = vmul.f32 1.442695, %v8567_v19  ;;  %v13072_v2 = vpack.c.bf16 %v589_v1, %v588_v0  ;;  %v590_v19 = vld [vmem:[%s15923_s15 + $0x10] sm:$0xff] }
0x2676   :  { %v8587_v9 = vmul.f32 1.442695, %v8572_v4  ;;  %v8552_v10 = vpop.xlane.xlu0 %8551  ;;  %v13076_v4 = vpack.c.bf16 %v591_v20, %v590_v19 }
0x2677   :  { %13452 = vpow2.f32 %v8577_v6  ;;  %v8568_v12 = vsub.f32 %v8539_v47, %v8552_v10  ;;  %v8706_v14 = vpop.permute.xlu1 %8705 }
0x2678   :  { %12702 = vmatpush3.msra.mxu1 %v8706_v14  ;;  %13454 = vpow2.f32 %v8587_v9 }
0x2679   :  { %v13447_v18 = vpop.eup %13446  ;;  %v8579_v21 = vmul.f32 1.442695, %v8568_v12  ;;  %12711 = vmatprep.subr.mxu1 %v14114_v8 }
0x267a   :  { %v8630_v22 = vpop.permute.xlu0 %8629  ;;  %v8592_v26 = vsel %vm751_vm2, %v13447_v18, 0.0 }
0x267b   :  { %13456 = vpow2.f32 %v8579_v21  ;;  %8593 = vadd.xlane.f32.xlu0 %v8592_v26  ;;  %12697 = vmatpush3.msra.mxu0 %v8630_v22  ;;  %v8782_v34 = vpop.permute.xlu1 %8781 }
0x267c   :  { %12706 = vmatprep.subr.mxu0 %v14114_v8 }
0x267d   :  { %v13449_v27 = vpop.eup %13448 }
0x267e   :  { %v8604_v17 = vsel %vm751_vm2, %v13449_v27, 0.0  ;;  %v13451_v24 = vpop.eup %13450  ;;  %v8934_v36 = vpop.permute.xlu0 %8933 }
0x267f   :  { %8605 = vadd.xlane.f32.xlu1 %v8604_v17  ;;  %v8607_v52 = vsel %vm751_vm2, %v13451_v24, 0.0  ;;  %v8858_v35 = vpop.permute.xlu1 %8857 }
0x2681   :  { %v13453_v28 = vpop.eup %13452 }
0x2682   :  { %v8595_v29 = vsel %vm751_vm2, %v13453_v28, 0.0  ;;  %v15520_v30 = vpop.eup %13454 }
0x2683   :  { %8608 = vadd.xlane.f32.xlu1 %v8607_v52  ;;  %8596 = vadd.xlane.f32.xlu0 %v8595_v29  ;;  %v8610_v32 = vsel %vm751_vm2, %v15520_v30, 0.0  ;;  %v9010_v37 = vpop.permute.xlu1 %9009 }
0x2685   :  { %v15522_v31 = vpop.eup %13456 }
0x2686   :  { %v8598_v33 = vsel %vm751_vm2, %v15522_v31, 0.0 }
0x2687   :  { %8611 = vadd.xlane.f32.xlu1 %v8610_v32  ;;  %8599 = vadd.xlane.f32.xlu0 %v8598_v33 }
0x2698   :  { %9161 = vrot.lane.b32.xlu1 %v15410_v53, %s14126_s23 }
0x269d   :  { %9085 = vrot.lane.b32.xlu0 %v15412_v55, %s14126_s23  ;;  %s15933_s23 = sld [smem:[#allocation76_spill]] }
0x26f9   :  { %v8591_v38 = vpop.xlane.xlu0 %8590 }
0x26fa   :  { %13458 = vrcp.f32 %v8591_v38 }
0x26fd   :  { %v8603_v39 = vpop.xlane.xlu1 %8602 }
0x26fe   :  { %13460 = vrcp.f32 %v8603_v39  ;;  %v11716_v39 = vld [vmem:[#allocation6] ss:$0 sm:$0xff] }
0x2704   :  { %v13459_v40 = vpop.eup %13458 }
0x2705   :  { %v8621_v41 = vmul.f32 %v13459_v40, %v15506_v45 }
0x2707   :  { %12699 = vmatmul.mubr.msk.f32.vlgmr.msra.gmra.mrb[80].mxu0 %vm751_vm2, %v8621_v41 }
0x2708   :  { %v13461_v43 = vpop.eup %13460  ;;  %12707 = vmatpush3.msra.mxu0 %v8782_v34  ;;  %v8594_v44 = vpop.xlane.xlu0 %8593  ;;  %12708 = vmatprep.mubr.msk.f32.mxu0 %vm14115_vm1, %v14114_v8 }
0x2709   :  { %v8625_v53 = vmul.f32 %v13461_v43, %v15510_v25  ;;  %13462 = vrcp.f32 %v8594_v44  ;;  %12716 = vmatprep.subr.mxu0 %v14114_v8 }
0x270b   :  { %12704 = vmatmul.mubr.msk.f32.vlgmr.msra.gmra.mrb[98].mxu1 %vm751_vm2, %v8625_v53 }
0x270c   :  { %12712 = vmatpush3.msra.mxu1 %v8858_v35  ;;  %v8606_v55 = vpop.xlane.xlu1 %8605  ;;  %12713 = vmatprep.mubr.msk.f32.mxu1 %vm14115_vm1, %v14114_v8 }
0x270d   :  { %13464 = vrcp.f32 %v8606_v55  ;;  %12721 = vmatprep.subr.mxu1 %v14114_v8 }
0x2710   :  { %v8609_v46 = vpop.xlane.xlu1 %8608  ;;  %v8597_v47 = vpop.xlane.xlu0 %8596 }
0x2711   :  { %13466 = vrcp.f32 %v8609_v46 }
0x2712   :  { %13468 = vrcp.f32 %v8597_v47 }
0x2713   :  { %v13463_v42 = vpop.eup %13462 }
0x2714   :  { %v8622_v11 = vmul.f32 %v13463_v42, %v13447_v18  ;;  %v8612_v13 = vpop.xlane.xlu1 %8611  ;;  %v8600_v54 = vpop.xlane.xlu0 %8599  ;;  %v566_v42 = vld [vmem:[%s15924_s16 + $0x10] sm:$0xff] }
0x2715   :  { %13470 = vrcp.f32 %v8612_v13 }
0x2716   :  { %13472 = vrcp.f32 %v8600_v54  ;;  %12709 = vmatmul.mubr.msk.f32.vlgmr.msra.gmra.mrb[82].mxu0 %vm751_vm2, %v8622_v11  ;;  %v567_v11 = vld [vmem:[%s15924_s16 + $0x18] sm:$0xff]  ;;  %v15588_v54 = vld [vmem:[%s15925_s22] ss:$0 sm:$0xff] }
0x2717   :  { %v13465_v56 = vpop.eup %13464  ;;  %12717 = vmatpush3.msra.mxu0 %v8934_v36  ;;  %12718 = vmatprep.mubr.msk.f32.mxu0 %vm14115_vm1, %v14114_v8  ;;  %v13271_v13 = vpack.i.bf16 %v567_v11, %v566_v42 }
0x2718   :  { %v8626_v57 = vmul.f32 %v13465_v56, %v13449_v27  ;;  %12726 = vmatprep.subr.mxu0 %v14114_v8  ;;  %v9162_v15 = vpop.permute.xlu1 %9161  ;;  %v9086_v5 = vpop.permute.xlu0 %9085  ;;  %v564_v56 = vld [vmem:[%s15924_s16] sm:$0xff] }
0x271a   :  { %12714 = vmatmul.mubr.msk.f32.vlgmr.msra.gmra.mrb[100].mxu1 %vm751_vm2, %v8626_v57  ;;  %v565_v57 = vld [vmem:[%s15924_s16 + $0x8] sm:$0xff] }
0x271b   :  { %v13467_v58 = vpop.eup %13466  ;;  %12722 = vmatpush3.msra.mxu1 %v9010_v37  ;;  %12723 = vmatprep.mubr.msk.f32.mxu1 %vm14115_vm1, %v14114_v8 }
0x271c   :  { %v13469_v16 = vpop.eup %13468  ;;  %v8627_v59 = vmul.f32 %v13467_v58, %v13451_v24  ;;  %12731 = vmatprep.subr.mxu1 %v14114_v8 }
0x271d   :  { %v8623_v45 = vmul.f32 %v13469_v16, %v13453_v28 }
0x271e   :  { %12724 = vmatmul.mubr.msk.f32.vlgmr.msra.gmra.mrb[102].mxu1 %vm751_vm2, %v8627_v59 }
0x271f   :  { %v13471_v49 = vpop.eup %13470  ;;  %12719 = vmatmul.mubr.msk.f32.vlgmr.msra.gmra.mrb[84].mxu0 %vm751_vm2, %v8623_v45  ;;  %12732 = vmatpush3.msra.mxu1 %v9162_v15 }
0x2720   :  { %v13473_v7 = vpop.eup %13472  ;;  %v8628_v60 = vmul.f32 %v13471_v49, %v15520_v30  ;;  %12727 = vmatpush3.msra.mxu0 %v9086_v5  ;;  %12728 = vmatprep.mubr.msk.f32.mxu0 %vm14115_vm1, %v14114_v8 }
0x2721   :  { %v8624_v61 = vmul.f32 %v13473_v7, %v15522_v31  ;;  %12733 = vmatprep.mubr.msk.f32.mxu1 %vm14115_vm1, %v14114_v8  ;;  %13073 = vmatprep.subr.bf16.mxu0 %v13072_v2 }
0x2722   :  { %12734 = vmatmul.mubr.msk.f32.vlgmr.msra.gmra.mrb[104].mxu1 %vm751_vm2, %v8628_v60 }
0x2723   :  { %12729 = vmatmul.mubr.msk.f32.vlgmr.msra.gmra.mrb[86].mxu0 %vm751_vm2, %v8624_v61 }
0x2724   :  { %13075 = vmatpush3.bf16.msra.mxu0 %v13072_v2 }
0x2725   :  { %13077 = vmatprep.subr.bf16.mxu0 %v13076_v4 }
0x2728   :  { %13079 = vmatpush3.bf16.msra.mxu0 %v13076_v4 }
0x27da   :  { %v8701_v25 = vpop.f32.mrb[80].mxu0 }
0x27db   :  { %v12700_v23 = vpop.f32.mrb[81].mxu0 }
0x27de   :  { %v8777_v62 = vpop.f32.mrb[98].mxu1 }
0x27df   :  { %v12705_v63 = vpop.f32.mrb[99].mxu1 }
0x27e0   :  { %v13084_v63 = vpack.c.bf16 %v567_v11, %v566_v42 }
0x27e9   :  { %v8853_v6 = vpop.f32.mrb[82].mxu0 }
0x27ea   :  { %9239 = vrot.lane.b32.xlu0 %v8853_v6, %s14127_s24  ;;  %v12710_v9 = vpop.f32.mrb[83].mxu0 }
0x27ed   :  { %v8929_v10 = vpop.f32.mrb[100].mxu1 }
0x27ee   :  { %9241 = vrot.lane.b32.xlu1 %v8929_v10, %s14127_s24  ;;  %v12715_v12 = vpop.f32.mrb[101].mxu1 }
0x27f1   :  { %v9081_v14 = vpop.f32.mrb[102].mxu1 }
0x27f2   :  { %v9005_v18 = vpop.f32.mrb[84].mxu0  ;;  %9249 = vrot.lane.b32.xlu1 %v9081_v14, %s14128_s26  ;;  %v12725_v21 = vpop.f32.mrb[103].mxu1 }
0x27f3   :  { %9247 = vrot.lane.b32.xlu0 %v9005_v18, %s14128_s26  ;;  %v12720_v22 = vpop.f32.mrb[85].mxu0 }
0x27f5   :  { %v9233_v26 = vpop.f32.mrb[104].mxu1 }
0x27f6   :  { %v9157_v27 = vpop.f32.mrb[86].mxu0  ;;  %9257 = vrot.lane.b32.xlu1 %v9233_v26, %s14129_s4  ;;  %v12735_v17 = vpop.f32.mrb[105].mxu1 }
0x27f7   :  { %9255 = vrot.lane.b32.xlu0 %v9157_v27, %s14129_s4  ;;  %v12730_v24 = vpop.f32.mrb[87].mxu0 }
0x285c   :  { %v9240_v52 = vpop.permute.xlu0 %9239 }
0x285d   :  { %v9261_v32 = vsel %vm751_vm2, %v8701_v25, %v9240_v52  ;;  %v13080_v25 = vpack.c.bf16 %v565_v57, %v564_v56  ;;  %v11719_v52 = vld [vmem:[#allocation10] ss:$0 sm:$0xff] }
0x285f   :  { %13081 = vmatprep.subr.bf16.mxu1 %v13080_v25 }
0x2860   :  { %v9242_v28 = vpop.permute.xlu1 %9241  ;;  %13083 = vmatpush3.bf16.msra.mxu1 %v13080_v25 }
0x2861   :  { %v9262_v31 = vsel %vm751_vm2, %v8777_v62, %v9242_v28  ;;  %13085 = vmatprep.subr.bf16.mxu1 %v13084_v63 }
0x2864   :  { %v9250_v29 = vpop.permute.xlu1 %9249  ;;  %13087 = vmatpush3.bf16.msra.mxu1 %v13084_v63 }
0x2865   :  { %v9248_v30 = vpop.permute.xlu0 %9247  ;;  %v9264_v33 = vsel %vm2101_vm3, %v9262_v31, %v9250_v29 }
0x2866   :  { %v9263_v35 = vsel %vm2101_vm3, %v9261_v32, %v9248_v30 }
0x2868   :  { %v9258_v34 = vpop.permute.xlu1 %9257 }
0x2869   :  { %v9266_v36 = vsel %vm2104_vm4, %v9264_v33, %v9258_v34  ;;  %v9256_v37 = vpop.permute.xlu0 %9255  ;;  %v11720_v34 = vld [vmem:[#allocation9] ss:$0 sm:$0xff] }
0x286a   :  { %v9265_v38 = vsel %vm2104_vm4, %v9263_v35, %v9256_v37 }
0x286b   :  { %12744 = vmatprep.mubr.msk.f32.mxu0 %vm666_vm0, %v9265_v38 }
0x286c   :  { %12745 = vmatmul.mubr.msk.f32.vlgmr.msra.gmra.mrb[88].mxu0 %vm666_vm0, %v9266_v36 }
0x286d   :  { %12766 = vmatprep.mubr.msk.f32.mxu0 %vm666_vm0, %v15163_v51 }
0x293f   :  { %v12746_v40 = vpop.f32.mrb[88].mxu0 }
0x2940   :  { %v9351_v41 = vadd.f32 %v12746_v40, %v11716_v39  ;;  %v9345_v43 = vpop.f32.mrb[89].mxu0 }
0x2941   :  { %v9346_v44 = vadd.f32 %v11716_v39, %v9345_v43 }
0x2942   :  { %v9355_v53 = vadd.f32 %v9351_v41, %v15402_v50  ;;  %v13276_v50 = vpack.i.bf16 %v565_v57, %v564_v56 }
0x2943   :  { %v9354_v55 = vadd.f32 %v9346_v44, %v15400_v48 }
0x2944   :  { %v9359_v46 = vsel %vm666_vm0, %v9355_v53, 0.0 }
0x2945   :  { %9360 = vadd.xlane.f32.xlu1 %v9359_v46  ;;  %v9356_v47 = vsel %vm666_vm0, %v9354_v55, 0.0 }
0x2946   :  { %9357 = vadd.xlane.f32.xlu0 %v9356_v47 }
0x2956   :  { %13272 = vrot.lane.b32.xlu1 %v13271_v13, %s14117_s6 }
0x295a   :  { %9501 = vrot.lane.b32.xlu1 %v15588_v54, %s14117_s6 }
0x295e   :  { %13277 = vrot.lane.b32.xlu1 %v13276_v50, %s14123_s5 }
0x29d2   :  { %v9361_v48 = vpop.xlane.xlu1 %9360 }
0x29d3   :  { %v9363_v58 = vmul.f32 0.03125, %v9361_v48  ;;  %v9358_v16 = vpop.xlane.xlu0 %9357 }
0x29d4   :  { %v9362_v59 = vmul.f32 0.03125, %v9358_v16 }
0x29d5   :  { %v9365_v45 = vsub.f32 %v9355_v53, %v9363_v58 }
0x29d6   :  { %v9364_v15 = vsub.f32 %v9354_v55, %v9362_v59  ;;  %v13273_v61 = vpop.permute.xlu1 %13272 }
0x29d7   :  { %v9367_v49 = vmul.f32 %v9365_v45, %v9365_v45  ;;  %v13275_v12 = vunpack.i.h.bf16 %v13273_v61  ;;  %v13274_v14 = vunpack.i.l.bf16 %v13273_v61 }
0x29d8   :  { %v9366_v7 = vmul.f32 %v9364_v15, %v9364_v15 }
0x29d9   :  { %v9371_v5 = vsel %vm666_vm0, %v9367_v49, 0.0  ;;  %v13092_v27 = vpack.c.bf16 %v13275_v12, %v13274_v14 }
0x29da   :  { %9372 = vadd.xlane.f32.xlu0 %v9371_v5  ;;  %v9368_v60 = vsel %vm666_vm0, %v9366_v7, 0.0  ;;  %v9502_v23 = vpop.permute.xlu1 %9501 }
0x29de   :  { %9369 = vadd.xlane.f32.xlu0 %v9368_v60  ;;  %v13278_v62 = vpop.permute.xlu1 %13277 }
0x29df   :  { %v13280_v0 = vunpack.i.h.bf16 %v13278_v62  ;;  %v13279_v1 = vunpack.i.l.bf16 %v13278_v62 }
0x29e1   :  { %v13096_v2 = vpack.c.bf16 %v13280_v0, %v13279_v1 }
0x29e3   :  { %13097 = vmatprep.subr.bf16.mxu1 %v13096_v2 }
0x29f4   :  { %13267 = vrot.lane.b32.xlu0 %v13276_v50, %s14117_s6  ;;  %s15927_s6 = sld [smem:[#allocation69_spill]] }
0x29f8   :  { %13282 = vrot.lane.b32.xlu0 %v13271_v13, %s14123_s5 }
0x2a67   :  { %v9373_v19 = vpop.xlane.xlu0 %9372 }
0x2a68   :  { %v9375_v20 = vmul.f32 0.03125, %v9373_v19 }
0x2a6a   :  { %v9377_v4 = vadd.f32 1e-05, %v9375_v20 }
0x2a6b   :  { %v9370_v6 = vpop.xlane.xlu0 %9369 }
0x2a6c   :  { %13474 = vrsqrt.f32 %v9377_v4  ;;  %v9374_v9 = vmul.f32 0.03125, %v9370_v6 }
0x2a6e   :  { %v9376_v10 = vadd.f32 1e-05, %v9374_v9 }
0x2a6f   :  { %v13268_v18 = vpop.permute.xlu0 %13267 }
0x2a70   :  { %13476 = vrsqrt.f32 %v9376_v10  ;;  %v13270_v21 = vunpack.i.h.bf16 %v13268_v18  ;;  %v13269_v22 = vunpack.i.l.bf16 %v13268_v18 }
0x2a72   :  { %v13088_v26 = vpack.c.bf16 %v13270_v21, %v13269_v22 }
0x2a73   :  { %v13283_v28 = vpop.permute.xlu0 %13282 }
0x2a74   :  { %13089 = vmatprep.subr.bf16.mxu0 %v13088_v26  ;;  %v13285_v31 = vunpack.i.h.bf16 %v13283_v28  ;;  %v13284_v32 = vunpack.i.l.bf16 %v13283_v28 }
0x2a75   :  { %13091 = vmatpush3.bf16.msra.mxu0 %v13088_v26 }
0x2a76   :  { %v13475_v17 = vpop.eup %13474  ;;  %13093 = vmatprep.subr.bf16.mxu0 %v13092_v27  ;;  %v13100_v37 = vpack.c.bf16 %v13285_v31, %v13284_v32 }
0x2a77   :  { %v9381_v24 = vmul.f32 %v13475_v17, %v9365_v45 }
0x2a79   :  { %13095 = vmatpush3.bf16.msra.mxu0 %v13092_v27  ;;  %v9389_v33 = vmul.f32 %v11719_v52, %v9381_v24 }
0x2a7a   :  { %v13477_v29 = vpop.eup %13476  ;;  %12780 = vmatprep.subr.mxu0 %v14114_v8 }
0x2a7b   :  { %v9380_v30 = vmul.f32 %v13477_v29, %v9364_v15  ;;  %v15606_v38 = vadd.f32 %v11720_v34, %v9389_v33 }
0x2a7c   :  { %12767 = vmatmul.mubr.msk.f32.vlgmr.msra.gmra.mrb[90].mxu0 %vm666_vm0, %v15193_v3 }
0x2a7d   :  { %v9388_v35 = vmul.f32 %v11719_v52, %v9380_v30  ;;  %12782 = vmatprep.mubr.msk.f32.mxu0 %vm14115_vm1, %v14114_v8 }
0x2a7f   :  { %v15604_v36 = vadd.f32 %v11720_v34, %v9388_v35 }
0x2a81   :  { %12755 = vmatprep.mubr.msk.f32.mxu1 %vm666_vm0, %v15604_v36 }
0x2a82   :  { %12756 = vmatmul.mubr.msk.f32.vlgmr.msra.gmra.mrb[106].mxu1 %vm666_vm0, %v15606_v38 }
0x2a83   :  { %13099 = vmatpush3.bf16.msra.mxu1 %v13096_v2  ;;  %12777 = vmatprep.mubr.msk.f32.mxu1 %vm666_vm0, %v15163_v51 }
0x2a84   :  { %13101 = vmatprep.subr.bf16.mxu1 %v13100_v37 }
0x2a87   :  { %13103 = vmatpush3.bf16.msra.mxu1 %v13100_v37 }
0x2a88   :  { %12785 = vmatprep.subr.mxu1 %v14114_v8 }
0x2a8a   :  { %12778 = vmatmul.mubr.msk.f32.vlgmr.msra.gmra.mrb[108].mxu1 %vm666_vm0, %v15193_v3 }
0x2a8b   :  { %12787 = vmatprep.mubr.msk.f32.mxu1 %vm14115_vm1, %v14114_v8 }
0x2b4f   :  { %v12768_v39 = vpop.f32.mrb[90].mxu0 }
0x2b50   :  { %v9576_v40 = vadd.f32 %v12768_v39, %v9502_v23  ;;  %v9570_v41 = vpop.f32.mrb[91].mxu0 }
0x2b51   :  { %v9571_v43 = vadd.f32 %v9570_v41, %v9502_v23 }
0x2b52   :  { %9903 = vrot.lane.b32.xlu0 %v9576_v40, %s14116_s11  ;;  %12786 = vmatpush3.xpose.msk.msra.mxu1 %vm751_vm2, %v9576_v40 }
0x2b53   :  { %9825 = vrot.lane.b32.xlu1 %v9571_v43, %s14116_s11  ;;  %12781 = vmatpush3.xpose.msk.msra.mxu0 %vm751_vm2, %v9571_v43 }
0x2b54   :  { %12795 = vmatprep.subr.mxu1 %v14114_v8  ;;  %12790 = vmatprep.subr.mxu0 %v14114_v8 }
0x2b55   :  { %v12757_v51 = vpop.f32.mrb[106].mxu1 }
0x2b56   :  { %v9482_v3 = vadd.f32 %v12757_v51, %v15588_v54  ;;  %v9476_v44 = vpop.f32.mrb[107].mxu1  ;;  %10061 = vrot.lane.b32.xlu0 %v9576_v40, %s14120_s18 }
0x2b57   :  { %v9477_v53 = vadd.f32 %v15588_v54, %v9476_v44  ;;  %9983 = vrot.lane.b32.xlu1 %v9571_v43, %s14120_s18 }
0x2b58   :  { %12788 = vmatmul.mubr.msk.f32.vlgmr.msra.gmra.mrb[110].mxu1 %vm751_vm2, %v9482_v3 }
0x2b59   :  { %12783 = vmatmul.mubr.msk.f32.vlgmr.msra.gmra.mrb[92].mxu0 %vm751_vm2, %v9477_v53  ;;  %12797 = vmatprep.mubr.msk.f32.mxu1 %vm14115_vm1, %v14114_v8 }
0x2b5a   :  { %10219 = vrot.lane.b32.xlu0 %v9576_v40, %s14122_s29  ;;  %12792 = vmatprep.mubr.msk.f32.mxu0 %vm14115_vm1, %v14114_v8 }
0x2b5b   :  { %10141 = vrot.lane.b32.xlu1 %v9571_v43, %s14122_s29 }
0x2b5d   :  { %v15637_v55 = vpop.f32.mrb[108].mxu1 }
0x2b5e   :  { %v15639_v46 = vpop.f32.mrb[109].mxu1  ;;  %9901 = vrot.lane.b32.xlu0 %v9482_v3, %s14116_s11 }
0x2b5f   :  { %9823 = vrot.lane.b32.xlu1 %v9477_v53, %s14116_s11 }
0x2b62   :  { %10059 = vrot.lane.b32.xlu0 %v9482_v3, %s14120_s18 }
0x2b63   :  { %9981 = vrot.lane.b32.xlu1 %v9477_v53, %s14120_s18 }
0x2b66   :  { %10217 = vrot.lane.b32.xlu0 %v9482_v3, %s14122_s29 }
0x2b67   :  { %10139 = vrot.lane.b32.xlu1 %v9477_v53, %s14122_s29 }
0x2bc4   :  { %v9904_v47 = vpop.permute.xlu0 %9903 }
0x2bc5   :  { %12796 = vmatpush3.xpose.msk.msra.mxu1 %vm751_vm2, %v9904_v47  ;;  %v9826_v42 = vpop.permute.xlu1 %9825 }
0x2bc6   :  { %12791 = vmatpush3.xpose.msk.msra.mxu0 %vm751_vm2, %v9826_v42  ;;  %12805 = vmatprep.subr.mxu1 %v14114_v8 }
0x2bc7   :  { %12800 = vmatprep.subr.mxu0 %v14114_v8 }
0x2bc8   :  { %v10062_v11 = vpop.permute.xlu0 %10061 }
0x2bc9   :  { %v9984_v13 = vpop.permute.xlu1 %9983 }
0x2bcc   :  { %v10220_v56 = vpop.permute.xlu0 %10219 }
0x2bcd   :  { %v10142_v57 = vpop.permute.xlu1 %10141 }
0x2bd0   :  { %v9902_v50 = vpop.permute.xlu0 %9901 }
0x2bd1   :  { %12798 = vmatmul.mubr.msk.f32.vlgmr.msra.gmra.mrb[112].mxu1 %vm751_vm2, %v9902_v50  ;;  %v9824_v48 = vpop.permute.xlu1 %9823 }
0x2bd2   :  { %12806 = vmatpush3.xpose.msk.msra.mxu1 %vm751_vm2, %v10062_v11  ;;  %12793 = vmatmul.mubr.msk.f32.vlgmr.msra.gmra.mrb[94].mxu0 %vm751_vm2, %v9824_v48 }
0x2bd3   :  { %12801 = vmatpush3.xpose.msk.msra.mxu0 %vm751_vm2, %v9984_v13  ;;  %12807 = vmatprep.mubr.msk.f32.mxu1 %vm14115_vm1, %v14114_v8 }
0x2bd4   :  { %v10060_v58 = vpop.permute.xlu0 %10059  ;;  %12815 = vmatprep.subr.mxu1 %v14114_v8  ;;  %12802 = vmatprep.mubr.msk.f32.mxu0 %vm14115_vm1, %v14114_v8 }
0x2bd5   :  { %12808 = vmatmul.mubr.msk.f32.vlgmr.msra.gmra.mrb[114].mxu1 %vm751_vm2, %v10060_v58  ;;  %v9982_v16 = vpop.permute.xlu1 %9981  ;;  %12810 = vmatprep.subr.mxu0 %v14114_v8 }
0x2bd6   :  { %12816 = vmatpush3.xpose.msk.msra.mxu1 %vm751_vm2, %v10220_v56  ;;  %12803 = vmatmul.mubr.msk.f32.vlgmr.msra.gmra.mrb[96].mxu0 %vm751_vm2, %v9982_v16 }
0x2bd7   :  { %12811 = vmatpush3.xpose.msk.msra.mxu0 %vm751_vm2, %v10142_v57  ;;  %12817 = vmatprep.mubr.msk.f32.mxu1 %vm14115_vm1, %v14114_v8 }
0x2bd8   :  { %v10218_v59 = vpop.permute.xlu0 %10217  ;;  %12812 = vmatprep.mubr.msk.f32.mxu0 %vm14115_vm1, %v14114_v8  ;;  %12820 = vmatprep.subr.mxu0 %v14114_v8 }
0x2bd9   :  { %12818 = vmatmul.mubr.msk.f32.vlgmr.msra.gmra.mrb[116].mxu1 %vm751_vm2, %v10218_v59  ;;  %v10140_v45 = vpop.permute.xlu1 %10139  ;;  %12825 = vmatprep.subr.mxu1 %v14114_v8 }
0x2bda   :  { %12813 = vmatmul.mubr.msk.f32.vlgmr.msra.gmra.mrb[98].mxu0 %vm751_vm2, %v10140_v45  ;;  %12827 = vmatprep.mubr.msk.f32.mxu1 %vm14115_vm1, %v14114_v8 }
0x2bdb   :  { %12822 = vmatprep.mubr.msk.f32.mxu0 %vm14115_vm1, %v14114_v8 }
0x2c2b   :  { %v9817_v15 = vpop.f32.mrb[110].mxu1 }
0x2c2c   :  { %v9822_v49 = vmul.f32 0.35355338, %v9817_v15  ;;  %v9741_v5 = vpop.f32.mrb[92].mxu0  ;;  %v12789_v7 = vpop.f32.mrb[111].mxu1 }
0x2c2d   :  { %v9821_v60 = vmul.f32 0.35355338, %v9741_v5  ;;  %v12784_v61 = vpop.f32.mrb[93].mxu0 }
0x2c2e   :  { %v10309_v25 = vsel %vm751_vm2, %v9822_v49, -inf }
0x2c2f   :  { %10310 = vmax.xlane.f32.xlu0 %v10309_v25  ;;  %v10297_v23 = vsel %vm751_vm2, %v9821_v60, -inf }
0x2c30   :  { %10298 = vmax.xlane.f32.xlu1 %v10297_v23 }
0x2ca4   :  { %v9975_v62 = vpop.f32.mrb[112].mxu1 }
0x2ca5   :  { %v9980_v63 = vmul.f32 0.35355338, %v9975_v62  ;;  %v9897_v0 = vpop.f32.mrb[94].mxu0  ;;  %v12799_v1 = vpop.f32.mrb[113].mxu1 }
0x2ca6   :  { %v12794_v2 = vpop.f32.mrb[95].mxu0  ;;  %v9979_v19 = vmul.f32 0.35355338, %v9897_v0 }
0x2ca7   :  { %v10312_v20 = vsel %vm751_vm2, %v9980_v63, -inf }
0x2ca8   :  { %10313 = vmax.xlane.f32.xlu0 %v10312_v20  ;;  %v10133_v4 = vpop.f32.mrb[114].mxu1  ;;  %v10300_v18 = vsel %vm751_vm2, %v9979_v19, -inf }
0x2ca9   :  { %v10055_v6 = vpop.f32.mrb[96].mxu0  ;;  %v12809_v9 = vpop.f32.mrb[115].mxu1  ;;  %v10138_v14 = vmul.f32 0.35355338, %v10133_v4 }
0x2caa   :  { %v10137_v10 = vmul.f32 0.35355338, %v10055_v6  ;;  %v12804_v12 = vpop.f32.mrb[97].mxu0 }
0x2cab   :  { %v10315_v52 = vsel %vm751_vm2, %v10138_v14, -inf }
0x2cac   :  { %v10291_v21 = vpop.f32.mrb[116].mxu1  ;;  %10301 = vmax.xlane.f32.xlu0 %v10300_v18  ;;  %v10303_v22 = vsel %vm751_vm2, %v10137_v10, -inf }
0x2cad   :  { %v12819_v26 = vpop.f32.mrb[117].mxu1  ;;  %10304 = vmax.xlane.f32.xlu1 %v10303_v22  ;;  %v10213_v27 = vpop.f32.mrb[98].mxu0  ;;  %v15684_v28 = vmul.f32 0.35355338, %v10291_v21 }
0x2cae   :  { %v15682_v17 = vmul.f32 0.35355338, %v10213_v27  ;;  %v12814_v24 = vpop.f32.mrb[99].mxu0 }
0x2caf   :  { %v10318_v30 = vsel %vm751_vm2, %v15684_v28, -inf }
0x2cb0   :  { %10316 = vmax.xlane.f32.xlu0 %v10315_v52  ;;  %v10306_v29 = vsel %vm751_vm2, %v15682_v17, -inf }
0x2cb1   :  { %10307 = vmax.xlane.f32.xlu1 %v10306_v29 }
0x2cb4   :  { %10319 = vmax.xlane.f32.xlu0 %v10318_v30 }
0x2cbc   :  { %v10311_v43 = vpop.xlane.xlu0 %10310 }
0x2cbd   :  { %v10299_v31 = vpop.xlane.xlu1 %10298  ;;  %v10325_v51 = vsub.f32 %v9822_v49, %v10311_v43 }
0x2cbe   :  { %v10321_v53 = vsub.f32 %v9821_v60, %v10299_v31 }
0x2cbf   :  { %v10337_v44 = vmul.f32 1.442695, %v10325_v51 }
0x2cc2   :  { %9591 = vrot.lane.b32.xlu1 %v15588_v54, %s14123_s5  ;;  %s15930_s5 = sld [smem:[#allocation72_spill]] }
0x2d35   :  { %v10314_v3 = vpop.xlane.xlu0 %10313 }
0x2d36   :  { %v10326_v47 = vsub.f32 %v9980_v63, %v10314_v3 }
0x2d38   :  { %v10339_v42 = vmul.f32 1.442695, %v10326_v47 }
0x2d3a   :  { %v10305_v32 = vpop.xlane.xlu1 %10304 }
0x2d3b   :  { %v10323_v33 = vsub.f32 %v10137_v10, %v10305_v32 }
0x2d3d   :  { %v10333_v34 = vmul.f32 1.442695, %v10323_v33 }
0x2d3e   :  { %v10308_v35 = vpop.xlane.xlu1 %10307 }
0x2d3f   :  { %13478 = vpow2.f32 %v10333_v34  ;;  %v10324_v23 = vsub.f32 %v15682_v17, %v10308_v35 }
0x2d40   :  { %13480 = vpow2.f32 %v10337_v44 }
0x2d41   :  { %v10335_v63 = vmul.f32 1.442695, %v10324_v23 }
0x2d42   :  { %v9592_v37 = vpop.permute.xlu1 %9591 }
0x2d43   :  { %v9661_v39 = vadd.f32 %v15639_v46, %v9592_v37  ;;  %v9666_v40 = vadd.f32 %v15637_v55, %v9592_v37  ;;  %v10302_v55 = vpop.xlane.xlu0 %10301  ;;  %v10329_v46 = vmul.f32 1.442695, %v10321_v53 }
0x2d44   :  { %v10322_v11 = vsub.f32 %v9979_v19, %v10302_v55 }
0x2d45   :  { %12826 = vmatpush3.msra.mxu1 %v9666_v40  ;;  %10532 = vrot.lane.b32.xlu0 %v9661_v39, %s14116_s11  ;;  %13482 = vpow2.f32 %v10329_v46 }
0x2d46   :  { %12821 = vmatpush3.msra.mxu0 %v9661_v39  ;;  %12835 = vmatprep.subr.mxu1 %v14114_v8  ;;  %13484 = vpow2.f32 %v10339_v42  ;;  %v10331_v56 = vmul.f32 1.442695, %v10322_v11 }
0x2d47   :  { %12830 = vmatprep.subr.mxu0 %v14114_v8  ;;  %v10317_v13 = vpop.xlane.xlu0 %10316 }
0x2d48   :  { %v10327_v57 = vsub.f32 %v10138_v14, %v10317_v13  ;;  %13486 = vpow2.f32 %v10331_v56 }
0x2d49   :  { %v15698_v54 = vpop.eup %13478 }
0x2d4a   :  { %v10351_v41 = vsel %vm751_vm2, %v15698_v54, 0.0  ;;  %v13481_v50 = vpop.eup %13480  ;;  %v10341_v48 = vmul.f32 1.442695, %v10327_v57 }
0x2d4b   :  { %10352 = vadd.xlane.f32.xlu1 %v10351_v41  ;;  %v10357_v58 = vsel %vm751_vm2, %v13481_v50, 0.0  ;;  %v10320_v61 = vpop.xlane.xlu0 %10319 }
0x2d4c   :  { %13488 = vpow2.f32 %v10341_v48  ;;  %v10328_v25 = vsub.f32 %v15684_v28, %v10320_v61 }
0x2d4e   :  { %v10343_v62 = vmul.f32 1.442695, %v10328_v25 }
0x2d4f   :  { %v13483_v16 = vpop.eup %13482 }
0x2d50   :  { %v10345_v59 = vsel %vm751_vm2, %v13483_v16, 0.0  ;;  %v13485_v45 = vpop.eup %13484  ;;  %13490 = vpow2.f32 %v10343_v62 }
0x2d51   :  { %v10360_v15 = vsel %vm751_vm2, %v13485_v45, 0.0  ;;  %13492 = vpow2.f32 %v10335_v63 }
0x2d52   :  { %v13487_v49 = vpop.eup %13486 }
0x2d53   :  { %v10348_v5 = vsel %vm751_vm2, %v13487_v49, 0.0 }
0x2d56   :  { %v15707_v7 = vpop.eup %13488 }
0x2d57   :  { %v10363_v60 = vsel %vm751_vm2, %v15707_v7, 0.0 }
0x2d5a   :  { %v15716_v0 = vpop.eup %13490 }
0x2d5b   :  { %v10366_v1 = vsel %vm751_vm2, %v15716_v0, 0.0  ;;  %v15720_v2 = vpop.eup %13492 }
0x2d5c   :  { %10609 = vrot.lane.b32.xlu1 %v9666_v40, %s14116_s11  ;;  %v10354_v19 = vsel %vm751_vm2, %v15720_v2, 0.0  ;;  %s15926_s11 = sld [smem:[#allocation73_spill]] }
0x2d62   :  { %v560_v53 = vld [vmem:[%s15926_s11] sm:$0xff]  ;;  %v561_v55 = vld [vmem:[%s15926_s11 + $0x8] sm:$0xff] }
0x2d63   :  { %v13104_v47 = vpack.c.bf16 %v561_v55, %v560_v53 }
0x2d64   :  { %10358 = vadd.xlane.f32.xlu0 %v10357_v58 }
0x2d68   :  { %10346 = vadd.xlane.f32.xlu0 %v10345_v59  ;;  %v563_v59 = vld [vmem:[%s15926_s11 + $0x18] sm:$0xff] }
0x2d6c   :  { %10361 = vadd.xlane.f32.xlu0 %v10360_v15 }
0x2d70   :  { %10349 = vadd.xlane.f32.xlu0 %v10348_v5 }
0x2d74   :  { %10364 = vadd.xlane.f32.xlu0 %v10363_v60 }
0x2d8a   :  { %10685 = vrot.lane.b32.xlu0 %v9661_v39, %s14120_s18 }
0x2d8e   :  { %10761 = vrot.lane.b32.xlu0 %v9666_v40, %s14120_s18  ;;  %s15928_s18 = sld [smem:[#allocation77_spill]] }
0x2d92   :  { %10837 = vrot.lane.b32.xlu0 %v9661_v39, %s14122_s29 }
0x2db1   :  { %10367 = vadd.xlane.f32.xlu0 %v10366_v1 }
0x2db5   :  { %10355 = vadd.xlane.f32.xlu0 %v10354_v19 }
0x2db7   :  { %v10533_v20 = vpop.permute.xlu0 %10532 }
0x2dcb   :  { %10913 = vrot.lane.b32.xlu0 %v9666_v40, %s14122_s29  ;;  %s15929_s29 = sld [smem:[#allocation78_spill]] }
0x2dd8   :  { %v10353_v9 = vpop.xlane.xlu1 %10352 }
0x2ddc   :  { %v10610_v21 = vpop.permute.xlu1 %10609 }
0x2df1   :  { %v10359_v4 = vpop.xlane.xlu0 %10358 }
0x2df2   :  { %13494 = vrcp.f32 %v10359_v4 }
0x2df5   :  { %v10347_v6 = vpop.xlane.xlu0 %10346 }
0x2df6   :  { %13496 = vrcp.f32 %v10347_v6  ;;  %v11752_v6 = vld [vmem:[%s15927_s6] ss:$0 sm:$0xff] }
0x2df9   :  { %v10362_v10 = vpop.xlane.xlu0 %10361 }
0x2dfa   :  { %13498 = vrcp.f32 %v10362_v10 }
0x2dfc   :  { %v13495_v12 = vpop.eup %13494 }
0x2dfd   :  { %v10381_v14 = vmul.f32 %v13495_v12, %v13481_v50  ;;  %v10350_v18 = vpop.xlane.xlu0 %10349 }
0x2dfe   :  { %13500 = vrcp.f32 %v10350_v18 }
0x2dff   :  { %12828 = vmatmul.mubr.msk.f32.vlgmr.msra.gmra.mrb[118].mxu1 %vm751_vm2, %v10381_v14  ;;  %13502 = vrcp.f32 %v10353_v9 }
0x2e00   :  { %v13497_v22 = vpop.eup %13496  ;;  %12836 = vmatpush3.msra.mxu1 %v10610_v21  ;;  %12837 = vmatprep.mubr.msk.f32.mxu1 %vm14115_vm1, %v14114_v8 }
0x2e01   :  { %v10377_v26 = vmul.f32 %v13497_v22, %v13483_v16  ;;  %v10365_v27 = vpop.xlane.xlu0 %10364  ;;  %12845 = vmatprep.subr.mxu1 %v14114_v8  ;;  %v562_v16 = vld [vmem:[%s15926_s11 + $0x10] sm:$0xff] }
0x2e02   :  { %13504 = vrcp.f32 %v10365_v27 }
0x2e03   :  { %12823 = vmatmul.mubr.msk.f32.vlgmr.msra.gmra.mrb[100].mxu0 %vm751_vm2, %v10377_v26 }
0x2e04   :  { %v13499_v17 = vpop.eup %13498  ;;  %12831 = vmatpush3.msra.mxu0 %v10533_v20  ;;  %12832 = vmatprep.mubr.msk.f32.mxu0 %vm14115_vm1, %v14114_v8 }
0x2e05   :  { %v10382_v24 = vmul.f32 %v13499_v17, %v13485_v45  ;;  %v10686_v28 = vpop.permute.xlu0 %10685  ;;  %12840 = vmatprep.subr.mxu0 %v14114_v8  ;;  %v13108_v45 = vpack.c.bf16 %v563_v59, %v562_v16 }
0x2e07   :  { %12838 = vmatmul.mubr.msk.f32.vlgmr.msra.gmra.mrb[120].mxu1 %vm751_vm2, %v10382_v24 }
0x2e08   :  { %v13501_v52 = vpop.eup %13500  ;;  %12847 = vmatprep.mubr.msk.f32.mxu1 %vm14115_vm1, %v14114_v8 }
0x2e09   :  { %v10378_v29 = vmul.f32 %v13501_v52, %v13487_v49  ;;  %v10762_v30 = vpop.permute.xlu0 %10761  ;;  %v13503_v31 = vpop.eup %13502 }
0x2e0a   :  { %12846 = vmatpush3.msra.mxu1 %v10762_v30  ;;  %v10379_v33 = vmul.f32 %v13503_v31, %v15698_v54 }
0x2e0b   :  { %12833 = vmatmul.mubr.msk.f32.vlgmr.msra.gmra.mrb[102].mxu0 %vm751_vm2, %v10378_v29  ;;  %12855 = vmatprep.subr.mxu1 %v14114_v8 }
0x2e0c   :  { %v13505_v32 = vpop.eup %13504  ;;  %12841 = vmatpush3.msra.mxu0 %v10686_v28  ;;  %12842 = vmatprep.mubr.msk.f32.mxu0 %vm14115_vm1, %v14114_v8 }
0x2e0d   :  { %v10383_v34 = vmul.f32 %v13505_v32, %v15707_v7  ;;  %v10838_v35 = vpop.permute.xlu0 %10837  ;;  %12850 = vmatprep.subr.mxu0 %v14114_v8  ;;  %v572_v32 = vld [vmem:[%s15928_s18] sm:$0xff] }
0x2e0f   :  { %12843 = vmatmul.mubr.msk.f32.vlgmr.msra.gmra.mrb[104].mxu0 %vm751_vm2, %v10379_v33  ;;  %12848 = vmatmul.mubr.msk.f32.vlgmr.msra.gmra.mrb[122].mxu1 %vm751_vm2, %v10383_v34  ;;  %v573_v33 = vld [vmem:[%s15928_s18 + $0x8] sm:$0xff] }
0x2e10   :  { %12851 = vmatpush3.msra.mxu0 %v10838_v35  ;;  %12857 = vmatprep.mubr.msk.f32.mxu1 %vm14115_vm1, %v14114_v8  ;;  %v13112_v34 = vpack.c.bf16 %v573_v33, %v572_v32  ;;  %v574_v35 = vld [vmem:[%s15928_s18 + $0x10] sm:$0xff]  ;;  %v655_v32 = vld [vmem:[%s14453_s8 + $0x18] sm:$0xff] }
0x2e11   :  { %12852 = vmatprep.mubr.msk.f32.mxu0 %vm14115_vm1, %v14114_v8  ;;  %13105 = vmatprep.subr.bf16.mxu0 %v13104_v47 }
0x2e3e   :  { %v10368_v37 = vpop.xlane.xlu0 %10367 }
0x2e3f   :  { %13506 = vrcp.f32 %v10368_v37  ;;  %v575_v37 = vld [vmem:[%s15928_s18 + $0x18] sm:$0xff] }
0x2e42   :  { %v10356_v39 = vpop.xlane.xlu0 %10355 }
0x2e43   :  { %13508 = vrcp.f32 %v10356_v39  ;;  %v13116_v39 = vpack.c.bf16 %v575_v37, %v574_v35 }
0x2e46   :  { %v10914_v40 = vpop.permute.xlu0 %10913 }
0x2e47   :  { %12856 = vmatpush3.msra.mxu1 %v10914_v40  ;;  %v576_v40 = vld [vmem:[%s15929_s29] sm:$0xff] }
0x2e48   :  { %13113 = vmatprep.subr.bf16.mxu1 %v13112_v34 }
0x2e49   :  { %v13507_v54 = vpop.eup %13506 }
0x2e4a   :  { %v10384_v41 = vmul.f32 %v13507_v54, %v15716_v0  ;;  %v577_v54 = vld [vmem:[%s15929_s29 + $0x8] sm:$0xff] }
0x2e4c   :  { %12858 = vmatmul.mubr.msk.f32.vlgmr.msra.gmra.mrb[124].mxu1 %vm751_vm2, %v10384_v41  ;;  %v578_v41 = vld [vmem:[%s15929_s29 + $0x10] sm:$0xff] }
0x2e4d   :  { %v13509_v43 = vpop.eup %13508  ;;  %13115 = vmatpush3.bf16.msra.mxu1 %v13112_v34 }
0x2e4e   :  { %v10380_v51 = vmul.f32 %v13509_v43, %v15720_v2  ;;  %13117 = vmatprep.subr.bf16.mxu1 %v13116_v39  ;;  %v13120_v43 = vpack.c.bf16 %v577_v54, %v576_v40 }
0x2e50   :  { %12853 = vmatmul.mubr.msk.f32.vlgmr.msra.gmra.mrb[106].mxu0 %vm751_vm2, %v10380_v51  ;;  %v579_v51 = vld [vmem:[%s15929_s29 + $0x18] sm:$0xff] }
0x2e51   :  { %13107 = vmatpush3.bf16.msra.mxu0 %v13104_v47  ;;  %13119 = vmatpush3.bf16.msra.mxu1 %v13116_v39 }
0x2e52   :  { %13109 = vmatprep.subr.bf16.mxu0 %v13108_v45 }
0x2e55   :  { %13111 = vmatpush3.bf16.msra.mxu0 %v13108_v45 }
0x2e56   :  { %13121 = vmatprep.subr.bf16.mxu0 %v13120_v43 }
0x2ed2   :  { %v10527_v3 = vpop.f32.mrb[118].mxu1 }
0x2ed3   :  { %v12829_v8 = vpop.f32.mrb[119].mxu1 }
0x2ed4   :  { %v580_v8 = vld [vmem:[%s15929_s29 + $0x20] sm:$0xff] }
0x2ed6   :  { %v10454_v44 = vpop.f32.mrb[100].mxu0 }
0x2ed7   :  { %v12824_v46 = vpop.f32.mrb[101].mxu0 }
0x2eda   :  { %v10681_v42 = vpop.f32.mrb[120].mxu1 }
0x2edb   :  { %10993 = vrot.lane.b32.xlu1 %v10681_v42, %s14127_s24  ;;  %v12839_v11 = vpop.f32.mrb[121].mxu1 }
0x2ede   :  { %v10604_v13 = vpop.f32.mrb[102].mxu0 }
0x2edf   :  { %10991 = vrot.lane.b32.xlu0 %v10604_v13, %s14127_s24  ;;  %v12834_v56 = vpop.f32.mrb[103].mxu0 }
0x2ee2   :  { %v10757_v57 = vpop.f32.mrb[104].mxu0  ;;  %v10833_v50 = vpop.f32.mrb[122].mxu1 }
0x2ee3   :  { %11001 = vrot.lane.b32.xlu1 %v10833_v50, %s14128_s26  ;;  %v12849_v48 = vpop.f32.mrb[123].mxu1  ;;  %10999 = vrot.lane.b32.xlu0 %v10757_v57, %s14128_s26  ;;  %v12844_v58 = vpop.f32.mrb[105].mxu0  ;;  %v11755_v57 = vld [vmem:[%s15930_s5] ss:$0 sm:$0xff] }
0x2ee4   :  { %v11756_v48 = vld [vmem:[%s15931_s21] ss:$0 sm:$0xff] }
0x2f1f   :  { %v10985_v15 = vpop.f32.mrb[124].mxu1 }
0x2f20   :  { %11009 = vrot.lane.b32.xlu1 %v10985_v15, %s14129_s4  ;;  %v12859_v49 = vpop.f32.mrb[125].mxu1 }
0x2f23   :  { %v10909_v5 = vpop.f32.mrb[106].mxu0 }
0x2f24   :  { %11007 = vrot.lane.b32.xlu0 %v10909_v5, %s14129_s4  ;;  %v12854_v7 = vpop.f32.mrb[107].mxu0  ;;  %v582_v5 = vld [vmem:[%s15929_s29 + $0x30] sm:$0xff] }
0x2f25   :  { %v583_v7 = vld [vmem:[%s15929_s29 + $0x38] sm:$0xff] }
0x2f4d   :  { %v10994_v61 = vpop.permute.xlu1 %10993 }
0x2f4e   :  { %v11014_v0 = vsel %vm751_vm2, %v10527_v3, %v10994_v61  ;;  %v13124_v3 = vpack.c.bf16 %v579_v51, %v578_v41  ;;  %v11757_v61 = vld [vmem:[%s15932_s25] ss:$0 sm:$0xff] }
0x2f51   :  { %v10992_v60 = vpop.permute.xlu0 %10991 }
0x2f52   :  { %v11013_v62 = vsel %vm751_vm2, %v10454_v44, %v10992_v60  ;;  %v581_v44 = vld [vmem:[%s15929_s29 + $0x28] sm:$0xff]  ;;  %v13132_v60 = vpack.c.bf16 %v583_v7, %v582_v5 }
0x2f53   :  { %v13128_v53 = vpack.c.bf16 %v581_v44, %v580_v8  ;;  %v11764_v44 = vld [vmem:[#allocation2] ss:$0 sm:$0xff] }
0x2f55   :  { %v11002_v25 = vpop.permute.xlu1 %11001  ;;  %v11000_v23 = vpop.permute.xlu0 %10999 }
0x2f56   :  { %v11015_v1 = vsel %vm2101_vm3, %v11013_v62, %v11000_v23  ;;  %v11016_v19 = vsel %vm2101_vm3, %v11014_v0, %v11002_v25 }
0x2f92   :  { %v11010_v63 = vpop.permute.xlu1 %11009 }
0x2f93   :  { %v11018_v4 = vsel %vm2104_vm4, %v11016_v19, %v11010_v63 }
0x2f96   :  { %v11008_v2 = vpop.permute.xlu0 %11007 }
0x2f97   :  { %v11017_v20 = vsel %vm2104_vm4, %v11015_v1, %v11008_v2  ;;  %v11760_v2 = vld [vmem:[%s15933_s23] ss:$0 sm:$0xff] }
0x2f98   :  { %12868 = vmatprep.mubr.msk.f32.mxu0 %vm666_vm0, %v11017_v20 }
0x2f99   :  { %12869 = vmatmul.mubr.msk.f32.vlgmr.msra.gmra.mrb[108].mxu0 %vm666_vm0, %v11018_v4 }
0x2f9a   :  { %13123 = vmatpush3.bf16.msra.mxu0 %v13120_v43  ;;  %v11763_v43 = vld [vmem:[#allocation4] ss:$0 sm:$0xff] }
0x2f9b   :  { %13125 = vmatprep.subr.bf16.mxu0 %v13124_v3 }
0x2f9e   :  { %13127 = vmatpush3.bf16.msra.mxu0 %v13124_v3 }
0x2f9f   :  { %13129 = vmatprep.subr.bf16.mxu0 %v13128_v53 }
0x2fa2   :  { %13131 = vmatpush3.bf16.msra.mxu0 %v13128_v53 }
0x2fa3   :  { %13133 = vmatprep.subr.bf16.mxu0 %v13132_v60 }
0x2fa6   :  { %13135 = vmatpush3.bf16.msra.mxu0 %v13132_v60 }
0x306c   :  { %v12870_v9 = vpop.f32.mrb[108].mxu0 }
0x306d   :  { %v11103_v10 = vadd.f32 %v12870_v9, %v11752_v6  ;;  %v11097_v12 = vpop.f32.mrb[109].mxu0 }
0x306e   :  { %v11098_v14 = vadd.f32 %v11752_v6, %v11097_v12 }
0x306f   :  { %v11107_v18 = vadd.f32 %v11103_v10, %v15606_v38 }
0x3070   :  { %v11106_v21 = vadd.f32 %v11098_v14, %v15604_v36 }
0x3071   :  { %v11111_v22 = vsel %vm666_vm0, %v11107_v18, 0.0 }
0x3072   :  { %11112 = vadd.xlane.f32.xlu1 %v11111_v22  ;;  %v11108_v26 = vsel %vm666_vm0, %v11106_v21, 0.0 }
0x3073   :  { %11109 = vadd.xlane.f32.xlu0 %v11108_v26 }
0x30ff   :  { %v11113_v27 = vpop.xlane.xlu1 %11112 }
0x3100   :  { %v11115_v17 = vmul.f32 0.03125, %v11113_v27  ;;  %v11110_v24 = vpop.xlane.xlu0 %11109 }
0x3101   :  { %v11114_v28 = vmul.f32 0.03125, %v11110_v24 }
0x3102   :  { %v11117_v52 = vsub.f32 %v11107_v18, %v11115_v17 }
0x3103   :  { %v11116_v29 = vsub.f32 %v11106_v21, %v11114_v28 }
0x3104   :  { %v11119_v38 = vmul.f32 %v11117_v52, %v11117_v52 }
0x3105   :  { %v11118_v30 = vmul.f32 %v11116_v29, %v11116_v29 }
0x3106   :  { %v11123_v31 = vsel %vm666_vm0, %v11119_v38, 0.0 }
0x3107   :  { %v11120_v36 = vsel %vm666_vm0, %v11118_v30, 0.0  ;;  %v652_v30 = vld [vmem:[%s14453_s8] sm:$0xff] }
0x3108   :  { %11121 = vadd.xlane.f32.xlu0 %v11120_v36  ;;  %v653_v36 = vld [vmem:[%s14453_s8 + $0x8] sm:$0xff] }
0x3109   :  { %v13136_v38 = vpack.c.bf16 %v653_v36, %v652_v30 }
0x310b   :  { %13137 = vmatprep.subr.bf16.mxu1 %v13136_v38 }
0x310c   :  { %11124 = vadd.xlane.f32.xlu0 %v11123_v31  ;;  %v654_v31 = vld [vmem:[%s14453_s8 + $0x10] sm:$0xff] }
0x310d   :  { %v13140_v33 = vpack.c.bf16 %v655_v32, %v654_v31 }
0x3195   :  { %v11122_v55 = vpop.xlane.xlu0 %11121 }
0x3196   :  { %v11126_v46 = vmul.f32 0.03125, %v11122_v55 }
0x3198   :  { %v11128_v47 = vadd.f32 1e-05, %v11126_v46 }
0x3199   :  { %v11125_v42 = vpop.xlane.xlu0 %11124 }
0x319a   :  { %13510 = vrsqrt.f32 %v11128_v47  ;;  %v11127_v11 = vmul.f32 0.03125, %v11125_v42 }
0x319c   :  { %v11129_v13 = vadd.f32 1e-05, %v11127_v11 }
0x319e   :  { %13512 = vrsqrt.f32 %v11129_v13 }
0x31a4   :  { %v13511_v56 = vpop.eup %13510 }
0x31a5   :  { %v11132_v50 = vmul.f32 %v13511_v56, %v11116_v29 }
0x31a7   :  { %v11140_v58 = vmul.f32 %v11755_v57, %v11132_v50 }
0x31a8   :  { %v13513_v16 = vpop.eup %13512 }
0x31a9   :  { %v11133_v59 = vmul.f32 %v13513_v16, %v11117_v52  ;;  %v11148_v45 = vadd.f32 %v11756_v48, %v11140_v58 }
0x31ab   :  { %v11141_v15 = vmul.f32 %v11755_v57, %v11133_v59  ;;  %12879 = vmatprep.mubr.msk.f32.mxu1 %vm666_vm0, %v11148_v45 }
0x31ad   :  { %v11149_v49 = vadd.f32 %v11756_v48, %v11141_v15 }
0x31af   :  { %12880 = vmatmul.mubr.msk.f32.vlgmr.msra.gmra.mrb[126].mxu1 %vm666_vm0, %v11149_v49 }
0x31b0   :  { %13139 = vmatpush3.bf16.msra.mxu1 %v13136_v38 }
0x31b1   :  { %13141 = vmatprep.subr.bf16.mxu1 %v13140_v33 }
0x31b4   :  { %13143 = vmatpush3.bf16.msra.mxu1 %v13140_v33 }
0x3282   :  { %v12881_v25 = vpop.f32.mrb[126].mxu1 }
0x3283   :  { %v11234_v23 = vadd.f32 %v12881_v25, %v11757_v61  ;;  %v11228_v62 = vpop.f32.mrb[127].mxu1 }
0x3284   :  { %v11229_v63 = vadd.f32 %v11757_v61, %v11228_v62 }
0x3285   :  { %v11238_v1 = vmax.f32 %v11234_v23, 0.0 }
0x3286   :  { %v11237_v0 = vmax.f32 %v11229_v63, 0.0 }
0x3288   :  { %12898 = vmatprep.mubr.msk.f32.mxu0 %vm2334_vm5, %v11237_v0 }
0x3289   :  { %12899 = vmatmul.mubr.msk.f32.vlgmr.msra.gmra.mrb[110].mxu0 %vm2334_vm5, %v11238_v1 }
0x335c   :  { %v12900_v19 = vpop.f32.mrb[110].mxu0 }
0x335d   :  { %v11323_v20 = vadd.f32 %v12900_v19, %v11760_v2  ;;  %v11317_v4 = vpop.f32.mrb[111].mxu0 }
0x335e   :  { %v11318_v6 = vadd.f32 %v11760_v2, %v11317_v4 }
0x335f   :  { %v11327_v9 = vadd.f32 %v11323_v20, %v11149_v49 }
0x3360   :  { %v11326_v10 = vadd.f32 %v11318_v6, %v11148_v45 }
0x3361   :  { %v11331_v12 = vsel %vm666_vm0, %v11327_v9, 0.0 }
0x3362   :  { %11332 = vadd.xlane.f32.xlu0 %v11331_v12  ;;  %v11328_v14 = vsel %vm666_vm0, %v11326_v10, 0.0 }
0x3363   :  { %11329 = vadd.xlane.f32.xlu1 %v11328_v14 }
0x33ef   :  { %v11333_v18 = vpop.xlane.xlu0 %11332 }
0x33f0   :  { %v11335_v21 = vmul.f32 0.03125, %v11333_v18  ;;  %v11330_v22 = vpop.xlane.xlu1 %11329 }
0x33f1   :  { %v11334_v26 = vmul.f32 0.03125, %v11330_v22 }
0x33f2   :  { %v11337_v27 = vsub.f32 %v11327_v9, %v11335_v21 }
0x33f3   :  { %v11336_v17 = vsub.f32 %v11326_v10, %v11334_v26 }
0x33f4   :  { %v11339_v24 = vmul.f32 %v11337_v27, %v11337_v27 }
0x33f5   :  { %v11338_v28 = vmul.f32 %v11336_v17, %v11336_v17 }
0x33f6   :  { %v11343_v52 = vsel %vm666_vm0, %v11339_v24, 0.0 }
0x33f7   :  { %11344 = vadd.xlane.f32.xlu0 %v11343_v52  ;;  %v11340_v29 = vsel %vm666_vm0, %v11338_v28, 0.0 }
0x33f8   :  { %11341 = vadd.xlane.f32.xlu1 %v11340_v29 }
0x3484   :  { %v11345_v34 = vpop.xlane.xlu0 %11344 }
0x3485   :  { %v11347_v35 = vmul.f32 0.03125, %v11345_v34  ;;  %v11342_v37 = vpop.xlane.xlu1 %11341 }
0x3486   :  { %v11346_v39 = vmul.f32 0.03125, %v11342_v37 }
0x3487   :  { %v11349_v40 = vadd.f32 1e-05, %v11347_v35 }
0x3488   :  { %v11348_v54 = vadd.f32 1e-05, %v11346_v39 }
0x3489   :  { %13514 = vrsqrt.f32 %v11349_v40 }
0x348a   :  { %13516 = vrsqrt.f32 %v11348_v54 }
0x3493   :  { %v13515_v41 = vpop.eup %13514 }
0x3494   :  { %v13517_v51 = vpop.eup %13516  ;;  %v11353_v3 = vmul.f32 %v13515_v41, %v11337_v27 }
0x3495   :  { %v11352_v8 = vmul.f32 %v13517_v51, %v11336_v17 }
0x3496   :  { %v11361_v53 = vmul.f32 %v11763_v43, %v11353_v3 }
0x3497   :  { %v11360_v55 = vmul.f32 %v11763_v43, %v11352_v8 }
0x3498   :  { %v11369_v47 = vadd.f32 %v11764_v44, %v11361_v53 }
0x3499   :  { %v11368_v46 = vadd.f32 %v11764_v44, %v11360_v55 }
0x349b   :  { %12909 = vmatprep.mubr.msk.f32.mxu1 %vm666_vm0, %v11368_v46 }
0x349c   :  { %12910 = vmatmul.mubr.msk.f32.vlgmr.msra.gmra.mrb[128].mxu1 %vm666_vm0, %v11369_v47 }
0x356f   :  { %v12911_v42 = vpop.f32.mrb[128].mxu1 }
0x3570   :  { %11452 = vst [vmem:[%s14458_s27 + $0x8] sm:$0xff] %v12911_v42  ;;  %v11442_v11 = vpop.f32.mrb[129].mxu1 }
0x3571   :  { %11451 = vst [vmem:[%s14458_s27] sm:$0xff] %v11442_v11 }
0x3572   :  { %11457 = vsyncpa [#allocation3], 1 }
0x3573   :  { %11458 = vsyncpa [#allocation5], 1 }
0x3574   :  { %11459 = vsyncpa [#allocation8], 1 }
0x3575   :  { %11460 = vsyncpa [#allocation11], 1 }
0x3576   :  { %11461 = vsyncpa [#allocation14], 1 }
0x3577   :  { %11462 = vsyncpa [#allocation17], 1 }
0x3578   :  { %11463 = vsyncpa [#allocation20], 1 }
0x3579   :  { %11464 = vsyncpa [#allocation23], 1 }
0x357a   :  { %11465 = vsyncpa [#allocation26], 1 }
0x357b   :  { %11466 = vsyncpa [#allocation29], 1 }
0x357c   :  { %11467 = vsyncpa [#allocation32], 1 }
0x357d   :  { %11468 = vsyncpa [#allocation35], 1 }

</bundles_post_ra>
